<compile_context>
chip_gen: v6e
topology: v6e:2x2x1
jax: 0.10.0
libtpu: 0.0.40
codegen_flags: <defaults>
</compile_context>

<pallas_src>
import functools

import jax
import jax.numpy as jnp
from jax import lax
from jax.experimental import pallas as pl
from jax.experimental.pallas import tpu as pltpu


# ----------------------------------------------------------------------------
# Kernels
# ----------------------------------------------------------------------------
def _conv_row(x_ref, w_ref, row, *, ow, kh, kw):
    """f32 (OW, OC_pad) conv output for one output row.

    x_ref: (HP, WP, C)       bf16 padded image (whole image, VMEM-resident)
    w_ref: (KH*KW, C, OC_pad) bf16 per-tap weights
    row:   absolute output-row index (== top input row of its window).
    Conv = sum over the KH*KW taps of a (OW, C) @ (C, OC_pad) MXU matmul.
    """
    ocp = w_ref.shape[-1]
    acc = jnp.zeros((ow, ocp), jnp.float32)
    for ki in range(kh):
        line = x_ref[row + ki]                     # (WP, C) bf16, dynamic row
        for kj in range(kw):
            acc = acc + jnp.dot(line[kj:kj + ow, :], w_ref[ki * kw + kj],
                                preferred_element_type=jnp.float32)
    return acc


def _stats_kernel(x_ref, w_ref, sum_ref, sq_ref, *, toh, ow, kh, kw):
    """Pass 1: accumulate global per-channel sum and sum-of-squares."""
    @pl.when((pl.program_id(0) == 0) & (pl.program_id(1) == 0))
    def _init():
        sum_ref[...] = jnp.zeros_like(sum_ref)
        sq_ref[...] = jnp.zeros_like(sq_ref)

    oh0 = pl.program_id(1) * toh
    ocp = w_ref.shape[-1]
    s = jnp.zeros((1, ocp), jnp.float32)
    q = jnp.zeros((1, ocp), jnp.float32)
    for r in range(toh):
        conv = _conv_row(x_ref, w_ref, oh0 + r, ow=ow, kh=kh, kw=kw)
        s = s + jnp.sum(conv, axis=0, keepdims=True)
        q = q + jnp.sum(conv * conv, axis=0, keepdims=True)
    sum_ref[...] += s
    sq_ref[...] += q


def _apply_kernel(x_ref, w_ref, ab_ref, o_ref, *, toh, ow, kh, kw):
    """Pass 2: recompute conv, apply folded BN (y = conv*a + b) and ReLU."""
    oh0 = pl.program_id(1) * toh
    ab = ab_ref[...]                      # (2, OC_pad) f32
    a = ab[0:1, :]
    b = ab[1:2, :]
    for r in range(toh):
        conv = _conv_row(x_ref, w_ref, oh0 + r, ow=ow, kh=kh, kw=kw)
        o_ref[r] = jnp.maximum(conv * a + b, 0.0).astype(o_ref.dtype)


# ----------------------------------------------------------------------------
# Wrapper
# ----------------------------------------------------------------------------
def _choose_block_rows(oh, ow, target_rows):
    """Largest divisor of OH with toh*OW <= target_rows (>= 1, capped at 32)."""
    toh = max(1, min(oh, max(1, target_rows // max(ow, 1))))
    toh = min(toh, 32)                    # bound trace-time unrolling
    while oh % toh:
        toh -= 1
    return toh


def basic_conv(x, weight, gamma, beta, *, stride=1, padding=0,
               tile_rows=512, eps=1e-5):
    """Fused Conv2d(bias=False) + BatchNorm2d(train-mode stats) + ReLU.

    x:      (N, C, H, W)    float32 NCHW
    weight: (OC, C, KH, KW) float32 (PyTorch conv weight layout)
    gamma, beta: (OC,)      float32 BN affine parameters
    returns (N, OC, OH, OW) float32
    """
    n, c, h, w = x.shape
    oc, cin, kh, kw = weight.shape
    assert cin == c
    # TODO(synk): stride>1 / dilation>1 / groups>1 need strided in-kernel
    # windows; only the module-default stride=1, dilation=1, groups=1 path
    # is fused here.
    assert stride == 1, "only stride=1 is supported by this Pallas kernel"

    oh = h + 2 * padding - kh + 1
    ow = w + 2 * padding - kw + 1
    hp = h + 2 * padding
    wp = w + 2 * padding
    ocp = ((oc + 127) // 128) * 128       # lane-dense output channels

    # NCHW -> NHWC, spatial zero-pad, bf16 for the MXU (halves HBM bytes).
    xp = jnp.transpose(x, (0, 2, 3, 1))
    xp = jnp.pad(xp, ((0, 0), (padding, padding), (padding, padding), (0, 0)))
    xp = xp.astype(jnp.bfloat16)

    # (OC, C, KH, KW) -> per-tap (KH*KW, C, OC_pad) bf16.
    # (Could be pre-packed once per module instead of per call.)
    w_taps = jnp.transpose(weight, (2, 3, 1, 0)).reshape(kh * kw, c, oc)
    w_taps = jnp.pad(w_taps, ((0, 0), (0, 0), (0, ocp - oc))).astype(jnp.bfloat16)

    # Padded channels get gamma=0 so a=0, b=0 -> output 0 (sliced off later).
    gamma_p = jnp.pad(gamma.astype(jnp.float32), (0, ocp - oc)).reshape(1, ocp)
    beta_p = jnp.pad(beta.astype(jnp.float32), (0, ocp - oc)).reshape(1, ocp)

    toh = _choose_block_rows(oh, ow, tile_rows)   # output rows per grid step
    n_h = oh // toh                               # row blocks per image
    m_total = n * oh * ow                         # true row count for BN

    x_spec = pl.BlockSpec((None, hp, wp, c), lambda ni, hi: (ni, 0, 0, 0))
    w_spec = pl.BlockSpec((kh * kw, c, ocp), lambda ni, hi: (0, 0, 0))

    flops = 2 * m_total * (c * kh * kw) * ocp
    in_bytes = xp.size * 2 + w_taps.size * 2
    vmem_limit = 32 * 1024 * 1024                 # explicit budget (v7x-safe)

    # ---- pass 1: global per-channel sum / sum-of-squares -------------------
    sums, sqs = pl.pallas_call(
        functools.partial(_stats_kernel, toh=toh, ow=ow, kh=kh, kw=kw),
        grid=(n, n_h),
        in_specs=[x_spec, w_spec],
        out_specs=(pl.BlockSpec((1, ocp), lambda ni, hi: (0, 0)),
                   pl.BlockSpec((1, ocp), lambda ni, hi: (0, 0))),
        out_shape=(jax.ShapeDtypeStruct((1, ocp), jnp.float32),
                   jax.ShapeDtypeStruct((1, ocp), jnp.float32)),
        compiler_params=pltpu.CompilerParams(
            dimension_semantics=("arbitrary", "arbitrary"),
            vmem_limit_bytes=vmem_limit),
        cost_estimate=pl.CostEstimate(
            flops=flops, transcendentals=0,
            bytes_accessed=in_bytes + 2 * ocp * 4),
    )(xp, w_taps)

    # ---- fold BN into one scale/shift per channel (tiny, done in XLA) ------
    mean = sums / m_total
    var = jnp.maximum(sqs / m_total - mean * mean, 0.0)
    a = gamma_p * lax.rsqrt(var + eps)
    b = beta_p - mean * a
    ab = jnp.concatenate([a, b], axis=0)          # (2, OC_pad) f32

    # ---- pass 2: conv (recomputed) + folded BN + ReLU, lane-dense output ---
    out4d = pl.pallas_call(
        functools.partial(_apply_kernel, toh=toh, ow=ow, kh=kh, kw=kw),
        grid=(n, n_h),
        in_specs=[x_spec, w_spec,
                  pl.BlockSpec((2, ocp), lambda ni, hi: (0, 0))],
        out_specs=pl.BlockSpec((None, toh, ow, ocp),
                               lambda ni, hi: (ni, hi, 0, 0)),
        out_shape=jax.ShapeDtypeStruct((n, oh, ow, ocp), jnp.float32),
        compiler_params=pltpu.CompilerParams(
            dimension_semantics=("parallel", "parallel"),
            vmem_limit_bytes=vmem_limit),
        cost_estimate=pl.CostEstimate(
            flops=flops, transcendentals=0,
            bytes_accessed=in_bytes + 2 * ocp * 4 + m_total * ocp * 4),
    )(xp, w_taps, ab)

    # Drop the channel pad; back to NCHW to match the PyTorch module contract.
    out = jnp.transpose(out4d[..., :oc], (0, 3, 1, 2))
    return out


# ----------------------------------------------------------------------------
# Pure-JAX reference (conv + train-mode BN + ReLU) for validation
# ----------------------------------------------------------------------------
def _reference(x, weight, gamma, beta, *, stride=1, padding=0, eps=1e-5):
    conv = lax.conv_general_dilated(
        x, weight, window_strides=(stride, stride),
        padding=[(padding, padding), (padding, padding)],
        dimension_numbers=("NCHW", "OIHW", "NCHW"))
    mean = jnp.mean(conv, axis=(0, 2, 3), keepdims=True)
    var = jnp.mean((conv - mean) ** 2, axis=(0, 2, 3), keepdims=True)
    y = (conv - mean) * lax.rsqrt(var + eps)
    y = y * gamma.reshape(1, -1, 1, 1) + beta.reshape(1, -1, 1, 1)
    return jnp.maximum(y, 0.0)


if __name__ == "__main__":
    # BasicConv(in_planes=4, out_planes=8, kernel_size=3, stride=1, padding=1)
    key = jax.random.PRNGKey(0)
    kx, kw_, kg, kb = jax.random.split(key, 4)

    N, C, H, W = 2, 4, 16, 16
    OC, KH, KW = 8, 3, 3
    stride, padding = 1, 1

    x = jax.random.normal(kx, (N, C, H, W), dtype=jnp.float32)
    weight = 0.1 * jax.random.normal(kw_, (OC, C, KH, KW), dtype=jnp.float32)
    gamma = 1.0 + 0.1 * jax.random.normal(kg, (OC,), dtype=jnp.float32)
    beta = 0.1 * jax.random.normal(kb, (OC,), dtype=jnp.float32)

    # tile_rows=128 forces multiple row blocks even at this toy shape so the
    # cross-tile BN-stats accumulator path is exercised (default is 512).
    fn = jax.jit(functools.partial(basic_conv, stride=stride, padding=padding,
                                   tile_rows=128))
    out = jax.block_until_ready(fn(x, weight, gamma, beta))

    ref = _reference(x, weight, gamma, beta, stride=stride, padding=padding)
    assert out.shape == (N, OC, H, W)
    max_err = float(jnp.max(jnp.abs(out - ref)))
    # bf16 matmul operands -> slightly looser tolerance than pure f32.
    assert jnp.allclose(out, ref, atol=3e-2, rtol=3e-2), \
        f"mismatch vs reference (max abs err {max_err})"

    print("KERNEL_OK")
</pallas_src>

<mosaic_0001>
module attributes {stable_mosaic.version = 11 : i64} {
  func.func @_stats_kernel(%arg0: i32, %arg1: i32, %arg2: memref<1x18x18x4xbf16, #tpu.memory_space<vmem>>, %arg3: memref<9x4x128xbf16, #tpu.memory_space<vmem>>, %arg4: memref<1x128xf32, #tpu.memory_space<vmem>>, %arg5: memref<1x128xf32, #tpu.memory_space<vmem>>) attributes {dimension_semantics = [#tpu.dimension_semantics<arbitrary>, #tpu.dimension_semantics<arbitrary>], iteration_bounds = array<i64: 2, 2>, scalar_prefetch = 0 : i64, scratch_operands = 0 : i64, tpu.core_type = #tpu.core_type<tc>, window_params = [{transform_indices = @transform_0, window_bounds = array<i64: 1, 18, 18, 4>}, {pipeline_mode = #tpu.pipeline_mode<synchronous>, transform_indices = @transform_1, window_bounds = array<i64: 9, 4, 128>}, {pipeline_mode = #tpu.pipeline_mode<synchronous>, transform_indices = @transform_2, window_bounds = array<i64: 1, 128>}, {pipeline_mode = #tpu.pipeline_mode<synchronous>, transform_indices = @transform_3, window_bounds = array<i64: 1, 128>}]} {
    %c0_i32 = arith.constant 0 : i32
    %0 = arith.cmpi eq, %arg0, %c0_i32 : i32
    %c0_i32_0 = arith.constant 0 : i32
    %1 = arith.cmpi eq, %arg1, %c0_i32_0 : i32
    %2 = arith.andi %0, %1 : i1
    %3 = arith.extui %2 : i1 to i32
    %c0_i32_1 = arith.constant 0 : i32
    %4 = arith.cmpi ne, %3, %c0_i32_1 : i32
    scf.if %4 {
      %cst_411 = arith.constant 0.000000e+00 : f32
      %542 = vector.broadcast %cst_411 : f32 to vector<1x128xf32>
      %c0_412 = arith.constant 0 : index
      %c0_413 = arith.constant 0 : index
      %543 = vector.load %arg4[%c0_412, %c0_413] : memref<1x128xf32, #tpu.memory_space<vmem>>, vector<1x128xf32>
      tpu.vector_store %arg4[%c0_412, %c0_413], %542 {strides = array<i32>} : memref<1x128xf32, #tpu.memory_space<vmem>>, vector<1x128xf32>,
      %cst_414 = arith.constant 0.000000e+00 : f32
      %544 = vector.broadcast %cst_414 : f32 to vector<1x128xf32>
      %c0_415 = arith.constant 0 : index
      %c0_416 = arith.constant 0 : index
      %545 = vector.load %arg5[%c0_415, %c0_416] : memref<1x128xf32, #tpu.memory_space<vmem>>, vector<1x128xf32>
      tpu.vector_store %arg5[%c0_415, %c0_416], %544 {strides = array<i32>} : memref<1x128xf32, #tpu.memory_space<vmem>>, vector<1x128xf32>,
    } else {
    }
    %c8_i32 = arith.constant 8 : i32
    %5 = arith.muli %arg1, %c8_i32 : i32
    %cst = arith.constant 0.000000e+00 : f32
    %6 = vector.broadcast %cst : f32 to vector<1x128xf32>
    %cst_2 = arith.constant 0.000000e+00 : f32
    %7 = vector.broadcast %cst_2 : f32 to vector<1x128xf32>
    %c0_i32_3 = arith.constant 0 : i32
    %8 = arith.addi %5, %c0_i32_3 : i32
    %cst_4 = arith.constant 0.000000e+00 : f32
    %9 = vector.broadcast %cst_4 : f32 to vector<16x128xf32>
    %c0_i32_5 = arith.constant 0 : i32
    %10 = arith.addi %8, %c0_i32_5 : i32
    %c0 = arith.constant 0 : index
    %11 = arith.index_cast %10 : i32 to index
    %c0_6 = arith.constant 0 : index
    %c0_7 = arith.constant 0 : index
    %12 = vector.load %arg2[%c0, %11, %c0_6, %c0_7] : memref<1x18x18x4xbf16, #tpu.memory_space<vmem>>, vector<1x1x18x4xbf16>
    %13 = vector.shape_cast %12 : vector<1x1x18x4xbf16> to vector<18x4xbf16>
    %14 = vector.extract_strided_slice %13 {offsets = [0, 0], sizes = [16, 4], strides = [1, 1]} : vector<18x4xbf16> to vector<16x4xbf16>
    %c0_8 = arith.constant 0 : index
    %c0_9 = arith.constant 0 : index
    %c0_10 = arith.constant 0 : index
    %15 = vector.load %arg3[%c0_8, %c0_9, %c0_10] : memref<9x4x128xbf16, #tpu.memory_space<vmem>>, vector<1x4x128xbf16>
    %16 = vector.shape_cast %15 : vector<1x4x128xbf16> to vector<4x128xbf16>
    %cst_11 = arith.constant dense<0.000000e+00> : vector<16x128xf32>
    %17 = tpu.matmul %14, %16, %cst_11 {dimension_numbers = #tpu.dot_dimension_numbers<[1], [0], [0], [1], [0, 0, 1, 1], [], []>} : vector<16x4xbf16>, vector<4x128xbf16>, vector<16x128xf32> -> vector<16x128xf32>
    %18 = arith.addf %9, %17 : vector<16x128xf32>
    %19 = vector.extract_strided_slice %13 {offsets = [1, 0], sizes = [16, 4], strides = [1, 1]} : vector<18x4xbf16> to vector<16x4xbf16>
    %c1 = arith.constant 1 : index
    %c0_12 = arith.constant 0 : index
    %c0_13 = arith.constant 0 : index
    %20 = vector.load %arg3[%c1, %c0_12, %c0_13] : memref<9x4x128xbf16, #tpu.memory_space<vmem>>, vector<1x4x128xbf16>
    %21 = vector.shape_cast %20 : vector<1x4x128xbf16> to vector<4x128xbf16>
    %cst_14 = arith.constant dense<0.000000e+00> : vector<16x128xf32>
    %22 = tpu.matmul %19, %21, %cst_14 {dimension_numbers = #tpu.dot_dimension_numbers<[1], [0], [0], [1], [0, 0, 1, 1], [], []>} : vector<16x4xbf16>, vector<4x128xbf16>, vector<16x128xf32> -> vector<16x128xf32>
    %23 = arith.addf %18, %22 : vector<16x128xf32>
    %24 = vector.extract_strided_slice %13 {offsets = [2, 0], sizes = [16, 4], strides = [1, 1]} : vector<18x4xbf16> to vector<16x4xbf16>
    %c2 = arith.constant 2 : index
    %c0_15 = arith.constant 0 : index
    %c0_16 = arith.constant 0 : index
    %25 = vector.load %arg3[%c2, %c0_15, %c0_16] : memref<9x4x128xbf16, #tpu.memory_space<vmem>>, vector<1x4x128xbf16>
    %26 = vector.shape_cast %25 : vector<1x4x128xbf16> to vector<4x128xbf16>
    %cst_17 = arith.constant dense<0.000000e+00> : vector<16x128xf32>
    %27 = tpu.matmul %24, %26, %cst_17 {dimension_numbers = #tpu.dot_dimension_numbers<[1], [0], [0], [1], [0, 0, 1, 1], [], []>} : vector<16x4xbf16>, vector<4x128xbf16>, vector<16x128xf32> -> vector<16x128xf32>
    %28 = arith.addf %23, %27 : vector<16x128xf32>
    %c1_i32 = arith.constant 1 : i32
    %29 = arith.addi %8, %c1_i32 : i32
    %c0_18 = arith.constant 0 : index
    %30 = arith.index_cast %29 : i32 to index
    %c0_19 = arith.constant 0 : index
    %c0_20 = arith.constant 0 : index
    %31 = vector.load %arg2[%c0_18, %30, %c0_19, %c0_20] : memref<1x18x18x4xbf16, #tpu.memory_space<vmem>>, vector<1x1x18x4xbf16>
    %32 = vector.shape_cast %31 : vector<1x1x18x4xbf16> to vector<18x4xbf16>
    %33 = vector.extract_strided_slice %32 {offsets = [0, 0], sizes = [16, 4], strides = [1, 1]} : vector<18x4xbf16> to vector<16x4xbf16>
    %c3 = arith.constant 3 : index
    %c0_21 = arith.constant 0 : index
    %c0_22 = arith.constant 0 : index
    %34 = vector.load %arg3[%c3, %c0_21, %c0_22] : memref<9x4x128xbf16, #tpu.memory_space<vmem>>, vector<1x4x128xbf16>
    %35 = vector.shape_cast %34 : vector<1x4x128xbf16> to vector<4x128xbf16>
    %cst_23 = arith.constant dense<0.000000e+00> : vector<16x128xf32>
    %36 = tpu.matmul %33, %35, %cst_23 {dimension_numbers = #tpu.dot_dimension_numbers<[1], [0], [0], [1], [0, 0, 1, 1], [], []>} : vector<16x4xbf16>, vector<4x128xbf16>, vector<16x128xf32> -> vector<16x128xf32>
    %37 = arith.addf %28, %36 : vector<16x128xf32>
    %38 = vector.extract_strided_slice %32 {offsets = [1, 0], sizes = [16, 4], strides = [1, 1]} : vector<18x4xbf16> to vector<16x4xbf16>
    %c4 = arith.constant 4 : index
    %c0_24 = arith.constant 0 : index
    %c0_25 = arith.constant 0 : index
    %39 = vector.load %arg3[%c4, %c0_24, %c0_25] : memref<9x4x128xbf16, #tpu.memory_space<vmem>>, vector<1x4x128xbf16>
    %40 = vector.shape_cast %39 : vector<1x4x128xbf16> to vector<4x128xbf16>
    %cst_26 = arith.constant dense<0.000000e+00> : vector<16x128xf32>
    %41 = tpu.matmul %38, %40, %cst_26 {dimension_numbers = #tpu.dot_dimension_numbers<[1], [0], [0], [1], [0, 0, 1, 1], [], []>} : vector<16x4xbf16>, vector<4x128xbf16>, vector<16x128xf32> -> vector<16x128xf32>
    %42 = arith.addf %37, %41 : vector<16x128xf32>
    %43 = vector.extract_strided_slice %32 {offsets = [2, 0], sizes = [16, 4], strides = [1, 1]} : vector<18x4xbf16> to vector<16x4xbf16>
    %c5 = arith.constant 5 : index
    %c0_27 = arith.constant 0 : index
    %c0_28 = arith.constant 0 : index
    %44 = vector.load %arg3[%c5, %c0_27, %c0_28] : memref<9x4x128xbf16, #tpu.memory_space<vmem>>, vector<1x4x128xbf16>
    %45 = vector.shape_cast %44 : vector<1x4x128xbf16> to vector<4x128xbf16>
    %cst_29 = arith.constant dense<0.000000e+00> : vector<16x128xf32>
    %46 = tpu.matmul %43, %45, %cst_29 {dimension_numbers = #tpu.dot_dimension_numbers<[1], [0], [0], [1], [0, 0, 1, 1], [], []>} : vector<16x4xbf16>, vector<4x128xbf16>, vector<16x128xf32> -> vector<16x128xf32>
    %47 = arith.addf %42, %46 : vector<16x128xf32>
    %c2_i32 = arith.constant 2 : i32
    %48 = arith.addi %8, %c2_i32 : i32
    %c0_30 = arith.constant 0 : index
    %49 = arith.index_cast %48 : i32 to index
    %c0_31 = arith.constant 0 : index
    %c0_32 = arith.constant 0 : index
    %50 = vector.load %arg2[%c0_30, %49, %c0_31, %c0_32] : memref<1x18x18x4xbf16, #tpu.memory_space<vmem>>, vector<1x1x18x4xbf16>
    %51 = vector.shape_cast %50 : vector<1x1x18x4xbf16> to vector<18x4xbf16>
    %52 = vector.extract_strided_slice %51 {offsets = [0, 0], sizes = [16, 4], strides = [1, 1]} : vector<18x4xbf16> to vector<16x4xbf16>
    %c6 = arith.constant 6 : index
    %c0_33 = arith.constant 0 : index
    %c0_34 = arith.constant 0 : index
    %53 = vector.load %arg3[%c6, %c0_33, %c0_34] : memref<9x4x128xbf16, #tpu.memory_space<vmem>>, vector<1x4x128xbf16>
    %54 = vector.shape_cast %53 : vector<1x4x128xbf16> to vector<4x128xbf16>
    %cst_35 = arith.constant dense<0.000000e+00> : vector<16x128xf32>
    %55 = tpu.matmul %52, %54, %cst_35 {dimension_numbers = #tpu.dot_dimension_numbers<[1], [0], [0], [1], [0, 0, 1, 1], [], []>} : vector<16x4xbf16>, vector<4x128xbf16>, vector<16x128xf32> -> vector<16x128xf32>
    %56 = arith.addf %47, %55 : vector<16x128xf32>
    %57 = vector.extract_strided_slice %51 {offsets = [1, 0], sizes = [16, 4], strides = [1, 1]} : vector<18x4xbf16> to vector<16x4xbf16>
    %c7 = arith.constant 7 : index
    %c0_36 = arith.constant 0 : index
    %c0_37 = arith.constant 0 : index
    %58 = vector.load %arg3[%c7, %c0_36, %c0_37] : memref<9x4x128xbf16, #tpu.memory_space<vmem>>, vector<1x4x128xbf16>
    %59 = vector.shape_cast %58 : vector<1x4x128xbf16> to vector<4x128xbf16>
    %cst_38 = arith.constant dense<0.000000e+00> : vector<16x128xf32>
    %60 = tpu.matmul %57, %59, %cst_38 {dimension_numbers = #tpu.dot_dimension_numbers<[1], [0], [0], [1], [0, 0, 1, 1], [], []>} : vector<16x4xbf16>, vector<4x128xbf16>, vector<16x128xf32> -> vector<16x128xf32>
    %61 = arith.addf %56, %60 : vector<16x128xf32>
    %62 = vector.extract_strided_slice %51 {offsets = [2, 0], sizes = [16, 4], strides = [1, 1]} : vector<18x4xbf16> to vector<16x4xbf16>
    %c8 = arith.constant 8 : index
    %c0_39 = arith.constant 0 : index
    %c0_40 = arith.constant 0 : index
    %63 = vector.load %arg3[%c8, %c0_39, %c0_40] : memref<9x4x128xbf16, #tpu.memory_space<vmem>>, vector<1x4x128xbf16>
    %64 = vector.shape_cast %63 : vector<1x4x128xbf16> to vector<4x128xbf16>
    %cst_41 = arith.constant dense<0.000000e+00> : vector<16x128xf32>
    %65 = tpu.matmul %62, %64, %cst_41 {dimension_numbers = #tpu.dot_dimension_numbers<[1], [0], [0], [1], [0, 0, 1, 1], [], []>} : vector<16x4xbf16>, vector<4x128xbf16>, vector<16x128xf32> -> vector<16x128xf32>
    %66 = arith.addf %61, %65 : vector<16x128xf32>
    %cst_42 = arith.constant dense<0.000000e+00> : vector<128xf32>
    %67 = vector.multi_reduction <add>, %66, %cst_42 [0] : vector<16x128xf32> to vector<128xf32>
    %68 = vector.shape_cast %67 : vector<128xf32> to vector<1x128xf32>
    %69 = arith.addf %6, %68 : vector<1x128xf32>
    %70 = arith.mulf %66, %66 : vector<16x128xf32>
    %cst_43 = arith.constant dense<0.000000e+00> : vector<128xf32>
    %71 = vector.multi_reduction <add>, %70, %cst_43 [0] : vector<16x128xf32> to vector<128xf32>
    %72 = vector.shape_cast %71 : vector<128xf32> to vector<1x128xf32>
    %73 = arith.addf %7, %72 : vector<1x128xf32>
    %c1_i32_44 = arith.constant 1 : i32
    %74 = arith.addi %5, %c1_i32_44 : i32
    %cst_45 = arith.constant 0.000000e+00 : f32
    %75 = vector.broadcast %cst_45 : f32 to vector<16x128xf32>
    %c0_i32_46 = arith.constant 0 : i32
    %76 = arith.addi %74, %c0_i32_46 : i32
    %c0_47 = arith.constant 0 : index
    %77 = arith.index_cast %76 : i32 to index
    %c0_48 = arith.constant 0 : index
    %c0_49 = arith.constant 0 : index
    %78 = vector.load %arg2[%c0_47, %77, %c0_48, %c0_49] : memref<1x18x18x4xbf16, #tpu.memory_space<vmem>>, vector<1x1x18x4xbf16>
    %79 = vector.shape_cast %78 : vector<1x1x18x4xbf16> to vector<18x4xbf16>
    %80 = vector.extract_strided_slice %79 {offsets = [0, 0], sizes = [16, 4], strides = [1, 1]} : vector<18x4xbf16> to vector<16x4xbf16>
    %c0_50 = arith.constant 0 : index
    %c0_51 = arith.constant 0 : index
    %c0_52 = arith.constant 0 : index
    %81 = vector.load %arg3[%c0_50, %c0_51, %c0_52] : memref<9x4x128xbf16, #tpu.memory_space<vmem>>, vector<1x4x128xbf16>
    %82 = vector.shape_cast %81 : vector<1x4x128xbf16> to vector<4x128xbf16>
    %cst_53 = arith.constant dense<0.000000e+00> : vector<16x128xf32>
    %83 = tpu.matmul %80, %82, %cst_53 {dimension_numbers = #tpu.dot_dimension_numbers<[1], [0], [0], [1], [0, 0, 1, 1], [], []>} : vector<16x4xbf16>, vector<4x128xbf16>, vector<16x128xf32> -> vector<16x128xf32>
    %84 = arith.addf %75, %83 : vector<16x128xf32>
    %85 = vector.extract_strided_slice %79 {offsets = [1, 0], sizes = [16, 4], strides = [1, 1]} : vector<18x4xbf16> to vector<16x4xbf16>
    %c1_54 = arith.constant 1 : index
    %c0_55 = arith.constant 0 : index
    %c0_56 = arith.constant 0 : index
    %86 = vector.load %arg3[%c1_54, %c0_55, %c0_56] : memref<9x4x128xbf16, #tpu.memory_space<vmem>>, vector<1x4x128xbf16>
    %87 = vector.shape_cast %86 : vector<1x4x128xbf16> to vector<4x128xbf16>
    %cst_57 = arith.constant dense<0.000000e+00> : vector<16x128xf32>
    %88 = tpu.matmul %85, %87, %cst_57 {dimension_numbers = #tpu.dot_dimension_numbers<[1], [0], [0], [1], [0, 0, 1, 1], [], []>} : vector<16x4xbf16>, vector<4x128xbf16>, vector<16x128xf32> -> vector<16x128xf32>
    %89 = arith.addf %84, %88 : vector<16x128xf32>
    %90 = vector.extract_strided_slice %79 {offsets = [2, 0], sizes = [16, 4], strides = [1, 1]} : vector<18x4xbf16> to vector<16x4xbf16>
    %c2_58 = arith.constant 2 : index
    %c0_59 = arith.constant 0 : index
    %c0_60 = arith.constant 0 : index
    %91 = vector.load %arg3[%c2_58, %c0_59, %c0_60] : memref<9x4x128xbf16, #tpu.memory_space<vmem>>, vector<1x4x128xbf16>
    %92 = vector.shape_cast %91 : vector<1x4x128xbf16> to vector<4x128xbf16>
    %cst_61 = arith.constant dense<0.000000e+00> : vector<16x128xf32>
    %93 = tpu.matmul %90, %92, %cst_61 {dimension_numbers = #tpu.dot_dimension_numbers<[1], [0], [0], [1], [0, 0, 1, 1], [], []>} : vector<16x4xbf16>, vector<4x128xbf16>, vector<16x128xf32> -> vector<16x128xf32>
    %94 = arith.addf %89, %93 : vector<16x128xf32>
    %c1_i32_62 = arith.constant 1 : i32
    %95 = arith.addi %74, %c1_i32_62 : i32
    %c0_63 = arith.constant 0 : index
    %96 = arith.index_cast %95 : i32 to index
    %c0_64 = arith.constant 0 : index
    %c0_65 = arith.constant 0 : index
    %97 = vector.load %arg2[%c0_63, %96, %c0_64, %c0_65] : memref<1x18x18x4xbf16, #tpu.memory_space<vmem>>, vector<1x1x18x4xbf16>
    %98 = vector.shape_cast %97 : vector<1x1x18x4xbf16> to vector<18x4xbf16>
    %99 = vector.extract_strided_slice %98 {offsets = [0, 0], sizes = [16, 4], strides = [1, 1]} : vector<18x4xbf16> to vector<16x4xbf16>
    %c3_66 = arith.constant 3 : index
    %c0_67 = arith.constant 0 : index
    %c0_68 = arith.constant 0 : index
    %100 = vector.load %arg3[%c3_66, %c0_67, %c0_68] : memref<9x4x128xbf16, #tpu.memory_space<vmem>>, vector<1x4x128xbf16>
    %101 = vector.shape_cast %100 : vector<1x4x128xbf16> to vector<4x128xbf16>
    %cst_69 = arith.constant dense<0.000000e+00> : vector<16x128xf32>
    %102 = tpu.matmul %99, %101, %cst_69 {dimension_numbers = #tpu.dot_dimension_numbers<[1], [0], [0], [1], [0, 0, 1, 1], [], []>} : vector<16x4xbf16>, vector<4x128xbf16>, vector<16x128xf32> -> vector<16x128xf32>
    %103 = arith.addf %94, %102 : vector<16x128xf32>
    %104 = vector.extract_strided_slice %98 {offsets = [1, 0], sizes = [16, 4], strides = [1, 1]} : vector<18x4xbf16> to vector<16x4xbf16>
    %c4_70 = arith.constant 4 : index
    %c0_71 = arith.constant 0 : index
    %c0_72 = arith.constant 0 : index
    %105 = vector.load %arg3[%c4_70, %c0_71, %c0_72] : memref<9x4x128xbf16, #tpu.memory_space<vmem>>, vector<1x4x128xbf16>
    %106 = vector.shape_cast %105 : vector<1x4x128xbf16> to vector<4x128xbf16>
    %cst_73 = arith.constant dense<0.000000e+00> : vector<16x128xf32>
    %107 = tpu.matmul %104, %106, %cst_73 {dimension_numbers = #tpu.dot_dimension_numbers<[1], [0], [0], [1], [0, 0, 1, 1], [], []>} : vector<16x4xbf16>, vector<4x128xbf16>, vector<16x128xf32> -> vector<16x128xf32>
    %108 = arith.addf %103, %107 : vector<16x128xf32>
    %109 = vector.extract_strided_slice %98 {offsets = [2, 0], sizes = [16, 4], strides = [1, 1]} : vector<18x4xbf16> to vector<16x4xbf16>
    %c5_74 = arith.constant 5 : index
    %c0_75 = arith.constant 0 : index
    %c0_76 = arith.constant 0 : index
    %110 = vector.load %arg3[%c5_74, %c0_75, %c0_76] : memref<9x4x128xbf16, #tpu.memory_space<vmem>>, vector<1x4x128xbf16>
    %111 = vector.shape_cast %110 : vector<1x4x128xbf16> to vector<4x128xbf16>
    %cst_77 = arith.constant dense<0.000000e+00> : vector<16x128xf32>
    %112 = tpu.matmul %109, %111, %cst_77 {dimension_numbers = #tpu.dot_dimension_numbers<[1], [0], [0], [1], [0, 0, 1, 1], [], []>} : vector<16x4xbf16>, vector<4x128xbf16>, vector<16x128xf32> -> vector<16x128xf32>
    %113 = arith.addf %108, %112 : vector<16x128xf32>
    %c2_i32_78 = arith.constant 2 : i32
    %114 = arith.addi %74, %c2_i32_78 : i32
    %c0_79 = arith.constant 0 : index
    %115 = arith.index_cast %114 : i32 to index
    %c0_80 = arith.constant 0 : index
    %c0_81 = arith.constant 0 : index
    %116 = vector.load %arg2[%c0_79, %115, %c0_80, %c0_81] : memref<1x18x18x4xbf16, #tpu.memory_space<vmem>>, vector<1x1x18x4xbf16>
    %117 = vector.shape_cast %116 : vector<1x1x18x4xbf16> to vector<18x4xbf16>
    %118 = vector.extract_strided_slice %117 {offsets = [0, 0], sizes = [16, 4], strides = [1, 1]} : vector<18x4xbf16> to vector<16x4xbf16>
    %c6_82 = arith.constant 6 : index
    %c0_83 = arith.constant 0 : index
    %c0_84 = arith.constant 0 : index
    %119 = vector.load %arg3[%c6_82, %c0_83, %c0_84] : memref<9x4x128xbf16, #tpu.memory_space<vmem>>, vector<1x4x128xbf16>
    %120 = vector.shape_cast %119 : vector<1x4x128xbf16> to vector<4x128xbf16>
    %cst_85 = arith.constant dense<0.000000e+00> : vector<16x128xf32>
    %121 = tpu.matmul %118, %120, %cst_85 {dimension_numbers = #tpu.dot_dimension_numbers<[1], [0], [0], [1], [0, 0, 1, 1], [], []>} : vector<16x4xbf16>, vector<4x128xbf16>, vector<16x128xf32> -> vector<16x128xf32>
    %122 = arith.addf %113, %121 : vector<16x128xf32>
    %123 = vector.extract_strided_slice %117 {offsets = [1, 0], sizes = [16, 4], strides = [1, 1]} : vector<18x4xbf16> to vector<16x4xbf16>
    %c7_86 = arith.constant 7 : index
    %c0_87 = arith.constant 0 : index
    %c0_88 = arith.constant 0 : index
    %124 = vector.load %arg3[%c7_86, %c0_87, %c0_88] : memref<9x4x128xbf16, #tpu.memory_space<vmem>>, vector<1x4x128xbf16>
    %125 = vector.shape_cast %124 : vector<1x4x128xbf16> to vector<4x128xbf16>
    %cst_89 = arith.constant dense<0.000000e+00> : vector<16x128xf32>
    %126 = tpu.matmul %123, %125, %cst_89 {dimension_numbers = #tpu.dot_dimension_numbers<[1], [0], [0], [1], [0, 0, 1, 1], [], []>} : vector<16x4xbf16>, vector<4x128xbf16>, vector<16x128xf32> -> vector<16x128xf32>
    %127 = arith.addf %122, %126 : vector<16x128xf32>
    %128 = vector.extract_strided_slice %117 {offsets = [2, 0], sizes = [16, 4], strides = [1, 1]} : vector<18x4xbf16> to vector<16x4xbf16>
    %c8_90 = arith.constant 8 : index
    %c0_91 = arith.constant 0 : index
    %c0_92 = arith.constant 0 : index
    %129 = vector.load %arg3[%c8_90, %c0_91, %c0_92] : memref<9x4x128xbf16, #tpu.memory_space<vmem>>, vector<1x4x128xbf16>
    %130 = vector.shape_cast %129 : vector<1x4x128xbf16> to vector<4x128xbf16>
    %cst_93 = arith.constant dense<0.000000e+00> : vector<16x128xf32>
    %131 = tpu.matmul %128, %130, %cst_93 {dimension_numbers = #tpu.dot_dimension_numbers<[1], [0], [0], [1], [0, 0, 1, 1], [], []>} : vector<16x4xbf16>, vector<4x128xbf16>, vector<16x128xf32> -> vector<16x128xf32>
    %132 = arith.addf %127, %131 : vector<16x128xf32>
    %cst_94 = arith.constant dense<0.000000e+00> : vector<128xf32>
    %133 = vector.multi_reduction <add>, %132, %cst_94 [0] : vector<16x128xf32> to vector<128xf32>
    %134 = vector.shape_cast %133 : vector<128xf32> to vector<1x128xf32>
    %135 = arith.addf %69, %134 : vector<1x128xf32>
    %136 = arith.mulf %132, %132 : vector<16x128xf32>
    %cst_95 = arith.constant dense<0.000000e+00> : vector<128xf32>
    %137 = vector.multi_reduction <add>, %136, %cst_95 [0] : vector<16x128xf32> to vector<128xf32>
    %138 = vector.shape_cast %137 : vector<128xf32> to vector<1x128xf32>
    %139 = arith.addf %73, %138 : vector<1x128xf32>
    %c2_i32_96 = arith.constant 2 : i32
    %140 = arith.addi %5, %c2_i32_96 : i32
    %cst_97 = arith.constant 0.000000e+00 : f32
    %141 = vector.broadcast %cst_97 : f32 to vector<16x128xf32>
    %c0_i32_98 = arith.constant 0 : i32
    %142 = arith.addi %140, %c0_i32_98 : i32
    %c0_99 = arith.constant 0 : index
    %143 = arith.index_cast %142 : i32 to index
    %c0_100 = arith.constant 0 : index
    %c0_101 = arith.constant 0 : index
    %144 = vector.load %arg2[%c0_99, %143, %c0_100, %c0_101] : memref<1x18x18x4xbf16, #tpu.memory_space<vmem>>, vector<1x1x18x4xbf16>
    %145 = vector.shape_cast %144 : vector<1x1x18x4xbf16> to vector<18x4xbf16>
    %146 = vector.extract_strided_slice %145 {offsets = [0, 0], sizes = [16, 4], strides = [1, 1]} : vector<18x4xbf16> to vector<16x4xbf16>
    %c0_102 = arith.constant 0 : index
    %c0_103 = arith.constant 0 : index
    %c0_104 = arith.constant 0 : index
    %147 = vector.load %arg3[%c0_102, %c0_103, %c0_104] : memref<9x4x128xbf16, #tpu.memory_space<vmem>>, vector<1x4x128xbf16>
    %148 = vector.shape_cast %147 : vector<1x4x128xbf16> to vector<4x128xbf16>
    %cst_105 = arith.constant dense<0.000000e+00> : vector<16x128xf32>
    %149 = tpu.matmul %146, %148, %cst_105 {dimension_numbers = #tpu.dot_dimension_numbers<[1], [0], [0], [1], [0, 0, 1, 1], [], []>} : vector<16x4xbf16>, vector<4x128xbf16>, vector<16x128xf32> -> vector<16x128xf32>
    %150 = arith.addf %141, %149 : vector<16x128xf32>
    %151 = vector.extract_strided_slice %145 {offsets = [1, 0], sizes = [16, 4], strides = [1, 1]} : vector<18x4xbf16> to vector<16x4xbf16>
    %c1_106 = arith.constant 1 : index
    %c0_107 = arith.constant 0 : index
    %c0_108 = arith.constant 0 : index
    %152 = vector.load %arg3[%c1_106, %c0_107, %c0_108] : memref<9x4x128xbf16, #tpu.memory_space<vmem>>, vector<1x4x128xbf16>
    %153 = vector.shape_cast %152 : vector<1x4x128xbf16> to vector<4x128xbf16>
    %cst_109 = arith.constant dense<0.000000e+00> : vector<16x128xf32>
    %154 = tpu.matmul %151, %153, %cst_109 {dimension_numbers = #tpu.dot_dimension_numbers<[1], [0], [0], [1], [0, 0, 1, 1], [], []>} : vector<16x4xbf16>, vector<4x128xbf16>, vector<16x128xf32> -> vector<16x128xf32>
    %155 = arith.addf %150, %154 : vector<16x128xf32>
    %156 = vector.extract_strided_slice %145 {offsets = [2, 0], sizes = [16, 4], strides = [1, 1]} : vector<18x4xbf16> to vector<16x4xbf16>
    %c2_110 = arith.constant 2 : index
    %c0_111 = arith.constant 0 : index
    %c0_112 = arith.constant 0 : index
    %157 = vector.load %arg3[%c2_110, %c0_111, %c0_112] : memref<9x4x128xbf16, #tpu.memory_space<vmem>>, vector<1x4x128xbf16>
    %158 = vector.shape_cast %157 : vector<1x4x128xbf16> to vector<4x128xbf16>
    %cst_113 = arith.constant dense<0.000000e+00> : vector<16x128xf32>
    %159 = tpu.matmul %156, %158, %cst_113 {dimension_numbers = #tpu.dot_dimension_numbers<[1], [0], [0], [1], [0, 0, 1, 1], [], []>} : vector<16x4xbf16>, vector<4x128xbf16>, vector<16x128xf32> -> vector<16x128xf32>
    %160 = arith.addf %155, %159 : vector<16x128xf32>
    %c1_i32_114 = arith.constant 1 : i32
    %161 = arith.addi %140, %c1_i32_114 : i32
    %c0_115 = arith.constant 0 : index
    %162 = arith.index_cast %161 : i32 to index
    %c0_116 = arith.constant 0 : index
    %c0_117 = arith.constant 0 : index
    %163 = vector.load %arg2[%c0_115, %162, %c0_116, %c0_117] : memref<1x18x18x4xbf16, #tpu.memory_space<vmem>>, vector<1x1x18x4xbf16>
    %164 = vector.shape_cast %163 : vector<1x1x18x4xbf16> to vector<18x4xbf16>
    %165 = vector.extract_strided_slice %164 {offsets = [0, 0], sizes = [16, 4], strides = [1, 1]} : vector<18x4xbf16> to vector<16x4xbf16>
    %c3_118 = arith.constant 3 : index
    %c0_119 = arith.constant 0 : index
    %c0_120 = arith.constant 0 : index
    %166 = vector.load %arg3[%c3_118, %c0_119, %c0_120] : memref<9x4x128xbf16, #tpu.memory_space<vmem>>, vector<1x4x128xbf16>
    %167 = vector.shape_cast %166 : vector<1x4x128xbf16> to vector<4x128xbf16>
    %cst_121 = arith.constant dense<0.000000e+00> : vector<16x128xf32>
    %168 = tpu.matmul %165, %167, %cst_121 {dimension_numbers = #tpu.dot_dimension_numbers<[1], [0], [0], [1], [0, 0, 1, 1], [], []>} : vector<16x4xbf16>, vector<4x128xbf16>, vector<16x128xf32> -> vector<16x128xf32>
    %169 = arith.addf %160, %168 : vector<16x128xf32>
    %170 = vector.extract_strided_slice %164 {offsets = [1, 0], sizes = [16, 4], strides = [1, 1]} : vector<18x4xbf16> to vector<16x4xbf16>
    %c4_122 = arith.constant 4 : index
    %c0_123 = arith.constant 0 : index
    %c0_124 = arith.constant 0 : index
    %171 = vector.load %arg3[%c4_122, %c0_123, %c0_124] : memref<9x4x128xbf16, #tpu.memory_space<vmem>>, vector<1x4x128xbf16>
    %172 = vector.shape_cast %171 : vector<1x4x128xbf16> to vector<4x128xbf16>
    %cst_125 = arith.constant dense<0.000000e+00> : vector<16x128xf32>
    %173 = tpu.matmul %170, %172, %cst_125 {dimension_numbers = #tpu.dot_dimension_numbers<[1], [0], [0], [1], [0, 0, 1, 1], [], []>} : vector<16x4xbf16>, vector<4x128xbf16>, vector<16x128xf32> -> vector<16x128xf32>
    %174 = arith.addf %169, %173 : vector<16x128xf32>
    %175 = vector.extract_strided_slice %164 {offsets = [2, 0], sizes = [16, 4], strides = [1, 1]} : vector<18x4xbf16> to vector<16x4xbf16>
    %c5_126 = arith.constant 5 : index
    %c0_127 = arith.constant 0 : index
    %c0_128 = arith.constant 0 : index
    %176 = vector.load %arg3[%c5_126, %c0_127, %c0_128] : memref<9x4x128xbf16, #tpu.memory_space<vmem>>, vector<1x4x128xbf16>
    %177 = vector.shape_cast %176 : vector<1x4x128xbf16> to vector<4x128xbf16>
    %cst_129 = arith.constant dense<0.000000e+00> : vector<16x128xf32>
    %178 = tpu.matmul %175, %177, %cst_129 {dimension_numbers = #tpu.dot_dimension_numbers<[1], [0], [0], [1], [0, 0, 1, 1], [], []>} : vector<16x4xbf16>, vector<4x128xbf16>, vector<16x128xf32> -> vector<16x128xf32>
    %179 = arith.addf %174, %178 : vector<16x128xf32>
    %c2_i32_130 = arith.constant 2 : i32
    %180 = arith.addi %140, %c2_i32_130 : i32
    %c0_131 = arith.constant 0 : index
    %181 = arith.index_cast %180 : i32 to index
    %c0_132 = arith.constant 0 : index
    %c0_133 = arith.constant 0 : index
    %182 = vector.load %arg2[%c0_131, %181, %c0_132, %c0_133] : memref<1x18x18x4xbf16, #tpu.memory_space<vmem>>, vector<1x1x18x4xbf16>
    %183 = vector.shape_cast %182 : vector<1x1x18x4xbf16> to vector<18x4xbf16>
    %184 = vector.extract_strided_slice %183 {offsets = [0, 0], sizes = [16, 4], strides = [1, 1]} : vector<18x4xbf16> to vector<16x4xbf16>
    %c6_134 = arith.constant 6 : index
    %c0_135 = arith.constant 0 : index
    %c0_136 = arith.constant 0 : index
    %185 = vector.load %arg3[%c6_134, %c0_135, %c0_136] : memref<9x4x128xbf16, #tpu.memory_space<vmem>>, vector<1x4x128xbf16>
    %186 = vector.shape_cast %185 : vector<1x4x128xbf16> to vector<4x128xbf16>
    %cst_137 = arith.constant dense<0.000000e+00> : vector<16x128xf32>
    %187 = tpu.matmul %184, %186, %cst_137 {dimension_numbers = #tpu.dot_dimension_numbers<[1], [0], [0], [1], [0, 0, 1, 1], [], []>} : vector<16x4xbf16>, vector<4x128xbf16>, vector<16x128xf32> -> vector<16x128xf32>
    %188 = arith.addf %179, %187 : vector<16x128xf32>
    %189 = vector.extract_strided_slice %183 {offsets = [1, 0], sizes = [16, 4], strides = [1, 1]} : vector<18x4xbf16> to vector<16x4xbf16>
    %c7_138 = arith.constant 7 : index
    %c0_139 = arith.constant 0 : index
    %c0_140 = arith.constant 0 : index
    %190 = vector.load %arg3[%c7_138, %c0_139, %c0_140] : memref<9x4x128xbf16, #tpu.memory_space<vmem>>, vector<1x4x128xbf16>
    %191 = vector.shape_cast %190 : vector<1x4x128xbf16> to vector<4x128xbf16>
    %cst_141 = arith.constant dense<0.000000e+00> : vector<16x128xf32>
    %192 = tpu.matmul %189, %191, %cst_141 {dimension_numbers = #tpu.dot_dimension_numbers<[1], [0], [0], [1], [0, 0, 1, 1], [], []>} : vector<16x4xbf16>, vector<4x128xbf16>, vector<16x128xf32> -> vector<16x128xf32>
    %193 = arith.addf %188, %192 : vector<16x128xf32>
    %194 = vector.extract_strided_slice %183 {offsets = [2, 0], sizes = [16, 4], strides = [1, 1]} : vector<18x4xbf16> to vector<16x4xbf16>
    %c8_142 = arith.constant 8 : index
    %c0_143 = arith.constant 0 : index
    %c0_144 = arith.constant 0 : index
    %195 = vector.load %arg3[%c8_142, %c0_143, %c0_144] : memref<9x4x128xbf16, #tpu.memory_space<vmem>>, vector<1x4x128xbf16>
    %196 = vector.shape_cast %195 : vector<1x4x128xbf16> to vector<4x128xbf16>
    %cst_145 = arith.constant dense<0.000000e+00> : vector<16x128xf32>
    %197 = tpu.matmul %194, %196, %cst_145 {dimension_numbers = #tpu.dot_dimension_numbers<[1], [0], [0], [1], [0, 0, 1, 1], [], []>} : vector<16x4xbf16>, vector<4x128xbf16>, vector<16x128xf32> -> vector<16x128xf32>
    %198 = arith.addf %193, %197 : vector<16x128xf32>
    %cst_146 = arith.constant dense<0.000000e+00> : vector<128xf32>
    %199 = vector.multi_reduction <add>, %198, %cst_146 [0] : vector<16x128xf32> to vector<128xf32>
    %200 = vector.shape_cast %199 : vector<128xf32> to vector<1x128xf32>
    %201 = arith.addf %135, %200 : vector<1x128xf32>
    %202 = arith.mulf %198, %198 : vector<16x128xf32>
    %cst_147 = arith.constant dense<0.000000e+00> : vector<128xf32>
    %203 = vector.multi_reduction <add>, %202, %cst_147 [0] : vector<16x128xf32> to vector<128xf32>
    %204 = vector.shape_cast %203 : vector<128xf32> to vector<1x128xf32>
    %205 = arith.addf %139, %204 : vector<1x128xf32>
    %c3_i32 = arith.constant 3 : i32
    %206 = arith.addi %5, %c3_i32 : i32
    %cst_148 = arith.constant 0.000000e+00 : f32
    %207 = vector.broadcast %cst_148 : f32 to vector<16x128xf32>
    %c0_i32_149 = arith.constant 0 : i32
    %208 = arith.addi %206, %c0_i32_149 : i32
    %c0_150 = arith.constant 0 : index
    %209 = arith.index_cast %208 : i32 to index
    %c0_151 = arith.constant 0 : index
    %c0_152 = arith.constant 0 : index
    %210 = vector.load %arg2[%c0_150, %209, %c0_151, %c0_152] : memref<1x18x18x4xbf16, #tpu.memory_space<vmem>>, vector<1x1x18x4xbf16>
    %211 = vector.shape_cast %210 : vector<1x1x18x4xbf16> to vector<18x4xbf16>
    %212 = vector.extract_strided_slice %211 {offsets = [0, 0], sizes = [16, 4], strides = [1, 1]} : vector<18x4xbf16> to vector<16x4xbf16>
    %c0_153 = arith.constant 0 : index
    %c0_154 = arith.constant 0 : index
    %c0_155 = arith.constant 0 : index
    %213 = vector.load %arg3[%c0_153, %c0_154, %c0_155] : memref<9x4x128xbf16, #tpu.memory_space<vmem>>, vector<1x4x128xbf16>
    %214 = vector.shape_cast %213 : vector<1x4x128xbf16> to vector<4x128xbf16>
    %cst_156 = arith.constant dense<0.000000e+00> : vector<16x128xf32>
    %215 = tpu.matmul %212, %214, %cst_156 {dimension_numbers = #tpu.dot_dimension_numbers<[1], [0], [0], [1], [0, 0, 1, 1], [], []>} : vector<16x4xbf16>, vector<4x128xbf16>, vector<16x128xf32> -> vector<16x128xf32>
    %216 = arith.addf %207, %215 : vector<16x128xf32>
    %217 = vector.extract_strided_slice %211 {offsets = [1, 0], sizes = [16, 4], strides = [1, 1]} : vector<18x4xbf16> to vector<16x4xbf16>
    %c1_157 = arith.constant 1 : index
    %c0_158 = arith.constant 0 : index
    %c0_159 = arith.constant 0 : index
    %218 = vector.load %arg3[%c1_157, %c0_158, %c0_159] : memref<9x4x128xbf16, #tpu.memory_space<vmem>>, vector<1x4x128xbf16>
    %219 = vector.shape_cast %218 : vector<1x4x128xbf16> to vector<4x128xbf16>
    %cst_160 = arith.constant dense<0.000000e+00> : vector<16x128xf32>
    %220 = tpu.matmul %217, %219, %cst_160 {dimension_numbers = #tpu.dot_dimension_numbers<[1], [0], [0], [1], [0, 0, 1, 1], [], []>} : vector<16x4xbf16>, vector<4x128xbf16>, vector<16x128xf32> -> vector<16x128xf32>
    %221 = arith.addf %216, %220 : vector<16x128xf32>
    %222 = vector.extract_strided_slice %211 {offsets = [2, 0], sizes = [16, 4], strides = [1, 1]} : vector<18x4xbf16> to vector<16x4xbf16>
    %c2_161 = arith.constant 2 : index
    %c0_162 = arith.constant 0 : index
    %c0_163 = arith.constant 0 : index
    %223 = vector.load %arg3[%c2_161, %c0_162, %c0_163] : memref<9x4x128xbf16, #tpu.memory_space<vmem>>, vector<1x4x128xbf16>
    %224 = vector.shape_cast %223 : vector<1x4x128xbf16> to vector<4x128xbf16>
    %cst_164 = arith.constant dense<0.000000e+00> : vector<16x128xf32>
    %225 = tpu.matmul %222, %224, %cst_164 {dimension_numbers = #tpu.dot_dimension_numbers<[1], [0], [0], [1], [0, 0, 1, 1], [], []>} : vector<16x4xbf16>, vector<4x128xbf16>, vector<16x128xf32> -> vector<16x128xf32>
    %226 = arith.addf %221, %225 : vector<16x128xf32>
    %c1_i32_165 = arith.constant 1 : i32
    %227 = arith.addi %206, %c1_i32_165 : i32
    %c0_166 = arith.constant 0 : index
    %228 = arith.index_cast %227 : i32 to index
    %c0_167 = arith.constant 0 : index
    %c0_168 = arith.constant 0 : index
    %229 = vector.load %arg2[%c0_166, %228, %c0_167, %c0_168] : memref<1x18x18x4xbf16, #tpu.memory_space<vmem>>, vector<1x1x18x4xbf16>
    %230 = vector.shape_cast %229 : vector<1x1x18x4xbf16> to vector<18x4xbf16>
    %231 = vector.extract_strided_slice %230 {offsets = [0, 0], sizes = [16, 4], strides = [1, 1]} : vector<18x4xbf16> to vector<16x4xbf16>
    %c3_169 = arith.constant 3 : index
    %c0_170 = arith.constant 0 : index
    %c0_171 = arith.constant 0 : index
    %232 = vector.load %arg3[%c3_169, %c0_170, %c0_171] : memref<9x4x128xbf16, #tpu.memory_space<vmem>>, vector<1x4x128xbf16>
    %233 = vector.shape_cast %232 : vector<1x4x128xbf16> to vector<4x128xbf16>
    %cst_172 = arith.constant dense<0.000000e+00> : vector<16x128xf32>
    %234 = tpu.matmul %231, %233, %cst_172 {dimension_numbers = #tpu.dot_dimension_numbers<[1], [0], [0], [1], [0, 0, 1, 1], [], []>} : vector<16x4xbf16>, vector<4x128xbf16>, vector<16x128xf32> -> vector<16x128xf32>
    %235 = arith.addf %226, %234 : vector<16x128xf32>
    %236 = vector.extract_strided_slice %230 {offsets = [1, 0], sizes = [16, 4], strides = [1, 1]} : vector<18x4xbf16> to vector<16x4xbf16>
    %c4_173 = arith.constant 4 : index
    %c0_174 = arith.constant 0 : index
    %c0_175 = arith.constant 0 : index
    %237 = vector.load %arg3[%c4_173, %c0_174, %c0_175] : memref<9x4x128xbf16, #tpu.memory_space<vmem>>, vector<1x4x128xbf16>
    %238 = vector.shape_cast %237 : vector<1x4x128xbf16> to vector<4x128xbf16>
    %cst_176 = arith.constant dense<0.000000e+00> : vector<16x128xf32>
    %239 = tpu.matmul %236, %238, %cst_176 {dimension_numbers = #tpu.dot_dimension_numbers<[1], [0], [0], [1], [0, 0, 1, 1], [], []>} : vector<16x4xbf16>, vector<4x128xbf16>, vector<16x128xf32> -> vector<16x128xf32>
    %240 = arith.addf %235, %239 : vector<16x128xf32>
    %241 = vector.extract_strided_slice %230 {offsets = [2, 0], sizes = [16, 4], strides = [1, 1]} : vector<18x4xbf16> to vector<16x4xbf16>
    %c5_177 = arith.constant 5 : index
    %c0_178 = arith.constant 0 : index
    %c0_179 = arith.constant 0 : index
    %242 = vector.load %arg3[%c5_177, %c0_178, %c0_179] : memref<9x4x128xbf16, #tpu.memory_space<vmem>>, vector<1x4x128xbf16>
    %243 = vector.shape_cast %242 : vector<1x4x128xbf16> to vector<4x128xbf16>
    %cst_180 = arith.constant dense<0.000000e+00> : vector<16x128xf32>
    %244 = tpu.matmul %241, %243, %cst_180 {dimension_numbers = #tpu.dot_dimension_numbers<[1], [0], [0], [1], [0, 0, 1, 1], [], []>} : vector<16x4xbf16>, vector<4x128xbf16>, vector<16x128xf32> -> vector<16x128xf32>
    %245 = arith.addf %240, %244 : vector<16x128xf32>
    %c2_i32_181 = arith.constant 2 : i32
    %246 = arith.addi %206, %c2_i32_181 : i32
    %c0_182 = arith.constant 0 : index
    %247 = arith.index_cast %246 : i32 to index
    %c0_183 = arith.constant 0 : index
    %c0_184 = arith.constant 0 : index
    %248 = vector.load %arg2[%c0_182, %247, %c0_183, %c0_184] : memref<1x18x18x4xbf16, #tpu.memory_space<vmem>>, vector<1x1x18x4xbf16>
    %249 = vector.shape_cast %248 : vector<1x1x18x4xbf16> to vector<18x4xbf16>
    %250 = vector.extract_strided_slice %249 {offsets = [0, 0], sizes = [16, 4], strides = [1, 1]} : vector<18x4xbf16> to vector<16x4xbf16>
    %c6_185 = arith.constant 6 : index
    %c0_186 = arith.constant 0 : index
    %c0_187 = arith.constant 0 : index
    %251 = vector.load %arg3[%c6_185, %c0_186, %c0_187] : memref<9x4x128xbf16, #tpu.memory_space<vmem>>, vector<1x4x128xbf16>
    %252 = vector.shape_cast %251 : vector<1x4x128xbf16> to vector<4x128xbf16>
    %cst_188 = arith.constant dense<0.000000e+00> : vector<16x128xf32>
    %253 = tpu.matmul %250, %252, %cst_188 {dimension_numbers = #tpu.dot_dimension_numbers<[1], [0], [0], [1], [0, 0, 1, 1], [], []>} : vector<16x4xbf16>, vector<4x128xbf16>, vector<16x128xf32> -> vector<16x128xf32>
    %254 = arith.addf %245, %253 : vector<16x128xf32>
    %255 = vector.extract_strided_slice %249 {offsets = [1, 0], sizes = [16, 4], strides = [1, 1]} : vector<18x4xbf16> to vector<16x4xbf16>
    %c7_189 = arith.constant 7 : index
    %c0_190 = arith.constant 0 : index
    %c0_191 = arith.constant 0 : index
    %256 = vector.load %arg3[%c7_189, %c0_190, %c0_191] : memref<9x4x128xbf16, #tpu.memory_space<vmem>>, vector<1x4x128xbf16>
    %257 = vector.shape_cast %256 : vector<1x4x128xbf16> to vector<4x128xbf16>
    %cst_192 = arith.constant dense<0.000000e+00> : vector<16x128xf32>
    %258 = tpu.matmul %255, %257, %cst_192 {dimension_numbers = #tpu.dot_dimension_numbers<[1], [0], [0], [1], [0, 0, 1, 1], [], []>} : vector<16x4xbf16>, vector<4x128xbf16>, vector<16x128xf32> -> vector<16x128xf32>
    %259 = arith.addf %254, %258 : vector<16x128xf32>
    %260 = vector.extract_strided_slice %249 {offsets = [2, 0], sizes = [16, 4], strides = [1, 1]} : vector<18x4xbf16> to vector<16x4xbf16>
    %c8_193 = arith.constant 8 : index
    %c0_194 = arith.constant 0 : index
    %c0_195 = arith.constant 0 : index
    %261 = vector.load %arg3[%c8_193, %c0_194, %c0_195] : memref<9x4x128xbf16, #tpu.memory_space<vmem>>, vector<1x4x128xbf16>
    %262 = vector.shape_cast %261 : vector<1x4x128xbf16> to vector<4x128xbf16>
    %cst_196 = arith.constant dense<0.000000e+00> : vector<16x128xf32>
    %263 = tpu.matmul %260, %262, %cst_196 {dimension_numbers = #tpu.dot_dimension_numbers<[1], [0], [0], [1], [0, 0, 1, 1], [], []>} : vector<16x4xbf16>, vector<4x128xbf16>, vector<16x128xf32> -> vector<16x128xf32>
    %264 = arith.addf %259, %263 : vector<16x128xf32>
    %cst_197 = arith.constant dense<0.000000e+00> : vector<128xf32>
    %265 = vector.multi_reduction <add>, %264, %cst_197 [0] : vector<16x128xf32> to vector<128xf32>
    %266 = vector.shape_cast %265 : vector<128xf32> to vector<1x128xf32>
    %267 = arith.addf %201, %266 : vector<1x128xf32>
    %268 = arith.mulf %264, %264 : vector<16x128xf32>
    %cst_198 = arith.constant dense<0.000000e+00> : vector<128xf32>
    %269 = vector.multi_reduction <add>, %268, %cst_198 [0] : vector<16x128xf32> to vector<128xf32>
    %270 = vector.shape_cast %269 : vector<128xf32> to vector<1x128xf32>
    %271 = arith.addf %205, %270 : vector<1x128xf32>
    %c4_i32 = arith.constant 4 : i32
    %272 = arith.addi %5, %c4_i32 : i32
    %cst_199 = arith.constant 0.000000e+00 : f32
    %273 = vector.broadcast %cst_199 : f32 to vector<16x128xf32>
    %c0_i32_200 = arith.constant 0 : i32
    %274 = arith.addi %272, %c0_i32_200 : i32
    %c0_201 = arith.constant 0 : index
    %275 = arith.index_cast %274 : i32 to index
    %c0_202 = arith.constant 0 : index
    %c0_203 = arith.constant 0 : index
    %276 = vector.load %arg2[%c0_201, %275, %c0_202, %c0_203] : memref<1x18x18x4xbf16, #tpu.memory_space<vmem>>, vector<1x1x18x4xbf16>
    %277 = vector.shape_cast %276 : vector<1x1x18x4xbf16> to vector<18x4xbf16>
    %278 = vector.extract_strided_slice %277 {offsets = [0, 0], sizes = [16, 4], strides = [1, 1]} : vector<18x4xbf16> to vector<16x4xbf16>
    %c0_204 = arith.constant 0 : index
    %c0_205 = arith.constant 0 : index
    %c0_206 = arith.constant 0 : index
    %279 = vector.load %arg3[%c0_204, %c0_205, %c0_206] : memref<9x4x128xbf16, #tpu.memory_space<vmem>>, vector<1x4x128xbf16>
    %280 = vector.shape_cast %279 : vector<1x4x128xbf16> to vector<4x128xbf16>
    %cst_207 = arith.constant dense<0.000000e+00> : vector<16x128xf32>
    %281 = tpu.matmul %278, %280, %cst_207 {dimension_numbers = #tpu.dot_dimension_numbers<[1], [0], [0], [1], [0, 0, 1, 1], [], []>} : vector<16x4xbf16>, vector<4x128xbf16>, vector<16x128xf32> -> vector<16x128xf32>
    %282 = arith.addf %273, %281 : vector<16x128xf32>
    %283 = vector.extract_strided_slice %277 {offsets = [1, 0], sizes = [16, 4], strides = [1, 1]} : vector<18x4xbf16> to vector<16x4xbf16>
    %c1_208 = arith.constant 1 : index
    %c0_209 = arith.constant 0 : index
    %c0_210 = arith.constant 0 : index
    %284 = vector.load %arg3[%c1_208, %c0_209, %c0_210] : memref<9x4x128xbf16, #tpu.memory_space<vmem>>, vector<1x4x128xbf16>
    %285 = vector.shape_cast %284 : vector<1x4x128xbf16> to vector<4x128xbf16>
    %cst_211 = arith.constant dense<0.000000e+00> : vector<16x128xf32>
    %286 = tpu.matmul %283, %285, %cst_211 {dimension_numbers = #tpu.dot_dimension_numbers<[1], [0], [0], [1], [0, 0, 1, 1], [], []>} : vector<16x4xbf16>, vector<4x128xbf16>, vector<16x128xf32> -> vector<16x128xf32>
    %287 = arith.addf %282, %286 : vector<16x128xf32>
    %288 = vector.extract_strided_slice %277 {offsets = [2, 0], sizes = [16, 4], strides = [1, 1]} : vector<18x4xbf16> to vector<16x4xbf16>
    %c2_212 = arith.constant 2 : index
    %c0_213 = arith.constant 0 : index
    %c0_214 = arith.constant 0 : index
    %289 = vector.load %arg3[%c2_212, %c0_213, %c0_214] : memref<9x4x128xbf16, #tpu.memory_space<vmem>>, vector<1x4x128xbf16>
    %290 = vector.shape_cast %289 : vector<1x4x128xbf16> to vector<4x128xbf16>
    %cst_215 = arith.constant dense<0.000000e+00> : vector<16x128xf32>
    %291 = tpu.matmul %288, %290, %cst_215 {dimension_numbers = #tpu.dot_dimension_numbers<[1], [0], [0], [1], [0, 0, 1, 1], [], []>} : vector<16x4xbf16>, vector<4x128xbf16>, vector<16x128xf32> -> vector<16x128xf32>
    %292 = arith.addf %287, %291 : vector<16x128xf32>
    %c1_i32_216 = arith.constant 1 : i32
    %293 = arith.addi %272, %c1_i32_216 : i32
    %c0_217 = arith.constant 0 : index
    %294 = arith.index_cast %293 : i32 to index
    %c0_218 = arith.constant 0 : index
    %c0_219 = arith.constant 0 : index
    %295 = vector.load %arg2[%c0_217, %294, %c0_218, %c0_219] : memref<1x18x18x4xbf16, #tpu.memory_space<vmem>>, vector<1x1x18x4xbf16>
    %296 = vector.shape_cast %295 : vector<1x1x18x4xbf16> to vector<18x4xbf16>
    %297 = vector.extract_strided_slice %296 {offsets = [0, 0], sizes = [16, 4], strides = [1, 1]} : vector<18x4xbf16> to vector<16x4xbf16>
    %c3_220 = arith.constant 3 : index
    %c0_221 = arith.constant 0 : index
    %c0_222 = arith.constant 0 : index
    %298 = vector.load %arg3[%c3_220, %c0_221, %c0_222] : memref<9x4x128xbf16, #tpu.memory_space<vmem>>, vector<1x4x128xbf16>
    %299 = vector.shape_cast %298 : vector<1x4x128xbf16> to vector<4x128xbf16>
    %cst_223 = arith.constant dense<0.000000e+00> : vector<16x128xf32>
    %300 = tpu.matmul %297, %299, %cst_223 {dimension_numbers = #tpu.dot_dimension_numbers<[1], [0], [0], [1], [0, 0, 1, 1], [], []>} : vector<16x4xbf16>, vector<4x128xbf16>, vector<16x128xf32> -> vector<16x128xf32>
    %301 = arith.addf %292, %300 : vector<16x128xf32>
    %302 = vector.extract_strided_slice %296 {offsets = [1, 0], sizes = [16, 4], strides = [1, 1]} : vector<18x4xbf16> to vector<16x4xbf16>
    %c4_224 = arith.constant 4 : index
    %c0_225 = arith.constant 0 : index
    %c0_226 = arith.constant 0 : index
    %303 = vector.load %arg3[%c4_224, %c0_225, %c0_226] : memref<9x4x128xbf16, #tpu.memory_space<vmem>>, vector<1x4x128xbf16>
    %304 = vector.shape_cast %303 : vector<1x4x128xbf16> to vector<4x128xbf16>
    %cst_227 = arith.constant dense<0.000000e+00> : vector<16x128xf32>
    %305 = tpu.matmul %302, %304, %cst_227 {dimension_numbers = #tpu.dot_dimension_numbers<[1], [0], [0], [1], [0, 0, 1, 1], [], []>} : vector<16x4xbf16>, vector<4x128xbf16>, vector<16x128xf32> -> vector<16x128xf32>
    %306 = arith.addf %301, %305 : vector<16x128xf32>
    %307 = vector.extract_strided_slice %296 {offsets = [2, 0], sizes = [16, 4], strides = [1, 1]} : vector<18x4xbf16> to vector<16x4xbf16>
    %c5_228 = arith.constant 5 : index
    %c0_229 = arith.constant 0 : index
    %c0_230 = arith.constant 0 : index
    %308 = vector.load %arg3[%c5_228, %c0_229, %c0_230] : memref<9x4x128xbf16, #tpu.memory_space<vmem>>, vector<1x4x128xbf16>
    %309 = vector.shape_cast %308 : vector<1x4x128xbf16> to vector<4x128xbf16>
    %cst_231 = arith.constant dense<0.000000e+00> : vector<16x128xf32>
    %310 = tpu.matmul %307, %309, %cst_231 {dimension_numbers = #tpu.dot_dimension_numbers<[1], [0], [0], [1], [0, 0, 1, 1], [], []>} : vector<16x4xbf16>, vector<4x128xbf16>, vector<16x128xf32> -> vector<16x128xf32>
    %311 = arith.addf %306, %310 : vector<16x128xf32>
    %c2_i32_232 = arith.constant 2 : i32
    %312 = arith.addi %272, %c2_i32_232 : i32
    %c0_233 = arith.constant 0 : index
    %313 = arith.index_cast %312 : i32 to index
    %c0_234 = arith.constant 0 : index
    %c0_235 = arith.constant 0 : index
    %314 = vector.load %arg2[%c0_233, %313, %c0_234, %c0_235] : memref<1x18x18x4xbf16, #tpu.memory_space<vmem>>, vector<1x1x18x4xbf16>
    %315 = vector.shape_cast %314 : vector<1x1x18x4xbf16> to vector<18x4xbf16>
    %316 = vector.extract_strided_slice %315 {offsets = [0, 0], sizes = [16, 4], strides = [1, 1]} : vector<18x4xbf16> to vector<16x4xbf16>
    %c6_236 = arith.constant 6 : index
    %c0_237 = arith.constant 0 : index
    %c0_238 = arith.constant 0 : index
    %317 = vector.load %arg3[%c6_236, %c0_237, %c0_238] : memref<9x4x128xbf16, #tpu.memory_space<vmem>>, vector<1x4x128xbf16>
    %318 = vector.shape_cast %317 : vector<1x4x128xbf16> to vector<4x128xbf16>
    %cst_239 = arith.constant dense<0.000000e+00> : vector<16x128xf32>
    %319 = tpu.matmul %316, %318, %cst_239 {dimension_numbers = #tpu.dot_dimension_numbers<[1], [0], [0], [1], [0, 0, 1, 1], [], []>} : vector<16x4xbf16>, vector<4x128xbf16>, vector<16x128xf32> -> vector<16x128xf32>
    %320 = arith.addf %311, %319 : vector<16x128xf32>
    %321 = vector.extract_strided_slice %315 {offsets = [1, 0], sizes = [16, 4], strides = [1, 1]} : vector<18x4xbf16> to vector<16x4xbf16>
    %c7_240 = arith.constant 7 : index
    %c0_241 = arith.constant 0 : index
    %c0_242 = arith.constant 0 : index
    %322 = vector.load %arg3[%c7_240, %c0_241, %c0_242] : memref<9x4x128xbf16, #tpu.memory_space<vmem>>, vector<1x4x128xbf16>
    %323 = vector.shape_cast %322 : vector<1x4x128xbf16> to vector<4x128xbf16>
    %cst_243 = arith.constant dense<0.000000e+00> : vector<16x128xf32>
    %324 = tpu.matmul %321, %323, %cst_243 {dimension_numbers = #tpu.dot_dimension_numbers<[1], [0], [0], [1], [0, 0, 1, 1], [], []>} : vector<16x4xbf16>, vector<4x128xbf16>, vector<16x128xf32> -> vector<16x128xf32>
    %325 = arith.addf %320, %324 : vector<16x128xf32>
    %326 = vector.extract_strided_slice %315 {offsets = [2, 0], sizes = [16, 4], strides = [1, 1]} : vector<18x4xbf16> to vector<16x4xbf16>
    %c8_244 = arith.constant 8 : index
    %c0_245 = arith.constant 0 : index
    %c0_246 = arith.constant 0 : index
    %327 = vector.load %arg3[%c8_244, %c0_245, %c0_246] : memref<9x4x128xbf16, #tpu.memory_space<vmem>>, vector<1x4x128xbf16>
    %328 = vector.shape_cast %327 : vector<1x4x128xbf16> to vector<4x128xbf16>
    %cst_247 = arith.constant dense<0.000000e+00> : vector<16x128xf32>
    %329 = tpu.matmul %326, %328, %cst_247 {dimension_numbers = #tpu.dot_dimension_numbers<[1], [0], [0], [1], [0, 0, 1, 1], [], []>} : vector<16x4xbf16>, vector<4x128xbf16>, vector<16x128xf32> -> vector<16x128xf32>
    %330 = arith.addf %325, %329 : vector<16x128xf32>
    %cst_248 = arith.constant dense<0.000000e+00> : vector<128xf32>
    %331 = vector.multi_reduction <add>, %330, %cst_248 [0] : vector<16x128xf32> to vector<128xf32>
    %332 = vector.shape_cast %331 : vector<128xf32> to vector<1x128xf32>
    %333 = arith.addf %267, %332 : vector<1x128xf32>
    %334 = arith.mulf %330, %330 : vector<16x128xf32>
    %cst_249 = arith.constant dense<0.000000e+00> : vector<128xf32>
    %335 = vector.multi_reduction <add>, %334, %cst_249 [0] : vector<16x128xf32> to vector<128xf32>
    %336 = vector.shape_cast %335 : vector<128xf32> to vector<1x128xf32>
    %337 = arith.addf %271, %336 : vector<1x128xf32>
    %c5_i32 = arith.constant 5 : i32
    %338 = arith.addi %5, %c5_i32 : i32
    %cst_250 = arith.constant 0.000000e+00 : f32
    %339 = vector.broadcast %cst_250 : f32 to vector<16x128xf32>
    %c0_i32_251 = arith.constant 0 : i32
    %340 = arith.addi %338, %c0_i32_251 : i32
    %c0_252 = arith.constant 0 : index
    %341 = arith.index_cast %340 : i32 to index
    %c0_253 = arith.constant 0 : index
    %c0_254 = arith.constant 0 : index
    %342 = vector.load %arg2[%c0_252, %341, %c0_253, %c0_254] : memref<1x18x18x4xbf16, #tpu.memory_space<vmem>>, vector<1x1x18x4xbf16>
    %343 = vector.shape_cast %342 : vector<1x1x18x4xbf16> to vector<18x4xbf16>
    %344 = vector.extract_strided_slice %343 {offsets = [0, 0], sizes = [16, 4], strides = [1, 1]} : vector<18x4xbf16> to vector<16x4xbf16>
    %c0_255 = arith.constant 0 : index
    %c0_256 = arith.constant 0 : index
    %c0_257 = arith.constant 0 : index
    %345 = vector.load %arg3[%c0_255, %c0_256, %c0_257] : memref<9x4x128xbf16, #tpu.memory_space<vmem>>, vector<1x4x128xbf16>
    %346 = vector.shape_cast %345 : vector<1x4x128xbf16> to vector<4x128xbf16>
    %cst_258 = arith.constant dense<0.000000e+00> : vector<16x128xf32>
    %347 = tpu.matmul %344, %346, %cst_258 {dimension_numbers = #tpu.dot_dimension_numbers<[1], [0], [0], [1], [0, 0, 1, 1], [], []>} : vector<16x4xbf16>, vector<4x128xbf16>, vector<16x128xf32> -> vector<16x128xf32>
    %348 = arith.addf %339, %347 : vector<16x128xf32>
    %349 = vector.extract_strided_slice %343 {offsets = [1, 0], sizes = [16, 4], strides = [1, 1]} : vector<18x4xbf16> to vector<16x4xbf16>
    %c1_259 = arith.constant 1 : index
    %c0_260 = arith.constant 0 : index
    %c0_261 = arith.constant 0 : index
    %350 = vector.load %arg3[%c1_259, %c0_260, %c0_261] : memref<9x4x128xbf16, #tpu.memory_space<vmem>>, vector<1x4x128xbf16>
    %351 = vector.shape_cast %350 : vector<1x4x128xbf16> to vector<4x128xbf16>
    %cst_262 = arith.constant dense<0.000000e+00> : vector<16x128xf32>
    %352 = tpu.matmul %349, %351, %cst_262 {dimension_numbers = #tpu.dot_dimension_numbers<[1], [0], [0], [1], [0, 0, 1, 1], [], []>} : vector<16x4xbf16>, vector<4x128xbf16>, vector<16x128xf32> -> vector<16x128xf32>
    %353 = arith.addf %348, %352 : vector<16x128xf32>
    %354 = vector.extract_strided_slice %343 {offsets = [2, 0], sizes = [16, 4], strides = [1, 1]} : vector<18x4xbf16> to vector<16x4xbf16>
    %c2_263 = arith.constant 2 : index
    %c0_264 = arith.constant 0 : index
    %c0_265 = arith.constant 0 : index
    %355 = vector.load %arg3[%c2_263, %c0_264, %c0_265] : memref<9x4x128xbf16, #tpu.memory_space<vmem>>, vector<1x4x128xbf16>
    %356 = vector.shape_cast %355 : vector<1x4x128xbf16> to vector<4x128xbf16>
    %cst_266 = arith.constant dense<0.000000e+00> : vector<16x128xf32>
    %357 = tpu.matmul %354, %356, %cst_266 {dimension_numbers = #tpu.dot_dimension_numbers<[1], [0], [0], [1], [0, 0, 1, 1], [], []>} : vector<16x4xbf16>, vector<4x128xbf16>, vector<16x128xf32> -> vector<16x128xf32>
    %358 = arith.addf %353, %357 : vector<16x128xf32>
    %c1_i32_267 = arith.constant 1 : i32
    %359 = arith.addi %338, %c1_i32_267 : i32
    %c0_268 = arith.constant 0 : index
    %360 = arith.index_cast %359 : i32 to index
    %c0_269 = arith.constant 0 : index
    %c0_270 = arith.constant 0 : index
    %361 = vector.load %arg2[%c0_268, %360, %c0_269, %c0_270] : memref<1x18x18x4xbf16, #tpu.memory_space<vmem>>, vector<1x1x18x4xbf16>
    %362 = vector.shape_cast %361 : vector<1x1x18x4xbf16> to vector<18x4xbf16>
    %363 = vector.extract_strided_slice %362 {offsets = [0, 0], sizes = [16, 4], strides = [1, 1]} : vector<18x4xbf16> to vector<16x4xbf16>
    %c3_271 = arith.constant 3 : index
    %c0_272 = arith.constant 0 : index
    %c0_273 = arith.constant 0 : index
    %364 = vector.load %arg3[%c3_271, %c0_272, %c0_273] : memref<9x4x128xbf16, #tpu.memory_space<vmem>>, vector<1x4x128xbf16>
    %365 = vector.shape_cast %364 : vector<1x4x128xbf16> to vector<4x128xbf16>
    %cst_274 = arith.constant dense<0.000000e+00> : vector<16x128xf32>
    %366 = tpu.matmul %363, %365, %cst_274 {dimension_numbers = #tpu.dot_dimension_numbers<[1], [0], [0], [1], [0, 0, 1, 1], [], []>} : vector<16x4xbf16>, vector<4x128xbf16>, vector<16x128xf32> -> vector<16x128xf32>
    %367 = arith.addf %358, %366 : vector<16x128xf32>
    %368 = vector.extract_strided_slice %362 {offsets = [1, 0], sizes = [16, 4], strides = [1, 1]} : vector<18x4xbf16> to vector<16x4xbf16>
    %c4_275 = arith.constant 4 : index
    %c0_276 = arith.constant 0 : index
    %c0_277 = arith.constant 0 : index
    %369 = vector.load %arg3[%c4_275, %c0_276, %c0_277] : memref<9x4x128xbf16, #tpu.memory_space<vmem>>, vector<1x4x128xbf16>
    %370 = vector.shape_cast %369 : vector<1x4x128xbf16> to vector<4x128xbf16>
    %cst_278 = arith.constant dense<0.000000e+00> : vector<16x128xf32>
    %371 = tpu.matmul %368, %370, %cst_278 {dimension_numbers = #tpu.dot_dimension_numbers<[1], [0], [0], [1], [0, 0, 1, 1], [], []>} : vector<16x4xbf16>, vector<4x128xbf16>, vector<16x128xf32> -> vector<16x128xf32>
    %372 = arith.addf %367, %371 : vector<16x128xf32>
    %373 = vector.extract_strided_slice %362 {offsets = [2, 0], sizes = [16, 4], strides = [1, 1]} : vector<18x4xbf16> to vector<16x4xbf16>
    %c5_279 = arith.constant 5 : index
    %c0_280 = arith.constant 0 : index
    %c0_281 = arith.constant 0 : index
    %374 = vector.load %arg3[%c5_279, %c0_280, %c0_281] : memref<9x4x128xbf16, #tpu.memory_space<vmem>>, vector<1x4x128xbf16>
    %375 = vector.shape_cast %374 : vector<1x4x128xbf16> to vector<4x128xbf16>
    %cst_282 = arith.constant dense<0.000000e+00> : vector<16x128xf32>
    %376 = tpu.matmul %373, %375, %cst_282 {dimension_numbers = #tpu.dot_dimension_numbers<[1], [0], [0], [1], [0, 0, 1, 1], [], []>} : vector<16x4xbf16>, vector<4x128xbf16>, vector<16x128xf32> -> vector<16x128xf32>
    %377 = arith.addf %372, %376 : vector<16x128xf32>
    %c2_i32_283 = arith.constant 2 : i32
    %378 = arith.addi %338, %c2_i32_283 : i32
    %c0_284 = arith.constant 0 : index
    %379 = arith.index_cast %378 : i32 to index
    %c0_285 = arith.constant 0 : index
    %c0_286 = arith.constant 0 : index
    %380 = vector.load %arg2[%c0_284, %379, %c0_285, %c0_286] : memref<1x18x18x4xbf16, #tpu.memory_space<vmem>>, vector<1x1x18x4xbf16>
    %381 = vector.shape_cast %380 : vector<1x1x18x4xbf16> to vector<18x4xbf16>
    %382 = vector.extract_strided_slice %381 {offsets = [0, 0], sizes = [16, 4], strides = [1, 1]} : vector<18x4xbf16> to vector<16x4xbf16>
    %c6_287 = arith.constant 6 : index
    %c0_288 = arith.constant 0 : index
    %c0_289 = arith.constant 0 : index
    %383 = vector.load %arg3[%c6_287, %c0_288, %c0_289] : memref<9x4x128xbf16, #tpu.memory_space<vmem>>, vector<1x4x128xbf16>
    %384 = vector.shape_cast %383 : vector<1x4x128xbf16> to vector<4x128xbf16>
    %cst_290 = arith.constant dense<0.000000e+00> : vector<16x128xf32>
    %385 = tpu.matmul %382, %384, %cst_290 {dimension_numbers = #tpu.dot_dimension_numbers<[1], [0], [0], [1], [0, 0, 1, 1], [], []>} : vector<16x4xbf16>, vector<4x128xbf16>, vector<16x128xf32> -> vector<16x128xf32>
    %386 = arith.addf %377, %385 : vector<16x128xf32>
    %387 = vector.extract_strided_slice %381 {offsets = [1, 0], sizes = [16, 4], strides = [1, 1]} : vector<18x4xbf16> to vector<16x4xbf16>
    %c7_291 = arith.constant 7 : index
    %c0_292 = arith.constant 0 : index
    %c0_293 = arith.constant 0 : index
    %388 = vector.load %arg3[%c7_291, %c0_292, %c0_293] : memref<9x4x128xbf16, #tpu.memory_space<vmem>>, vector<1x4x128xbf16>
    %389 = vector.shape_cast %388 : vector<1x4x128xbf16> to vector<4x128xbf16>
    %cst_294 = arith.constant dense<0.000000e+00> : vector<16x128xf32>
    %390 = tpu.matmul %387, %389, %cst_294 {dimension_numbers = #tpu.dot_dimension_numbers<[1], [0], [0], [1], [0, 0, 1, 1], [], []>} : vector<16x4xbf16>, vector<4x128xbf16>, vector<16x128xf32> -> vector<16x128xf32>
    %391 = arith.addf %386, %390 : vector<16x128xf32>
    %392 = vector.extract_strided_slice %381 {offsets = [2, 0], sizes = [16, 4], strides = [1, 1]} : vector<18x4xbf16> to vector<16x4xbf16>
    %c8_295 = arith.constant 8 : index
    %c0_296 = arith.constant 0 : index
    %c0_297 = arith.constant 0 : index
    %393 = vector.load %arg3[%c8_295, %c0_296, %c0_297] : memref<9x4x128xbf16, #tpu.memory_space<vmem>>, vector<1x4x128xbf16>
    %394 = vector.shape_cast %393 : vector<1x4x128xbf16> to vector<4x128xbf16>
    %cst_298 = arith.constant dense<0.000000e+00> : vector<16x128xf32>
    %395 = tpu.matmul %392, %394, %cst_298 {dimension_numbers = #tpu.dot_dimension_numbers<[1], [0], [0], [1], [0, 0, 1, 1], [], []>} : vector<16x4xbf16>, vector<4x128xbf16>, vector<16x128xf32> -> vector<16x128xf32>
    %396 = arith.addf %391, %395 : vector<16x128xf32>
    %cst_299 = arith.constant dense<0.000000e+00> : vector<128xf32>
    %397 = vector.multi_reduction <add>, %396, %cst_299 [0] : vector<16x128xf32> to vector<128xf32>
    %398 = vector.shape_cast %397 : vector<128xf32> to vector<1x128xf32>
    %399 = arith.addf %333, %398 : vector<1x128xf32>
    %400 = arith.mulf %396, %396 : vector<16x128xf32>
    %cst_300 = arith.constant dense<0.000000e+00> : vector<128xf32>
    %401 = vector.multi_reduction <add>, %400, %cst_300 [0] : vector<16x128xf32> to vector<128xf32>
    %402 = vector.shape_cast %401 : vector<128xf32> to vector<1x128xf32>
    %403 = arith.addf %337, %402 : vector<1x128xf32>
    %c6_i32 = arith.constant 6 : i32
    %404 = arith.addi %5, %c6_i32 : i32
    %cst_301 = arith.constant 0.000000e+00 : f32
    %405 = vector.broadcast %cst_301 : f32 to vector<16x128xf32>
    %c0_i32_302 = arith.constant 0 : i32
    %406 = arith.addi %404, %c0_i32_302 : i32
    %c0_303 = arith.constant 0 : index
    %407 = arith.index_cast %406 : i32 to index
    %c0_304 = arith.constant 0 : index
    %c0_305 = arith.constant 0 : index
    %408 = vector.load %arg2[%c0_303, %407, %c0_304, %c0_305] : memref<1x18x18x4xbf16, #tpu.memory_space<vmem>>, vector<1x1x18x4xbf16>
    %409 = vector.shape_cast %408 : vector<1x1x18x4xbf16> to vector<18x4xbf16>
    %410 = vector.extract_strided_slice %409 {offsets = [0, 0], sizes = [16, 4], strides = [1, 1]} : vector<18x4xbf16> to vector<16x4xbf16>
    %c0_306 = arith.constant 0 : index
    %c0_307 = arith.constant 0 : index
    %c0_308 = arith.constant 0 : index
    %411 = vector.load %arg3[%c0_306, %c0_307, %c0_308] : memref<9x4x128xbf16, #tpu.memory_space<vmem>>, vector<1x4x128xbf16>
    %412 = vector.shape_cast %411 : vector<1x4x128xbf16> to vector<4x128xbf16>
    %cst_309 = arith.constant dense<0.000000e+00> : vector<16x128xf32>
    %413 = tpu.matmul %410, %412, %cst_309 {dimension_numbers = #tpu.dot_dimension_numbers<[1], [0], [0], [1], [0, 0, 1, 1], [], []>} : vector<16x4xbf16>, vector<4x128xbf16>, vector<16x128xf32> -> vector<16x128xf32>
    %414 = arith.addf %405, %413 : vector<16x128xf32>
    %415 = vector.extract_strided_slice %409 {offsets = [1, 0], sizes = [16, 4], strides = [1, 1]} : vector<18x4xbf16> to vector<16x4xbf16>
    %c1_310 = arith.constant 1 : index
    %c0_311 = arith.constant 0 : index
    %c0_312 = arith.constant 0 : index
    %416 = vector.load %arg3[%c1_310, %c0_311, %c0_312] : memref<9x4x128xbf16, #tpu.memory_space<vmem>>, vector<1x4x128xbf16>
    %417 = vector.shape_cast %416 : vector<1x4x128xbf16> to vector<4x128xbf16>
    %cst_313 = arith.constant dense<0.000000e+00> : vector<16x128xf32>
    %418 = tpu.matmul %415, %417, %cst_313 {dimension_numbers = #tpu.dot_dimension_numbers<[1], [0], [0], [1], [0, 0, 1, 1], [], []>} : vector<16x4xbf16>, vector<4x128xbf16>, vector<16x128xf32> -> vector<16x128xf32>
    %419 = arith.addf %414, %418 : vector<16x128xf32>
    %420 = vector.extract_strided_slice %409 {offsets = [2, 0], sizes = [16, 4], strides = [1, 1]} : vector<18x4xbf16> to vector<16x4xbf16>
    %c2_314 = arith.constant 2 : index
    %c0_315 = arith.constant 0 : index
    %c0_316 = arith.constant 0 : index
    %421 = vector.load %arg3[%c2_314, %c0_315, %c0_316] : memref<9x4x128xbf16, #tpu.memory_space<vmem>>, vector<1x4x128xbf16>
    %422 = vector.shape_cast %421 : vector<1x4x128xbf16> to vector<4x128xbf16>
    %cst_317 = arith.constant dense<0.000000e+00> : vector<16x128xf32>
    %423 = tpu.matmul %420, %422, %cst_317 {dimension_numbers = #tpu.dot_dimension_numbers<[1], [0], [0], [1], [0, 0, 1, 1], [], []>} : vector<16x4xbf16>, vector<4x128xbf16>, vector<16x128xf32> -> vector<16x128xf32>
    %424 = arith.addf %419, %423 : vector<16x128xf32>
    %c1_i32_318 = arith.constant 1 : i32
    %425 = arith.addi %404, %c1_i32_318 : i32
    %c0_319 = arith.constant 0 : index
    %426 = arith.index_cast %425 : i32 to index
    %c0_320 = arith.constant 0 : index
    %c0_321 = arith.constant 0 : index
    %427 = vector.load %arg2[%c0_319, %426, %c0_320, %c0_321] : memref<1x18x18x4xbf16, #tpu.memory_space<vmem>>, vector<1x1x18x4xbf16>
    %428 = vector.shape_cast %427 : vector<1x1x18x4xbf16> to vector<18x4xbf16>
    %429 = vector.extract_strided_slice %428 {offsets = [0, 0], sizes = [16, 4], strides = [1, 1]} : vector<18x4xbf16> to vector<16x4xbf16>
    %c3_322 = arith.constant 3 : index
    %c0_323 = arith.constant 0 : index
    %c0_324 = arith.constant 0 : index
    %430 = vector.load %arg3[%c3_322, %c0_323, %c0_324] : memref<9x4x128xbf16, #tpu.memory_space<vmem>>, vector<1x4x128xbf16>
    %431 = vector.shape_cast %430 : vector<1x4x128xbf16> to vector<4x128xbf16>
    %cst_325 = arith.constant dense<0.000000e+00> : vector<16x128xf32>
    %432 = tpu.matmul %429, %431, %cst_325 {dimension_numbers = #tpu.dot_dimension_numbers<[1], [0], [0], [1], [0, 0, 1, 1], [], []>} : vector<16x4xbf16>, vector<4x128xbf16>, vector<16x128xf32> -> vector<16x128xf32>
    %433 = arith.addf %424, %432 : vector<16x128xf32>
    %434 = vector.extract_strided_slice %428 {offsets = [1, 0], sizes = [16, 4], strides = [1, 1]} : vector<18x4xbf16> to vector<16x4xbf16>
    %c4_326 = arith.constant 4 : index
    %c0_327 = arith.constant 0 : index
    %c0_328 = arith.constant 0 : index
    %435 = vector.load %arg3[%c4_326, %c0_327, %c0_328] : memref<9x4x128xbf16, #tpu.memory_space<vmem>>, vector<1x4x128xbf16>
    %436 = vector.shape_cast %435 : vector<1x4x128xbf16> to vector<4x128xbf16>
    %cst_329 = arith.constant dense<0.000000e+00> : vector<16x128xf32>
    %437 = tpu.matmul %434, %436, %cst_329 {dimension_numbers = #tpu.dot_dimension_numbers<[1], [0], [0], [1], [0, 0, 1, 1], [], []>} : vector<16x4xbf16>, vector<4x128xbf16>, vector<16x128xf32> -> vector<16x128xf32>
    %438 = arith.addf %433, %437 : vector<16x128xf32>
    %439 = vector.extract_strided_slice %428 {offsets = [2, 0], sizes = [16, 4], strides = [1, 1]} : vector<18x4xbf16> to vector<16x4xbf16>
    %c5_330 = arith.constant 5 : index
    %c0_331 = arith.constant 0 : index
    %c0_332 = arith.constant 0 : index
    %440 = vector.load %arg3[%c5_330, %c0_331, %c0_332] : memref<9x4x128xbf16, #tpu.memory_space<vmem>>, vector<1x4x128xbf16>
    %441 = vector.shape_cast %440 : vector<1x4x128xbf16> to vector<4x128xbf16>
    %cst_333 = arith.constant dense<0.000000e+00> : vector<16x128xf32>
    %442 = tpu.matmul %439, %441, %cst_333 {dimension_numbers = #tpu.dot_dimension_numbers<[1], [0], [0], [1], [0, 0, 1, 1], [], []>} : vector<16x4xbf16>, vector<4x128xbf16>, vector<16x128xf32> -> vector<16x128xf32>
    %443 = arith.addf %438, %442 : vector<16x128xf32>
    %c2_i32_334 = arith.constant 2 : i32
    %444 = arith.addi %404, %c2_i32_334 : i32
    %c0_335 = arith.constant 0 : index
    %445 = arith.index_cast %444 : i32 to index
    %c0_336 = arith.constant 0 : index
    %c0_337 = arith.constant 0 : index
    %446 = vector.load %arg2[%c0_335, %445, %c0_336, %c0_337] : memref<1x18x18x4xbf16, #tpu.memory_space<vmem>>, vector<1x1x18x4xbf16>
    %447 = vector.shape_cast %446 : vector<1x1x18x4xbf16> to vector<18x4xbf16>
    %448 = vector.extract_strided_slice %447 {offsets = [0, 0], sizes = [16, 4], strides = [1, 1]} : vector<18x4xbf16> to vector<16x4xbf16>
    %c6_338 = arith.constant 6 : index
    %c0_339 = arith.constant 0 : index
    %c0_340 = arith.constant 0 : index
    %449 = vector.load %arg3[%c6_338, %c0_339, %c0_340] : memref<9x4x128xbf16, #tpu.memory_space<vmem>>, vector<1x4x128xbf16>
    %450 = vector.shape_cast %449 : vector<1x4x128xbf16> to vector<4x128xbf16>
    %cst_341 = arith.constant dense<0.000000e+00> : vector<16x128xf32>
    %451 = tpu.matmul %448, %450, %cst_341 {dimension_numbers = #tpu.dot_dimension_numbers<[1], [0], [0], [1], [0, 0, 1, 1], [], []>} : vector<16x4xbf16>, vector<4x128xbf16>, vector<16x128xf32> -> vector<16x128xf32>
    %452 = arith.addf %443, %451 : vector<16x128xf32>
    %453 = vector.extract_strided_slice %447 {offsets = [1, 0], sizes = [16, 4], strides = [1, 1]} : vector<18x4xbf16> to vector<16x4xbf16>
    %c7_342 = arith.constant 7 : index
    %c0_343 = arith.constant 0 : index
    %c0_344 = arith.constant 0 : index
    %454 = vector.load %arg3[%c7_342, %c0_343, %c0_344] : memref<9x4x128xbf16, #tpu.memory_space<vmem>>, vector<1x4x128xbf16>
    %455 = vector.shape_cast %454 : vector<1x4x128xbf16> to vector<4x128xbf16>
    %cst_345 = arith.constant dense<0.000000e+00> : vector<16x128xf32>
    %456 = tpu.matmul %453, %455, %cst_345 {dimension_numbers = #tpu.dot_dimension_numbers<[1], [0], [0], [1], [0, 0, 1, 1], [], []>} : vector<16x4xbf16>, vector<4x128xbf16>, vector<16x128xf32> -> vector<16x128xf32>
    %457 = arith.addf %452, %456 : vector<16x128xf32>
    %458 = vector.extract_strided_slice %447 {offsets = [2, 0], sizes = [16, 4], strides = [1, 1]} : vector<18x4xbf16> to vector<16x4xbf16>
    %c8_346 = arith.constant 8 : index
    %c0_347 = arith.constant 0 : index
    %c0_348 = arith.constant 0 : index
    %459 = vector.load %arg3[%c8_346, %c0_347, %c0_348] : memref<9x4x128xbf16, #tpu.memory_space<vmem>>, vector<1x4x128xbf16>
    %460 = vector.shape_cast %459 : vector<1x4x128xbf16> to vector<4x128xbf16>
    %cst_349 = arith.constant dense<0.000000e+00> : vector<16x128xf32>
    %461 = tpu.matmul %458, %460, %cst_349 {dimension_numbers = #tpu.dot_dimension_numbers<[1], [0], [0], [1], [0, 0, 1, 1], [], []>} : vector<16x4xbf16>, vector<4x128xbf16>, vector<16x128xf32> -> vector<16x128xf32>
    %462 = arith.addf %457, %461 : vector<16x128xf32>
    %cst_350 = arith.constant dense<0.000000e+00> : vector<128xf32>
    %463 = vector.multi_reduction <add>, %462, %cst_350 [0] : vector<16x128xf32> to vector<128xf32>
    %464 = vector.shape_cast %463 : vector<128xf32> to vector<1x128xf32>
    %465 = arith.addf %399, %464 : vector<1x128xf32>
    %466 = arith.mulf %462, %462 : vector<16x128xf32>
    %cst_351 = arith.constant dense<0.000000e+00> : vector<128xf32>
    %467 = vector.multi_reduction <add>, %466, %cst_351 [0] : vector<16x128xf32> to vector<128xf32>
    %468 = vector.shape_cast %467 : vector<128xf32> to vector<1x128xf32>
    %469 = arith.addf %403, %468 : vector<1x128xf32>
    %c7_i32 = arith.constant 7 : i32
    %470 = arith.addi %5, %c7_i32 : i32
    %cst_352 = arith.constant 0.000000e+00 : f32
    %471 = vector.broadcast %cst_352 : f32 to vector<16x128xf32>
    %c0_i32_353 = arith.constant 0 : i32
    %472 = arith.addi %470, %c0_i32_353 : i32
    %c0_354 = arith.constant 0 : index
    %473 = arith.index_cast %472 : i32 to index
    %c0_355 = arith.constant 0 : index
    %c0_356 = arith.constant 0 : index
    %474 = vector.load %arg2[%c0_354, %473, %c0_355, %c0_356] : memref<1x18x18x4xbf16, #tpu.memory_space<vmem>>, vector<1x1x18x4xbf16>
    %475 = vector.shape_cast %474 : vector<1x1x18x4xbf16> to vector<18x4xbf16>
    %476 = vector.extract_strided_slice %475 {offsets = [0, 0], sizes = [16, 4], strides = [1, 1]} : vector<18x4xbf16> to vector<16x4xbf16>
    %c0_357 = arith.constant 0 : index
    %c0_358 = arith.constant 0 : index
    %c0_359 = arith.constant 0 : index
    %477 = vector.load %arg3[%c0_357, %c0_358, %c0_359] : memref<9x4x128xbf16, #tpu.memory_space<vmem>>, vector<1x4x128xbf16>
    %478 = vector.shape_cast %477 : vector<1x4x128xbf16> to vector<4x128xbf16>
    %cst_360 = arith.constant dense<0.000000e+00> : vector<16x128xf32>
    %479 = tpu.matmul %476, %478, %cst_360 {dimension_numbers = #tpu.dot_dimension_numbers<[1], [0], [0], [1], [0, 0, 1, 1], [], []>} : vector<16x4xbf16>, vector<4x128xbf16>, vector<16x128xf32> -> vector<16x128xf32>
    %480 = arith.addf %471, %479 : vector<16x128xf32>
    %481 = vector.extract_strided_slice %475 {offsets = [1, 0], sizes = [16, 4], strides = [1, 1]} : vector<18x4xbf16> to vector<16x4xbf16>
    %c1_361 = arith.constant 1 : index
    %c0_362 = arith.constant 0 : index
    %c0_363 = arith.constant 0 : index
    %482 = vector.load %arg3[%c1_361, %c0_362, %c0_363] : memref<9x4x128xbf16, #tpu.memory_space<vmem>>, vector<1x4x128xbf16>
    %483 = vector.shape_cast %482 : vector<1x4x128xbf16> to vector<4x128xbf16>
    %cst_364 = arith.constant dense<0.000000e+00> : vector<16x128xf32>
    %484 = tpu.matmul %481, %483, %cst_364 {dimension_numbers = #tpu.dot_dimension_numbers<[1], [0], [0], [1], [0, 0, 1, 1], [], []>} : vector<16x4xbf16>, vector<4x128xbf16>, vector<16x128xf32> -> vector<16x128xf32>
    %485 = arith.addf %480, %484 : vector<16x128xf32>
    %486 = vector.extract_strided_slice %475 {offsets = [2, 0], sizes = [16, 4], strides = [1, 1]} : vector<18x4xbf16> to vector<16x4xbf16>
    %c2_365 = arith.constant 2 : index
    %c0_366 = arith.constant 0 : index
    %c0_367 = arith.constant 0 : index
    %487 = vector.load %arg3[%c2_365, %c0_366, %c0_367] : memref<9x4x128xbf16, #tpu.memory_space<vmem>>, vector<1x4x128xbf16>
    %488 = vector.shape_cast %487 : vector<1x4x128xbf16> to vector<4x128xbf16>
    %cst_368 = arith.constant dense<0.000000e+00> : vector<16x128xf32>
    %489 = tpu.matmul %486, %488, %cst_368 {dimension_numbers = #tpu.dot_dimension_numbers<[1], [0], [0], [1], [0, 0, 1, 1], [], []>} : vector<16x4xbf16>, vector<4x128xbf16>, vector<16x128xf32> -> vector<16x128xf32>
    %490 = arith.addf %485, %489 : vector<16x128xf32>
    %c1_i32_369 = arith.constant 1 : i32
    %491 = arith.addi %470, %c1_i32_369 : i32
    %c0_370 = arith.constant 0 : index
    %492 = arith.index_cast %491 : i32 to index
    %c0_371 = arith.constant 0 : index
    %c0_372 = arith.constant 0 : index
    %493 = vector.load %arg2[%c0_370, %492, %c0_371, %c0_372] : memref<1x18x18x4xbf16, #tpu.memory_space<vmem>>, vector<1x1x18x4xbf16>
    %494 = vector.shape_cast %493 : vector<1x1x18x4xbf16> to vector<18x4xbf16>
    %495 = vector.extract_strided_slice %494 {offsets = [0, 0], sizes = [16, 4], strides = [1, 1]} : vector<18x4xbf16> to vector<16x4xbf16>
    %c3_373 = arith.constant 3 : index
    %c0_374 = arith.constant 0 : index
    %c0_375 = arith.constant 0 : index
    %496 = vector.load %arg3[%c3_373, %c0_374, %c0_375] : memref<9x4x128xbf16, #tpu.memory_space<vmem>>, vector<1x4x128xbf16>
    %497 = vector.shape_cast %496 : vector<1x4x128xbf16> to vector<4x128xbf16>
    %cst_376 = arith.constant dense<0.000000e+00> : vector<16x128xf32>
    %498 = tpu.matmul %495, %497, %cst_376 {dimension_numbers = #tpu.dot_dimension_numbers<[1], [0], [0], [1], [0, 0, 1, 1], [], []>} : vector<16x4xbf16>, vector<4x128xbf16>, vector<16x128xf32> -> vector<16x128xf32>
    %499 = arith.addf %490, %498 : vector<16x128xf32>
    %500 = vector.extract_strided_slice %494 {offsets = [1, 0], sizes = [16, 4], strides = [1, 1]} : vector<18x4xbf16> to vector<16x4xbf16>
    %c4_377 = arith.constant 4 : index
    %c0_378 = arith.constant 0 : index
    %c0_379 = arith.constant 0 : index
    %501 = vector.load %arg3[%c4_377, %c0_378, %c0_379] : memref<9x4x128xbf16, #tpu.memory_space<vmem>>, vector<1x4x128xbf16>
    %502 = vector.shape_cast %501 : vector<1x4x128xbf16> to vector<4x128xbf16>
    %cst_380 = arith.constant dense<0.000000e+00> : vector<16x128xf32>
    %503 = tpu.matmul %500, %502, %cst_380 {dimension_numbers = #tpu.dot_dimension_numbers<[1], [0], [0], [1], [0, 0, 1, 1], [], []>} : vector<16x4xbf16>, vector<4x128xbf16>, vector<16x128xf32> -> vector<16x128xf32>
    %504 = arith.addf %499, %503 : vector<16x128xf32>
    %505 = vector.extract_strided_slice %494 {offsets = [2, 0], sizes = [16, 4], strides = [1, 1]} : vector<18x4xbf16> to vector<16x4xbf16>
    %c5_381 = arith.constant 5 : index
    %c0_382 = arith.constant 0 : index
    %c0_383 = arith.constant 0 : index
    %506 = vector.load %arg3[%c5_381, %c0_382, %c0_383] : memref<9x4x128xbf16, #tpu.memory_space<vmem>>, vector<1x4x128xbf16>
    %507 = vector.shape_cast %506 : vector<1x4x128xbf16> to vector<4x128xbf16>
    %cst_384 = arith.constant dense<0.000000e+00> : vector<16x128xf32>
    %508 = tpu.matmul %505, %507, %cst_384 {dimension_numbers = #tpu.dot_dimension_numbers<[1], [0], [0], [1], [0, 0, 1, 1], [], []>} : vector<16x4xbf16>, vector<4x128xbf16>, vector<16x128xf32> -> vector<16x128xf32>
    %509 = arith.addf %504, %508 : vector<16x128xf32>
    %c2_i32_385 = arith.constant 2 : i32
    %510 = arith.addi %470, %c2_i32_385 : i32
    %c0_386 = arith.constant 0 : index
    %511 = arith.index_cast %510 : i32 to index
    %c0_387 = arith.constant 0 : index
    %c0_388 = arith.constant 0 : index
    %512 = vector.load %arg2[%c0_386, %511, %c0_387, %c0_388] : memref<1x18x18x4xbf16, #tpu.memory_space<vmem>>, vector<1x1x18x4xbf16>
    %513 = vector.shape_cast %512 : vector<1x1x18x4xbf16> to vector<18x4xbf16>
    %514 = vector.extract_strided_slice %513 {offsets = [0, 0], sizes = [16, 4], strides = [1, 1]} : vector<18x4xbf16> to vector<16x4xbf16>
    %c6_389 = arith.constant 6 : index
    %c0_390 = arith.constant 0 : index
    %c0_391 = arith.constant 0 : index
    %515 = vector.load %arg3[%c6_389, %c0_390, %c0_391] : memref<9x4x128xbf16, #tpu.memory_space<vmem>>, vector<1x4x128xbf16>
    %516 = vector.shape_cast %515 : vector<1x4x128xbf16> to vector<4x128xbf16>
    %cst_392 = arith.constant dense<0.000000e+00> : vector<16x128xf32>
    %517 = tpu.matmul %514, %516, %cst_392 {dimension_numbers = #tpu.dot_dimension_numbers<[1], [0], [0], [1], [0, 0, 1, 1], [], []>} : vector<16x4xbf16>, vector<4x128xbf16>, vector<16x128xf32> -> vector<16x128xf32>
    %518 = arith.addf %509, %517 : vector<16x128xf32>
    %519 = vector.extract_strided_slice %513 {offsets = [1, 0], sizes = [16, 4], strides = [1, 1]} : vector<18x4xbf16> to vector<16x4xbf16>
    %c7_393 = arith.constant 7 : index
    %c0_394 = arith.constant 0 : index
    %c0_395 = arith.constant 0 : index
    %520 = vector.load %arg3[%c7_393, %c0_394, %c0_395] : memref<9x4x128xbf16, #tpu.memory_space<vmem>>, vector<1x4x128xbf16>
    %521 = vector.shape_cast %520 : vector<1x4x128xbf16> to vector<4x128xbf16>
    %cst_396 = arith.constant dense<0.000000e+00> : vector<16x128xf32>
    %522 = tpu.matmul %519, %521, %cst_396 {dimension_numbers = #tpu.dot_dimension_numbers<[1], [0], [0], [1], [0, 0, 1, 1], [], []>} : vector<16x4xbf16>, vector<4x128xbf16>, vector<16x128xf32> -> vector<16x128xf32>
    %523 = arith.addf %518, %522 : vector<16x128xf32>
    %524 = vector.extract_strided_slice %513 {offsets = [2, 0], sizes = [16, 4], strides = [1, 1]} : vector<18x4xbf16> to vector<16x4xbf16>
    %c8_397 = arith.constant 8 : index
    %c0_398 = arith.constant 0 : index
    %c0_399 = arith.constant 0 : index
    %525 = vector.load %arg3[%c8_397, %c0_398, %c0_399] : memref<9x4x128xbf16, #tpu.memory_space<vmem>>, vector<1x4x128xbf16>
    %526 = vector.shape_cast %525 : vector<1x4x128xbf16> to vector<4x128xbf16>
    %cst_400 = arith.constant dense<0.000000e+00> : vector<16x128xf32>
    %527 = tpu.matmul %524, %526, %cst_400 {dimension_numbers = #tpu.dot_dimension_numbers<[1], [0], [0], [1], [0, 0, 1, 1], [], []>} : vector<16x4xbf16>, vector<4x128xbf16>, vector<16x128xf32> -> vector<16x128xf32>
    %528 = arith.addf %523, %527 : vector<16x128xf32>
    %cst_401 = arith.constant dense<0.000000e+00> : vector<128xf32>
    %529 = vector.multi_reduction <add>, %528, %cst_401 [0] : vector<16x128xf32> to vector<128xf32>
    %530 = vector.shape_cast %529 : vector<128xf32> to vector<1x128xf32>
    %531 = arith.addf %465, %530 : vector<1x128xf32>
    %532 = arith.mulf %528, %528 : vector<16x128xf32>
    %cst_402 = arith.constant dense<0.000000e+00> : vector<128xf32>
    %533 = vector.multi_reduction <add>, %532, %cst_402 [0] : vector<16x128xf32> to vector<128xf32>
    %534 = vector.shape_cast %533 : vector<128xf32> to vector<1x128xf32>
    %535 = arith.addf %469, %534 : vector<1x128xf32>
    %c0_403 = arith.constant 0 : index
    %c0_404 = arith.constant 0 : index
    %536 = vector.load %arg4[%c0_403, %c0_404] : memref<1x128xf32, #tpu.memory_space<vmem>>, vector<1x128xf32>
    %537 = arith.addf %536, %531 : vector<1x128xf32>
    %c0_405 = arith.constant 0 : index
    %c0_406 = arith.constant 0 : index
    %538 = vector.load %arg4[%c0_405, %c0_406] : memref<1x128xf32, #tpu.memory_space<vmem>>, vector<1x128xf32>
    tpu.vector_store %arg4[%c0_405, %c0_406], %537 {strides = array<i32>} : memref<1x128xf32, #tpu.memory_space<vmem>>, vector<1x128xf32>,
    %c0_407 = arith.constant 0 : index
    %c0_408 = arith.constant 0 : index
    %539 = vector.load %arg5[%c0_407, %c0_408] : memref<1x128xf32, #tpu.memory_space<vmem>>, vector<1x128xf32>
    %540 = arith.addf %539, %535 : vector<1x128xf32>
    %c0_409 = arith.constant 0 : index
    %c0_410 = arith.constant 0 : index
    %541 = vector.load %arg5[%c0_409, %c0_410] : memref<1x128xf32, #tpu.memory_space<vmem>>, vector<1x128xf32>
    tpu.vector_store %arg5[%c0_409, %c0_410], %540 {strides = array<i32>} : memref<1x128xf32, #tpu.memory_space<vmem>>, vector<1x128xf32>,
    return
  }
  func.func @transform_0(%arg0: i32, %arg1: i32) -> (i32, i32, i32, i32) {
    %c0_i32 = arith.constant 0 : i32
    %c0_i32_0 = arith.constant 0 : i32
    %c0_i32_1 = arith.constant 0 : i32
    %c0_i32_2 = arith.constant 0 : i32
    return %arg0, %c0_i32, %c0_i32_0, %c0_i32_1 : i32, i32, i32, i32
  }
  func.func @transform_1(%arg0: i32, %arg1: i32) -> (i32, i32, i32) {
    %c0_i32 = arith.constant 0 : i32
    %c0_i32_0 = arith.constant 0 : i32
    %c0_i32_1 = arith.constant 0 : i32
    %c0_i32_2 = arith.constant 0 : i32
    return %c0_i32, %c0_i32_0, %c0_i32_1 : i32, i32, i32
  }
  func.func @transform_2(%arg0: i32, %arg1: i32) -> (i32, i32) {
    %c0_i32 = arith.constant 0 : i32
    %c0_i32_0 = arith.constant 0 : i32
    %c0_i32_1 = arith.constant 0 : i32
    return %c0_i32, %c0_i32_0 : i32, i32
  }
  func.func @transform_3(%arg0: i32, %arg1: i32) -> (i32, i32) {
    %c0_i32 = arith.constant 0 : i32
    %c0_i32_0 = arith.constant 0 : i32
    %c0_i32_1 = arith.constant 0 : i32
    return %c0_i32, %c0_i32_0 : i32, i32
  }
}

module attributes {stable_mosaic.version = 11 : i64} {
  func.func @_apply_kernel(%arg0: i32, %arg1: i32, %arg2: memref<1x18x18x4xbf16, #tpu.memory_space<vmem>>, %arg3: memref<9x4x128xbf16, #tpu.memory_space<vmem>>, %arg4: memref<2x128xf32, #tpu.memory_space<vmem>>, %arg5: memref<1x8x16x128xf32, #tpu.memory_space<vmem>>) attributes {dimension_semantics = [#tpu.dimension_semantics<parallel>, #tpu.dimension_semantics<parallel>], iteration_bounds = array<i64: 2, 2>, scalar_prefetch = 0 : i64, scratch_operands = 0 : i64, tpu.core_type = #tpu.core_type<tc>, window_params = [{transform_indices = @transform_0, window_bounds = array<i64: 1, 18, 18, 4>}, {pipeline_mode = #tpu.pipeline_mode<synchronous>, transform_indices = @transform_1, window_bounds = array<i64: 9, 4, 128>}, {pipeline_mode = #tpu.pipeline_mode<synchronous>, transform_indices = @transform_2, window_bounds = array<i64: 2, 128>}, {transform_indices = @transform_3, window_bounds = array<i64: 1, 8, 16, 128>}]} {
    %c8_i32 = arith.constant 8 : i32
    %0 = arith.muli %arg1, %c8_i32 : i32
    %c0 = arith.constant 0 : index
    %c0_0 = arith.constant 0 : index
    %1 = vector.load %arg4[%c0, %c0_0] : memref<2x128xf32, #tpu.memory_space<vmem>>, vector<2x128xf32>
    %2 = vector.extract_strided_slice %1 {offsets = [0, 0], sizes = [1, 128], strides = [1, 1]} : vector<2x128xf32> to vector<1x128xf32>
    %3 = vector.extract_strided_slice %1 {offsets = [1, 0], sizes = [1, 128], strides = [1, 1]} : vector<2x128xf32> to vector<1x128xf32>
    %c0_i32 = arith.constant 0 : i32
    %4 = arith.addi %0, %c0_i32 : i32
    %cst = arith.constant 0.000000e+00 : f32
    %5 = vector.broadcast %cst : f32 to vector<16x128xf32>
    %c0_i32_1 = arith.constant 0 : i32
    %6 = arith.addi %4, %c0_i32_1 : i32
    %c0_2 = arith.constant 0 : index
    %7 = arith.index_cast %6 : i32 to index
    %c0_3 = arith.constant 0 : index
    %c0_4 = arith.constant 0 : index
    %8 = vector.load %arg2[%c0_2, %7, %c0_3, %c0_4] : memref<1x18x18x4xbf16, #tpu.memory_space<vmem>>, vector<1x1x18x4xbf16>
    %9 = vector.shape_cast %8 : vector<1x1x18x4xbf16> to vector<18x4xbf16>
    %10 = vector.extract_strided_slice %9 {offsets = [0, 0], sizes = [16, 4], strides = [1, 1]} : vector<18x4xbf16> to vector<16x4xbf16>
    %c0_5 = arith.constant 0 : index
    %c0_6 = arith.constant 0 : index
    %c0_7 = arith.constant 0 : index
    %11 = vector.load %arg3[%c0_5, %c0_6, %c0_7] : memref<9x4x128xbf16, #tpu.memory_space<vmem>>, vector<1x4x128xbf16>
    %12 = vector.shape_cast %11 : vector<1x4x128xbf16> to vector<4x128xbf16>
    %cst_8 = arith.constant dense<0.000000e+00> : vector<16x128xf32>
    %13 = tpu.matmul %10, %12, %cst_8 {dimension_numbers = #tpu.dot_dimension_numbers<[1], [0], [0], [1], [0, 0, 1, 1], [], []>} : vector<16x4xbf16>, vector<4x128xbf16>, vector<16x128xf32> -> vector<16x128xf32>
    %14 = arith.addf %5, %13 : vector<16x128xf32>
    %15 = vector.extract_strided_slice %9 {offsets = [1, 0], sizes = [16, 4], strides = [1, 1]} : vector<18x4xbf16> to vector<16x4xbf16>
    %c1 = arith.constant 1 : index
    %c0_9 = arith.constant 0 : index
    %c0_10 = arith.constant 0 : index
    %16 = vector.load %arg3[%c1, %c0_9, %c0_10] : memref<9x4x128xbf16, #tpu.memory_space<vmem>>, vector<1x4x128xbf16>
    %17 = vector.shape_cast %16 : vector<1x4x128xbf16> to vector<4x128xbf16>
    %cst_11 = arith.constant dense<0.000000e+00> : vector<16x128xf32>
    %18 = tpu.matmul %15, %17, %cst_11 {dimension_numbers = #tpu.dot_dimension_numbers<[1], [0], [0], [1], [0, 0, 1, 1], [], []>} : vector<16x4xbf16>, vector<4x128xbf16>, vector<16x128xf32> -> vector<16x128xf32>
    %19 = arith.addf %14, %18 : vector<16x128xf32>
    %20 = vector.extract_strided_slice %9 {offsets = [2, 0], sizes = [16, 4], strides = [1, 1]} : vector<18x4xbf16> to vector<16x4xbf16>
    %c2 = arith.constant 2 : index
    %c0_12 = arith.constant 0 : index
    %c0_13 = arith.constant 0 : index
    %21 = vector.load %arg3[%c2, %c0_12, %c0_13] : memref<9x4x128xbf16, #tpu.memory_space<vmem>>, vector<1x4x128xbf16>
    %22 = vector.shape_cast %21 : vector<1x4x128xbf16> to vector<4x128xbf16>
    %cst_14 = arith.constant dense<0.000000e+00> : vector<16x128xf32>
    %23 = tpu.matmul %20, %22, %cst_14 {dimension_numbers = #tpu.dot_dimension_numbers<[1], [0], [0], [1], [0, 0, 1, 1], [], []>} : vector<16x4xbf16>, vector<4x128xbf16>, vector<16x128xf32> -> vector<16x128xf32>
    %24 = arith.addf %19, %23 : vector<16x128xf32>
    %c1_i32 = arith.constant 1 : i32
    %25 = arith.addi %4, %c1_i32 : i32
    %c0_15 = arith.constant 0 : index
    %26 = arith.index_cast %25 : i32 to index
    %c0_16 = arith.constant 0 : index
    %c0_17 = arith.constant 0 : index
    %27 = vector.load %arg2[%c0_15, %26, %c0_16, %c0_17] : memref<1x18x18x4xbf16, #tpu.memory_space<vmem>>, vector<1x1x18x4xbf16>
    %28 = vector.shape_cast %27 : vector<1x1x18x4xbf16> to vector<18x4xbf16>
    %29 = vector.extract_strided_slice %28 {offsets = [0, 0], sizes = [16, 4], strides = [1, 1]} : vector<18x4xbf16> to vector<16x4xbf16>
    %c3 = arith.constant 3 : index
    %c0_18 = arith.constant 0 : index
    %c0_19 = arith.constant 0 : index
    %30 = vector.load %arg3[%c3, %c0_18, %c0_19] : memref<9x4x128xbf16, #tpu.memory_space<vmem>>, vector<1x4x128xbf16>
    %31 = vector.shape_cast %30 : vector<1x4x128xbf16> to vector<4x128xbf16>
    %cst_20 = arith.constant dense<0.000000e+00> : vector<16x128xf32>
    %32 = tpu.matmul %29, %31, %cst_20 {dimension_numbers = #tpu.dot_dimension_numbers<[1], [0], [0], [1], [0, 0, 1, 1], [], []>} : vector<16x4xbf16>, vector<4x128xbf16>, vector<16x128xf32> -> vector<16x128xf32>
    %33 = arith.addf %24, %32 : vector<16x128xf32>
    %34 = vector.extract_strided_slice %28 {offsets = [1, 0], sizes = [16, 4], strides = [1, 1]} : vector<18x4xbf16> to vector<16x4xbf16>
    %c4 = arith.constant 4 : index
    %c0_21 = arith.constant 0 : index
    %c0_22 = arith.constant 0 : index
    %35 = vector.load %arg3[%c4, %c0_21, %c0_22] : memref<9x4x128xbf16, #tpu.memory_space<vmem>>, vector<1x4x128xbf16>
    %36 = vector.shape_cast %35 : vector<1x4x128xbf16> to vector<4x128xbf16>
    %cst_23 = arith.constant dense<0.000000e+00> : vector<16x128xf32>
    %37 = tpu.matmul %34, %36, %cst_23 {dimension_numbers = #tpu.dot_dimension_numbers<[1], [0], [0], [1], [0, 0, 1, 1], [], []>} : vector<16x4xbf16>, vector<4x128xbf16>, vector<16x128xf32> -> vector<16x128xf32>
    %38 = arith.addf %33, %37 : vector<16x128xf32>
    %39 = vector.extract_strided_slice %28 {offsets = [2, 0], sizes = [16, 4], strides = [1, 1]} : vector<18x4xbf16> to vector<16x4xbf16>
    %c5 = arith.constant 5 : index
    %c0_24 = arith.constant 0 : index
    %c0_25 = arith.constant 0 : index
    %40 = vector.load %arg3[%c5, %c0_24, %c0_25] : memref<9x4x128xbf16, #tpu.memory_space<vmem>>, vector<1x4x128xbf16>
    %41 = vector.shape_cast %40 : vector<1x4x128xbf16> to vector<4x128xbf16>
    %cst_26 = arith.constant dense<0.000000e+00> : vector<16x128xf32>
    %42 = tpu.matmul %39, %41, %cst_26 {dimension_numbers = #tpu.dot_dimension_numbers<[1], [0], [0], [1], [0, 0, 1, 1], [], []>} : vector<16x4xbf16>, vector<4x128xbf16>, vector<16x128xf32> -> vector<16x128xf32>
    %43 = arith.addf %38, %42 : vector<16x128xf32>
    %c2_i32 = arith.constant 2 : i32
    %44 = arith.addi %4, %c2_i32 : i32
    %c0_27 = arith.constant 0 : index
    %45 = arith.index_cast %44 : i32 to index
    %c0_28 = arith.constant 0 : index
    %c0_29 = arith.constant 0 : index
    %46 = vector.load %arg2[%c0_27, %45, %c0_28, %c0_29] : memref<1x18x18x4xbf16, #tpu.memory_space<vmem>>, vector<1x1x18x4xbf16>
    %47 = vector.shape_cast %46 : vector<1x1x18x4xbf16> to vector<18x4xbf16>
    %48 = vector.extract_strided_slice %47 {offsets = [0, 0], sizes = [16, 4], strides = [1, 1]} : vector<18x4xbf16> to vector<16x4xbf16>
    %c6 = arith.constant 6 : index
    %c0_30 = arith.constant 0 : index
    %c0_31 = arith.constant 0 : index
    %49 = vector.load %arg3[%c6, %c0_30, %c0_31] : memref<9x4x128xbf16, #tpu.memory_space<vmem>>, vector<1x4x128xbf16>
    %50 = vector.shape_cast %49 : vector<1x4x128xbf16> to vector<4x128xbf16>
    %cst_32 = arith.constant dense<0.000000e+00> : vector<16x128xf32>
    %51 = tpu.matmul %48, %50, %cst_32 {dimension_numbers = #tpu.dot_dimension_numbers<[1], [0], [0], [1], [0, 0, 1, 1], [], []>} : vector<16x4xbf16>, vector<4x128xbf16>, vector<16x128xf32> -> vector<16x128xf32>
    %52 = arith.addf %43, %51 : vector<16x128xf32>
    %53 = vector.extract_strided_slice %47 {offsets = [1, 0], sizes = [16, 4], strides = [1, 1]} : vector<18x4xbf16> to vector<16x4xbf16>
    %c7 = arith.constant 7 : index
    %c0_33 = arith.constant 0 : index
    %c0_34 = arith.constant 0 : index
    %54 = vector.load %arg3[%c7, %c0_33, %c0_34] : memref<9x4x128xbf16, #tpu.memory_space<vmem>>, vector<1x4x128xbf16>
    %55 = vector.shape_cast %54 : vector<1x4x128xbf16> to vector<4x128xbf16>
    %cst_35 = arith.constant dense<0.000000e+00> : vector<16x128xf32>
    %56 = tpu.matmul %53, %55, %cst_35 {dimension_numbers = #tpu.dot_dimension_numbers<[1], [0], [0], [1], [0, 0, 1, 1], [], []>} : vector<16x4xbf16>, vector<4x128xbf16>, vector<16x128xf32> -> vector<16x128xf32>
    %57 = arith.addf %52, %56 : vector<16x128xf32>
    %58 = vector.extract_strided_slice %47 {offsets = [2, 0], sizes = [16, 4], strides = [1, 1]} : vector<18x4xbf16> to vector<16x4xbf16>
    %c8 = arith.constant 8 : index
    %c0_36 = arith.constant 0 : index
    %c0_37 = arith.constant 0 : index
    %59 = vector.load %arg3[%c8, %c0_36, %c0_37] : memref<9x4x128xbf16, #tpu.memory_space<vmem>>, vector<1x4x128xbf16>
    %60 = vector.shape_cast %59 : vector<1x4x128xbf16> to vector<4x128xbf16>
    %cst_38 = arith.constant dense<0.000000e+00> : vector<16x128xf32>
    %61 = tpu.matmul %58, %60, %cst_38 {dimension_numbers = #tpu.dot_dimension_numbers<[1], [0], [0], [1], [0, 0, 1, 1], [], []>} : vector<16x4xbf16>, vector<4x128xbf16>, vector<16x128xf32> -> vector<16x128xf32>
    %62 = arith.addf %57, %61 : vector<16x128xf32>
    %63 = vector.broadcast %2 : vector<1x128xf32> to vector<16x128xf32>
    %64 = arith.mulf %62, %63 : vector<16x128xf32>
    %65 = vector.broadcast %3 : vector<1x128xf32> to vector<16x128xf32>
    %66 = arith.addf %64, %65 : vector<16x128xf32>
    %cst_39 = arith.constant 0.000000e+00 : f32
    %67 = vector.broadcast %cst_39 : f32 to vector<16x128xf32>
    %68 = arith.maximumf %66, %67 : vector<16x128xf32>
    %c0_40 = arith.constant 0 : index
    %c0_41 = arith.constant 0 : index
    %c0_42 = arith.constant 0 : index
    %c0_43 = arith.constant 0 : index
    %69 = vector.load %arg5[%c0_40, %c0_41, %c0_42, %c0_43] : memref<1x8x16x128xf32, #tpu.memory_space<vmem>>, vector<1x1x16x128xf32>
    %70 = vector.shape_cast %69 : vector<1x1x16x128xf32> to vector<16x128xf32>
    %71 = vector.shape_cast %68 : vector<16x128xf32> to vector<1x1x16x128xf32>
    tpu.vector_store %arg5[%c0_40, %c0_41, %c0_42, %c0_43], %71 {strides = array<i32>} : memref<1x8x16x128xf32, #tpu.memory_space<vmem>>, vector<1x1x16x128xf32>,
    %c1_i32_44 = arith.constant 1 : i32
    %72 = arith.addi %0, %c1_i32_44 : i32
    %cst_45 = arith.constant 0.000000e+00 : f32
    %73 = vector.broadcast %cst_45 : f32 to vector<16x128xf32>
    %c0_i32_46 = arith.constant 0 : i32
    %74 = arith.addi %72, %c0_i32_46 : i32
    %c0_47 = arith.constant 0 : index
    %75 = arith.index_cast %74 : i32 to index
    %c0_48 = arith.constant 0 : index
    %c0_49 = arith.constant 0 : index
    %76 = vector.load %arg2[%c0_47, %75, %c0_48, %c0_49] : memref<1x18x18x4xbf16, #tpu.memory_space<vmem>>, vector<1x1x18x4xbf16>
    %77 = vector.shape_cast %76 : vector<1x1x18x4xbf16> to vector<18x4xbf16>
    %78 = vector.extract_strided_slice %77 {offsets = [0, 0], sizes = [16, 4], strides = [1, 1]} : vector<18x4xbf16> to vector<16x4xbf16>
    %c0_50 = arith.constant 0 : index
    %c0_51 = arith.constant 0 : index
    %c0_52 = arith.constant 0 : index
    %79 = vector.load %arg3[%c0_50, %c0_51, %c0_52] : memref<9x4x128xbf16, #tpu.memory_space<vmem>>, vector<1x4x128xbf16>
    %80 = vector.shape_cast %79 : vector<1x4x128xbf16> to vector<4x128xbf16>
    %cst_53 = arith.constant dense<0.000000e+00> : vector<16x128xf32>
    %81 = tpu.matmul %78, %80, %cst_53 {dimension_numbers = #tpu.dot_dimension_numbers<[1], [0], [0], [1], [0, 0, 1, 1], [], []>} : vector<16x4xbf16>, vector<4x128xbf16>, vector<16x128xf32> -> vector<16x128xf32>
    %82 = arith.addf %73, %81 : vector<16x128xf32>
    %83 = vector.extract_strided_slice %77 {offsets = [1, 0], sizes = [16, 4], strides = [1, 1]} : vector<18x4xbf16> to vector<16x4xbf16>
    %c1_54 = arith.constant 1 : index
    %c0_55 = arith.constant 0 : index
    %c0_56 = arith.constant 0 : index
    %84 = vector.load %arg3[%c1_54, %c0_55, %c0_56] : memref<9x4x128xbf16, #tpu.memory_space<vmem>>, vector<1x4x128xbf16>
    %85 = vector.shape_cast %84 : vector<1x4x128xbf16> to vector<4x128xbf16>
    %cst_57 = arith.constant dense<0.000000e+00> : vector<16x128xf32>
    %86 = tpu.matmul %83, %85, %cst_57 {dimension_numbers = #tpu.dot_dimension_numbers<[1], [0], [0], [1], [0, 0, 1, 1], [], []>} : vector<16x4xbf16>, vector<4x128xbf16>, vector<16x128xf32> -> vector<16x128xf32>
    %87 = arith.addf %82, %86 : vector<16x128xf32>
    %88 = vector.extract_strided_slice %77 {offsets = [2, 0], sizes = [16, 4], strides = [1, 1]} : vector<18x4xbf16> to vector<16x4xbf16>
    %c2_58 = arith.constant 2 : index
    %c0_59 = arith.constant 0 : index
    %c0_60 = arith.constant 0 : index
    %89 = vector.load %arg3[%c2_58, %c0_59, %c0_60] : memref<9x4x128xbf16, #tpu.memory_space<vmem>>, vector<1x4x128xbf16>
    %90 = vector.shape_cast %89 : vector<1x4x128xbf16> to vector<4x128xbf16>
    %cst_61 = arith.constant dense<0.000000e+00> : vector<16x128xf32>
    %91 = tpu.matmul %88, %90, %cst_61 {dimension_numbers = #tpu.dot_dimension_numbers<[1], [0], [0], [1], [0, 0, 1, 1], [], []>} : vector<16x4xbf16>, vector<4x128xbf16>, vector<16x128xf32> -> vector<16x128xf32>
    %92 = arith.addf %87, %91 : vector<16x128xf32>
    %c1_i32_62 = arith.constant 1 : i32
    %93 = arith.addi %72, %c1_i32_62 : i32
    %c0_63 = arith.constant 0 : index
    %94 = arith.index_cast %93 : i32 to index
    %c0_64 = arith.constant 0 : index
    %c0_65 = arith.constant 0 : index
    %95 = vector.load %arg2[%c0_63, %94, %c0_64, %c0_65] : memref<1x18x18x4xbf16, #tpu.memory_space<vmem>>, vector<1x1x18x4xbf16>
    %96 = vector.shape_cast %95 : vector<1x1x18x4xbf16> to vector<18x4xbf16>
    %97 = vector.extract_strided_slice %96 {offsets = [0, 0], sizes = [16, 4], strides = [1, 1]} : vector<18x4xbf16> to vector<16x4xbf16>
    %c3_66 = arith.constant 3 : index
    %c0_67 = arith.constant 0 : index
    %c0_68 = arith.constant 0 : index
    %98 = vector.load %arg3[%c3_66, %c0_67, %c0_68] : memref<9x4x128xbf16, #tpu.memory_space<vmem>>, vector<1x4x128xbf16>
    %99 = vector.shape_cast %98 : vector<1x4x128xbf16> to vector<4x128xbf16>
    %cst_69 = arith.constant dense<0.000000e+00> : vector<16x128xf32>
    %100 = tpu.matmul %97, %99, %cst_69 {dimension_numbers = #tpu.dot_dimension_numbers<[1], [0], [0], [1], [0, 0, 1, 1], [], []>} : vector<16x4xbf16>, vector<4x128xbf16>, vector<16x128xf32> -> vector<16x128xf32>
    %101 = arith.addf %92, %100 : vector<16x128xf32>
    %102 = vector.extract_strided_slice %96 {offsets = [1, 0], sizes = [16, 4], strides = [1, 1]} : vector<18x4xbf16> to vector<16x4xbf16>
    %c4_70 = arith.constant 4 : index
    %c0_71 = arith.constant 0 : index
    %c0_72 = arith.constant 0 : index
    %103 = vector.load %arg3[%c4_70, %c0_71, %c0_72] : memref<9x4x128xbf16, #tpu.memory_space<vmem>>, vector<1x4x128xbf16>
    %104 = vector.shape_cast %103 : vector<1x4x128xbf16> to vector<4x128xbf16>
    %cst_73 = arith.constant dense<0.000000e+00> : vector<16x128xf32>
    %105 = tpu.matmul %102, %104, %cst_73 {dimension_numbers = #tpu.dot_dimension_numbers<[1], [0], [0], [1], [0, 0, 1, 1], [], []>} : vector<16x4xbf16>, vector<4x128xbf16>, vector<16x128xf32> -> vector<16x128xf32>
    %106 = arith.addf %101, %105 : vector<16x128xf32>
    %107 = vector.extract_strided_slice %96 {offsets = [2, 0], sizes = [16, 4], strides = [1, 1]} : vector<18x4xbf16> to vector<16x4xbf16>
    %c5_74 = arith.constant 5 : index
    %c0_75 = arith.constant 0 : index
    %c0_76 = arith.constant 0 : index
    %108 = vector.load %arg3[%c5_74, %c0_75, %c0_76] : memref<9x4x128xbf16, #tpu.memory_space<vmem>>, vector<1x4x128xbf16>
    %109 = vector.shape_cast %108 : vector<1x4x128xbf16> to vector<4x128xbf16>
    %cst_77 = arith.constant dense<0.000000e+00> : vector<16x128xf32>
    %110 = tpu.matmul %107, %109, %cst_77 {dimension_numbers = #tpu.dot_dimension_numbers<[1], [0], [0], [1], [0, 0, 1, 1], [], []>} : vector<16x4xbf16>, vector<4x128xbf16>, vector<16x128xf32> -> vector<16x128xf32>
    %111 = arith.addf %106, %110 : vector<16x128xf32>
    %c2_i32_78 = arith.constant 2 : i32
    %112 = arith.addi %72, %c2_i32_78 : i32
    %c0_79 = arith.constant 0 : index
    %113 = arith.index_cast %112 : i32 to index
    %c0_80 = arith.constant 0 : index
    %c0_81 = arith.constant 0 : index
    %114 = vector.load %arg2[%c0_79, %113, %c0_80, %c0_81] : memref<1x18x18x4xbf16, #tpu.memory_space<vmem>>, vector<1x1x18x4xbf16>
    %115 = vector.shape_cast %114 : vector<1x1x18x4xbf16> to vector<18x4xbf16>
    %116 = vector.extract_strided_slice %115 {offsets = [0, 0], sizes = [16, 4], strides = [1, 1]} : vector<18x4xbf16> to vector<16x4xbf16>
    %c6_82 = arith.constant 6 : index
    %c0_83 = arith.constant 0 : index
    %c0_84 = arith.constant 0 : index
    %117 = vector.load %arg3[%c6_82, %c0_83, %c0_84] : memref<9x4x128xbf16, #tpu.memory_space<vmem>>, vector<1x4x128xbf16>
    %118 = vector.shape_cast %117 : vector<1x4x128xbf16> to vector<4x128xbf16>
    %cst_85 = arith.constant dense<0.000000e+00> : vector<16x128xf32>
    %119 = tpu.matmul %116, %118, %cst_85 {dimension_numbers = #tpu.dot_dimension_numbers<[1], [0], [0], [1], [0, 0, 1, 1], [], []>} : vector<16x4xbf16>, vector<4x128xbf16>, vector<16x128xf32> -> vector<16x128xf32>
    %120 = arith.addf %111, %119 : vector<16x128xf32>
    %121 = vector.extract_strided_slice %115 {offsets = [1, 0], sizes = [16, 4], strides = [1, 1]} : vector<18x4xbf16> to vector<16x4xbf16>
    %c7_86 = arith.constant 7 : index
    %c0_87 = arith.constant 0 : index
    %c0_88 = arith.constant 0 : index
    %122 = vector.load %arg3[%c7_86, %c0_87, %c0_88] : memref<9x4x128xbf16, #tpu.memory_space<vmem>>, vector<1x4x128xbf16>
    %123 = vector.shape_cast %122 : vector<1x4x128xbf16> to vector<4x128xbf16>
    %cst_89 = arith.constant dense<0.000000e+00> : vector<16x128xf32>
    %124 = tpu.matmul %121, %123, %cst_89 {dimension_numbers = #tpu.dot_dimension_numbers<[1], [0], [0], [1], [0, 0, 1, 1], [], []>} : vector<16x4xbf16>, vector<4x128xbf16>, vector<16x128xf32> -> vector<16x128xf32>
    %125 = arith.addf %120, %124 : vector<16x128xf32>
    %126 = vector.extract_strided_slice %115 {offsets = [2, 0], sizes = [16, 4], strides = [1, 1]} : vector<18x4xbf16> to vector<16x4xbf16>
    %c8_90 = arith.constant 8 : index
    %c0_91 = arith.constant 0 : index
    %c0_92 = arith.constant 0 : index
    %127 = vector.load %arg3[%c8_90, %c0_91, %c0_92] : memref<9x4x128xbf16, #tpu.memory_space<vmem>>, vector<1x4x128xbf16>
    %128 = vector.shape_cast %127 : vector<1x4x128xbf16> to vector<4x128xbf16>
    %cst_93 = arith.constant dense<0.000000e+00> : vector<16x128xf32>
    %129 = tpu.matmul %126, %128, %cst_93 {dimension_numbers = #tpu.dot_dimension_numbers<[1], [0], [0], [1], [0, 0, 1, 1], [], []>} : vector<16x4xbf16>, vector<4x128xbf16>, vector<16x128xf32> -> vector<16x128xf32>
    %130 = arith.addf %125, %129 : vector<16x128xf32>
    %131 = vector.broadcast %2 : vector<1x128xf32> to vector<16x128xf32>
    %132 = arith.mulf %130, %131 : vector<16x128xf32>
    %133 = vector.broadcast %3 : vector<1x128xf32> to vector<16x128xf32>
    %134 = arith.addf %132, %133 : vector<16x128xf32>
    %cst_94 = arith.constant 0.000000e+00 : f32
    %135 = vector.broadcast %cst_94 : f32 to vector<16x128xf32>
    %136 = arith.maximumf %134, %135 : vector<16x128xf32>
    %c0_95 = arith.constant 0 : index
    %c1_96 = arith.constant 1 : index
    %c0_97 = arith.constant 0 : index
    %c0_98 = arith.constant 0 : index
    %137 = vector.load %arg5[%c0_95, %c1_96, %c0_97, %c0_98] : memref<1x8x16x128xf32, #tpu.memory_space<vmem>>, vector<1x1x16x128xf32>
    %138 = vector.shape_cast %137 : vector<1x1x16x128xf32> to vector<16x128xf32>
    %139 = vector.shape_cast %136 : vector<16x128xf32> to vector<1x1x16x128xf32>
    tpu.vector_store %arg5[%c0_95, %c1_96, %c0_97, %c0_98], %139 {strides = array<i32>} : memref<1x8x16x128xf32, #tpu.memory_space<vmem>>, vector<1x1x16x128xf32>,
    %c2_i32_99 = arith.constant 2 : i32
    %140 = arith.addi %0, %c2_i32_99 : i32
    %cst_100 = arith.constant 0.000000e+00 : f32
    %141 = vector.broadcast %cst_100 : f32 to vector<16x128xf32>
    %c0_i32_101 = arith.constant 0 : i32
    %142 = arith.addi %140, %c0_i32_101 : i32
    %c0_102 = arith.constant 0 : index
    %143 = arith.index_cast %142 : i32 to index
    %c0_103 = arith.constant 0 : index
    %c0_104 = arith.constant 0 : index
    %144 = vector.load %arg2[%c0_102, %143, %c0_103, %c0_104] : memref<1x18x18x4xbf16, #tpu.memory_space<vmem>>, vector<1x1x18x4xbf16>
    %145 = vector.shape_cast %144 : vector<1x1x18x4xbf16> to vector<18x4xbf16>
    %146 = vector.extract_strided_slice %145 {offsets = [0, 0], sizes = [16, 4], strides = [1, 1]} : vector<18x4xbf16> to vector<16x4xbf16>
    %c0_105 = arith.constant 0 : index
    %c0_106 = arith.constant 0 : index
    %c0_107 = arith.constant 0 : index
    %147 = vector.load %arg3[%c0_105, %c0_106, %c0_107] : memref<9x4x128xbf16, #tpu.memory_space<vmem>>, vector<1x4x128xbf16>
    %148 = vector.shape_cast %147 : vector<1x4x128xbf16> to vector<4x128xbf16>
    %cst_108 = arith.constant dense<0.000000e+00> : vector<16x128xf32>
    %149 = tpu.matmul %146, %148, %cst_108 {dimension_numbers = #tpu.dot_dimension_numbers<[1], [0], [0], [1], [0, 0, 1, 1], [], []>} : vector<16x4xbf16>, vector<4x128xbf16>, vector<16x128xf32> -> vector<16x128xf32>
    %150 = arith.addf %141, %149 : vector<16x128xf32>
    %151 = vector.extract_strided_slice %145 {offsets = [1, 0], sizes = [16, 4], strides = [1, 1]} : vector<18x4xbf16> to vector<16x4xbf16>
    %c1_109 = arith.constant 1 : index
    %c0_110 = arith.constant 0 : index
    %c0_111 = arith.constant 0 : index
    %152 = vector.load %arg3[%c1_109, %c0_110, %c0_111] : memref<9x4x128xbf16, #tpu.memory_space<vmem>>, vector<1x4x128xbf16>
    %153 = vector.shape_cast %152 : vector<1x4x128xbf16> to vector<4x128xbf16>
    %cst_112 = arith.constant dense<0.000000e+00> : vector<16x128xf32>
    %154 = tpu.matmul %151, %153, %cst_112 {dimension_numbers = #tpu.dot_dimension_numbers<[1], [0], [0], [1], [0, 0, 1, 1], [], []>} : vector<16x4xbf16>, vector<4x128xbf16>, vector<16x128xf32> -> vector<16x128xf32>
    %155 = arith.addf %150, %154 : vector<16x128xf32>
    %156 = vector.extract_strided_slice %145 {offsets = [2, 0], sizes = [16, 4], strides = [1, 1]} : vector<18x4xbf16> to vector<16x4xbf16>
    %c2_113 = arith.constant 2 : index
    %c0_114 = arith.constant 0 : index
    %c0_115 = arith.constant 0 : index
    %157 = vector.load %arg3[%c2_113, %c0_114, %c0_115] : memref<9x4x128xbf16, #tpu.memory_space<vmem>>, vector<1x4x128xbf16>
    %158 = vector.shape_cast %157 : vector<1x4x128xbf16> to vector<4x128xbf16>
    %cst_116 = arith.constant dense<0.000000e+00> : vector<16x128xf32>
    %159 = tpu.matmul %156, %158, %cst_116 {dimension_numbers = #tpu.dot_dimension_numbers<[1], [0], [0], [1], [0, 0, 1, 1], [], []>} : vector<16x4xbf16>, vector<4x128xbf16>, vector<16x128xf32> -> vector<16x128xf32>
    %160 = arith.addf %155, %159 : vector<16x128xf32>
    %c1_i32_117 = arith.constant 1 : i32
    %161 = arith.addi %140, %c1_i32_117 : i32
    %c0_118 = arith.constant 0 : index
    %162 = arith.index_cast %161 : i32 to index
    %c0_119 = arith.constant 0 : index
    %c0_120 = arith.constant 0 : index
    %163 = vector.load %arg2[%c0_118, %162, %c0_119, %c0_120] : memref<1x18x18x4xbf16, #tpu.memory_space<vmem>>, vector<1x1x18x4xbf16>
    %164 = vector.shape_cast %163 : vector<1x1x18x4xbf16> to vector<18x4xbf16>
    %165 = vector.extract_strided_slice %164 {offsets = [0, 0], sizes = [16, 4], strides = [1, 1]} : vector<18x4xbf16> to vector<16x4xbf16>
    %c3_121 = arith.constant 3 : index
    %c0_122 = arith.constant 0 : index
    %c0_123 = arith.constant 0 : index
    %166 = vector.load %arg3[%c3_121, %c0_122, %c0_123] : memref<9x4x128xbf16, #tpu.memory_space<vmem>>, vector<1x4x128xbf16>
    %167 = vector.shape_cast %166 : vector<1x4x128xbf16> to vector<4x128xbf16>
    %cst_124 = arith.constant dense<0.000000e+00> : vector<16x128xf32>
    %168 = tpu.matmul %165, %167, %cst_124 {dimension_numbers = #tpu.dot_dimension_numbers<[1], [0], [0], [1], [0, 0, 1, 1], [], []>} : vector<16x4xbf16>, vector<4x128xbf16>, vector<16x128xf32> -> vector<16x128xf32>
    %169 = arith.addf %160, %168 : vector<16x128xf32>
    %170 = vector.extract_strided_slice %164 {offsets = [1, 0], sizes = [16, 4], strides = [1, 1]} : vector<18x4xbf16> to vector<16x4xbf16>
    %c4_125 = arith.constant 4 : index
    %c0_126 = arith.constant 0 : index
    %c0_127 = arith.constant 0 : index
    %171 = vector.load %arg3[%c4_125, %c0_126, %c0_127] : memref<9x4x128xbf16, #tpu.memory_space<vmem>>, vector<1x4x128xbf16>
    %172 = vector.shape_cast %171 : vector<1x4x128xbf16> to vector<4x128xbf16>
    %cst_128 = arith.constant dense<0.000000e+00> : vector<16x128xf32>
    %173 = tpu.matmul %170, %172, %cst_128 {dimension_numbers = #tpu.dot_dimension_numbers<[1], [0], [0], [1], [0, 0, 1, 1], [], []>} : vector<16x4xbf16>, vector<4x128xbf16>, vector<16x128xf32> -> vector<16x128xf32>
    %174 = arith.addf %169, %173 : vector<16x128xf32>
    %175 = vector.extract_strided_slice %164 {offsets = [2, 0], sizes = [16, 4], strides = [1, 1]} : vector<18x4xbf16> to vector<16x4xbf16>
    %c5_129 = arith.constant 5 : index
    %c0_130 = arith.constant 0 : index
    %c0_131 = arith.constant 0 : index
    %176 = vector.load %arg3[%c5_129, %c0_130, %c0_131] : memref<9x4x128xbf16, #tpu.memory_space<vmem>>, vector<1x4x128xbf16>
    %177 = vector.shape_cast %176 : vector<1x4x128xbf16> to vector<4x128xbf16>
    %cst_132 = arith.constant dense<0.000000e+00> : vector<16x128xf32>
    %178 = tpu.matmul %175, %177, %cst_132 {dimension_numbers = #tpu.dot_dimension_numbers<[1], [0], [0], [1], [0, 0, 1, 1], [], []>} : vector<16x4xbf16>, vector<4x128xbf16>, vector<16x128xf32> -> vector<16x128xf32>
    %179 = arith.addf %174, %178 : vector<16x128xf32>
    %c2_i32_133 = arith.constant 2 : i32
    %180 = arith.addi %140, %c2_i32_133 : i32
    %c0_134 = arith.constant 0 : index
    %181 = arith.index_cast %180 : i32 to index
    %c0_135 = arith.constant 0 : index
    %c0_136 = arith.constant 0 : index
    %182 = vector.load %arg2[%c0_134, %181, %c0_135, %c0_136] : memref<1x18x18x4xbf16, #tpu.memory_space<vmem>>, vector<1x1x18x4xbf16>
    %183 = vector.shape_cast %182 : vector<1x1x18x4xbf16> to vector<18x4xbf16>
    %184 = vector.extract_strided_slice %183 {offsets = [0, 0], sizes = [16, 4], strides = [1, 1]} : vector<18x4xbf16> to vector<16x4xbf16>
    %c6_137 = arith.constant 6 : index
    %c0_138 = arith.constant 0 : index
    %c0_139 = arith.constant 0 : index
    %185 = vector.load %arg3[%c6_137, %c0_138, %c0_139] : memref<9x4x128xbf16, #tpu.memory_space<vmem>>, vector<1x4x128xbf16>
    %186 = vector.shape_cast %185 : vector<1x4x128xbf16> to vector<4x128xbf16>
    %cst_140 = arith.constant dense<0.000000e+00> : vector<16x128xf32>
    %187 = tpu.matmul %184, %186, %cst_140 {dimension_numbers = #tpu.dot_dimension_numbers<[1], [0], [0], [1], [0, 0, 1, 1], [], []>} : vector<16x4xbf16>, vector<4x128xbf16>, vector<16x128xf32> -> vector<16x128xf32>
    %188 = arith.addf %179, %187 : vector<16x128xf32>
    %189 = vector.extract_strided_slice %183 {offsets = [1, 0], sizes = [16, 4], strides = [1, 1]} : vector<18x4xbf16> to vector<16x4xbf16>
    %c7_141 = arith.constant 7 : index
    %c0_142 = arith.constant 0 : index
    %c0_143 = arith.constant 0 : index
    %190 = vector.load %arg3[%c7_141, %c0_142, %c0_143] : memref<9x4x128xbf16, #tpu.memory_space<vmem>>, vector<1x4x128xbf16>
    %191 = vector.shape_cast %190 : vector<1x4x128xbf16> to vector<4x128xbf16>
    %cst_144 = arith.constant dense<0.000000e+00> : vector<16x128xf32>
    %192 = tpu.matmul %189, %191, %cst_144 {dimension_numbers = #tpu.dot_dimension_numbers<[1], [0], [0], [1], [0, 0, 1, 1], [], []>} : vector<16x4xbf16>, vector<4x128xbf16>, vector<16x128xf32> -> vector<16x128xf32>
    %193 = arith.addf %188, %192 : vector<16x128xf32>
    %194 = vector.extract_strided_slice %183 {offsets = [2, 0], sizes = [16, 4], strides = [1, 1]} : vector<18x4xbf16> to vector<16x4xbf16>
    %c8_145 = arith.constant 8 : index
    %c0_146 = arith.constant 0 : index
    %c0_147 = arith.constant 0 : index
    %195 = vector.load %arg3[%c8_145, %c0_146, %c0_147] : memref<9x4x128xbf16, #tpu.memory_space<vmem>>, vector<1x4x128xbf16>
    %196 = vector.shape_cast %195 : vector<1x4x128xbf16> to vector<4x128xbf16>
    %cst_148 = arith.constant dense<0.000000e+00> : vector<16x128xf32>
    %197 = tpu.matmul %194, %196, %cst_148 {dimension_numbers = #tpu.dot_dimension_numbers<[1], [0], [0], [1], [0, 0, 1, 1], [], []>} : vector<16x4xbf16>, vector<4x128xbf16>, vector<16x128xf32> -> vector<16x128xf32>
    %198 = arith.addf %193, %197 : vector<16x128xf32>
    %199 = vector.broadcast %2 : vector<1x128xf32> to vector<16x128xf32>
    %200 = arith.mulf %198, %199 : vector<16x128xf32>
    %201 = vector.broadcast %3 : vector<1x128xf32> to vector<16x128xf32>
    %202 = arith.addf %200, %201 : vector<16x128xf32>
    %cst_149 = arith.constant 0.000000e+00 : f32
    %203 = vector.broadcast %cst_149 : f32 to vector<16x128xf32>
    %204 = arith.maximumf %202, %203 : vector<16x128xf32>
    %c0_150 = arith.constant 0 : index
    %c2_151 = arith.constant 2 : index
    %c0_152 = arith.constant 0 : index
    %c0_153 = arith.constant 0 : index
    %205 = vector.load %arg5[%c0_150, %c2_151, %c0_152, %c0_153] : memref<1x8x16x128xf32, #tpu.memory_space<vmem>>, vector<1x1x16x128xf32>
    %206 = vector.shape_cast %205 : vector<1x1x16x128xf32> to vector<16x128xf32>
    %207 = vector.shape_cast %204 : vector<16x128xf32> to vector<1x1x16x128xf32>
    tpu.vector_store %arg5[%c0_150, %c2_151, %c0_152, %c0_153], %207 {strides = array<i32>} : memref<1x8x16x128xf32, #tpu.memory_space<vmem>>, vector<1x1x16x128xf32>,
    %c3_i32 = arith.constant 3 : i32
    %208 = arith.addi %0, %c3_i32 : i32
    %cst_154 = arith.constant 0.000000e+00 : f32
    %209 = vector.broadcast %cst_154 : f32 to vector<16x128xf32>
    %c0_i32_155 = arith.constant 0 : i32
    %210 = arith.addi %208, %c0_i32_155 : i32
    %c0_156 = arith.constant 0 : index
    %211 = arith.index_cast %210 : i32 to index
    %c0_157 = arith.constant 0 : index
    %c0_158 = arith.constant 0 : index
    %212 = vector.load %arg2[%c0_156, %211, %c0_157, %c0_158] : memref<1x18x18x4xbf16, #tpu.memory_space<vmem>>, vector<1x1x18x4xbf16>
    %213 = vector.shape_cast %212 : vector<1x1x18x4xbf16> to vector<18x4xbf16>
    %214 = vector.extract_strided_slice %213 {offsets = [0, 0], sizes = [16, 4], strides = [1, 1]} : vector<18x4xbf16> to vector<16x4xbf16>
    %c0_159 = arith.constant 0 : index
    %c0_160 = arith.constant 0 : index
    %c0_161 = arith.constant 0 : index
    %215 = vector.load %arg3[%c0_159, %c0_160, %c0_161] : memref<9x4x128xbf16, #tpu.memory_space<vmem>>, vector<1x4x128xbf16>
    %216 = vector.shape_cast %215 : vector<1x4x128xbf16> to vector<4x128xbf16>
    %cst_162 = arith.constant dense<0.000000e+00> : vector<16x128xf32>
    %217 = tpu.matmul %214, %216, %cst_162 {dimension_numbers = #tpu.dot_dimension_numbers<[1], [0], [0], [1], [0, 0, 1, 1], [], []>} : vector<16x4xbf16>, vector<4x128xbf16>, vector<16x128xf32> -> vector<16x128xf32>
    %218 = arith.addf %209, %217 : vector<16x128xf32>
    %219 = vector.extract_strided_slice %213 {offsets = [1, 0], sizes = [16, 4], strides = [1, 1]} : vector<18x4xbf16> to vector<16x4xbf16>
    %c1_163 = arith.constant 1 : index
    %c0_164 = arith.constant 0 : index
    %c0_165 = arith.constant 0 : index
    %220 = vector.load %arg3[%c1_163, %c0_164, %c0_165] : memref<9x4x128xbf16, #tpu.memory_space<vmem>>, vector<1x4x128xbf16>
    %221 = vector.shape_cast %220 : vector<1x4x128xbf16> to vector<4x128xbf16>
    %cst_166 = arith.constant dense<0.000000e+00> : vector<16x128xf32>
    %222 = tpu.matmul %219, %221, %cst_166 {dimension_numbers = #tpu.dot_dimension_numbers<[1], [0], [0], [1], [0, 0, 1, 1], [], []>} : vector<16x4xbf16>, vector<4x128xbf16>, vector<16x128xf32> -> vector<16x128xf32>
    %223 = arith.addf %218, %222 : vector<16x128xf32>
    %224 = vector.extract_strided_slice %213 {offsets = [2, 0], sizes = [16, 4], strides = [1, 1]} : vector<18x4xbf16> to vector<16x4xbf16>
    %c2_167 = arith.constant 2 : index
    %c0_168 = arith.constant 0 : index
    %c0_169 = arith.constant 0 : index
    %225 = vector.load %arg3[%c2_167, %c0_168, %c0_169] : memref<9x4x128xbf16, #tpu.memory_space<vmem>>, vector<1x4x128xbf16>
    %226 = vector.shape_cast %225 : vector<1x4x128xbf16> to vector<4x128xbf16>
    %cst_170 = arith.constant dense<0.000000e+00> : vector<16x128xf32>
    %227 = tpu.matmul %224, %226, %cst_170 {dimension_numbers = #tpu.dot_dimension_numbers<[1], [0], [0], [1], [0, 0, 1, 1], [], []>} : vector<16x4xbf16>, vector<4x128xbf16>, vector<16x128xf32> -> vector<16x128xf32>
    %228 = arith.addf %223, %227 : vector<16x128xf32>
    %c1_i32_171 = arith.constant 1 : i32
    %229 = arith.addi %208, %c1_i32_171 : i32
    %c0_172 = arith.constant 0 : index
    %230 = arith.index_cast %229 : i32 to index
    %c0_173 = arith.constant 0 : index
    %c0_174 = arith.constant 0 : index
    %231 = vector.load %arg2[%c0_172, %230, %c0_173, %c0_174] : memref<1x18x18x4xbf16, #tpu.memory_space<vmem>>, vector<1x1x18x4xbf16>
    %232 = vector.shape_cast %231 : vector<1x1x18x4xbf16> to vector<18x4xbf16>
    %233 = vector.extract_strided_slice %232 {offsets = [0, 0], sizes = [16, 4], strides = [1, 1]} : vector<18x4xbf16> to vector<16x4xbf16>
    %c3_175 = arith.constant 3 : index
    %c0_176 = arith.constant 0 : index
    %c0_177 = arith.constant 0 : index
    %234 = vector.load %arg3[%c3_175, %c0_176, %c0_177] : memref<9x4x128xbf16, #tpu.memory_space<vmem>>, vector<1x4x128xbf16>
    %235 = vector.shape_cast %234 : vector<1x4x128xbf16> to vector<4x128xbf16>
    %cst_178 = arith.constant dense<0.000000e+00> : vector<16x128xf32>
    %236 = tpu.matmul %233, %235, %cst_178 {dimension_numbers = #tpu.dot_dimension_numbers<[1], [0], [0], [1], [0, 0, 1, 1], [], []>} : vector<16x4xbf16>, vector<4x128xbf16>, vector<16x128xf32> -> vector<16x128xf32>
    %237 = arith.addf %228, %236 : vector<16x128xf32>
    %238 = vector.extract_strided_slice %232 {offsets = [1, 0], sizes = [16, 4], strides = [1, 1]} : vector<18x4xbf16> to vector<16x4xbf16>
    %c4_179 = arith.constant 4 : index
    %c0_180 = arith.constant 0 : index
    %c0_181 = arith.constant 0 : index
    %239 = vector.load %arg3[%c4_179, %c0_180, %c0_181] : memref<9x4x128xbf16, #tpu.memory_space<vmem>>, vector<1x4x128xbf16>
    %240 = vector.shape_cast %239 : vector<1x4x128xbf16> to vector<4x128xbf16>
    %cst_182 = arith.constant dense<0.000000e+00> : vector<16x128xf32>
    %241 = tpu.matmul %238, %240, %cst_182 {dimension_numbers = #tpu.dot_dimension_numbers<[1], [0], [0], [1], [0, 0, 1, 1], [], []>} : vector<16x4xbf16>, vector<4x128xbf16>, vector<16x128xf32> -> vector<16x128xf32>
    %242 = arith.addf %237, %241 : vector<16x128xf32>
    %243 = vector.extract_strided_slice %232 {offsets = [2, 0], sizes = [16, 4], strides = [1, 1]} : vector<18x4xbf16> to vector<16x4xbf16>
    %c5_183 = arith.constant 5 : index
    %c0_184 = arith.constant 0 : index
    %c0_185 = arith.constant 0 : index
    %244 = vector.load %arg3[%c5_183, %c0_184, %c0_185] : memref<9x4x128xbf16, #tpu.memory_space<vmem>>, vector<1x4x128xbf16>
    %245 = vector.shape_cast %244 : vector<1x4x128xbf16> to vector<4x128xbf16>
    %cst_186 = arith.constant dense<0.000000e+00> : vector<16x128xf32>
    %246 = tpu.matmul %243, %245, %cst_186 {dimension_numbers = #tpu.dot_dimension_numbers<[1], [0], [0], [1], [0, 0, 1, 1], [], []>} : vector<16x4xbf16>, vector<4x128xbf16>, vector<16x128xf32> -> vector<16x128xf32>
    %247 = arith.addf %242, %246 : vector<16x128xf32>
    %c2_i32_187 = arith.constant 2 : i32
    %248 = arith.addi %208, %c2_i32_187 : i32
    %c0_188 = arith.constant 0 : index
    %249 = arith.index_cast %248 : i32 to index
    %c0_189 = arith.constant 0 : index
    %c0_190 = arith.constant 0 : index
    %250 = vector.load %arg2[%c0_188, %249, %c0_189, %c0_190] : memref<1x18x18x4xbf16, #tpu.memory_space<vmem>>, vector<1x1x18x4xbf16>
    %251 = vector.shape_cast %250 : vector<1x1x18x4xbf16> to vector<18x4xbf16>
    %252 = vector.extract_strided_slice %251 {offsets = [0, 0], sizes = [16, 4], strides = [1, 1]} : vector<18x4xbf16> to vector<16x4xbf16>
    %c6_191 = arith.constant 6 : index
    %c0_192 = arith.constant 0 : index
    %c0_193 = arith.constant 0 : index
    %253 = vector.load %arg3[%c6_191, %c0_192, %c0_193] : memref<9x4x128xbf16, #tpu.memory_space<vmem>>, vector<1x4x128xbf16>
    %254 = vector.shape_cast %253 : vector<1x4x128xbf16> to vector<4x128xbf16>
    %cst_194 = arith.constant dense<0.000000e+00> : vector<16x128xf32>
    %255 = tpu.matmul %252, %254, %cst_194 {dimension_numbers = #tpu.dot_dimension_numbers<[1], [0], [0], [1], [0, 0, 1, 1], [], []>} : vector<16x4xbf16>, vector<4x128xbf16>, vector<16x128xf32> -> vector<16x128xf32>
    %256 = arith.addf %247, %255 : vector<16x128xf32>
    %257 = vector.extract_strided_slice %251 {offsets = [1, 0], sizes = [16, 4], strides = [1, 1]} : vector<18x4xbf16> to vector<16x4xbf16>
    %c7_195 = arith.constant 7 : index
    %c0_196 = arith.constant 0 : index
    %c0_197 = arith.constant 0 : index
    %258 = vector.load %arg3[%c7_195, %c0_196, %c0_197] : memref<9x4x128xbf16, #tpu.memory_space<vmem>>, vector<1x4x128xbf16>
    %259 = vector.shape_cast %258 : vector<1x4x128xbf16> to vector<4x128xbf16>
    %cst_198 = arith.constant dense<0.000000e+00> : vector<16x128xf32>
    %260 = tpu.matmul %257, %259, %cst_198 {dimension_numbers = #tpu.dot_dimension_numbers<[1], [0], [0], [1], [0, 0, 1, 1], [], []>} : vector<16x4xbf16>, vector<4x128xbf16>, vector<16x128xf32> -> vector<16x128xf32>
    %261 = arith.addf %256, %260 : vector<16x128xf32>
    %262 = vector.extract_strided_slice %251 {offsets = [2, 0], sizes = [16, 4], strides = [1, 1]} : vector<18x4xbf16> to vector<16x4xbf16>
    %c8_199 = arith.constant 8 : index
    %c0_200 = arith.constant 0 : index
    %c0_201 = arith.constant 0 : index
    %263 = vector.load %arg3[%c8_199, %c0_200, %c0_201] : memref<9x4x128xbf16, #tpu.memory_space<vmem>>, vector<1x4x128xbf16>
    %264 = vector.shape_cast %263 : vector<1x4x128xbf16> to vector<4x128xbf16>
    %cst_202 = arith.constant dense<0.000000e+00> : vector<16x128xf32>
    %265 = tpu.matmul %262, %264, %cst_202 {dimension_numbers = #tpu.dot_dimension_numbers<[1], [0], [0], [1], [0, 0, 1, 1], [], []>} : vector<16x4xbf16>, vector<4x128xbf16>, vector<16x128xf32> -> vector<16x128xf32>
    %266 = arith.addf %261, %265 : vector<16x128xf32>
    %267 = vector.broadcast %2 : vector<1x128xf32> to vector<16x128xf32>
    %268 = arith.mulf %266, %267 : vector<16x128xf32>
    %269 = vector.broadcast %3 : vector<1x128xf32> to vector<16x128xf32>
    %270 = arith.addf %268, %269 : vector<16x128xf32>
    %cst_203 = arith.constant 0.000000e+00 : f32
    %271 = vector.broadcast %cst_203 : f32 to vector<16x128xf32>
    %272 = arith.maximumf %270, %271 : vector<16x128xf32>
    %c0_204 = arith.constant 0 : index
    %c3_205 = arith.constant 3 : index
    %c0_206 = arith.constant 0 : index
    %c0_207 = arith.constant 0 : index
    %273 = vector.load %arg5[%c0_204, %c3_205, %c0_206, %c0_207] : memref<1x8x16x128xf32, #tpu.memory_space<vmem>>, vector<1x1x16x128xf32>
    %274 = vector.shape_cast %273 : vector<1x1x16x128xf32> to vector<16x128xf32>
    %275 = vector.shape_cast %272 : vector<16x128xf32> to vector<1x1x16x128xf32>
    tpu.vector_store %arg5[%c0_204, %c3_205, %c0_206, %c0_207], %275 {strides = array<i32>} : memref<1x8x16x128xf32, #tpu.memory_space<vmem>>, vector<1x1x16x128xf32>,
    %c4_i32 = arith.constant 4 : i32
    %276 = arith.addi %0, %c4_i32 : i32
    %cst_208 = arith.constant 0.000000e+00 : f32
    %277 = vector.broadcast %cst_208 : f32 to vector<16x128xf32>
    %c0_i32_209 = arith.constant 0 : i32
    %278 = arith.addi %276, %c0_i32_209 : i32
    %c0_210 = arith.constant 0 : index
    %279 = arith.index_cast %278 : i32 to index
    %c0_211 = arith.constant 0 : index
    %c0_212 = arith.constant 0 : index
    %280 = vector.load %arg2[%c0_210, %279, %c0_211, %c0_212] : memref<1x18x18x4xbf16, #tpu.memory_space<vmem>>, vector<1x1x18x4xbf16>
    %281 = vector.shape_cast %280 : vector<1x1x18x4xbf16> to vector<18x4xbf16>
    %282 = vector.extract_strided_slice %281 {offsets = [0, 0], sizes = [16, 4], strides = [1, 1]} : vector<18x4xbf16> to vector<16x4xbf16>
    %c0_213 = arith.constant 0 : index
    %c0_214 = arith.constant 0 : index
    %c0_215 = arith.constant 0 : index
    %283 = vector.load %arg3[%c0_213, %c0_214, %c0_215] : memref<9x4x128xbf16, #tpu.memory_space<vmem>>, vector<1x4x128xbf16>
    %284 = vector.shape_cast %283 : vector<1x4x128xbf16> to vector<4x128xbf16>
    %cst_216 = arith.constant dense<0.000000e+00> : vector<16x128xf32>
    %285 = tpu.matmul %282, %284, %cst_216 {dimension_numbers = #tpu.dot_dimension_numbers<[1], [0], [0], [1], [0, 0, 1, 1], [], []>} : vector<16x4xbf16>, vector<4x128xbf16>, vector<16x128xf32> -> vector<16x128xf32>
    %286 = arith.addf %277, %285 : vector<16x128xf32>
    %287 = vector.extract_strided_slice %281 {offsets = [1, 0], sizes = [16, 4], strides = [1, 1]} : vector<18x4xbf16> to vector<16x4xbf16>
    %c1_217 = arith.constant 1 : index
    %c0_218 = arith.constant 0 : index
    %c0_219 = arith.constant 0 : index
    %288 = vector.load %arg3[%c1_217, %c0_218, %c0_219] : memref<9x4x128xbf16, #tpu.memory_space<vmem>>, vector<1x4x128xbf16>
    %289 = vector.shape_cast %288 : vector<1x4x128xbf16> to vector<4x128xbf16>
    %cst_220 = arith.constant dense<0.000000e+00> : vector<16x128xf32>
    %290 = tpu.matmul %287, %289, %cst_220 {dimension_numbers = #tpu.dot_dimension_numbers<[1], [0], [0], [1], [0, 0, 1, 1], [], []>} : vector<16x4xbf16>, vector<4x128xbf16>, vector<16x128xf32> -> vector<16x128xf32>
    %291 = arith.addf %286, %290 : vector<16x128xf32>
    %292 = vector.extract_strided_slice %281 {offsets = [2, 0], sizes = [16, 4], strides = [1, 1]} : vector<18x4xbf16> to vector<16x4xbf16>
    %c2_221 = arith.constant 2 : index
    %c0_222 = arith.constant 0 : index
    %c0_223 = arith.constant 0 : index
    %293 = vector.load %arg3[%c2_221, %c0_222, %c0_223] : memref<9x4x128xbf16, #tpu.memory_space<vmem>>, vector<1x4x128xbf16>
    %294 = vector.shape_cast %293 : vector<1x4x128xbf16> to vector<4x128xbf16>
    %cst_224 = arith.constant dense<0.000000e+00> : vector<16x128xf32>
    %295 = tpu.matmul %292, %294, %cst_224 {dimension_numbers = #tpu.dot_dimension_numbers<[1], [0], [0], [1], [0, 0, 1, 1], [], []>} : vector<16x4xbf16>, vector<4x128xbf16>, vector<16x128xf32> -> vector<16x128xf32>
    %296 = arith.addf %291, %295 : vector<16x128xf32>
    %c1_i32_225 = arith.constant 1 : i32
    %297 = arith.addi %276, %c1_i32_225 : i32
    %c0_226 = arith.constant 0 : index
    %298 = arith.index_cast %297 : i32 to index
    %c0_227 = arith.constant 0 : index
    %c0_228 = arith.constant 0 : index
    %299 = vector.load %arg2[%c0_226, %298, %c0_227, %c0_228] : memref<1x18x18x4xbf16, #tpu.memory_space<vmem>>, vector<1x1x18x4xbf16>
    %300 = vector.shape_cast %299 : vector<1x1x18x4xbf16> to vector<18x4xbf16>
    %301 = vector.extract_strided_slice %300 {offsets = [0, 0], sizes = [16, 4], strides = [1, 1]} : vector<18x4xbf16> to vector<16x4xbf16>
    %c3_229 = arith.constant 3 : index
    %c0_230 = arith.constant 0 : index
    %c0_231 = arith.constant 0 : index
    %302 = vector.load %arg3[%c3_229, %c0_230, %c0_231] : memref<9x4x128xbf16, #tpu.memory_space<vmem>>, vector<1x4x128xbf16>
    %303 = vector.shape_cast %302 : vector<1x4x128xbf16> to vector<4x128xbf16>
    %cst_232 = arith.constant dense<0.000000e+00> : vector<16x128xf32>
    %304 = tpu.matmul %301, %303, %cst_232 {dimension_numbers = #tpu.dot_dimension_numbers<[1], [0], [0], [1], [0, 0, 1, 1], [], []>} : vector<16x4xbf16>, vector<4x128xbf16>, vector<16x128xf32> -> vector<16x128xf32>
    %305 = arith.addf %296, %304 : vector<16x128xf32>
    %306 = vector.extract_strided_slice %300 {offsets = [1, 0], sizes = [16, 4], strides = [1, 1]} : vector<18x4xbf16> to vector<16x4xbf16>
    %c4_233 = arith.constant 4 : index
    %c0_234 = arith.constant 0 : index
    %c0_235 = arith.constant 0 : index
    %307 = vector.load %arg3[%c4_233, %c0_234, %c0_235] : memref<9x4x128xbf16, #tpu.memory_space<vmem>>, vector<1x4x128xbf16>
    %308 = vector.shape_cast %307 : vector<1x4x128xbf16> to vector<4x128xbf16>
    %cst_236 = arith.constant dense<0.000000e+00> : vector<16x128xf32>
    %309 = tpu.matmul %306, %308, %cst_236 {dimension_numbers = #tpu.dot_dimension_numbers<[1], [0], [0], [1], [0, 0, 1, 1], [], []>} : vector<16x4xbf16>, vector<4x128xbf16>, vector<16x128xf32> -> vector<16x128xf32>
    %310 = arith.addf %305, %309 : vector<16x128xf32>
    %311 = vector.extract_strided_slice %300 {offsets = [2, 0], sizes = [16, 4], strides = [1, 1]} : vector<18x4xbf16> to vector<16x4xbf16>
    %c5_237 = arith.constant 5 : index
    %c0_238 = arith.constant 0 : index
    %c0_239 = arith.constant 0 : index
    %312 = vector.load %arg3[%c5_237, %c0_238, %c0_239] : memref<9x4x128xbf16, #tpu.memory_space<vmem>>, vector<1x4x128xbf16>
    %313 = vector.shape_cast %312 : vector<1x4x128xbf16> to vector<4x128xbf16>
    %cst_240 = arith.constant dense<0.000000e+00> : vector<16x128xf32>
    %314 = tpu.matmul %311, %313, %cst_240 {dimension_numbers = #tpu.dot_dimension_numbers<[1], [0], [0], [1], [0, 0, 1, 1], [], []>} : vector<16x4xbf16>, vector<4x128xbf16>, vector<16x128xf32> -> vector<16x128xf32>
    %315 = arith.addf %310, %314 : vector<16x128xf32>
    %c2_i32_241 = arith.constant 2 : i32
    %316 = arith.addi %276, %c2_i32_241 : i32
    %c0_242 = arith.constant 0 : index
    %317 = arith.index_cast %316 : i32 to index
    %c0_243 = arith.constant 0 : index
    %c0_244 = arith.constant 0 : index
    %318 = vector.load %arg2[%c0_242, %317, %c0_243, %c0_244] : memref<1x18x18x4xbf16, #tpu.memory_space<vmem>>, vector<1x1x18x4xbf16>
    %319 = vector.shape_cast %318 : vector<1x1x18x4xbf16> to vector<18x4xbf16>
    %320 = vector.extract_strided_slice %319 {offsets = [0, 0], sizes = [16, 4], strides = [1, 1]} : vector<18x4xbf16> to vector<16x4xbf16>
    %c6_245 = arith.constant 6 : index
    %c0_246 = arith.constant 0 : index
    %c0_247 = arith.constant 0 : index
    %321 = vector.load %arg3[%c6_245, %c0_246, %c0_247] : memref<9x4x128xbf16, #tpu.memory_space<vmem>>, vector<1x4x128xbf16>
    %322 = vector.shape_cast %321 : vector<1x4x128xbf16> to vector<4x128xbf16>
    %cst_248 = arith.constant dense<0.000000e+00> : vector<16x128xf32>
    %323 = tpu.matmul %320, %322, %cst_248 {dimension_numbers = #tpu.dot_dimension_numbers<[1], [0], [0], [1], [0, 0, 1, 1], [], []>} : vector<16x4xbf16>, vector<4x128xbf16>, vector<16x128xf32> -> vector<16x128xf32>
    %324 = arith.addf %315, %323 : vector<16x128xf32>
    %325 = vector.extract_strided_slice %319 {offsets = [1, 0], sizes = [16, 4], strides = [1, 1]} : vector<18x4xbf16> to vector<16x4xbf16>
    %c7_249 = arith.constant 7 : index
    %c0_250 = arith.constant 0 : index
    %c0_251 = arith.constant 0 : index
    %326 = vector.load %arg3[%c7_249, %c0_250, %c0_251] : memref<9x4x128xbf16, #tpu.memory_space<vmem>>, vector<1x4x128xbf16>
    %327 = vector.shape_cast %326 : vector<1x4x128xbf16> to vector<4x128xbf16>
    %cst_252 = arith.constant dense<0.000000e+00> : vector<16x128xf32>
    %328 = tpu.matmul %325, %327, %cst_252 {dimension_numbers = #tpu.dot_dimension_numbers<[1], [0], [0], [1], [0, 0, 1, 1], [], []>} : vector<16x4xbf16>, vector<4x128xbf16>, vector<16x128xf32> -> vector<16x128xf32>
    %329 = arith.addf %324, %328 : vector<16x128xf32>
    %330 = vector.extract_strided_slice %319 {offsets = [2, 0], sizes = [16, 4], strides = [1, 1]} : vector<18x4xbf16> to vector<16x4xbf16>
    %c8_253 = arith.constant 8 : index
    %c0_254 = arith.constant 0 : index
    %c0_255 = arith.constant 0 : index
    %331 = vector.load %arg3[%c8_253, %c0_254, %c0_255] : memref<9x4x128xbf16, #tpu.memory_space<vmem>>, vector<1x4x128xbf16>
    %332 = vector.shape_cast %331 : vector<1x4x128xbf16> to vector<4x128xbf16>
    %cst_256 = arith.constant dense<0.000000e+00> : vector<16x128xf32>
    %333 = tpu.matmul %330, %332, %cst_256 {dimension_numbers = #tpu.dot_dimension_numbers<[1], [0], [0], [1], [0, 0, 1, 1], [], []>} : vector<16x4xbf16>, vector<4x128xbf16>, vector<16x128xf32> -> vector<16x128xf32>
    %334 = arith.addf %329, %333 : vector<16x128xf32>
    %335 = vector.broadcast %2 : vector<1x128xf32> to vector<16x128xf32>
    %336 = arith.mulf %334, %335 : vector<16x128xf32>
    %337 = vector.broadcast %3 : vector<1x128xf32> to vector<16x128xf32>
    %338 = arith.addf %336, %337 : vector<16x128xf32>
    %cst_257 = arith.constant 0.000000e+00 : f32
    %339 = vector.broadcast %cst_257 : f32 to vector<16x128xf32>
    %340 = arith.maximumf %338, %339 : vector<16x128xf32>
    %c0_258 = arith.constant 0 : index
    %c4_259 = arith.constant 4 : index
    %c0_260 = arith.constant 0 : index
    %c0_261 = arith.constant 0 : index
    %341 = vector.load %arg5[%c0_258, %c4_259, %c0_260, %c0_261] : memref<1x8x16x128xf32, #tpu.memory_space<vmem>>, vector<1x1x16x128xf32>
    %342 = vector.shape_cast %341 : vector<1x1x16x128xf32> to vector<16x128xf32>
    %343 = vector.shape_cast %340 : vector<16x128xf32> to vector<1x1x16x128xf32>
    tpu.vector_store %arg5[%c0_258, %c4_259, %c0_260, %c0_261], %343 {strides = array<i32>} : memref<1x8x16x128xf32, #tpu.memory_space<vmem>>, vector<1x1x16x128xf32>,
    %c5_i32 = arith.constant 5 : i32
    %344 = arith.addi %0, %c5_i32 : i32
    %cst_262 = arith.constant 0.000000e+00 : f32
    %345 = vector.broadcast %cst_262 : f32 to vector<16x128xf32>
    %c0_i32_263 = arith.constant 0 : i32
    %346 = arith.addi %344, %c0_i32_263 : i32
    %c0_264 = arith.constant 0 : index
    %347 = arith.index_cast %346 : i32 to index
    %c0_265 = arith.constant 0 : index
    %c0_266 = arith.constant 0 : index
    %348 = vector.load %arg2[%c0_264, %347, %c0_265, %c0_266] : memref<1x18x18x4xbf16, #tpu.memory_space<vmem>>, vector<1x1x18x4xbf16>
    %349 = vector.shape_cast %348 : vector<1x1x18x4xbf16> to vector<18x4xbf16>
    %350 = vector.extract_strided_slice %349 {offsets = [0, 0], sizes = [16, 4], strides = [1, 1]} : vector<18x4xbf16> to vector<16x4xbf16>
    %c0_267 = arith.constant 0 : index
    %c0_268 = arith.constant 0 : index
    %c0_269 = arith.constant 0 : index
    %351 = vector.load %arg3[%c0_267, %c0_268, %c0_269] : memref<9x4x128xbf16, #tpu.memory_space<vmem>>, vector<1x4x128xbf16>
    %352 = vector.shape_cast %351 : vector<1x4x128xbf16> to vector<4x128xbf16>
    %cst_270 = arith.constant dense<0.000000e+00> : vector<16x128xf32>
    %353 = tpu.matmul %350, %352, %cst_270 {dimension_numbers = #tpu.dot_dimension_numbers<[1], [0], [0], [1], [0, 0, 1, 1], [], []>} : vector<16x4xbf16>, vector<4x128xbf16>, vector<16x128xf32> -> vector<16x128xf32>
    %354 = arith.addf %345, %353 : vector<16x128xf32>
    %355 = vector.extract_strided_slice %349 {offsets = [1, 0], sizes = [16, 4], strides = [1, 1]} : vector<18x4xbf16> to vector<16x4xbf16>
    %c1_271 = arith.constant 1 : index
    %c0_272 = arith.constant 0 : index
    %c0_273 = arith.constant 0 : index
    %356 = vector.load %arg3[%c1_271, %c0_272, %c0_273] : memref<9x4x128xbf16, #tpu.memory_space<vmem>>, vector<1x4x128xbf16>
    %357 = vector.shape_cast %356 : vector<1x4x128xbf16> to vector<4x128xbf16>
    %cst_274 = arith.constant dense<0.000000e+00> : vector<16x128xf32>
    %358 = tpu.matmul %355, %357, %cst_274 {dimension_numbers = #tpu.dot_dimension_numbers<[1], [0], [0], [1], [0, 0, 1, 1], [], []>} : vector<16x4xbf16>, vector<4x128xbf16>, vector<16x128xf32> -> vector<16x128xf32>
    %359 = arith.addf %354, %358 : vector<16x128xf32>
    %360 = vector.extract_strided_slice %349 {offsets = [2, 0], sizes = [16, 4], strides = [1, 1]} : vector<18x4xbf16> to vector<16x4xbf16>
    %c2_275 = arith.constant 2 : index
    %c0_276 = arith.constant 0 : index
    %c0_277 = arith.constant 0 : index
    %361 = vector.load %arg3[%c2_275, %c0_276, %c0_277] : memref<9x4x128xbf16, #tpu.memory_space<vmem>>, vector<1x4x128xbf16>
    %362 = vector.shape_cast %361 : vector<1x4x128xbf16> to vector<4x128xbf16>
    %cst_278 = arith.constant dense<0.000000e+00> : vector<16x128xf32>
    %363 = tpu.matmul %360, %362, %cst_278 {dimension_numbers = #tpu.dot_dimension_numbers<[1], [0], [0], [1], [0, 0, 1, 1], [], []>} : vector<16x4xbf16>, vector<4x128xbf16>, vector<16x128xf32> -> vector<16x128xf32>
    %364 = arith.addf %359, %363 : vector<16x128xf32>
    %c1_i32_279 = arith.constant 1 : i32
    %365 = arith.addi %344, %c1_i32_279 : i32
    %c0_280 = arith.constant 0 : index
    %366 = arith.index_cast %365 : i32 to index
    %c0_281 = arith.constant 0 : index
    %c0_282 = arith.constant 0 : index
    %367 = vector.load %arg2[%c0_280, %366, %c0_281, %c0_282] : memref<1x18x18x4xbf16, #tpu.memory_space<vmem>>, vector<1x1x18x4xbf16>
    %368 = vector.shape_cast %367 : vector<1x1x18x4xbf16> to vector<18x4xbf16>
    %369 = vector.extract_strided_slice %368 {offsets = [0, 0], sizes = [16, 4], strides = [1, 1]} : vector<18x4xbf16> to vector<16x4xbf16>
    %c3_283 = arith.constant 3 : index
    %c0_284 = arith.constant 0 : index
    %c0_285 = arith.constant 0 : index
    %370 = vector.load %arg3[%c3_283, %c0_284, %c0_285] : memref<9x4x128xbf16, #tpu.memory_space<vmem>>, vector<1x4x128xbf16>
    %371 = vector.shape_cast %370 : vector<1x4x128xbf16> to vector<4x128xbf16>
    %cst_286 = arith.constant dense<0.000000e+00> : vector<16x128xf32>
    %372 = tpu.matmul %369, %371, %cst_286 {dimension_numbers = #tpu.dot_dimension_numbers<[1], [0], [0], [1], [0, 0, 1, 1], [], []>} : vector<16x4xbf16>, vector<4x128xbf16>, vector<16x128xf32> -> vector<16x128xf32>
    %373 = arith.addf %364, %372 : vector<16x128xf32>
    %374 = vector.extract_strided_slice %368 {offsets = [1, 0], sizes = [16, 4], strides = [1, 1]} : vector<18x4xbf16> to vector<16x4xbf16>
    %c4_287 = arith.constant 4 : index
    %c0_288 = arith.constant 0 : index
    %c0_289 = arith.constant 0 : index
    %375 = vector.load %arg3[%c4_287, %c0_288, %c0_289] : memref<9x4x128xbf16, #tpu.memory_space<vmem>>, vector<1x4x128xbf16>
    %376 = vector.shape_cast %375 : vector<1x4x128xbf16> to vector<4x128xbf16>
    %cst_290 = arith.constant dense<0.000000e+00> : vector<16x128xf32>
    %377 = tpu.matmul %374, %376, %cst_290 {dimension_numbers = #tpu.dot_dimension_numbers<[1], [0], [0], [1], [0, 0, 1, 1], [], []>} : vector<16x4xbf16>, vector<4x128xbf16>, vector<16x128xf32> -> vector<16x128xf32>
    %378 = arith.addf %373, %377 : vector<16x128xf32>
    %379 = vector.extract_strided_slice %368 {offsets = [2, 0], sizes = [16, 4], strides = [1, 1]} : vector<18x4xbf16> to vector<16x4xbf16>
    %c5_291 = arith.constant 5 : index
    %c0_292 = arith.constant 0 : index
    %c0_293 = arith.constant 0 : index
    %380 = vector.load %arg3[%c5_291, %c0_292, %c0_293] : memref<9x4x128xbf16, #tpu.memory_space<vmem>>, vector<1x4x128xbf16>
    %381 = vector.shape_cast %380 : vector<1x4x128xbf16> to vector<4x128xbf16>
    %cst_294 = arith.constant dense<0.000000e+00> : vector<16x128xf32>
    %382 = tpu.matmul %379, %381, %cst_294 {dimension_numbers = #tpu.dot_dimension_numbers<[1], [0], [0], [1], [0, 0, 1, 1], [], []>} : vector<16x4xbf16>, vector<4x128xbf16>, vector<16x128xf32> -> vector<16x128xf32>
    %383 = arith.addf %378, %382 : vector<16x128xf32>
    %c2_i32_295 = arith.constant 2 : i32
    %384 = arith.addi %344, %c2_i32_295 : i32
    %c0_296 = arith.constant 0 : index
    %385 = arith.index_cast %384 : i32 to index
    %c0_297 = arith.constant 0 : index
    %c0_298 = arith.constant 0 : index
    %386 = vector.load %arg2[%c0_296, %385, %c0_297, %c0_298] : memref<1x18x18x4xbf16, #tpu.memory_space<vmem>>, vector<1x1x18x4xbf16>
    %387 = vector.shape_cast %386 : vector<1x1x18x4xbf16> to vector<18x4xbf16>
    %388 = vector.extract_strided_slice %387 {offsets = [0, 0], sizes = [16, 4], strides = [1, 1]} : vector<18x4xbf16> to vector<16x4xbf16>
    %c6_299 = arith.constant 6 : index
    %c0_300 = arith.constant 0 : index
    %c0_301 = arith.constant 0 : index
    %389 = vector.load %arg3[%c6_299, %c0_300, %c0_301] : memref<9x4x128xbf16, #tpu.memory_space<vmem>>, vector<1x4x128xbf16>
    %390 = vector.shape_cast %389 : vector<1x4x128xbf16> to vector<4x128xbf16>
    %cst_302 = arith.constant dense<0.000000e+00> : vector<16x128xf32>
    %391 = tpu.matmul %388, %390, %cst_302 {dimension_numbers = #tpu.dot_dimension_numbers<[1], [0], [0], [1], [0, 0, 1, 1], [], []>} : vector<16x4xbf16>, vector<4x128xbf16>, vector<16x128xf32> -> vector<16x128xf32>
    %392 = arith.addf %383, %391 : vector<16x128xf32>
    %393 = vector.extract_strided_slice %387 {offsets = [1, 0], sizes = [16, 4], strides = [1, 1]} : vector<18x4xbf16> to vector<16x4xbf16>
    %c7_303 = arith.constant 7 : index
    %c0_304 = arith.constant 0 : index
    %c0_305 = arith.constant 0 : index
    %394 = vector.load %arg3[%c7_303, %c0_304, %c0_305] : memref<9x4x128xbf16, #tpu.memory_space<vmem>>, vector<1x4x128xbf16>
    %395 = vector.shape_cast %394 : vector<1x4x128xbf16> to vector<4x128xbf16>
    %cst_306 = arith.constant dense<0.000000e+00> : vector<16x128xf32>
    %396 = tpu.matmul %393, %395, %cst_306 {dimension_numbers = #tpu.dot_dimension_numbers<[1], [0], [0], [1], [0, 0, 1, 1], [], []>} : vector<16x4xbf16>, vector<4x128xbf16>, vector<16x128xf32> -> vector<16x128xf32>
    %397 = arith.addf %392, %396 : vector<16x128xf32>
    %398 = vector.extract_strided_slice %387 {offsets = [2, 0], sizes = [16, 4], strides = [1, 1]} : vector<18x4xbf16> to vector<16x4xbf16>
    %c8_307 = arith.constant 8 : index
    %c0_308 = arith.constant 0 : index
    %c0_309 = arith.constant 0 : index
    %399 = vector.load %arg3[%c8_307, %c0_308, %c0_309] : memref<9x4x128xbf16, #tpu.memory_space<vmem>>, vector<1x4x128xbf16>
    %400 = vector.shape_cast %399 : vector<1x4x128xbf16> to vector<4x128xbf16>
    %cst_310 = arith.constant dense<0.000000e+00> : vector<16x128xf32>
    %401 = tpu.matmul %398, %400, %cst_310 {dimension_numbers = #tpu.dot_dimension_numbers<[1], [0], [0], [1], [0, 0, 1, 1], [], []>} : vector<16x4xbf16>, vector<4x128xbf16>, vector<16x128xf32> -> vector<16x128xf32>
    %402 = arith.addf %397, %401 : vector<16x128xf32>
    %403 = vector.broadcast %2 : vector<1x128xf32> to vector<16x128xf32>
    %404 = arith.mulf %402, %403 : vector<16x128xf32>
    %405 = vector.broadcast %3 : vector<1x128xf32> to vector<16x128xf32>
    %406 = arith.addf %404, %405 : vector<16x128xf32>
    %cst_311 = arith.constant 0.000000e+00 : f32
    %407 = vector.broadcast %cst_311 : f32 to vector<16x128xf32>
    %408 = arith.maximumf %406, %407 : vector<16x128xf32>
    %c0_312 = arith.constant 0 : index
    %c5_313 = arith.constant 5 : index
    %c0_314 = arith.constant 0 : index
    %c0_315 = arith.constant 0 : index
    %409 = vector.load %arg5[%c0_312, %c5_313, %c0_314, %c0_315] : memref<1x8x16x128xf32, #tpu.memory_space<vmem>>, vector<1x1x16x128xf32>
    %410 = vector.shape_cast %409 : vector<1x1x16x128xf32> to vector<16x128xf32>
    %411 = vector.shape_cast %408 : vector<16x128xf32> to vector<1x1x16x128xf32>
    tpu.vector_store %arg5[%c0_312, %c5_313, %c0_314, %c0_315], %411 {strides = array<i32>} : memref<1x8x16x128xf32, #tpu.memory_space<vmem>>, vector<1x1x16x128xf32>,
    %c6_i32 = arith.constant 6 : i32
    %412 = arith.addi %0, %c6_i32 : i32
    %cst_316 = arith.constant 0.000000e+00 : f32
    %413 = vector.broadcast %cst_316 : f32 to vector<16x128xf32>
    %c0_i32_317 = arith.constant 0 : i32
    %414 = arith.addi %412, %c0_i32_317 : i32
    %c0_318 = arith.constant 0 : index
    %415 = arith.index_cast %414 : i32 to index
    %c0_319 = arith.constant 0 : index
    %c0_320 = arith.constant 0 : index
    %416 = vector.load %arg2[%c0_318, %415, %c0_319, %c0_320] : memref<1x18x18x4xbf16, #tpu.memory_space<vmem>>, vector<1x1x18x4xbf16>
    %417 = vector.shape_cast %416 : vector<1x1x18x4xbf16> to vector<18x4xbf16>
    %418 = vector.extract_strided_slice %417 {offsets = [0, 0], sizes = [16, 4], strides = [1, 1]} : vector<18x4xbf16> to vector<16x4xbf16>
    %c0_321 = arith.constant 0 : index
    %c0_322 = arith.constant 0 : index
    %c0_323 = arith.constant 0 : index
    %419 = vector.load %arg3[%c0_321, %c0_322, %c0_323] : memref<9x4x128xbf16, #tpu.memory_space<vmem>>, vector<1x4x128xbf16>
    %420 = vector.shape_cast %419 : vector<1x4x128xbf16> to vector<4x128xbf16>
    %cst_324 = arith.constant dense<0.000000e+00> : vector<16x128xf32>
    %421 = tpu.matmul %418, %420, %cst_324 {dimension_numbers = #tpu.dot_dimension_numbers<[1], [0], [0], [1], [0, 0, 1, 1], [], []>} : vector<16x4xbf16>, vector<4x128xbf16>, vector<16x128xf32> -> vector<16x128xf32>
    %422 = arith.addf %413, %421 : vector<16x128xf32>
    %423 = vector.extract_strided_slice %417 {offsets = [1, 0], sizes = [16, 4], strides = [1, 1]} : vector<18x4xbf16> to vector<16x4xbf16>
    %c1_325 = arith.constant 1 : index
    %c0_326 = arith.constant 0 : index
    %c0_327 = arith.constant 0 : index
    %424 = vector.load %arg3[%c1_325, %c0_326, %c0_327] : memref<9x4x128xbf16, #tpu.memory_space<vmem>>, vector<1x4x128xbf16>
    %425 = vector.shape_cast %424 : vector<1x4x128xbf16> to vector<4x128xbf16>
    %cst_328 = arith.constant dense<0.000000e+00> : vector<16x128xf32>
    %426 = tpu.matmul %423, %425, %cst_328 {dimension_numbers = #tpu.dot_dimension_numbers<[1], [0], [0], [1], [0, 0, 1, 1], [], []>} : vector<16x4xbf16>, vector<4x128xbf16>, vector<16x128xf32> -> vector<16x128xf32>
    %427 = arith.addf %422, %426 : vector<16x128xf32>
    %428 = vector.extract_strided_slice %417 {offsets = [2, 0], sizes = [16, 4], strides = [1, 1]} : vector<18x4xbf16> to vector<16x4xbf16>
    %c2_329 = arith.constant 2 : index
    %c0_330 = arith.constant 0 : index
    %c0_331 = arith.constant 0 : index
    %429 = vector.load %arg3[%c2_329, %c0_330, %c0_331] : memref<9x4x128xbf16, #tpu.memory_space<vmem>>, vector<1x4x128xbf16>
    %430 = vector.shape_cast %429 : vector<1x4x128xbf16> to vector<4x128xbf16>
    %cst_332 = arith.constant dense<0.000000e+00> : vector<16x128xf32>
    %431 = tpu.matmul %428, %430, %cst_332 {dimension_numbers = #tpu.dot_dimension_numbers<[1], [0], [0], [1], [0, 0, 1, 1], [], []>} : vector<16x4xbf16>, vector<4x128xbf16>, vector<16x128xf32> -> vector<16x128xf32>
    %432 = arith.addf %427, %431 : vector<16x128xf32>
    %c1_i32_333 = arith.constant 1 : i32
    %433 = arith.addi %412, %c1_i32_333 : i32
    %c0_334 = arith.constant 0 : index
    %434 = arith.index_cast %433 : i32 to index
    %c0_335 = arith.constant 0 : index
    %c0_336 = arith.constant 0 : index
    %435 = vector.load %arg2[%c0_334, %434, %c0_335, %c0_336] : memref<1x18x18x4xbf16, #tpu.memory_space<vmem>>, vector<1x1x18x4xbf16>
    %436 = vector.shape_cast %435 : vector<1x1x18x4xbf16> to vector<18x4xbf16>
    %437 = vector.extract_strided_slice %436 {offsets = [0, 0], sizes = [16, 4], strides = [1, 1]} : vector<18x4xbf16> to vector<16x4xbf16>
    %c3_337 = arith.constant 3 : index
    %c0_338 = arith.constant 0 : index
    %c0_339 = arith.constant 0 : index
    %438 = vector.load %arg3[%c3_337, %c0_338, %c0_339] : memref<9x4x128xbf16, #tpu.memory_space<vmem>>, vector<1x4x128xbf16>
    %439 = vector.shape_cast %438 : vector<1x4x128xbf16> to vector<4x128xbf16>
    %cst_340 = arith.constant dense<0.000000e+00> : vector<16x128xf32>
    %440 = tpu.matmul %437, %439, %cst_340 {dimension_numbers = #tpu.dot_dimension_numbers<[1], [0], [0], [1], [0, 0, 1, 1], [], []>} : vector<16x4xbf16>, vector<4x128xbf16>, vector<16x128xf32> -> vector<16x128xf32>
    %441 = arith.addf %432, %440 : vector<16x128xf32>
    %442 = vector.extract_strided_slice %436 {offsets = [1, 0], sizes = [16, 4], strides = [1, 1]} : vector<18x4xbf16> to vector<16x4xbf16>
    %c4_341 = arith.constant 4 : index
    %c0_342 = arith.constant 0 : index
    %c0_343 = arith.constant 0 : index
    %443 = vector.load %arg3[%c4_341, %c0_342, %c0_343] : memref<9x4x128xbf16, #tpu.memory_space<vmem>>, vector<1x4x128xbf16>
    %444 = vector.shape_cast %443 : vector<1x4x128xbf16> to vector<4x128xbf16>
    %cst_344 = arith.constant dense<0.000000e+00> : vector<16x128xf32>
    %445 = tpu.matmul %442, %444, %cst_344 {dimension_numbers = #tpu.dot_dimension_numbers<[1], [0], [0], [1], [0, 0, 1, 1], [], []>} : vector<16x4xbf16>, vector<4x128xbf16>, vector<16x128xf32> -> vector<16x128xf32>
    %446 = arith.addf %441, %445 : vector<16x128xf32>
    %447 = vector.extract_strided_slice %436 {offsets = [2, 0], sizes = [16, 4], strides = [1, 1]} : vector<18x4xbf16> to vector<16x4xbf16>
    %c5_345 = arith.constant 5 : index
    %c0_346 = arith.constant 0 : index
    %c0_347 = arith.constant 0 : index
    %448 = vector.load %arg3[%c5_345, %c0_346, %c0_347] : memref<9x4x128xbf16, #tpu.memory_space<vmem>>, vector<1x4x128xbf16>
    %449 = vector.shape_cast %448 : vector<1x4x128xbf16> to vector<4x128xbf16>
    %cst_348 = arith.constant dense<0.000000e+00> : vector<16x128xf32>
    %450 = tpu.matmul %447, %449, %cst_348 {dimension_numbers = #tpu.dot_dimension_numbers<[1], [0], [0], [1], [0, 0, 1, 1], [], []>} : vector<16x4xbf16>, vector<4x128xbf16>, vector<16x128xf32> -> vector<16x128xf32>
    %451 = arith.addf %446, %450 : vector<16x128xf32>
    %c2_i32_349 = arith.constant 2 : i32
    %452 = arith.addi %412, %c2_i32_349 : i32
    %c0_350 = arith.constant 0 : index
    %453 = arith.index_cast %452 : i32 to index
    %c0_351 = arith.constant 0 : index
    %c0_352 = arith.constant 0 : index
    %454 = vector.load %arg2[%c0_350, %453, %c0_351, %c0_352] : memref<1x18x18x4xbf16, #tpu.memory_space<vmem>>, vector<1x1x18x4xbf16>
    %455 = vector.shape_cast %454 : vector<1x1x18x4xbf16> to vector<18x4xbf16>
    %456 = vector.extract_strided_slice %455 {offsets = [0, 0], sizes = [16, 4], strides = [1, 1]} : vector<18x4xbf16> to vector<16x4xbf16>
    %c6_353 = arith.constant 6 : index
    %c0_354 = arith.constant 0 : index
    %c0_355 = arith.constant 0 : index
    %457 = vector.load %arg3[%c6_353, %c0_354, %c0_355] : memref<9x4x128xbf16, #tpu.memory_space<vmem>>, vector<1x4x128xbf16>
    %458 = vector.shape_cast %457 : vector<1x4x128xbf16> to vector<4x128xbf16>
    %cst_356 = arith.constant dense<0.000000e+00> : vector<16x128xf32>
    %459 = tpu.matmul %456, %458, %cst_356 {dimension_numbers = #tpu.dot_dimension_numbers<[1], [0], [0], [1], [0, 0, 1, 1], [], []>} : vector<16x4xbf16>, vector<4x128xbf16>, vector<16x128xf32> -> vector<16x128xf32>
    %460 = arith.addf %451, %459 : vector<16x128xf32>
    %461 = vector.extract_strided_slice %455 {offsets = [1, 0], sizes = [16, 4], strides = [1, 1]} : vector<18x4xbf16> to vector<16x4xbf16>
    %c7_357 = arith.constant 7 : index
    %c0_358 = arith.constant 0 : index
    %c0_359 = arith.constant 0 : index
    %462 = vector.load %arg3[%c7_357, %c0_358, %c0_359] : memref<9x4x128xbf16, #tpu.memory_space<vmem>>, vector<1x4x128xbf16>
    %463 = vector.shape_cast %462 : vector<1x4x128xbf16> to vector<4x128xbf16>
    %cst_360 = arith.constant dense<0.000000e+00> : vector<16x128xf32>
    %464 = tpu.matmul %461, %463, %cst_360 {dimension_numbers = #tpu.dot_dimension_numbers<[1], [0], [0], [1], [0, 0, 1, 1], [], []>} : vector<16x4xbf16>, vector<4x128xbf16>, vector<16x128xf32> -> vector<16x128xf32>
    %465 = arith.addf %460, %464 : vector<16x128xf32>
    %466 = vector.extract_strided_slice %455 {offsets = [2, 0], sizes = [16, 4], strides = [1, 1]} : vector<18x4xbf16> to vector<16x4xbf16>
    %c8_361 = arith.constant 8 : index
    %c0_362 = arith.constant 0 : index
    %c0_363 = arith.constant 0 : index
    %467 = vector.load %arg3[%c8_361, %c0_362, %c0_363] : memref<9x4x128xbf16, #tpu.memory_space<vmem>>, vector<1x4x128xbf16>
    %468 = vector.shape_cast %467 : vector<1x4x128xbf16> to vector<4x128xbf16>
    %cst_364 = arith.constant dense<0.000000e+00> : vector<16x128xf32>
    %469 = tpu.matmul %466, %468, %cst_364 {dimension_numbers = #tpu.dot_dimension_numbers<[1], [0], [0], [1], [0, 0, 1, 1], [], []>} : vector<16x4xbf16>, vector<4x128xbf16>, vector<16x128xf32> -> vector<16x128xf32>
    %470 = arith.addf %465, %469 : vector<16x128xf32>
    %471 = vector.broadcast %2 : vector<1x128xf32> to vector<16x128xf32>
    %472 = arith.mulf %470, %471 : vector<16x128xf32>
    %473 = vector.broadcast %3 : vector<1x128xf32> to vector<16x128xf32>
    %474 = arith.addf %472, %473 : vector<16x128xf32>
    %cst_365 = arith.constant 0.000000e+00 : f32
    %475 = vector.broadcast %cst_365 : f32 to vector<16x128xf32>
    %476 = arith.maximumf %474, %475 : vector<16x128xf32>
    %c0_366 = arith.constant 0 : index
    %c6_367 = arith.constant 6 : index
    %c0_368 = arith.constant 0 : index
    %c0_369 = arith.constant 0 : index
    %477 = vector.load %arg5[%c0_366, %c6_367, %c0_368, %c0_369] : memref<1x8x16x128xf32, #tpu.memory_space<vmem>>, vector<1x1x16x128xf32>
    %478 = vector.shape_cast %477 : vector<1x1x16x128xf32> to vector<16x128xf32>
    %479 = vector.shape_cast %476 : vector<16x128xf32> to vector<1x1x16x128xf32>
    tpu.vector_store %arg5[%c0_366, %c6_367, %c0_368, %c0_369], %479 {strides = array<i32>} : memref<1x8x16x128xf32, #tpu.memory_space<vmem>>, vector<1x1x16x128xf32>,
    %c7_i32 = arith.constant 7 : i32
    %480 = arith.addi %0, %c7_i32 : i32
    %cst_370 = arith.constant 0.000000e+00 : f32
    %481 = vector.broadcast %cst_370 : f32 to vector<16x128xf32>
    %c0_i32_371 = arith.constant 0 : i32
    %482 = arith.addi %480, %c0_i32_371 : i32
    %c0_372 = arith.constant 0 : index
    %483 = arith.index_cast %482 : i32 to index
    %c0_373 = arith.constant 0 : index
    %c0_374 = arith.constant 0 : index
    %484 = vector.load %arg2[%c0_372, %483, %c0_373, %c0_374] : memref<1x18x18x4xbf16, #tpu.memory_space<vmem>>, vector<1x1x18x4xbf16>
    %485 = vector.shape_cast %484 : vector<1x1x18x4xbf16> to vector<18x4xbf16>
    %486 = vector.extract_strided_slice %485 {offsets = [0, 0], sizes = [16, 4], strides = [1, 1]} : vector<18x4xbf16> to vector<16x4xbf16>
    %c0_375 = arith.constant 0 : index
    %c0_376 = arith.constant 0 : index
    %c0_377 = arith.constant 0 : index
    %487 = vector.load %arg3[%c0_375, %c0_376, %c0_377] : memref<9x4x128xbf16, #tpu.memory_space<vmem>>, vector<1x4x128xbf16>
    %488 = vector.shape_cast %487 : vector<1x4x128xbf16> to vector<4x128xbf16>
    %cst_378 = arith.constant dense<0.000000e+00> : vector<16x128xf32>
    %489 = tpu.matmul %486, %488, %cst_378 {dimension_numbers = #tpu.dot_dimension_numbers<[1], [0], [0], [1], [0, 0, 1, 1], [], []>} : vector<16x4xbf16>, vector<4x128xbf16>, vector<16x128xf32> -> vector<16x128xf32>
    %490 = arith.addf %481, %489 : vector<16x128xf32>
    %491 = vector.extract_strided_slice %485 {offsets = [1, 0], sizes = [16, 4], strides = [1, 1]} : vector<18x4xbf16> to vector<16x4xbf16>
    %c1_379 = arith.constant 1 : index
    %c0_380 = arith.constant 0 : index
    %c0_381 = arith.constant 0 : index
    %492 = vector.load %arg3[%c1_379, %c0_380, %c0_381] : memref<9x4x128xbf16, #tpu.memory_space<vmem>>, vector<1x4x128xbf16>
    %493 = vector.shape_cast %492 : vector<1x4x128xbf16> to vector<4x128xbf16>
    %cst_382 = arith.constant dense<0.000000e+00> : vector<16x128xf32>
    %494 = tpu.matmul %491, %493, %cst_382 {dimension_numbers = #tpu.dot_dimension_numbers<[1], [0], [0], [1], [0, 0, 1, 1], [], []>} : vector<16x4xbf16>, vector<4x128xbf16>, vector<16x128xf32> -> vector<16x128xf32>
    %495 = arith.addf %490, %494 : vector<16x128xf32>
    %496 = vector.extract_strided_slice %485 {offsets = [2, 0], sizes = [16, 4], strides = [1, 1]} : vector<18x4xbf16> to vector<16x4xbf16>
    %c2_383 = arith.constant 2 : index
    %c0_384 = arith.constant 0 : index
    %c0_385 = arith.constant 0 : index
    %497 = vector.load %arg3[%c2_383, %c0_384, %c0_385] : memref<9x4x128xbf16, #tpu.memory_space<vmem>>, vector<1x4x128xbf16>
    %498 = vector.shape_cast %497 : vector<1x4x128xbf16> to vector<4x128xbf16>
    %cst_386 = arith.constant dense<0.000000e+00> : vector<16x128xf32>
    %499 = tpu.matmul %496, %498, %cst_386 {dimension_numbers = #tpu.dot_dimension_numbers<[1], [0], [0], [1], [0, 0, 1, 1], [], []>} : vector<16x4xbf16>, vector<4x128xbf16>, vector<16x128xf32> -> vector<16x128xf32>
    %500 = arith.addf %495, %499 : vector<16x128xf32>
    %c1_i32_387 = arith.constant 1 : i32
    %501 = arith.addi %480, %c1_i32_387 : i32
    %c0_388 = arith.constant 0 : index
    %502 = arith.index_cast %501 : i32 to index
    %c0_389 = arith.constant 0 : index
    %c0_390 = arith.constant 0 : index
    %503 = vector.load %arg2[%c0_388, %502, %c0_389, %c0_390] : memref<1x18x18x4xbf16, #tpu.memory_space<vmem>>, vector<1x1x18x4xbf16>
    %504 = vector.shape_cast %503 : vector<1x1x18x4xbf16> to vector<18x4xbf16>
    %505 = vector.extract_strided_slice %504 {offsets = [0, 0], sizes = [16, 4], strides = [1, 1]} : vector<18x4xbf16> to vector<16x4xbf16>
    %c3_391 = arith.constant 3 : index
    %c0_392 = arith.constant 0 : index
    %c0_393 = arith.constant 0 : index
    %506 = vector.load %arg3[%c3_391, %c0_392, %c0_393] : memref<9x4x128xbf16, #tpu.memory_space<vmem>>, vector<1x4x128xbf16>
    %507 = vector.shape_cast %506 : vector<1x4x128xbf16> to vector<4x128xbf16>
    %cst_394 = arith.constant dense<0.000000e+00> : vector<16x128xf32>
    %508 = tpu.matmul %505, %507, %cst_394 {dimension_numbers = #tpu.dot_dimension_numbers<[1], [0], [0], [1], [0, 0, 1, 1], [], []>} : vector<16x4xbf16>, vector<4x128xbf16>, vector<16x128xf32> -> vector<16x128xf32>
    %509 = arith.addf %500, %508 : vector<16x128xf32>
    %510 = vector.extract_strided_slice %504 {offsets = [1, 0], sizes = [16, 4], strides = [1, 1]} : vector<18x4xbf16> to vector<16x4xbf16>
    %c4_395 = arith.constant 4 : index
    %c0_396 = arith.constant 0 : index
    %c0_397 = arith.constant 0 : index
    %511 = vector.load %arg3[%c4_395, %c0_396, %c0_397] : memref<9x4x128xbf16, #tpu.memory_space<vmem>>, vector<1x4x128xbf16>
    %512 = vector.shape_cast %511 : vector<1x4x128xbf16> to vector<4x128xbf16>
    %cst_398 = arith.constant dense<0.000000e+00> : vector<16x128xf32>
    %513 = tpu.matmul %510, %512, %cst_398 {dimension_numbers = #tpu.dot_dimension_numbers<[1], [0], [0], [1], [0, 0, 1, 1], [], []>} : vector<16x4xbf16>, vector<4x128xbf16>, vector<16x128xf32> -> vector<16x128xf32>
    %514 = arith.addf %509, %513 : vector<16x128xf32>
    %515 = vector.extract_strided_slice %504 {offsets = [2, 0], sizes = [16, 4], strides = [1, 1]} : vector<18x4xbf16> to vector<16x4xbf16>
    %c5_399 = arith.constant 5 : index
    %c0_400 = arith.constant 0 : index
    %c0_401 = arith.constant 0 : index
    %516 = vector.load %arg3[%c5_399, %c0_400, %c0_401] : memref<9x4x128xbf16, #tpu.memory_space<vmem>>, vector<1x4x128xbf16>
    %517 = vector.shape_cast %516 : vector<1x4x128xbf16> to vector<4x128xbf16>
    %cst_402 = arith.constant dense<0.000000e+00> : vector<16x128xf32>
    %518 = tpu.matmul %515, %517, %cst_402 {dimension_numbers = #tpu.dot_dimension_numbers<[1], [0], [0], [1], [0, 0, 1, 1], [], []>} : vector<16x4xbf16>, vector<4x128xbf16>, vector<16x128xf32> -> vector<16x128xf32>
    %519 = arith.addf %514, %518 : vector<16x128xf32>
    %c2_i32_403 = arith.constant 2 : i32
    %520 = arith.addi %480, %c2_i32_403 : i32
    %c0_404 = arith.constant 0 : index
    %521 = arith.index_cast %520 : i32 to index
    %c0_405 = arith.constant 0 : index
    %c0_406 = arith.constant 0 : index
    %522 = vector.load %arg2[%c0_404, %521, %c0_405, %c0_406] : memref<1x18x18x4xbf16, #tpu.memory_space<vmem>>, vector<1x1x18x4xbf16>
    %523 = vector.shape_cast %522 : vector<1x1x18x4xbf16> to vector<18x4xbf16>
    %524 = vector.extract_strided_slice %523 {offsets = [0, 0], sizes = [16, 4], strides = [1, 1]} : vector<18x4xbf16> to vector<16x4xbf16>
    %c6_407 = arith.constant 6 : index
    %c0_408 = arith.constant 0 : index
    %c0_409 = arith.constant 0 : index
    %525 = vector.load %arg3[%c6_407, %c0_408, %c0_409] : memref<9x4x128xbf16, #tpu.memory_space<vmem>>, vector<1x4x128xbf16>
    %526 = vector.shape_cast %525 : vector<1x4x128xbf16> to vector<4x128xbf16>
    %cst_410 = arith.constant dense<0.000000e+00> : vector<16x128xf32>
    %527 = tpu.matmul %524, %526, %cst_410 {dimension_numbers = #tpu.dot_dimension_numbers<[1], [0], [0], [1], [0, 0, 1, 1], [], []>} : vector<16x4xbf16>, vector<4x128xbf16>, vector<16x128xf32> -> vector<16x128xf32>
    %528 = arith.addf %519, %527 : vector<16x128xf32>
    %529 = vector.extract_strided_slice %523 {offsets = [1, 0], sizes = [16, 4], strides = [1, 1]} : vector<18x4xbf16> to vector<16x4xbf16>
    %c7_411 = arith.constant 7 : index
    %c0_412 = arith.constant 0 : index
    %c0_413 = arith.constant 0 : index
    %530 = vector.load %arg3[%c7_411, %c0_412, %c0_413] : memref<9x4x128xbf16, #tpu.memory_space<vmem>>, vector<1x4x128xbf16>
    %531 = vector.shape_cast %530 : vector<1x4x128xbf16> to vector<4x128xbf16>
    %cst_414 = arith.constant dense<0.000000e+00> : vector<16x128xf32>
    %532 = tpu.matmul %529, %531, %cst_414 {dimension_numbers = #tpu.dot_dimension_numbers<[1], [0], [0], [1], [0, 0, 1, 1], [], []>} : vector<16x4xbf16>, vector<4x128xbf16>, vector<16x128xf32> -> vector<16x128xf32>
    %533 = arith.addf %528, %532 : vector<16x128xf32>
    %534 = vector.extract_strided_slice %523 {offsets = [2, 0], sizes = [16, 4], strides = [1, 1]} : vector<18x4xbf16> to vector<16x4xbf16>
    %c8_415 = arith.constant 8 : index
    %c0_416 = arith.constant 0 : index
    %c0_417 = arith.constant 0 : index
    %535 = vector.load %arg3[%c8_415, %c0_416, %c0_417] : memref<9x4x128xbf16, #tpu.memory_space<vmem>>, vector<1x4x128xbf16>
    %536 = vector.shape_cast %535 : vector<1x4x128xbf16> to vector<4x128xbf16>
    %cst_418 = arith.constant dense<0.000000e+00> : vector<16x128xf32>
    %537 = tpu.matmul %534, %536, %cst_418 {dimension_numbers = #tpu.dot_dimension_numbers<[1], [0], [0], [1], [0, 0, 1, 1], [], []>} : vector<16x4xbf16>, vector<4x128xbf16>, vector<16x128xf32> -> vector<16x128xf32>
    %538 = arith.addf %533, %537 : vector<16x128xf32>
    %539 = vector.broadcast %2 : vector<1x128xf32> to vector<16x128xf32>
    %540 = arith.mulf %538, %539 : vector<16x128xf32>
    %541 = vector.broadcast %3 : vector<1x128xf32> to vector<16x128xf32>
    %542 = arith.addf %540, %541 : vector<16x128xf32>
    %cst_419 = arith.constant 0.000000e+00 : f32
    %543 = vector.broadcast %cst_419 : f32 to vector<16x128xf32>
    %544 = arith.maximumf %542, %543 : vector<16x128xf32>
    %c0_420 = arith.constant 0 : index
    %c7_421 = arith.constant 7 : index
    %c0_422 = arith.constant 0 : index
    %c0_423 = arith.constant 0 : index
    %545 = vector.load %arg5[%c0_420, %c7_421, %c0_422, %c0_423] : memref<1x8x16x128xf32, #tpu.memory_space<vmem>>, vector<1x1x16x128xf32>
    %546 = vector.shape_cast %545 : vector<1x1x16x128xf32> to vector<16x128xf32>
    %547 = vector.shape_cast %544 : vector<16x128xf32> to vector<1x1x16x128xf32>
    tpu.vector_store %arg5[%c0_420, %c7_421, %c0_422, %c0_423], %547 {strides = array<i32>} : memref<1x8x16x128xf32, #tpu.memory_space<vmem>>, vector<1x1x16x128xf32>,
    return
  }
  func.func @transform_0(%arg0: i32, %arg1: i32) -> (i32, i32, i32, i32) {
    %c0_i32 = arith.constant 0 : i32
    %c0_i32_0 = arith.constant 0 : i32
    %c0_i32_1 = arith.constant 0 : i32
    %c0_i32_2 = arith.constant 0 : i32
    return %arg0, %c0_i32, %c0_i32_0, %c0_i32_1 : i32, i32, i32, i32
  }
  func.func @transform_1(%arg0: i32, %arg1: i32) -> (i32, i32, i32) {
    %c0_i32 = arith.constant 0 : i32
    %c0_i32_0 = arith.constant 0 : i32
    %c0_i32_1 = arith.constant 0 : i32
    %c0_i32_2 = arith.constant 0 : i32
    return %c0_i32, %c0_i32_0, %c0_i32_1 : i32, i32, i32
  }
  func.func @transform_2(%arg0: i32, %arg1: i32) -> (i32, i32) {
    %c0_i32 = arith.constant 0 : i32
    %c0_i32_0 = arith.constant 0 : i32
    %c0_i32_1 = arith.constant 0 : i32
    return %c0_i32, %c0_i32_0 : i32, i32
  }
  func.func @transform_3(%arg0: i32, %arg1: i32) -> (i32, i32, i32, i32) {
    %c0_i32 = arith.constant 0 : i32
    %c0_i32_0 = arith.constant 0 : i32
    %c0_i32_1 = arith.constant 0 : i32
    return %arg0, %arg1, %c0_i32, %c0_i32_0 : i32, i32, i32, i32
  }
}

</mosaic_0001>

<bundles_post_ra>
// kernel: basic_conv.2
= control target key start
LH: loop header
LB: loop body
LE: loop exit
PB: predicated region body
PF: predicated region fallthrough
CT: control target
= control target key end

     0   :  { %s4759_s12 = smov 0   ;;  %s4761_s13 = smov 0   ;;  %s5444_s0 = inlined_call_operand.vmem [shape: bf16[2,18,18,4], index: 0, kind: input, shape index: {}]   ;;  %s5445_s1 = inlined_call_operand.vmem [shape: bf16[9,4,128], index: 1, kind: input, shape index: {}]   ;;  %s5446_s2 = inlined_call_operand.vmem [shape: f32[1,128], index: 2, kind: output, shape index: {0}]   ;;  %s5447_s3 = inlined_call_operand.vmem [shape: f32[1,128], index: 3, kind: output, shape index: {1}]  }
   0x1   :  { %s4763_s14 = smov 0   ;;  %s4765_s15 = smov 0  }
   0x2   :  { %s4767_s16 = smov 0  }
   0x3 LB: > { %s23_s17 = sadd.s32 1, %s4726_s14  ;;  %s26_s18 = sadd.s32 1, %s4730_s15  ;;  %s4734_s16 = sphi %s4767_s16, %s14_s16   ;;  %s4730_s15 = sphi %s4765_s15, %s5451_s15   ;;  %s4726_s14 = sphi %s4763_s14, %s5450_s14   ;;  %s4722_s13 = sphi %s4761_s13, %s5449_s13   ;;  %s4718_s12 = sphi %s4759_s12, %s5448_s12  }
   0x4   : > { %p24_p0 = scmp.ge.s32.totalorder %s23_s17, 2  ;;  %p3903_p1 = scmp.ge.s32.totalorder %s4734_s16, 1 }
   0x5   : > { %p142_p2 = scmp.lt.s32.totalorder %s4734_s16, 5 }
   0x6   : > { %s5453_s17 = smov (%p24_p0, %s23_s17), 0  ;;  %s5455_s18 = smov (!%p24_p0, %s26_s18), %s4730_s15 }
   0x7   : > { %p143_p3 = pnand %p3903_p1, %p142_p2  ;;  %p28_p4 = scmp.ge.s32.totalorder %s5455_s18, 2 }
   0x8   : > { %p161_p5 = scmp.lt.s32.totalorder (!%p143_p3), %s4722_s13, 1  ;;  %p167_p6 = scmp.eq.s32.totalorder (!%p143_p3), %s4722_s13, 0 }
   0x9   : > { %s5457_s18 = smov (%p28_p4, %s5455_s18), 0  ;;  %146 = sbr.rel (%p143_p3) target bundleno = 534 (0x216), region = 28 }
   0xa   : > { %p168_p7 = scmp.eq.s32.totalorder (!%p143_p3), %s4718_s12, 0 }
   0xc   : > { %p169_p8 = pnand (!%p143_p3), %p168_p7, %p167_p6 }
   0xe   : > { %s5459_s13 = smov (!%p161_p5, %s4722_s13), 1  ;;  %172 = sbr.rel (%p169_p8) target bundleno = 21 (0x15), region = 32 }
   0xf   : > { %s4632_s19 = smul.u32 216, %s5459_s13 }
  0x11   : > { %s165_s22 = scalar_lea.vmem %s5444_s0, %s4632_s19 }
  0x13   : > { %v4736_v0 = vmov 0.0  }
  0x14   : > { %173 = vst [vmem:[%s5446_s2] sm:$0x1] %v4736_v0  ;;  %174 = vst [vmem:[%s5447_s3] sm:$0x1] %v4736_v0 }
  0x15 PF: > { %v182_v1 = vld [vmem:[%s5445_s1] sm:$0x3]  ;;  %vm210_vm0 = vcmask 1041408   ;;  %s4055_s29 = smul.u32 96, %s4718_s12  ;;  %v4737_v2 = vmov 0.0   ;;  %vm4738_vm1 = vmmov 0  }
  0x16   : > { %4206 = vmatprep.subr.bf16.mxu1 %v4737_v2  ;;  %v4807_v3 = vsel %vm210_vm0, %v182_v1, 0  ;;  %4200 = vmatprep.subr.bf16.mxu0 %v4737_v2  ;;  %v3908_v4 = vld [vmem:[%s5445_s1 + $0x2] sm:$0x3]  ;;  %vm206_vm2 = vcmask 31744   ;;  %v3920_v6 = vld [vmem:[%s5445_s1 + $0x6] sm:$0x3] }
  0x17   : > { %4207 = vmatpush3.bf16.msra.mxu1 %v4807_v3  ;;  %4208 = vmatprep.mubr.msk.bf16.mxu1 %vm4738_vm1, %v4737_v2  ;;  %v4817_v5 = vsel %vm210_vm0, %v3908_v4, 0  ;;  %s4819_s5 = scalar_lea.vmem %s165_s22, %s4055_s29  ;;  %v4832_v9 = vsel %vm210_vm0, %v3920_v6, 0  ;;  %v3913_v14 = vld [vmem:[%s5445_s1 + $0x4] sm:$0x3]  ;;  %vm193_vm3 = vsmask.f32 7424 }
  0x18   : > { %4201 = vmatpush3.bf16.msra.mxu0 %v4817_v5  ;;  %v4676_v7 = vld [vmem:[%s4819_s5] sm:$0xff]   ;;  %4202 = vmatprep.mubr.msk.bf16.mxu0 %vm4738_vm1, %v4737_v2  ;;  %v4677_v8 = vld [vmem:[%s4819_s5 + $0x8] ss:$0 sps:$4 sm:$0x11]   ;;  %v4843_v17 = vld [vmem:[%s4819_s5 + $0xc] sm:$0xff]   ;;  %v4850_v20 = vsel %vm210_vm0, %v3913_v14, 0 }
  0x19   : > { %4212 = vmatprep.subr.bf16.mxu0 %v4737_v2  ;;  %4218 = vmatprep.subr.bf16.mxu1 %v4737_v2  ;;  %v195_v10 = vshrl.u32 %v4676_v7, 16  ;;  %v197_v11 = vshll.u32 %v4676_v7, 16  ;;  %v202_v12 = vshll.u32 %v4677_v8, 16  ;;  %v3926_v18 = vld [vmem:[%s5445_s1 + $0xa] sm:$0x3]  ;;  %v4854_v22 = vld [vmem:[%s4819_s5 + $0x18] sm:$0xff]  }
  0x1a   : > { %4209 = vmatmul.mubr.msk.bf16.vlgmr.msra.gmra.mxu1 %vm206_vm2, %v4676_v7  ;;  %v4679_v19 = vld [vmem:[%s4819_s5 + $0x14] ss:$0 sps:$4 sm:$0x11]   ;;  %vm303_vm4 = vcmask 1046528   ;;  %v304_v23 = vrot.slane %v4676_v7, 1  ;;  %v4861_v25 = vsel %vm210_vm0, %v3926_v18, 0 }
  0x1b   : > { %4219 = vmatpush3.bf16.msra.mxu1 %v4832_v9  ;;  %4220 = vmatprep.mubr.msk.bf16.mxu1 %vm4738_vm1, %v4737_v2  ;;  %v199_v13 = vrot.slane %v197_v11, 1  ;;  %v204_v15 = vrot.slane %v202_v12, 1  ;;  %v3923_v24 = vld [vmem:[%s5445_s1 + $0x8] sm:$0x3]  ;;  %v305_v26 = vrot.slane %v4677_v8, 1  ;;  %v486_v27 = vrot.slane %v4843_v17, 1 }
  0x1c   : > { %4230 = vmatprep.subr.bf16.mxu1 %v4737_v2  ;;  %v487_v28 = vrot.slane %v4679_v19, 1  ;;  %v426_v29 = vshll.u32 %v4843_v17, 16  ;;  %v4681_v30 = vld [vmem:[%s4819_s5 + $0x20] ss:$0 sps:$4 sm:$0x11]   ;;  %v608_v31 = vshll.u32 %v4854_v22, 16 }
  0x1d   : > { %v200_v16 = vor.u32 %v199_v13, %v195_v10  ;;  %v4877_v32 = vsel %vm210_vm0, %v3923_v24, 0  ;;  %v424_v33 = vshrl.u32 %v4843_v17, 16  ;;  %v306_v34 = vsel %vm303_vm4, %v304_v23, %v305_v26  ;;  %v3936_v37 = vld [vmem:[%s5445_s1 + $0xe] sm:$0x3]  ;;  %v3933_v45 = vld [vmem:[%s5445_s1 + $0xc] sm:$0x3] }
  0x1e   : > { %v428_v35 = vrot.slane %v426_v29, 1  ;;  %v431_v36 = vshll.u32 %v4679_v19, 16  ;;  %v488_v38 = vsel %vm303_vm4, %v486_v27, %v487_v28  ;;  %v606_v39 = vshrl.u32 %v4854_v22, 16  ;;  %v3939_v51 = vld [vmem:[%s5445_s1 + $0x10] sm:$0x3]  ;;  %v4966_v56 = vld [vmem:[%s4819_s5 + $0x24] sm:$0xff]  }
  0x1f   : > { %v205_v21 = vsel %vm193_vm3, %v200_v16, %v204_v15  ;;  %v610_v40 = vrot.slane %v608_v31, 1  ;;  %v613_v41 = vshll.u32 %v4681_v30, 16  ;;  %v4889_v42 = vsel %vm210_vm0, %v3936_v37, 0  ;;  %v4683_v57 = vld [vmem:[%s4819_s5 + $0x2c] ss:$0 sps:$4 sm:$0x11]  }
  0x20   : > { %4203 = vmatmul.mubr.msk.bf16.vlgmr.msra.gmra.mxu0 %vm206_vm2, %v205_v21  ;;  %v429_v43 = vor.u32 %v428_v35, %v424_v33  ;;  %v433_v44 = vrot.slane %v431_v36, 1  ;;  %v4905_v49 = vsel %vm210_vm0, %v3933_v45, 0  ;;  %v4925_v52 = vsel %vm210_vm0, %v3939_v51, 0  ;;  %v5012_v7 = vld [vmem:[%s4819_s5 + $0x30] sm:$0xff]   ;;  %v5095_v21 = vld [vmem:[%s4819_s5 + $0x3c] sm:$0xff]   ;;  %v5141_v35 = vld [vmem:[%s4819_s5 + $0x48] sm:$0xff]  }
  0x21   : > { %4213 = vmatpush3.bf16.msra.mxu0 %v4850_v20  ;;  %4214 = vmatprep.mubr.msk.bf16.mxu0 %vm4738_vm1, %v4737_v2  ;;  %v611_v46 = vor.u32 %v610_v40, %v606_v39  ;;  %v615_v47 = vrot.slane %v613_v41, 1  ;;  %v668_v53 = vrot.slane %v4854_v22, 1  ;;  %v669_v54 = vrot.slane %v4681_v30, 1  ;;  %v4685_v8 = vld [vmem:[%s4819_s5 + $0x38] ss:$0 sps:$4 sm:$0x11]  }
  0x22   : > { %4221 = vmatmul.mubr.msk.bf16.vlgmr.msra.gmra.mxu1 %vm206_vm2, %v4843_v17  ;;  %4224 = vmatprep.subr.bf16.mxu0 %v4737_v2  ;;  %v434_v48 = vsel %vm193_vm3, %v429_v43, %v433_v44  ;;  %v1055_v58 = vshll.u32 %v4966_v56, 16  ;;  %v1110_v59 = vrot.slane %v4966_v56, 1  ;;  %v1111_v60 = vrot.slane %v4683_v57, 1  ;;  %v4689_v36 = vld [vmem:[%s4819_s5 + $0x50] ss:$0 sps:$4 sm:$0x11]  }
  0x23   : > { %4231 = vmatpush3.bf16.msra.mxu1 %v4861_v25  ;;  %4232 = vmatprep.mubr.msk.bf16.mxu1 %vm4738_vm1, %v4737_v2  ;;  %v4908_v50 = vsel %vm193_vm3, %v611_v46, %v615_v47  ;;  %v4940_v55 = vsel %vm303_vm4, %v668_v53, %v669_v54  ;;  %v1053_v61 = vshrl.u32 %v4966_v56, 16  ;;  %v1060_v63 = vshll.u32 %v4683_v57, 16  ;;  %v5224_v53 = vld [vmem:[%s4819_s5 + $0x54] sm:$0xff]   ;;  %v4691_v54 = vld [vmem:[%s4819_s5 + $0x5c] ss:$0 sps:$4 sm:$0x11]  }
  0x24   : > { %4242 = vmatprep.subr.bf16.mxu1 %v4737_v2  ;;  %v1057_v62 = vrot.slane %v1055_v58, 1  ;;  %v4985_v0 = vsel %vm303_vm4, %v1110_v59, %v1111_v60  ;;  %v1494_v10 = vshll.u32 %v5012_v7, 16  ;;  %v1492_v11 = vshrl.u32 %v5012_v7, 16 }
  0x25   : > { %v1062_v4 = vrot.slane %v1060_v63, 1  ;;  %v1499_v13 = vshll.u32 %v4685_v8, 16  ;;  %v1550_v18 = vrot.slane %v4685_v8, 1  ;;  %v1933_v23 = vshll.u32 %v5095_v21, 16 }
  0x26   : > { %v1058_v1 = vor.u32 %v1057_v62, %v1053_v61  ;;  %v1496_v12 = vrot.slane %v1494_v10, 1  ;;  %v1988_v24 = vrot.slane %v5095_v21, 1  ;;  %v1931_v27 = vshrl.u32 %v5095_v21, 16 }
  0x27   : > { %v1501_v15 = vrot.slane %v1499_v13, 1  ;;  %v1935_v28 = vrot.slane %v1933_v23, 1  ;;  %v2372_v37 = vshll.u32 %v5141_v35, 16  ;;  %v2377_v40 = vshll.u32 %v4689_v36, 16 }
  0x28   : > { %4215 = vmatmul.mubr.msk.bf16.vlgmr.msra.gmra.mxu0 %vm206_vm2, %v306_v34  ;;  %v1063_v6 = vsel %vm193_vm3, %v1058_v1, %v1062_v4  ;;  %v1497_v14 = vor.u32 %v1496_v12, %v1492_v11  ;;  %v2427_v45 = vrot.slane %v5141_v35, 1  ;;  %v2428_v46 = vrot.slane %v4689_v36, 1 }
  0x29   : > { %4225 = vmatpush3.bf16.msra.mxu0 %v4877_v32  ;;  %4226 = vmatprep.mubr.msk.bf16.mxu0 %vm4738_vm1, %v4737_v2  ;;  %v1936_v31 = vor.u32 %v1935_v28, %v1931_v27  ;;  %v2374_v39 = vrot.slane %v2372_v37, 1  ;;  %v2379_v43 = vrot.slane %v2377_v40, 1  ;;  %v2811_v59 = vshll.u32 %v5224_v53, 16 }
  0x2a   : > { %4233 = vmatmul.mubr.msk.bf16.vlgmr.msra.gmra.mxu1 %vm206_vm2, %v488_v38  ;;  %4236 = vmatprep.subr.bf16.mxu0 %v4737_v2  ;;  %v5042_v16 = vsel %vm193_vm3, %v1497_v14, %v1501_v15  ;;  %v5197_v47 = vsel %vm303_vm4, %v2427_v45, %v2428_v46  ;;  %v2866_v61 = vrot.slane %v5224_v53, 1  ;;  %v2867_v62 = vrot.slane %v4691_v54, 1 }
  0x2b   : > { %4243 = vmatpush3.bf16.msra.mxu1 %v4889_v42  ;;  %4244 = vmatprep.mubr.msk.bf16.mxu1 %vm4738_vm1, %v4737_v2  ;;  %v2816_v8 = vshll.u32 %v4691_v54, 16  ;;  %v5284_v54 = vld [vmem:[%s4819_s5 + $0x68] ss:$0 sps:$4 sm:$0x11]  }
  0x2c   : > { %4254 = vmatprep.subr.bf16.mxu1 %v4737_v2  ;;  %v5243_v11 = vsel %vm303_vm4, %v2866_v61, %v2867_v62 }
  0x30   : > { %4227 = vmatmul.mubr.msk.bf16.vlgmr.msra.gmra.mxu0 %vm206_vm2, %v434_v48 }
  0x31   : > { %4237 = vmatpush3.bf16.msra.mxu0 %v4905_v49  ;;  %4238 = vmatprep.mubr.msk.bf16.mxu0 %vm4738_vm1, %v4737_v2 }
  0x32   : > { %4245 = vmatmul.mubr.msk.bf16.vlgmr.msra.gmra.mxu1 %vm206_vm2, %v4908_v50  ;;  %4248 = vmatprep.subr.bf16.mxu0 %v4737_v2 }
  0x33   : > { %4255 = vmatpush3.bf16.msra.mxu1 %v4817_v5  ;;  %4256 = vmatprep.mubr.msk.bf16.mxu1 %vm4738_vm1, %v4737_v2 }
  0x34   : > { %4266 = vmatprep.subr.bf16.mxu1 %v4737_v2 }
  0x38   : > { %4239 = vmatmul.mubr.msk.bf16.vlgmr.msra.gmra.mxu0 %vm206_vm2, %v4854_v22 }
  0x39   : > { %4249 = vmatpush3.bf16.msra.mxu0 %v4925_v52  ;;  %4250 = vmatprep.mubr.msk.bf16.mxu0 %vm4738_vm1, %v4737_v2 }
  0x3a   : > { %4257 = vmatmul.mubr.msk.bf16.vlgmr.msra.gmra.mxu1 %vm206_vm2, %v434_v48  ;;  %4260 = vmatprep.subr.bf16.mxu0 %v4737_v2 }
  0x3b   : > { %4267 = vmatpush3.bf16.msra.mxu1 %v4850_v20  ;;  %4268 = vmatprep.mubr.msk.bf16.mxu1 %vm4738_vm1, %v4737_v2 }
  0x3c   : > { %4278 = vmatprep.subr.bf16.mxu1 %v4737_v2 }
  0x40   : > { %4251 = vmatmul.mubr.msk.bf16.vlgmr.msra.gmra.mxu0 %vm206_vm2, %v4940_v55 }
  0x41   : > { %4261 = vmatpush3.bf16.msra.mxu0 %v4807_v3  ;;  %4262 = vmatprep.mubr.msk.bf16.mxu0 %vm4738_vm1, %v4737_v2 }
  0x42   : > { %4269 = vmatmul.mubr.msk.bf16.vlgmr.msra.gmra.mxu1 %vm206_vm2, %v488_v38  ;;  %4272 = vmatprep.subr.bf16.mxu0 %v4737_v2  ;;  %v2370_v38 = vshrl.u32 %v5141_v35, 16 }
  0x43   : > { %4279 = vmatpush3.bf16.msra.mxu1 %v4877_v32  ;;  %4280 = vmatprep.mubr.msk.bf16.mxu1 %vm4738_vm1, %v4737_v2 }
  0x44   : > { %4290 = vmatprep.subr.bf16.mxu1 %v4737_v2  ;;  %v2375_v41 = vor.u32 %v2374_v39, %v2370_v38 }
  0x46   : > { %v5171_v44 = vsel %vm193_vm3, %v2375_v41, %v2379_v43  ;;  %v5273_v41 = vld [vmem:[%s4819_s5 + $0x60] sm:$0xff]  }
  0x47   : > { %v3248_v61 = vshrl.u32 %v5273_v41, 16 }
  0x48   : > { %4263 = vmatmul.mubr.msk.bf16.vlgmr.msra.gmra.mxu0 %vm206_vm2, %v4843_v17  ;;  %v1549_v17 = vrot.slane %v5012_v7, 1 }
  0x49   : > { %4273 = vmatpush3.bf16.msra.mxu0 %v4832_v9  ;;  %4274 = vmatprep.mubr.msk.bf16.mxu0 %vm4738_vm1, %v4737_v2 }
  0x4a   : > { %4281 = vmatmul.mubr.msk.bf16.vlgmr.msra.gmra.mxu1 %vm206_vm2, %v4908_v50  ;;  %4284 = vmatprep.subr.bf16.mxu0 %v4737_v2  ;;  %v5068_v19 = vsel %vm303_vm4, %v1549_v17, %v1550_v18  ;;  %v2818_v17 = vrot.slane %v2816_v8, 1 }
  0x4b   : > { %4291 = vmatpush3.bf16.msra.mxu1 %v4905_v49  ;;  %4292 = vmatprep.mubr.msk.bf16.mxu1 %vm4738_vm1, %v4737_v2 }
  0x4c   : > { %4302 = vmatprep.subr.bf16.mxu1 %v4737_v2 }
  0x50   : > { %4275 = vmatmul.mubr.msk.bf16.vlgmr.msra.gmra.mxu0 %vm206_vm2, %v4854_v22 }
  0x51   : > { %4285 = vmatpush3.bf16.msra.mxu0 %v4861_v25  ;;  %4286 = vmatprep.mubr.msk.bf16.mxu0 %vm4738_vm1, %v4737_v2 }
  0x52   : > { %4293 = vmatmul.mubr.msk.bf16.vlgmr.msra.gmra.mxu1 %vm206_vm2, %v4966_v56  ;;  %4296 = vmatprep.subr.bf16.mxu0 %v4737_v2 }
  0x53   : > { %4303 = vmatpush3.bf16.msra.mxu1 %v4925_v52  ;;  %4304 = vmatprep.mubr.msk.bf16.mxu1 %vm4738_vm1, %v4737_v2 }
  0x54   : > { %4314 = vmatprep.subr.bf16.mxu1 %v4737_v2 }
  0x58   : > { %4287 = vmatmul.mubr.msk.bf16.vlgmr.msra.gmra.mxu0 %vm206_vm2, %v4940_v55 }
  0x59   : > { %4297 = vmatpush3.bf16.msra.mxu0 %v4889_v42  ;;  %4298 = vmatprep.mubr.msk.bf16.mxu0 %vm4738_vm1, %v4737_v2 }
  0x5a   : > { %4305 = vmatmul.mubr.msk.bf16.vlgmr.msra.gmra.mxu1 %vm206_vm2, %v4985_v0  ;;  %4308 = vmatprep.subr.bf16.mxu0 %v4737_v2 }
  0x5b   : > { %4315 = vmatpush3.bf16.msra.mxu1 %v4807_v3  ;;  %4316 = vmatprep.mubr.msk.bf16.mxu1 %vm4738_vm1, %v4737_v2 }
  0x5c   : > { %4326 = vmatprep.subr.bf16.mxu1 %v4737_v2 }
  0x60   : > { %4299 = vmatmul.mubr.msk.bf16.vlgmr.msra.gmra.mxu0 %vm206_vm2, %v1063_v6 }
  0x61   : > { %4309 = vmatpush3.bf16.msra.mxu0 %v4817_v5  ;;  %4310 = vmatprep.mubr.msk.bf16.mxu0 %vm4738_vm1, %v4737_v2 }
  0x62   : > { %4317 = vmatmul.mubr.msk.bf16.vlgmr.msra.gmra.mxu1 %vm206_vm2, %v4854_v22  ;;  %4320 = vmatprep.subr.bf16.mxu0 %v4737_v2  ;;  %v4687_v22 = vld [vmem:[%s4819_s5 + $0x44] ss:$0 sps:$4 sm:$0x11]  }
  0x63   : > { %4327 = vmatpush3.bf16.msra.mxu1 %v4832_v9  ;;  %4328 = vmatprep.mubr.msk.bf16.mxu1 %vm4738_vm1, %v4737_v2  ;;  %v1989_v26 = vrot.slane %v4687_v22, 1  ;;  %v1938_v29 = vshll.u32 %v4687_v22, 16 }
  0x64   : > { %4338 = vmatprep.subr.bf16.mxu1 %v4737_v2 }
  0x65   : > { %v5114_v30 = vsel %vm303_vm4, %v1988_v24, %v1989_v26  ;;  %v1940_v33 = vrot.slane %v1938_v29, 1 }
  0x67   : > { %v1941_v34 = vsel %vm193_vm3, %v1936_v31, %v1940_v33 }
  0x68   : > { %4311 = vmatmul.mubr.msk.bf16.vlgmr.msra.gmra.mxu0 %vm206_vm2, %v4908_v50 }
  0x69   : > { %4321 = vmatpush3.bf16.msra.mxu0 %v4850_v20  ;;  %4322 = vmatprep.mubr.msk.bf16.mxu0 %vm4738_vm1, %v4737_v2 }
  0x6a   : > { %4329 = vmatmul.mubr.msk.bf16.vlgmr.msra.gmra.mxu1 %vm206_vm2, %v4966_v56  ;;  %4332 = vmatprep.subr.bf16.mxu0 %v4737_v2 }
  0x6b   : > { %4339 = vmatpush3.bf16.msra.mxu1 %v4861_v25  ;;  %4340 = vmatprep.mubr.msk.bf16.mxu1 %vm4738_vm1, %v4737_v2 }
  0x6c   : > { %4350 = vmatprep.subr.bf16.mxu1 %v4737_v2 }
  0x70   : > { %4323 = vmatmul.mubr.msk.bf16.vlgmr.msra.gmra.mxu0 %vm206_vm2, %v4940_v55 }
  0x71   : > { %4333 = vmatpush3.bf16.msra.mxu0 %v4877_v32  ;;  %4334 = vmatprep.mubr.msk.bf16.mxu0 %vm4738_vm1, %v4737_v2 }
  0x72   : > { %4341 = vmatmul.mubr.msk.bf16.vlgmr.msra.gmra.mxu1 %vm206_vm2, %v4985_v0  ;;  %4344 = vmatprep.subr.bf16.mxu0 %v4737_v2 }
  0x73   : > { %4351 = vmatpush3.bf16.msra.mxu1 %v4889_v42  ;;  %4352 = vmatprep.mubr.msk.bf16.mxu1 %vm4738_vm1, %v4737_v2 }
  0x74   : > { %4362 = vmatprep.subr.bf16.mxu1 %v4737_v2 }
  0x78   : > { %4335 = vmatmul.mubr.msk.bf16.vlgmr.msra.gmra.mxu0 %vm206_vm2, %v1063_v6 }
  0x79   : > { %4345 = vmatpush3.bf16.msra.mxu0 %v4905_v49  ;;  %4346 = vmatprep.mubr.msk.bf16.mxu0 %vm4738_vm1, %v4737_v2 }
  0x7a   : > { %4353 = vmatmul.mubr.msk.bf16.vlgmr.msra.gmra.mxu1 %vm206_vm2, %v5042_v16  ;;  %4356 = vmatprep.subr.bf16.mxu0 %v4737_v2 }
  0x7b   : > { %4363 = vmatpush3.bf16.msra.mxu1 %v4817_v5  ;;  %4364 = vmatprep.mubr.msk.bf16.mxu1 %vm4738_vm1, %v4737_v2 }
  0x7c   : > { %4374 = vmatprep.subr.bf16.mxu1 %v4737_v2 }
  0x80   : > { %4347 = vmatmul.mubr.msk.bf16.vlgmr.msra.gmra.mxu0 %vm206_vm2, %v5012_v7 }
  0x81   : > { %4357 = vmatpush3.bf16.msra.mxu0 %v4925_v52  ;;  %4358 = vmatprep.mubr.msk.bf16.mxu0 %vm4738_vm1, %v4737_v2 }
  0x82   : > { %4365 = vmatmul.mubr.msk.bf16.vlgmr.msra.gmra.mxu1 %vm206_vm2, %v1063_v6  ;;  %4368 = vmatprep.subr.bf16.mxu0 %v4737_v2  ;;  %v2809_v6 = vshrl.u32 %v5224_v53, 16 }
  0x83   : > { %4375 = vmatpush3.bf16.msra.mxu1 %v4850_v20  ;;  %4376 = vmatprep.mubr.msk.bf16.mxu1 %vm4738_vm1, %v4737_v2 }
  0x84   : > { %4386 = vmatprep.subr.bf16.mxu1 %v4737_v2 }
  0x88   : > { %4359 = vmatmul.mubr.msk.bf16.vlgmr.msra.gmra.mxu0 %vm206_vm2, %v5068_v19 }
  0x89   : > { %4369 = vmatpush3.bf16.msra.mxu0 %v4807_v3  ;;  %4370 = vmatprep.mubr.msk.bf16.mxu0 %vm4738_vm1, %v4737_v2 }
  0x8a   : > { %4377 = vmatmul.mubr.msk.bf16.vlgmr.msra.gmra.mxu1 %vm206_vm2, %v4985_v0  ;;  %4380 = vmatprep.subr.bf16.mxu0 %v4737_v2 }
  0x8b   : > { %4387 = vmatpush3.bf16.msra.mxu1 %v4877_v32  ;;  %4388 = vmatprep.mubr.msk.bf16.mxu1 %vm4738_vm1, %v4737_v2 }
  0x8c   : > { %4398 = vmatprep.subr.bf16.mxu1 %v4737_v2 }
  0x90   : > { %4371 = vmatmul.mubr.msk.bf16.vlgmr.msra.gmra.mxu0 %vm206_vm2, %v4966_v56 }
  0x91   : > { %4381 = vmatpush3.bf16.msra.mxu0 %v4832_v9  ;;  %4382 = vmatprep.mubr.msk.bf16.mxu0 %vm4738_vm1, %v4737_v2 }
  0x92   : > { %4389 = vmatmul.mubr.msk.bf16.vlgmr.msra.gmra.mxu1 %vm206_vm2, %v5042_v16  ;;  %4392 = vmatprep.subr.bf16.mxu0 %v4737_v2 }
  0x93   : > { %4399 = vmatpush3.bf16.msra.mxu1 %v4905_v49  ;;  %4400 = vmatprep.mubr.msk.bf16.mxu1 %vm4738_vm1, %v4737_v2 }
  0x94   : > { %4410 = vmatprep.subr.bf16.mxu1 %v4737_v2 }
  0x98   : > { %4383 = vmatmul.mubr.msk.bf16.vlgmr.msra.gmra.mxu0 %vm206_vm2, %v5012_v7 }
  0x99   : > { %4393 = vmatpush3.bf16.msra.mxu0 %v4861_v25  ;;  %4394 = vmatprep.mubr.msk.bf16.mxu0 %vm4738_vm1, %v4737_v2 }
  0x9a   : > { %4401 = vmatmul.mubr.msk.bf16.vlgmr.msra.gmra.mxu1 %vm206_vm2, %v5095_v21  ;;  %4404 = vmatprep.subr.bf16.mxu0 %v4737_v2 }
  0x9b   : > { %4411 = vmatpush3.bf16.msra.mxu1 %v4925_v52  ;;  %4412 = vmatprep.mubr.msk.bf16.mxu1 %vm4738_vm1, %v4737_v2 }
  0x9c   : > { %4422 = vmatprep.subr.bf16.mxu1 %v4737_v2 }
  0xa0   : > { %4395 = vmatmul.mubr.msk.bf16.vlgmr.msra.gmra.mxu0 %vm206_vm2, %v5068_v19 }
  0xa1   : > { %4405 = vmatpush3.bf16.msra.mxu0 %v4889_v42  ;;  %4406 = vmatprep.mubr.msk.bf16.mxu0 %vm4738_vm1, %v4737_v2 }
  0xa2   : > { %4413 = vmatmul.mubr.msk.bf16.vlgmr.msra.gmra.mxu1 %vm206_vm2, %v5114_v30  ;;  %4416 = vmatprep.subr.bf16.mxu0 %v4737_v2 }
  0xa3   : > { %4423 = vmatpush3.bf16.msra.mxu1 %v4807_v3  ;;  %4424 = vmatprep.mubr.msk.bf16.mxu1 %vm4738_vm1, %v4737_v2 }
  0xa4   : > { %4434 = vmatprep.subr.bf16.mxu1 %v4737_v2 }
  0xa8   : > { %4407 = vmatmul.mubr.msk.bf16.vlgmr.msra.gmra.mxu0 %vm206_vm2, %v1941_v34 }
  0xa9   : > { %4417 = vmatpush3.bf16.msra.mxu0 %v4817_v5  ;;  %4418 = vmatprep.mubr.msk.bf16.mxu0 %vm4738_vm1, %v4737_v2 }
  0xaa   : > { %4425 = vmatmul.mubr.msk.bf16.vlgmr.msra.gmra.mxu1 %vm206_vm2, %v5012_v7  ;;  %4428 = vmatprep.subr.bf16.mxu0 %v4737_v2  ;;  %v2813_v7 = vrot.slane %v2811_v59, 1 }
  0xab   : > { %4435 = vmatpush3.bf16.msra.mxu1 %v4832_v9  ;;  %4436 = vmatprep.mubr.msk.bf16.mxu1 %vm4738_vm1, %v4737_v2 }
  0xac   : > { %4446 = vmatprep.subr.bf16.mxu1 %v4737_v2 }
  0xb0   : > { %4419 = vmatmul.mubr.msk.bf16.vlgmr.msra.gmra.mxu0 %vm206_vm2, %v5042_v16  ;;  %v2814_v16 = vor.u32 %v2813_v7, %v2809_v6 }
  0xb1   : > { %4429 = vmatpush3.bf16.msra.mxu0 %v4850_v20  ;;  %4430 = vmatprep.mubr.msk.bf16.mxu0 %vm4738_vm1, %v4737_v2 }
  0xb2   : > { %4437 = vmatmul.mubr.msk.bf16.vlgmr.msra.gmra.mxu1 %vm206_vm2, %v5095_v21  ;;  %4440 = vmatprep.subr.bf16.mxu0 %v4737_v2  ;;  %v5258_v26 = vsel %vm193_vm3, %v2814_v16, %v2818_v17 }
  0xb3   : > { %4447 = vmatpush3.bf16.msra.mxu1 %v4861_v25  ;;  %4448 = vmatprep.mubr.msk.bf16.mxu1 %vm4738_vm1, %v4737_v2 }
  0xb4   : > { %4458 = vmatprep.subr.bf16.mxu1 %v4737_v2 }
  0xb8   : > { %4431 = vmatmul.mubr.msk.bf16.vlgmr.msra.gmra.mxu0 %vm206_vm2, %v5068_v19 }
  0xb9   : > { %4441 = vmatpush3.bf16.msra.mxu0 %v4877_v32  ;;  %4442 = vmatprep.mubr.msk.bf16.mxu0 %vm4738_vm1, %v4737_v2 }
  0xba   : > { %4449 = vmatmul.mubr.msk.bf16.vlgmr.msra.gmra.mxu1 %vm206_vm2, %v5114_v30  ;;  %4452 = vmatprep.subr.bf16.mxu0 %v4737_v2 }
  0xbb   : > { %4459 = vmatpush3.bf16.msra.mxu1 %v4889_v42  ;;  %4460 = vmatprep.mubr.msk.bf16.mxu1 %vm4738_vm1, %v4737_v2 }
  0xbc   : > { %4470 = vmatprep.subr.bf16.mxu1 %v4737_v2 }
  0xc0   : > { %4443 = vmatmul.mubr.msk.bf16.vlgmr.msra.gmra.mxu0 %vm206_vm2, %v1941_v34 }
  0xc1   : > { %4453 = vmatpush3.bf16.msra.mxu0 %v4905_v49  ;;  %4454 = vmatprep.mubr.msk.bf16.mxu0 %vm4738_vm1, %v4737_v2 }
  0xc2   : > { %4461 = vmatmul.mubr.msk.bf16.vlgmr.msra.gmra.mxu1 %vm206_vm2, %v5171_v44  ;;  %4464 = vmatprep.subr.bf16.mxu0 %v4737_v2 }
  0xc3   : > { %4471 = vmatpush3.bf16.msra.mxu1 %v4817_v5  ;;  %4472 = vmatprep.mubr.msk.bf16.mxu1 %vm4738_vm1, %v4737_v2 }
  0xc4   : > { %4482 = vmatprep.subr.bf16.mxu1 %v4737_v2 }
  0xc8   : > { %4455 = vmatmul.mubr.msk.bf16.vlgmr.msra.gmra.mxu0 %vm206_vm2, %v5141_v35 }
  0xc9   : > { %4465 = vmatpush3.bf16.msra.mxu0 %v4925_v52  ;;  %4466 = vmatprep.mubr.msk.bf16.mxu0 %vm4738_vm1, %v4737_v2 }
  0xca   : > { %4473 = vmatmul.mubr.msk.bf16.vlgmr.msra.gmra.mxu1 %vm206_vm2, %v1941_v34  ;;  %4476 = vmatprep.subr.bf16.mxu0 %v4737_v2 }
  0xcb   : > { %4483 = vmatpush3.bf16.msra.mxu1 %v4850_v20  ;;  %4484 = vmatprep.mubr.msk.bf16.mxu1 %vm4738_vm1, %v4737_v2 }
  0xcc   : > { %4494 = vmatprep.subr.bf16.mxu1 %v4737_v2 }
  0xd0   : > { %4467 = vmatmul.mubr.msk.bf16.vlgmr.msra.gmra.mxu0 %vm206_vm2, %v5197_v47 }
  0xd1   : > { %4477 = vmatpush3.bf16.msra.mxu0 %v4807_v3  ;;  %4478 = vmatprep.mubr.msk.bf16.mxu0 %vm4738_vm1, %v4737_v2 }
  0xd2   : > { %4485 = vmatmul.mubr.msk.bf16.vlgmr.msra.gmra.mxu1 %vm206_vm2, %v5114_v30  ;;  %4488 = vmatprep.subr.bf16.mxu0 %v4737_v2 }
  0xd3   : > { %4495 = vmatpush3.bf16.msra.mxu1 %v4877_v32  ;;  %4496 = vmatprep.mubr.msk.bf16.mxu1 %vm4738_vm1, %v4737_v2 }
  0xd4   : > { %4506 = vmatprep.subr.bf16.mxu1 %v4737_v2 }
  0xd8   : > { %4479 = vmatmul.mubr.msk.bf16.vlgmr.msra.gmra.mxu0 %vm206_vm2, %v5095_v21 }
  0xd9   : > { %4489 = vmatpush3.bf16.msra.mxu0 %v4832_v9  ;;  %4490 = vmatprep.mubr.msk.bf16.mxu0 %vm4738_vm1, %v4737_v2 }
  0xda   : > { %v294_v48 = vpop.f32.mrf.mxu1  ;;  %4497 = vmatmul.mubr.msk.bf16.vlgmr.msra.gmra.mxu1 %vm206_vm2, %v5171_v44  ;;  %4500 = vmatprep.subr.bf16.mxu0 %v4737_v2 }
  0xdb   : > { %4507 = vmatpush3.bf16.msra.mxu1 %v4905_v49  ;;  %4508 = vmatprep.mubr.msk.bf16.mxu1 %vm4738_vm1, %v4737_v2 }
  0xdc   : > { %v4210_v50 = vpop.f32.mrf.mxu1  ;;  %4518 = vmatprep.subr.bf16.mxu1 %v4737_v2 }
  0xde   : > { %v297_v51 = vpop.f32.mrf.mxu1 }
  0xe0   : > { %v4211_v55 = vpop.f32.mrf.mxu1  ;;  %v248_v56 = vpop.f32.mrf.mxu0  ;;  %4491 = vmatmul.mubr.msk.bf16.vlgmr.msra.gmra.mxu0 %vm206_vm2, %v5141_v35 }
  0xe1   : > { %v295_v57 = vadd.f32 %v294_v48, %v248_v56  ;;  %4501 = vmatpush3.bf16.msra.mxu0 %v4861_v25  ;;  %4502 = vmatprep.mubr.msk.bf16.mxu0 %vm4738_vm1, %v4737_v2  ;;  %v3250_v55 = vshll.u32 %v5273_v41, 16 }
  0xe2   : > { %v410_v58 = vpop.f32.mrf.mxu1  ;;  %4509 = vmatmul.mubr.msk.bf16.vlgmr.msra.gmra.mxu1 %vm206_vm2, %v5224_v53  ;;  %v4204_v60 = vpop.f32.mrf.mxu0  ;;  %4512 = vmatprep.subr.bf16.mxu0 %v4737_v2 }
  0xe3   : > { %4519 = vmatpush3.bf16.msra.mxu1 %v4925_v52  ;;  %4520 = vmatprep.mubr.msk.bf16.mxu1 %vm4738_vm1, %v4737_v2  ;;  %v3252_v62 = vrot.slane %v3250_v55, 1 }
  0xe4   : > { %v4222_v63 = vpop.f32.mrf.mxu1  ;;  %v251_v0 = vpop.f32.mrf.mxu0  ;;  %4530 = vmatprep.subr.bf16.mxu1 %v4737_v2 }
  0xe5   : > { %v298_v1 = vadd.f32 %v297_v51, %v251_v0  ;;  %v3255_v63 = vshll.u32 %v5284_v54, 16 }
  0xe6   : > { %v413_v4 = vpop.f32.mrf.mxu1  ;;  %v4205_v10 = vpop.f32.mrf.mxu0 }
  0xe7   : > { %v3253_v10 = vor.u32 %v3252_v62, %v3248_v61 }
  0xe8   : > { %v4223_v12 = vpop.f32.mrf.mxu1  ;;  %v347_v13 = vpop.f32.mrf.mxu0  ;;  %4503 = vmatmul.mubr.msk.bf16.vlgmr.msra.gmra.mxu0 %vm206_vm2, %v5197_v47 }
  0xe9   : > { %v354_v14 = vadd.f32 %v347_v13, %v295_v57  ;;  %4513 = vmatpush3.bf16.msra.mxu0 %v4889_v42  ;;  %4514 = vmatprep.mubr.msk.bf16.mxu0 %vm4738_vm1, %v4737_v2  ;;  %v3257_v12 = vrot.slane %v3255_v63, 1 }
  0xea   : > { %v529_v15 = vpop.f32.mrf.mxu1  ;;  %4521 = vmatmul.mubr.msk.bf16.vlgmr.msra.gmra.mxu1 %vm206_vm2, %v5243_v11  ;;  %v4216_v18 = vpop.f32.mrf.mxu0  ;;  %4524 = vmatprep.subr.bf16.mxu0 %v4737_v2 }
  0xeb   : > { %v417_v21 = vadd.f32 %v410_v58, %v354_v14  ;;  %4531 = vmatpush3.bf16.msra.mxu1 %v4807_v3  ;;  %4532 = vmatprep.mubr.msk.bf16.mxu1 %vm4738_vm1, %v4737_v2  ;;  %v5306_v17 = vsel %vm193_vm3, %v3253_v10, %v3257_v12 }
  0xec   : > { %v4234_v19 = vpop.f32.mrf.mxu1  ;;  %v350_v22 = vpop.f32.mrf.mxu0  ;;  %4542 = vmatprep.subr.bf16.mxu1 %v4737_v2 }
  0xed   : > { %v355_v23 = vadd.f32 %v350_v22, %v298_v1 }
  0xee   : > { %v532_v24 = vpop.f32.mrf.mxu1  ;;  %v4217_v27 = vpop.f32.mrf.mxu0 }
  0xef   : > { %v418_v29 = vadd.f32 %v413_v4, %v355_v23 }
  0xf0   : > { %v4235_v28 = vpop.f32.mrf.mxu1  ;;  %v475_v30 = vpop.f32.mrf.mxu0  ;;  %4515 = vmatmul.mubr.msk.bf16.vlgmr.msra.gmra.mxu0 %vm206_vm2, %v5258_v26 }
  0xf1   : > { %v482_v31 = vadd.f32 %v475_v30, %v417_v21  ;;  %4525 = vmatpush3.bf16.msra.mxu0 %v4817_v5  ;;  %4526 = vmatprep.mubr.msk.bf16.mxu0 %vm4738_vm1, %v4737_v2 }
  0xf2   : > { %v657_v33 = vpop.f32.mrf.mxu1  ;;  %4533 = vmatmul.mubr.msk.bf16.vlgmr.msra.gmra.mxu1 %vm206_vm2, %v5141_v35  ;;  %v4228_v34 = vpop.f32.mrf.mxu0  ;;  %4536 = vmatprep.subr.bf16.mxu0 %v4737_v2 }
  0xf3   : > { %v536_v37 = vadd.f32 %v529_v15, %v482_v31  ;;  %4543 = vmatpush3.bf16.msra.mxu1 %v4832_v9  ;;  %4544 = vmatprep.mubr.msk.bf16.mxu1 %vm4738_vm1, %v4737_v2 }
  0xf4   : > { %v4246_v36 = vpop.f32.mrf.mxu1  ;;  %v478_v38 = vpop.f32.mrf.mxu0  ;;  %4554 = vmatprep.subr.bf16.mxu1 %v4737_v2 }
  0xf5   : > { %v483_v39 = vadd.f32 %v478_v38, %v418_v29 }
  0xf6   : > { %v660_v40 = vpop.f32.mrf.mxu1  ;;  %v4229_v35 = vpop.f32.mrf.mxu0 }
  0xf7   : > { %v537_v45 = vadd.f32 %v532_v24, %v483_v39 }
  0xf8   : > { %v4247_v43 = vpop.f32.mrf.mxu1  ;;  %v592_v46 = vpop.f32.mrf.mxu0  ;;  %4527 = vmatmul.mubr.msk.bf16.vlgmr.msra.gmra.mxu0 %vm206_vm2, %v5171_v44 }
  0xf9   : > { %v599_v48 = vadd.f32 %v592_v46, %v536_v37  ;;  %4537 = vmatpush3.bf16.msra.mxu0 %v4850_v20  ;;  %4538 = vmatprep.mubr.msk.bf16.mxu0 %vm4738_vm1, %v4737_v2 }
  0xfa   : > { %v772_v50 = vpop.f32.mrf.mxu1  ;;  %4545 = vmatmul.mubr.msk.bf16.vlgmr.msra.gmra.mxu1 %vm206_vm2, %v5224_v53  ;;  %v4240_v51 = vpop.f32.mrf.mxu0  ;;  %4548 = vmatprep.subr.bf16.mxu0 %v4737_v2 }
  0xfb   : > { %v664_v57 = vadd.f32 %v657_v33, %v599_v48  ;;  %4555 = vmatpush3.bf16.msra.mxu1 %v4861_v25  ;;  %4556 = vmatprep.mubr.msk.bf16.mxu1 %vm4738_vm1, %v4737_v2 }
  0xfc   : > { %v4258_v56 = vpop.f32.mrf.mxu1  ;;  %v595_v44 = vpop.f32.mrf.mxu0  ;;  %4566 = vmatprep.subr.bf16.mxu1 %v4737_v2 }
  0xfd   : > { %v600_v58 = vadd.f32 %v595_v44, %v537_v45  ;;  %v3306_v45 = vrot.slane %v5284_v54, 1 }
  0xfe   : > { %v775_v59 = vpop.f32.mrf.mxu1  ;;  %v4241_v60 = vpop.f32.mrf.mxu0 }
  0xff   : > { %v665_v1 = vadd.f32 %v660_v40, %v600_v58 }
 0x100   : > { %v4259_v0 = vpop.f32.mrf.mxu1  ;;  %v711_v4 = vpop.f32.mrf.mxu0  ;;  %4539 = vmatmul.mubr.msk.bf16.vlgmr.msra.gmra.mxu0 %vm206_vm2, %v5197_v47 }
 0x101   : > { %v718_v6 = vadd.f32 %v711_v4, %v664_v57  ;;  %4549 = vmatpush3.bf16.msra.mxu0 %v4877_v32  ;;  %4550 = vmatprep.mubr.msk.bf16.mxu0 %vm4738_vm1, %v4737_v2 }
 0x102   : > { %v854_v7 = vpop.f32.mrf.mxu1  ;;  %4557 = vmatmul.mubr.msk.bf16.vlgmr.msra.gmra.mxu1 %vm206_vm2, %v5243_v11  ;;  %v4252_v8 = vpop.f32.mrf.mxu0  ;;  %4560 = vmatprep.subr.bf16.mxu0 %v4737_v2 }
 0x103   : > { %4567 = vmatpush3.bf16.msra.mxu1 %v4889_v42  ;;  %4568 = vmatprep.mubr.msk.bf16.mxu1 %vm4738_vm1, %v4737_v2  ;;  %v728_v18 = vmul.f32 %v718_v6, %v718_v6 }
 0x104   : > { %v4270_v13 = vpop.f32.mrf.mxu1  ;;  %v714_v47 = vpop.f32.mrf.mxu0  ;;  %4578 = vmatprep.subr.bf16.mxu1 %v4737_v2 }
 0x105   : > { %v719_v14 = vadd.f32 %v714_v47, %v665_v1 }
 0x106   : > { %v857_v15 = vpop.f32.mrf.mxu1  ;;  %v4253_v16 = vpop.f32.mrf.mxu0 }
 0x107   : > { %v5308_v19 = vadd.f32 %v719_v14, %v718_v6  ;;  %v729_v21 = vmul.f32 %v719_v14, %v719_v14  ;;  %v4694_v16 = vld [vmem:[%s4819_s5 + $0x6c] sm:$0xff]  }
 0x108   : > { %v4271_v22 = vpop.f32.mrf.mxu1  ;;  %v813_v23 = vpop.f32.mrf.mxu0  ;;  %4551 = vmatmul.mubr.msk.bf16.vlgmr.msra.gmra.mxu0 %vm206_vm2, %v5258_v26 }
 0x109   : > { %v5312_v24 = vadd.f32 %v729_v21, %v728_v18  ;;  %v814_v27 = vadd.f32 %v813_v23, %v772_v50  ;;  %4561 = vmatpush3.bf16.msra.mxu0 %v4905_v49  ;;  %4562 = vmatprep.mubr.msk.bf16.mxu0 %vm4738_vm1, %v4737_v2  ;;  %v4695_v18 = vld [vmem:[%s4819_s5 + $0x74] ss:$0 sps:$4 sm:$0x11]  }
 0x10a   : > { %v940_v28 = vpop.f32.mrf.mxu1  ;;  %4569 = vmatmul.mubr.msk.bf16.vlgmr.msra.gmra.mxu1 %vm206_vm2, %v5306_v17  ;;  %v4264_v29 = vpop.f32.mrf.mxu0  ;;  %4572 = vmatprep.subr.bf16.mxu0 %v4737_v2 }
 0x10b   : > { %v861_v31 = vadd.f32 %v854_v7, %v814_v27  ;;  %4579 = vmatpush3.bf16.msra.mxu1 %v4817_v5  ;;  %4580 = vmatprep.mubr.msk.bf16.mxu1 %vm4738_vm1, %v4737_v2  ;;  %v3305_v5 = vrot.slane %v5273_v41, 1  ;;  %v721_v7 = vrot.slane %v5308_v19, 4  ;;  %v731_v12 = vrot.slane %v5312_v24, 4 }
 0x10c   : > { %v4282_v30 = vpop.f32.mrf.mxu1  ;;  %v816_v33 = vpop.f32.mrf.mxu0  ;;  %4590 = vmatprep.subr.bf16.mxu1 %v4737_v2 }
 0x10d   : > { %v817_v34 = vadd.f32 %v816_v33, %v775_v59  ;;  %v5339_v54 = vsel %vm303_vm4, %v3305_v5, %v3306_v45  ;;  %v722_v47 = vadd.f32 %v721_v7, %v5308_v19  ;;  %v732_v21 = vadd.f32 %v731_v12, %v5312_v24 }
 0x10e   : > { %v943_v36 = vpop.f32.mrf.mxu1  ;;  %v4265_v37 = vpop.f32.mrf.mxu0  ;;  %v3744_v24 = vrot.slane %v4694_v16, 1 }
 0x10f   : > { %v862_v39 = vadd.f32 %v857_v15, %v817_v34  ;;  %v723_v29 = vrot.slane %v722_v47, 2  ;;  %v733_v37 = vrot.slane %v732_v21, 2 }
 0x110   : > { %v4283_v38 = vpop.f32.mrf.mxu1  ;;  %v897_v40 = vpop.f32.mrf.mxu0  ;;  %4563 = vmatmul.mubr.msk.bf16.vlgmr.msra.gmra.mxu0 %vm206_vm2, %v5273_v41 }
 0x111   : > { %v904_v35 = vadd.f32 %v897_v40, %v861_v31  ;;  %4573 = vmatpush3.bf16.msra.mxu0 %v4925_v52  ;;  %4574 = vmatprep.mubr.msk.bf16.mxu0 %vm4738_vm1, %v4737_v2  ;;  %v3687_v40 = vshrl.u32 %v4694_v16, 16  ;;  %v724_v5 = vadd.f32 %v723_v29, %v722_v47 }
 0x112   : > { %v1041_v43 = vpop.f32.mrf.mxu1  ;;  %4581 = vmatmul.mubr.msk.bf16.vlgmr.msra.gmra.mxu1 %vm206_vm2, %v5258_v26  ;;  %v4276_v46 = vpop.f32.mrf.mxu0  ;;  %4584 = vmatprep.subr.bf16.mxu0 %v4737_v2 }
 0x113   : > { %v947_v50 = vadd.f32 %v940_v28, %v904_v35  ;;  %4591 = vmatpush3.bf16.msra.mxu1 %v4850_v20  ;;  %4592 = vmatprep.mubr.msk.bf16.mxu1 %vm4738_vm1, %v4737_v2 }
 0x114   : > { %v4294_v48 = vpop.f32.mrf.mxu1  ;;  %v900_v51 = vpop.f32.mrf.mxu0  ;;  %4602 = vmatprep.subr.bf16.mxu1 %v4737_v2 }
 0x115   : > { %v905_v26 = vadd.f32 %v900_v51, %v862_v39 }
 0x116   : > { %v1044_v55 = vpop.f32.mrf.mxu1  ;;  %v4277_v56 = vpop.f32.mrf.mxu0 }
 0x117   : > { %v948_v44 = vadd.f32 %v943_v36, %v905_v26  ;;  %v3745_v36 = vrot.slane %v4695_v18, 1 }
 0x118   : > { %v4295_v57 = vpop.f32.mrf.mxu1  ;;  %v983_v58 = vpop.f32.mrf.mxu0  ;;  %4575 = vmatmul.mubr.msk.bf16.vlgmr.msra.gmra.mxu0 %vm206_vm2, %v5339_v54 }
 0x119   : > { %v990_v59 = vadd.f32 %v983_v58, %v947_v50  ;;  %4585 = vmatpush3.bf16.msra.mxu0 %v4807_v3  ;;  %4586 = vmatprep.mubr.msk.bf16.mxu0 %vm4738_vm1, %v4737_v2  ;;  %v3746_v26 = vsel %vm303_vm4, %v3744_v24, %v3745_v36 }
 0x11a   : > { %v1150_v20 = vpop.f32.mrf.mxu1  ;;  %4593 = vmatmul.mubr.msk.bf16.vlgmr.msra.gmra.mxu1 %vm206_vm2, %v5243_v11  ;;  %v4288_v60 = vpop.f32.mrf.mxu0  ;;  %4596 = vmatprep.subr.bf16.mxu0 %v4737_v2 }
 0x11b   : > { %v1048_v62 = vadd.f32 %v1041_v43, %v990_v59  ;;  %4603 = vmatpush3.bf16.msra.mxu1 %v4877_v32  ;;  %4604 = vmatprep.mubr.msk.bf16.mxu1 %vm4738_vm1, %v4737_v2  ;;  %v3694_v43 = vshll.u32 %v4695_v18, 16 }
 0x11c   : > { %v4306_v61 = vpop.f32.mrf.mxu1  ;;  %v986_v63 = vpop.f32.mrf.mxu0  ;;  %4614 = vmatprep.subr.bf16.mxu1 %v4737_v2 }
 0x11d   : > { %v991_v3 = vadd.f32 %v986_v63, %v948_v44  ;;  %v3696_v59 = vrot.slane %v3694_v43, 1 }
 0x11e   : > { %v1153_v0 = vpop.f32.mrf.mxu1  ;;  %v4289_v1 = vpop.f32.mrf.mxu0 }
 0x11f   : > { %v1049_v4 = vadd.f32 %v1044_v55, %v991_v3  ;;  %v734_v55 = vadd.f32 %v733_v37, %v732_v21 }
 0x120   : > { %v4307_v11 = vpop.f32.mrf.mxu1  ;;  %v1101_v6 = vpop.f32.mrf.mxu0  ;;  %4587 = vmatmul.mubr.msk.bf16.vlgmr.msra.gmra.mxu0 %vm206_vm2, %v5224_v53 }
 0x121   : > { %v1108_v8 = vadd.f32 %v1101_v6, %v1048_v62  ;;  %4597 = vmatpush3.bf16.msra.mxu0 %v4832_v9  ;;  %4598 = vmatprep.mubr.msk.bf16.mxu0 %vm4738_vm1, %v4737_v2 }
 0x122   : > { %v1252_v32 = vpop.f32.mrf.mxu1  ;;  %4605 = vmatmul.mubr.msk.bf16.vlgmr.msra.gmra.mxu1 %vm206_vm2, %v5306_v17  ;;  %v4300_v10 = vpop.f32.mrf.mxu0  ;;  %4608 = vmatprep.subr.bf16.mxu0 %v4737_v2 }
 0x123   : > { %v1157_v53 = vadd.f32 %v1150_v20, %v1108_v8  ;;  %4615 = vmatpush3.bf16.msra.mxu1 %v4905_v49  ;;  %4616 = vmatprep.mubr.msk.bf16.mxu1 %vm4738_vm1, %v4737_v2  ;;  %v3689_v49 = vshll.u32 %v4694_v16, 16  ;;  %v725_v20 = vrot.slane %v724_v5, 1 }
 0x124   : > { %v4318_v13 = vpop.f32.mrf.mxu1  ;;  %v1104_v9 = vpop.f32.mrf.mxu0  ;;  %4626 = vmatprep.subr.bf16.mxu1 %v4737_v2 }
 0x125   : > { %v1109_v14 = vadd.f32 %v1104_v9, %v1049_v4  ;;  %v1167_v27 = vmul.f32 %v1157_v53, %v1157_v53  ;;  %v3691_v35 = vrot.slane %v3689_v49, 1  ;;  %v726_v8 = vadd.f32 %v725_v20, %v724_v5 }
 0x126   : > { %v1255_v15 = vpop.f32.mrf.mxu1  ;;  %v4301_v17 = vpop.f32.mrf.mxu0 }
 0x127   : > { %v1158_v22 = vadd.f32 %v1153_v0, %v1109_v14  ;;  %v3692_v58 = vor.u32 %v3691_v35, %v3687_v40  ;;  %v735_v0 = vrot.slane %v734_v55, 1 }
 0x128   : > { %v4319_v23 = vpop.f32.mrf.mxu1  ;;  %v1211_v28 = vpop.f32.mrf.mxu0  ;;  %4599 = vmatmul.mubr.msk.bf16.vlgmr.msra.gmra.mxu0 %vm206_vm2, %v5273_v41 }
 0x129   : > { %v1159_v30 = vadd.f32 %v1158_v22, %v1157_v53  ;;  %v1168_v31 = vmul.f32 %v1158_v22, %v1158_v22  ;;  %v1253_v33 = vadd.f32 %v1252_v32, %v1211_v28  ;;  %4609 = vmatpush3.bf16.msra.mxu0 %v4861_v25  ;;  %4610 = vmatprep.mubr.msk.bf16.mxu0 %vm4738_vm1, %v4737_v2 }
 0x12a   : > { %v1336_v19 = vpop.f32.mrf.mxu1  ;;  %4617 = vmatmul.mubr.msk.bf16.vlgmr.msra.gmra.mxu1 %vm206_vm2, %v4694_v16  ;;  %v4312_v34 = vpop.f32.mrf.mxu0  ;;  %4620 = vmatprep.subr.bf16.mxu0 %v4737_v2  ;;  %v3697_v7 = vsel %vm193_vm3, %v3692_v58, %v3696_v59  ;;  %v736_v13 = vadd.f32 %v735_v0, %v734_v55 }
 0x12b   : > { %v1160_v41 = vrot.slane %v1159_v30, 4  ;;  %v1169_v38 = vadd.f32 %v1168_v31, %v1167_v27  ;;  %4627 = vmatpush3.bf16.msra.mxu1 %v4925_v52  ;;  %4628 = vmatprep.mubr.msk.bf16.mxu1 %vm4738_vm1, %v4737_v2 }
 0x12c   : > { %v4330_v39 = vpop.f32.mrf.mxu1  ;;  %v1214_v25 = vpop.f32.mrf.mxu0 }
 0x12d   : > { %v1161_v45 = vadd.f32 %v1160_v41, %v1159_v30  ;;  %v1170_v46 = vrot.slane %v1169_v38, 4  ;;  %v1256_v48 = vadd.f32 %v1255_v15, %v1214_v25 }
 0x12e   : > { %v1339_v50 = vpop.f32.mrf.mxu1  ;;  %v4313_v51 = vpop.f32.mrf.mxu0 }
 0x12f   : > { %v1162_v56 = vrot.slane %v1161_v45, 2  ;;  %v1171_v57 = vadd.f32 %v1170_v46, %v1169_v38 }
 0x130   : > { %v4331_v44 = vpop.f32.mrf.mxu1  ;;  %v1293_v52 = vpop.f32.mrf.mxu0  ;;  %4611 = vmatmul.mubr.msk.bf16.vlgmr.msra.gmra.mxu0 %vm206_vm2, %v5339_v54 }
 0x131   : > { %v1163_v60 = vadd.f32 %v1162_v56, %v1161_v45  ;;  %v1172_v61 = vrot.slane %v1171_v57, 2  ;;  %v1300_v62 = vadd.f32 %v1293_v52, %v1253_v33  ;;  %4621 = vmatpush3.bf16.msra.mxu0 %v4889_v42  ;;  %4622 = vmatprep.mubr.msk.bf16.mxu0 %vm4738_vm1, %v4737_v2 }
 0x132   : > { %v1422_v63 = vpop.f32.mrf.mxu1  ;;  %4629 = vmatmul.mubr.msk.bf16.vlgmr.msra.gmra.mxu1 %vm206_vm2, %v3746_v26  ;;  %v4324_v3 = vpop.f32.mrf.mxu0 }
 0x133   : > { %v1164_v1 = vrot.slane %v1163_v60, 1  ;;  %v1173_v11 = vadd.f32 %v1172_v61, %v1171_v57  ;;  %v1343_v54 = vadd.f32 %v1336_v19, %v1300_v62 }
 0x134   : > { %v4342_v4 = vpop.f32.mrf.mxu1  ;;  %v1296_v6 = vpop.f32.mrf.mxu0 }
 0x135   : > { %v1165_v32 = vadd.f32 %v1164_v1, %v1163_v60  ;;  %v1174_v10 = vrot.slane %v1173_v11, 1  ;;  %v1301_v12 = vadd.f32 %v1296_v6, %v1256_v48 }
 0x136   : > { %v1425_v42 = vpop.f32.mrf.mxu1  ;;  %v4325_v53 = vpop.f32.mrf.mxu0 }
 0x137   : > { %v1175_v9 = vadd.f32 %v1174_v10, %v1173_v11  ;;  %v1344_v14 = vadd.f32 %v1339_v50, %v1301_v12  ;;  %v5389_v15 = vadd.f32 %v1165_v32, %v726_v8 }
 0x138   : > { %v4343_v47 = vpop.f32.mrf.mxu1  ;;  %v1379_v2 = vpop.f32.mrf.mxu0  ;;  %4623 = vmatmul.mubr.msk.bf16.vlgmr.msra.gmra.mxu0 %vm206_vm2, %v3697_v7 }
 0x139   : > { %v1386_v16 = vadd.f32 %v1379_v2, %v1343_v54  ;;  %v5392_v18 = vadd.f32 %v1175_v9, %v736_v13 }
 0x13a   : > { %v1540_v17 = vpop.f32.mrf.mxu1  ;;  %v4336_v21 = vpop.f32.mrf.mxu0 }
 0x13b   : > { %v1429_v23 = vadd.f32 %v1422_v63, %v1386_v16 }
 0x13c   : > { %v4354_v22 = vpop.f32.mrf.mxu1  ;;  %v1382_v27 = vpop.f32.mrf.mxu0 }
 0x13d   : > { %v1387_v28 = vadd.f32 %v1382_v27, %v1344_v14 }
 0x13e   : > { %v1543_v49 = vpop.f32.mrf.mxu1  ;;  %v4337_v29 = vpop.f32.mrf.mxu0 }
 0x13f   : > { %v1430_v31 = vadd.f32 %v1425_v42, %v1387_v28 }
 0x140   : > { %v4355_v30 = vpop.f32.mrf.mxu1  ;;  %v1480_v33 = vpop.f32.mrf.mxu0 }
 0x141   : > { %v1487_v19 = vadd.f32 %v1480_v33, %v1429_v23 }
 0x142   : > { %v1650_v34 = vpop.f32.mrf.mxu1  ;;  %v4348_v24 = vpop.f32.mrf.mxu0 }
 0x143   : > { %v1547_v37 = vadd.f32 %v1540_v17, %v1487_v19 }
 0x144   : > { %v4366_v36 = vpop.f32.mrf.mxu1  ;;  %v1483_v41 = vpop.f32.mrf.mxu0 }
 0x145   : > { %v1488_v38 = vadd.f32 %v1483_v41, %v1430_v31 }
 0x146   : > { %v1653_v39 = vpop.f32.mrf.mxu1  ;;  %v4349_v25 = vpop.f32.mrf.mxu0 }
 0x147   : > { %v1548_v35 = vadd.f32 %v1543_v49, %v1488_v38 }
 0x148   : > { %v4367_v40 = vpop.f32.mrf.mxu1  ;;  %v1589_v43 = vpop.f32.mrf.mxu0 }
 0x149   : > { %v1596_v5 = vadd.f32 %v1589_v43, %v1547_v37 }
 0x14a   : > { %v1732_v45 = vpop.f32.mrf.mxu1  ;;  %v4360_v46 = vpop.f32.mrf.mxu0 }
 0x14b   : > { %v1606_v56 = vmul.f32 %v1596_v5, %v1596_v5 }
 0x14c   : > { %v4378_v48 = vpop.f32.mrf.mxu1  ;;  %v1592_v50 = vpop.f32.mrf.mxu0 }
 0x14d   : > { %v1597_v51 = vadd.f32 %v1592_v50, %v1548_v35 }
 0x14e   : > { %v1735_v26 = vpop.f32.mrf.mxu1  ;;  %v4361_v55 = vpop.f32.mrf.mxu0 }
 0x14f   : > { %v1598_v57 = vadd.f32 %v1597_v51, %v1596_v5  ;;  %v1607_v44 = vmul.f32 %v1597_v51, %v1597_v51 }
 0x150   : > { %v4379_v52 = vpop.f32.mrf.mxu1  ;;  %v1691_v58 = vpop.f32.mrf.mxu0 }
 0x151   : > { %v1599_v59 = vrot.slane %v1598_v57, 4  ;;  %v1608_v20 = vadd.f32 %v1607_v44, %v1606_v56  ;;  %v1692_v60 = vadd.f32 %v1691_v58, %v1650_v34 }
 0x152   : > { %v1818_v61 = vpop.f32.mrf.mxu1  ;;  %v4372_v62 = vpop.f32.mrf.mxu0 }
 0x153   : > { %v1600_v63 = vadd.f32 %v1599_v59, %v1598_v57  ;;  %v1609_v3 = vrot.slane %v1608_v20, 4  ;;  %v1739_v1 = vadd.f32 %v1732_v45, %v1692_v60 }
 0x154   : > { %v4390_v0 = vpop.f32.mrf.mxu1  ;;  %v1694_v11 = vpop.f32.mrf.mxu0 }
 0x155   : > { %v1601_v4 = vrot.slane %v1600_v63, 2  ;;  %v1610_v54 = vadd.f32 %v1609_v3, %v1608_v20  ;;  %v1695_v6 = vadd.f32 %v1694_v11, %v1653_v39 }
 0x156   : > { %v1821_v7 = vpop.f32.mrf.mxu1  ;;  %v4373_v8 = vpop.f32.mrf.mxu0 }
 0x157   : > { %v1602_v32 = vadd.f32 %v1601_v4, %v1600_v63  ;;  %v1611_v10 = vrot.slane %v1610_v54, 2  ;;  %v1740_v42 = vadd.f32 %v1735_v26, %v1695_v6 }
 0x158   : > { %v4391_v12 = vpop.f32.mrf.mxu1  ;;  %v1775_v53 = vpop.f32.mrf.mxu0 }
 0x159   : > { %v1603_v13 = vrot.slane %v1602_v32, 1  ;;  %v1612_v9 = vadd.f32 %v1611_v10, %v1610_v54  ;;  %v1782_v47 = vadd.f32 %v1775_v53, %v1739_v1 }
 0x15a   : > { %v1919_v14 = vpop.f32.mrf.mxu1  ;;  %v4384_v2 = vpop.f32.mrf.mxu0 }
 0x15b   : > { %v1604_v16 = vadd.f32 %v1603_v13, %v1602_v32  ;;  %v1613_v17 = vrot.slane %v1612_v9, 1  ;;  %v1825_v22 = vadd.f32 %v1818_v61, %v1782_v47 }
 0x15c   : > { %v4402_v21 = vpop.f32.mrf.mxu1  ;;  %v1778_v23 = vpop.f32.mrf.mxu0 }
 0x15d   : > { %v5395_v27 = vadd.f32 %v1604_v16, %v5389_v15  ;;  %v1614_v28 = vadd.f32 %v1613_v17, %v1612_v9  ;;  %v1783_v49 = vadd.f32 %v1778_v23, %v1740_v42 }
 0x15e   : > { %v1922_v29 = vpop.f32.mrf.mxu1  ;;  %v4385_v30 = vpop.f32.mrf.mxu0 }
 0x15f   : > { %v5398_v31 = vadd.f32 %v1614_v28, %v5392_v18  ;;  %v1826_v19 = vadd.f32 %v1821_v7, %v1783_v49 }
 0x160   : > { %v4403_v33 = vpop.f32.mrf.mxu1  ;;  %v1861_v34 = vpop.f32.mrf.mxu0 }
 0x161   : > { %v1868_v24 = vadd.f32 %v1861_v34, %v1825_v22 }
 0x162   : > { %v2028_v36 = vpop.f32.mrf.mxu1  ;;  %v4396_v37 = vpop.f32.mrf.mxu0 }
 0x163   : > { %v1926_v38 = vadd.f32 %v1919_v14, %v1868_v24 }
 0x164   : > { %v4414_v41 = vpop.f32.mrf.mxu1  ;;  %v1864_v39 = vpop.f32.mrf.mxu0 }
 0x165   : > { %v1869_v25 = vadd.f32 %v1864_v39, %v1826_v19 }
 0x166   : > { %v2031_v40 = vpop.f32.mrf.mxu1  ;;  %v4397_v15 = vpop.f32.mrf.mxu0 }
 0x167   : > { %v1927_v43 = vadd.f32 %v1922_v29, %v1869_v25 }
 0x168   : > { %v4415_v35 = vpop.f32.mrf.mxu1  ;;  %v1979_v5 = vpop.f32.mrf.mxu0 }
 0x169   : > { %v1986_v45 = vadd.f32 %v1979_v5, %v1926_v38 }
 0x16a   : > { %v2130_v46 = vpop.f32.mrf.mxu1  ;;  %v4408_v48 = vpop.f32.mrf.mxu0 }
 0x16b   : > { %v2035_v18 = vadd.f32 %v2028_v36, %v1986_v45 }
 0x16c   : > { %v4426_v50 = vpop.f32.mrf.mxu1  ;;  %v1982_v51 = vpop.f32.mrf.mxu0 }
 0x16d   : > { %v1987_v26 = vadd.f32 %v1982_v51, %v1927_v43  ;;  %v2045_v58 = vmul.f32 %v2035_v18, %v2035_v18 }
 0x16e   : > { %v2133_v55 = vpop.f32.mrf.mxu1  ;;  %v4409_v56 = vpop.f32.mrf.mxu0 }
 0x16f   : > { %v2036_v57 = vadd.f32 %v2031_v40, %v1987_v26 }
 0x170   : > { %v4427_v44 = vpop.f32.mrf.mxu1  ;;  %v2089_v52 = vpop.f32.mrf.mxu0 }
 0x171   : > { %v2037_v59 = vadd.f32 %v2036_v57, %v2035_v18  ;;  %v2046_v20 = vmul.f32 %v2036_v57, %v2036_v57  ;;  %v2131_v60 = vadd.f32 %v2130_v46, %v2089_v52 }
 0x172   : > { %v2214_v61 = vpop.f32.mrf.mxu1  ;;  %v4420_v62 = vpop.f32.mrf.mxu0 }
 0x173   : > { %v2038_v63 = vrot.slane %v2037_v59, 4  ;;  %v2047_v3 = vadd.f32 %v2046_v20, %v2045_v58 }
 0x174   : > { %v4438_v0 = vpop.f32.mrf.mxu1  ;;  %v2092_v1 = vpop.f32.mrf.mxu0 }
 0x175   : > { %v2039_v11 = vadd.f32 %v2038_v63, %v2037_v59  ;;  %v2048_v4 = vrot.slane %v2047_v3, 4  ;;  %v2134_v54 = vadd.f32 %v2133_v55, %v2092_v1 }
 0x176   : > { %v2217_v6 = vpop.f32.mrf.mxu1  ;;  %v4421_v7 = vpop.f32.mrf.mxu0 }
 0x177   : > { %v2040_v8 = vrot.slane %v2039_v11, 2  ;;  %v2049_v32 = vadd.f32 %v2048_v4, %v2047_v3 }
 0x178   : > { %v4439_v10 = vpop.f32.mrf.mxu1  ;;  %v2171_v12 = vpop.f32.mrf.mxu0 }
 0x179   : > { %v2041_v42 = vadd.f32 %v2040_v8, %v2039_v11  ;;  %v2050_v53 = vrot.slane %v2049_v32, 2  ;;  %v2178_v13 = vadd.f32 %v2171_v12, %v2131_v60 }
 0x17a   : > { %v2300_v9 = vpop.f32.mrf.mxu1  ;;  %v4432_v47 = vpop.f32.mrf.mxu0 }
 0x17b   : > { %v2042_v14 = vrot.slane %v2041_v42, 1  ;;  %v2051_v2 = vadd.f32 %v2050_v53, %v2049_v32  ;;  %v2221_v17 = vadd.f32 %v2214_v61, %v2178_v13 }
 0x17c   : > { %v4450_v16 = vpop.f32.mrf.mxu1  ;;  %v2174_v21 = vpop.f32.mrf.mxu0 }
 0x17d   : > { %v2043_v22 = vadd.f32 %v2042_v14, %v2041_v42  ;;  %v2052_v23 = vrot.slane %v2051_v2, 1  ;;  %v2179_v28 = vadd.f32 %v2174_v21, %v2134_v54 }
 0x17e   : > { %v2303_v49 = vpop.f32.mrf.mxu1  ;;  %v4433_v29 = vpop.f32.mrf.mxu0 }
 0x17f   : > { %v2053_v30 = vadd.f32 %v2052_v23, %v2051_v2  ;;  %v2222_v19 = vadd.f32 %v2217_v6, %v2179_v28  ;;  %v5401_v34 = vadd.f32 %v2043_v22, %v5395_v27 }
 0x180   : > { %v4451_v33 = vpop.f32.mrf.mxu1  ;;  %v2257_v24 = vpop.f32.mrf.mxu0 }
 0x181   : > { %v2264_v36 = vadd.f32 %v2257_v24, %v2221_v17  ;;  %v5404_v41 = vadd.f32 %v2053_v30, %v5398_v31 }
 0x182   : > { %v2418_v37 = vpop.f32.mrf.mxu1  ;;  %v4444_v38 = vpop.f32.mrf.mxu0 }
 0x183   : > { %v2307_v25 = vadd.f32 %v2300_v9, %v2264_v36 }
 0x184   : > { %v4462_v39 = vpop.f32.mrf.mxu1  ;;  %v2260_v40 = vpop.f32.mrf.mxu0 }
 0x185   : > { %v2265_v15 = vadd.f32 %v2260_v40, %v2222_v19 }
 0x186   : > { %v2421_v35 = vpop.f32.mrf.mxu1  ;;  %v4445_v43 = vpop.f32.mrf.mxu0 }
 0x187   : > { %v2308_v45 = vadd.f32 %v2303_v49, %v2265_v15 }
 0x188   : > { %v4463_v5 = vpop.f32.mrf.mxu1  ;;  %v2358_v46 = vpop.f32.mrf.mxu0 }
 0x189   : > { %v2365_v48 = vadd.f32 %v2358_v46, %v2307_v25 }
 0x18a   : > { %v2528_v18 = vpop.f32.mrf.mxu1  ;;  %v4456_v27 = vpop.f32.mrf.mxu0 }
 0x18b   : > { %v2425_v51 = vadd.f32 %v2418_v37, %v2365_v48 }
 0x18c   : > { %v4474_v50 = vpop.f32.mrf.mxu1  ;;  %v2361_v26 = vpop.f32.mrf.mxu0 }
 0x18d   : > { %v2366_v55 = vadd.f32 %v2361_v26, %v2308_v45 }
 0x18e   : > { %v2531_v56 = vpop.f32.mrf.mxu1  ;;  %v4457_v31 = vpop.f32.mrf.mxu0 }
 0x18f   : > { %v2426_v44 = vadd.f32 %v2421_v35, %v2366_v55 }
 0x190   : > { %v4475_v57 = vpop.f32.mrf.mxu1  ;;  %v2467_v52 = vpop.f32.mrf.mxu0 }
 0x191   : > { %v2474_v58 = vadd.f32 %v2467_v52, %v2425_v51 }
 0x192   : > { %v2610_v59 = vpop.f32.mrf.mxu1  ;;  %v4468_v20 = vpop.f32.mrf.mxu0 }
 0x193   : > { %v2484_v0 = vmul.f32 %v2474_v58, %v2474_v58 }
 0x194   : > { %v4486_v60 = vpop.f32.mrf.mxu1  ;;  %v2470_v61 = vpop.f32.mrf.mxu0 }
 0x195   : > { %v2475_v62 = vadd.f32 %v2470_v61, %v2426_v44 }
 0x196   : > { %v2613_v63 = vpop.f32.mrf.mxu1  ;;  %v4469_v3 = vpop.f32.mrf.mxu0 }
 0x197   : > { %v2476_v1 = vadd.f32 %v2475_v62, %v2474_v58  ;;  %v2485_v11 = vmul.f32 %v2475_v62, %v2475_v62 }
 0x198   : > { %v4487_v4 = vpop.f32.mrf.mxu1  ;;  %v2569_v54 = vpop.f32.mrf.mxu0 }
 0x199   : > { %v2477_v6 = vrot.slane %v2476_v1, 4  ;;  %v2486_v7 = vadd.f32 %v2485_v11, %v2484_v0  ;;  %v2570_v8 = vadd.f32 %v2569_v54, %v2528_v18 }
 0x19a   : > { %v2696_v32 = vpop.f32.mrf.mxu1  ;;  %v4480_v10 = vpop.f32.mrf.mxu0 }
 0x19b   : > { %v2478_v12 = vadd.f32 %v2477_v6, %v2476_v1  ;;  %v2487_v42 = vrot.slane %v2486_v7, 4  ;;  %v2617_v13 = vadd.f32 %v2610_v59, %v2570_v8 }
 0x19c   : > { %v4498_v53 = vpop.f32.mrf.mxu1  ;;  %v2572_v9 = vpop.f32.mrf.mxu0 }
 0x19d   : > { %v2479_v47 = vrot.slane %v2478_v12, 2  ;;  %v2488_v14 = vadd.f32 %v2487_v42, %v2486_v7  ;;  %v2573_v2 = vadd.f32 %v2572_v9, %v2531_v56 }
 0x19e   : > { %v2699_v16 = vpop.f32.mrf.mxu1  ;;  %v4481_v17 = vpop.f32.mrf.mxu0 }
 0x19f   : > { %v2480_v21 = vadd.f32 %v2479_v47, %v2478_v12  ;;  %v2489_v22 = vrot.slane %v2488_v14, 2  ;;  %v2618_v28 = vadd.f32 %v2613_v63, %v2573_v2 }
 0x1a0   : > { %v4499_v23 = vpop.f32.mrf.mxu1  ;;  %v2653_v49 = vpop.f32.mrf.mxu0 }
 0x1a1   : > { %v2481_v29 = vrot.slane %v2480_v21, 1  ;;  %v2490_v30 = vadd.f32 %v2489_v22, %v2488_v14  ;;  %v2660_v33 = vadd.f32 %v2653_v49, %v2617_v13 }
 0x1a2   : > { %v2797_v19 = vpop.f32.mrf.mxu1  ;;  %v4492_v24 = vpop.f32.mrf.mxu0 }
 0x1a3   : > { %v2482_v36 = vadd.f32 %v2481_v29, %v2480_v21  ;;  %v2491_v37 = vrot.slane %v2490_v30, 1  ;;  %v2703_v39 = vadd.f32 %v2696_v32, %v2660_v33 }
 0x1a4   : > { %v4510_v38 = vpop.f32.mrf.mxu1  ;;  %v2656_v25 = vpop.f32.mrf.mxu0 }
 0x1a5   : > { %v5407_v40 = vadd.f32 %v2482_v36, %v5401_v34  ;;  %v2492_v15 = vadd.f32 %v2491_v37, %v2490_v30  ;;  %v2661_v35 = vadd.f32 %v2656_v25, %v2618_v28 }
 0x1a6   : > { %v2800_v43 = vpop.f32.mrf.mxu1  ;;  %v4493_v5 = vpop.f32.mrf.mxu0 }
 0x1a7   : > { %v2493_v45 = vadd.f32 %v2492_v15, %v5404_v41  ;;  %v2704_v48 = vadd.f32 %v2699_v16, %v2661_v35 }
 0x1a8   : > { %v4511_v46 = vpop.f32.mrf.mxu1  ;;  %v2739_v18 = vpop.f32.mrf.mxu0 }
 0x1a9   : > { %v2746_v27 = vadd.f32 %v2739_v18, %v2703_v39 }
 0x1aa   : > { %v2906_v50 = vpop.f32.mrf.mxu1  ;;  %v4504_v51 = vpop.f32.mrf.mxu0 }
 0x1ab   : > { %v2804_v55 = vadd.f32 %v2797_v19, %v2746_v27 }
 0x1ac   : > { %v4522_v26 = vpop.f32.mrf.mxu1  ;;  %v2742_v56 = vpop.f32.mrf.mxu0 }
 0x1ad   : > { %v2747_v31 = vadd.f32 %v2742_v56, %v2704_v48 }
 0x1ae   : > { %v2909_v57 = vpop.f32.mrf.mxu1  ;;  %v4505_v44 = vpop.f32.mrf.mxu0 }
 0x1af   : > { %v2805_v52 = vadd.f32 %v2800_v43, %v2747_v31 }
 0x1b0   : > { %v4523_v34 = vpop.f32.mrf.mxu1  ;;  %v2857_v58 = vpop.f32.mrf.mxu0 }
 0x1b1   : > { %v2864_v59 = vadd.f32 %v2857_v58, %v2804_v55 }
 0x1b2   : > { %v3008_v20 = vpop.f32.mrf.mxu1  ;;  %v4516_v60 = vpop.f32.mrf.mxu0 }
 0x1b3   : > { %v2913_v61 = vadd.f32 %v2906_v50, %v2864_v59 }
 0x1b4   : > { %v4534_v41 = vpop.f32.mrf.mxu1  ;;  %v2860_v62 = vpop.f32.mrf.mxu0 }
 0x1b5   : > { %v2865_v63 = vadd.f32 %v2860_v62, %v2805_v52  ;;  %v2923_v54 = vmul.f32 %v2913_v61, %v2913_v61 }
 0x1b6   : > { %v3011_v3 = vpop.f32.mrf.mxu1  ;;  %v4517_v0 = vpop.f32.mrf.mxu0 }
 0x1b7   : > { %v2914_v1 = vadd.f32 %v2909_v57, %v2865_v63 }
 0x1b8   : > { %v4535_v11 = vpop.f32.mrf.mxu1  ;;  %v2967_v4 = vpop.f32.mrf.mxu0 }
 0x1b9   : > { %v2915_v6 = vadd.f32 %v2914_v1, %v2913_v61  ;;  %v2924_v7 = vmul.f32 %v2914_v1, %v2914_v1  ;;  %v3009_v59 = vadd.f32 %v3008_v20, %v2967_v4 }
 0x1ba   : > { %v3092_v8 = vpop.f32.mrf.mxu1  ;;  %v4528_v32 = vpop.f32.mrf.mxu0 }
 0x1bb   : > { %v2916_v10 = vrot.slane %v2915_v6, 4  ;;  %v2925_v12 = vadd.f32 %v2924_v7, %v2923_v54 }
 0x1bc   : > { %v4546_v42 = vpop.f32.mrf.mxu1  ;;  %v2970_v53 = vpop.f32.mrf.mxu0 }
 0x1bd   : > { %v2917_v13 = vadd.f32 %v2916_v10, %v2915_v6  ;;  %v2926_v9 = vrot.slane %v2925_v12, 4  ;;  %v3012_v52 = vadd.f32 %v3011_v3, %v2970_v53 }
 0x1be   : > { %v3095_v47 = vpop.f32.mrf.mxu1  ;;  %v4529_v14 = vpop.f32.mrf.mxu0 }
 0x1bf   : > { %v2918_v2 = vrot.slane %v2917_v13, 2  ;;  %v2927_v16 = vadd.f32 %v2926_v9, %v2925_v12 }
 0x1c0   : > { %v4547_v17 = vpop.f32.mrf.mxu1  ;;  %v3049_v21 = vpop.f32.mrf.mxu0 }
 0x1c1   : > { %v2919_v22 = vadd.f32 %v2918_v2, %v2917_v13  ;;  %v2928_v23 = vrot.slane %v2927_v16, 2  ;;  %v3056_v41 = vadd.f32 %v3049_v21, %v3009_v59 }
 0x1c2   : > { %v3178_v28 = vpop.f32.mrf.mxu1  ;;  %v4540_v49 = vpop.f32.mrf.mxu0 }
 0x1c3   : > { %v2920_v29 = vrot.slane %v2919_v22, 1  ;;  %v2929_v30 = vadd.f32 %v2928_v23, %v2927_v16  ;;  %v3099_v54 = vadd.f32 %v3092_v8, %v3056_v41 }
 0x1c4   : > { %v4558_v33 = vpop.f32.mrf.mxu1  ;;  %v3052_v19 = vpop.f32.mrf.mxu0 }
 0x1c5   : > { %v2921_v24 = vadd.f32 %v2920_v29, %v2919_v22  ;;  %v2930_v36 = vrot.slane %v2929_v30, 1  ;;  %v3057_v60 = vadd.f32 %v3052_v19, %v3012_v52 }
 0x1c6   : > { %v3181_v37 = vpop.f32.mrf.mxu1  ;;  %v4541_v38 = vpop.f32.mrf.mxu0 }
 0x1c7   : > { %v2931_v39 = vadd.f32 %v2930_v36, %v2929_v30  ;;  %v5411_v15 = vadd.f32 %v2921_v24, %v5407_v40  ;;  %v3100_v0 = vadd.f32 %v3095_v47, %v3057_v60 }
 0x1c8   : > { %v4559_v25 = vpop.f32.mrf.mxu1  ;;  %v3135_v35 = vpop.f32.mrf.mxu0 }
 0x1c9   : > { %v5413_v5 = vadd.f32 %v2931_v39, %v2493_v45  ;;  %v3142_v10 = vadd.f32 %v3135_v35, %v3099_v54 }
 0x1ca   : > { %v3296_v43 = vpop.f32.mrf.mxu1  ;;  %v4552_v46 = vpop.f32.mrf.mxu0 }
 0x1cb   : > { %v3185_v20 = vadd.f32 %v3178_v28, %v3142_v10 }
 0x1cc   : > { %v4570_v48 = vpop.f32.mrf.mxu1  ;;  %v3138_v18 = vpop.f32.mrf.mxu0 }
 0x1cd   : > { %v3143_v6 = vadd.f32 %v3138_v18, %v3100_v0 }
 0x1ce   : > { %v3299_v27 = vpop.f32.mrf.mxu1  ;;  %v4553_v50 = vpop.f32.mrf.mxu0 }
 0x1cf   : > { %v3186_v3 = vadd.f32 %v3181_v37, %v3143_v6 }
 0x1d0   : > { %v4571_v51 = vpop.f32.mrf.mxu1  ;;  %v3236_v26 = vpop.f32.mrf.mxu0 }
 0x1d1   : > { %v3243_v2 = vadd.f32 %v3236_v26, %v3185_v20 }
 0x1d2   : > { %v3406_v55 = vpop.f32.mrf.mxu1  ;;  %v4564_v56 = vpop.f32.mrf.mxu0 }
 0x1d3   : > { %v3303_v23 = vadd.f32 %v3296_v43, %v3243_v2 }
 0x1d4   : > { %v4582_v31 = vpop.f32.mrf.mxu1  ;;  %v3239_v57 = vpop.f32.mrf.mxu0 }
 0x1d5   : > { %v3244_v4 = vadd.f32 %v3239_v57, %v3186_v3 }
 0x1d6   : > { %v3409_v44 = vpop.f32.mrf.mxu1  ;;  %v4565_v34 = vpop.f32.mrf.mxu0 }
 0x1d7   : > { %v3304_v21 = vadd.f32 %v3299_v27, %v3244_v4 }
 0x1d8   : > { %v4583_v40 = vpop.f32.mrf.mxu1  ;;  %v3345_v58 = vpop.f32.mrf.mxu0 }
 0x1d9   : > { %v3352_v24 = vadd.f32 %v3345_v58, %v3303_v23 }
 0x1da   : > { %v3488_v45 = vpop.f32.mrf.mxu1  ;;  %v4576_v61 = vpop.f32.mrf.mxu0 }
 0x1db   : > { %v3362_v46 = vmul.f32 %v3352_v24, %v3352_v24 }
 0x1dc   : > { %v4594_v62 = vpop.f32.mrf.mxu1  ;;  %v3348_v63 = vpop.f32.mrf.mxu0 }
 0x1dd   : > { %v3353_v49 = vadd.f32 %v3348_v63, %v3304_v21 }
 0x1de   : > { %v3491_v1 = vpop.f32.mrf.mxu1  ;;  %v4577_v11 = vpop.f32.mrf.mxu0 }
 0x1df   : > { %v3363_v38 = vmul.f32 %v3353_v49, %v3353_v49  ;;  %v3354_v48 = vadd.f32 %v3353_v49, %v3352_v24 }
 0x1e0   : > { %v4595_v7 = vpop.f32.mrf.mxu1  ;;  %v3447_v32 = vpop.f32.mrf.mxu0 }
 0x1e1   : > { %v3448_v16 = vadd.f32 %v3447_v32, %v3406_v55  ;;  %v3364_v43 = vadd.f32 %v3363_v38, %v3362_v46  ;;  %v3355_v31 = vrot.slane %v3354_v48, 4 }
 0x1e2   : > { %v3574_v12 = vpop.f32.mrf.mxu1  ;;  %v4588_v42 = vpop.f32.mrf.mxu0 }
 0x1e3   : > { %v3495_v30 = vadd.f32 %v3488_v45, %v3448_v16  ;;  %v3365_v52 = vrot.slane %v3364_v43, 4  ;;  %v3356_v45 = vadd.f32 %v3355_v31, %v3354_v48 }
 0x1e4   : > { %v4606_v53 = vpop.f32.mrf.mxu1  ;;  %v3450_v13 = vpop.f32.mrf.mxu0 }
 0x1e5   : > { %v3451_v29 = vadd.f32 %v3450_v13, %v3409_v44  ;;  %v3366_v62 = vadd.f32 %v3365_v52, %v3364_v43 }
 0x1e6   : > { %v3577_v9 = vpop.f32.mrf.mxu1  ;;  %v4589_v14 = vpop.f32.mrf.mxu0 }
 0x1e7   : > { %v3496_v39 = vadd.f32 %v3491_v1, %v3451_v29  ;;  %v3357_v1 = vrot.slane %v3356_v45, 2  ;;  %v3367_v7 = vrot.slane %v3366_v62, 2 }
 0x1e8   : > { %v4607_v17 = vpop.f32.mrf.mxu1  ;;  %v3531_v47 = vpop.f32.mrf.mxu0 }
 0x1e9   : > { %v3538_v36 = vadd.f32 %v3531_v47, %v3495_v30  ;;  %v3358_v10 = vadd.f32 %v3357_v1, %v3356_v45  ;;  %v3368_v53 = vadd.f32 %v3367_v7, %v3366_v62 }
 0x1ea   : > { %v3675_v22 = vpop.f32.mrf.mxu1  ;;  %v4600_v8 = vpop.f32.mrf.mxu0 }
 0x1eb   : > { %v3581_v27 = vadd.f32 %v3574_v12, %v3538_v36  ;;  %v3359_v4 = vrot.slane %v3358_v10, 1  ;;  %v3369_v2 = vrot.slane %v3368_v53, 1 }
 0x1ec   : > { %v4618_v33 = vpop.f32.mrf.mxu1  ;;  %v3534_v19 = vpop.f32.mrf.mxu0 }
 0x1ed   : > { %v3539_v18 = vadd.f32 %v3534_v19, %v3496_v39  ;;  %v3360_v47 = vadd.f32 %v3359_v4, %v3358_v10  ;;  %v3370_v8 = vadd.f32 %v3369_v2, %v3368_v53  ;;  %v3811_v19 = vld [vmem:[%s5446_s2] sm:$0x1] }
 0x1ee   : > { %v3678_v37 = vpop.f32.mrf.mxu1  ;;  %v4601_v28 = vpop.f32.mrf.mxu0 }
 0x1ef   : > { %v3582_v57 = vadd.f32 %v3577_v9, %v3539_v18  ;;  %v3361_v29 = vadd.f32 %v3360_v47, %v5411_v15  ;;  %v3371_v24 = vadd.f32 %v3370_v8, %v5413_v5  ;;  %v3814_v28 = vld [vmem:[%s5447_s3] sm:$0x1] }
 0x1f0   : > { %v4619_v25 = vpop.f32.mrf.mxu1  ;;  %v3617_v35 = vpop.f32.mrf.mxu0 }
 0x1f1   : > { %v3624_v26 = vadd.f32 %v3617_v35, %v3581_v27 }
 0x1f2   : > { %v3784_v50 = vpop.f32.mrf.mxu1  ;;  %v4612_v51 = vpop.f32.mrf.mxu0 }
 0x1f3   : > { %v3682_v58 = vadd.f32 %v3675_v22, %v3624_v26 }
 0x1f4   : > { %v4630_v55 = vpop.f32.mrf.mxu1  ;;  %v3620_v56 = vpop.f32.mrf.mxu0 }
 0x1f5   : > { %v3625_v40 = vadd.f32 %v3620_v56, %v3582_v57 }
 0x1f6   : > { %v3787_v44 = vpop.f32.mrf.mxu1  ;;  %v4613_v34 = vpop.f32.mrf.mxu0 }
 0x1f7   : > { %v3683_v63 = vadd.f32 %v3678_v37, %v3625_v40 }
 0x1f8   : > { %v4631_v59 = vpop.f32.mrf.mxu1  ;;  %v3735_v60 = vpop.f32.mrf.mxu0 }
 0x1f9   : > { %v3742_v61 = vadd.f32 %v3735_v60, %v3682_v58 }
 0x1fa   : > { %v4624_v41 = vpop.f32.mrf.mxu0 }
 0x1fb   : > { %v3791_v11 = vadd.f32 %v3784_v50, %v3742_v61 }
 0x1fc   : > { %v3738_v0 = vpop.f32.mrf.mxu0 }
 0x1fd   : > { %v3743_v54 = vadd.f32 %v3738_v0, %v3683_v63  ;;  %v3801_v12 = vmul.f32 %v3791_v11, %v3791_v11 }
 0x1fe   : > { %v4625_v6 = vpop.f32.mrf.mxu0 }
 0x1ff   : > { %v3792_v32 = vadd.f32 %v3787_v44, %v3743_v54 }
 0x201   : > { %v3793_v42 = vadd.f32 %v3792_v32, %v3791_v11  ;;  %v3802_v3 = vmul.f32 %v3792_v32, %v3792_v32 }
 0x203   : > { %v3794_v13 = vrot.slane %v3793_v42, 4  ;;  %v3803_v20 = vadd.f32 %v3802_v3, %v3801_v12 }
 0x205   : > { %v3795_v9 = vadd.f32 %v3794_v13, %v3793_v42  ;;  %v3804_v14 = vrot.slane %v3803_v20, 4 }
 0x207   : > { %v3796_v16 = vrot.slane %v3795_v9, 2  ;;  %v3805_v17 = vadd.f32 %v3804_v14, %v3803_v20 }
 0x209   : > { %v3797_v21 = vadd.f32 %v3796_v16, %v3795_v9  ;;  %v3806_v22 = vrot.slane %v3805_v17, 2 }
 0x20b   : > { %v3798_v23 = vrot.slane %v3797_v21, 1  ;;  %v3807_v49 = vadd.f32 %v3806_v22, %v3805_v17 }
 0x20d   : > { %v3799_v30 = vadd.f32 %v3798_v23, %v3797_v21  ;;  %v3808_v33 = vrot.slane %v3807_v49, 1 }
 0x20f   : > { %v3800_v36 = vadd.f32 %v3799_v30, %v3361_v29  ;;  %v3809_v37 = vadd.f32 %v3808_v33, %v3807_v49 }
 0x211   : > { %v3810_v38 = vadd.f32 %v3809_v37, %v3371_v24  ;;  %v3812_v39 = vadd.f32 %v3811_v19, %v3800_v36 }
 0x213   : > { %3813 = vst [vmem:[%s5446_s2] sm:$0x1] %v3812_v39  ;;  %v3815_v15 = vadd.f32 %v3814_v28, %v3810_v38 }
 0x215   : > { %3816 = vst [vmem:[%s5447_s3] sm:$0x1] %v3815_v15 }
 0x216 PF: > { %s14_s16 = sadd.s32 1, %s4734_s16   ;;  %s5448_s12 = smov %s4726_s14 }
 0x217   : > { %p11_p9 = scmp.ge.s32.totalorder %s14_s16, 6   ;;  %s5449_s13 = smov %s4730_s15 }
 0x218   : > { %s5450_s14 = smov %s5453_s17  ;;  %s5451_s15 = smov %s5457_s18 }
 0x219   :  { %13 = sbr.rel (!%p11_p9) target bundleno = 3 (0x3), region = 84 }

// kernel: basic_conv.3
= control target key start
LH: loop header
LB: loop body
LE: loop exit
PB: predicated region body
PF: predicated region fallthrough
CT: control target
= control target key end

     0   :  { %s5655_s12 = smov 0   ;;  %s5657_s13 = smov 0   ;;  %s6623_s0 = inlined_call_operand.vmem [shape: bf16[2,18,18,4], index: 0, kind: input, shape index: {}]   ;;  %s6624_s1 = inlined_call_operand.vmem [shape: bf16[9,4,128], index: 1, kind: input, shape index: {}]   ;;  %s6625_s2 = inlined_call_operand.vmem [shape: f32[2,128], index: 2, kind: input, shape index: {}]   ;;  %s6626_s3 = inlined_call_operand.vmem [shape: f32[2,16,16,128], index: 3, kind: output, shape index: {}]  }
   0x1   :  { %s5659_s14 = smov 0   ;;  %s5661_s15 = smov 0  }
   0x2   :  { %s5663_s16 = smov 0  }
   0x3 LB: > { %s22_s17 = sadd.s32 1, %s5623_s14  ;;  %s25_s18 = sadd.s32 1, %s5627_s15  ;;  %s5631_s16 = sphi %s5663_s16, %s13_s16   ;;  %s5627_s15 = sphi %s5661_s15, %s6631_s15   ;;  %s5623_s14 = sphi %s5659_s14, %s6630_s14   ;;  %s5619_s13 = sphi %s5657_s13, %s6629_s13   ;;  %s5615_s12 = sphi %s5655_s12, %s6628_s12  }
   0x4   : > { %p23_p0 = scmp.ge.s32.totalorder %s22_s17, 2  ;;  %p4629_p1 = scmp.ge.s32.totalorder %s5631_s16, 1 }
   0x5   : > { %p151_p2 = scmp.lt.s32.totalorder %s5631_s16, 5 }
   0x6   : > { %s6633_s17 = smov (%p23_p0, %s22_s17), 0  ;;  %s6635_s18 = smov (!%p23_p0, %s25_s18), %s5627_s15 }
   0x7   : > { %p152_p3 = pnand %p4629_p1, %p151_p2  ;;  %p27_p4 = scmp.ge.s32.totalorder %s6635_s18, 2 }
   0x8   : > { %p180_p5 = scmp.lt.s32.totalorder (!%p152_p3), %s5619_s13, 1  ;;  %s4925_s23 = smul.u32 (!%p152_p3), 96, %s5615_s12 }
   0x9   : > { %s6637_s18 = smov (%p27_p4, %s6635_s18), 0  ;;  %155 = sbr.rel (%p152_p3) target bundleno = 516 (0x204), region = 32 }
   0xe   : > { %v205_v0 = vld [vmem:[%s6624_s1] sm:$0x3]  ;;  %vm233_vm0 = vcmask 1041408   ;;  %v5633_v1 = vmov 0.0   ;;  %v4638_v3 = vld [vmem:[%s6624_s1 + $0x2] sm:$0x3] }
   0xf   : > { %5076 = vmatprep.subr.bf16.mxu1 %v5633_v1  ;;  %v281_v2 = vsel %vm233_vm0, %v205_v0, 0  ;;  %5070 = vmatprep.subr.bf16.mxu0 %v5633_v1  ;;  %vm5634_vm1 = vmmov 0   ;;  %v235_v4 = vsel %vm233_vm0, %v4638_v3, 0  ;;  %s6639_s13 = smov (!%p180_p5, %s5619_s13), 1  ;;  %v4650_v5 = vld [vmem:[%s6624_s1 + $0x6] sm:$0x3] }
  0x10   : > { %5077 = vmatpush3.bf16.msra.mxu1 %v281_v2  ;;  %5078 = vmatprep.mubr.msk.bf16.mxu1 %vm5634_vm1, %v5633_v1  ;;  %s5502_s24 = smul.u32 216, %s6639_s13  ;;  %vm229_vm2 = vcmask 31744   ;;  %v397_v7 = vsel %vm233_vm0, %v4650_v5, 0  ;;  %vm216_vm3 = vsmask.f32 7424  ;;  %vm326_vm4 = vcmask 1046528  }
  0x11   : > { %5071 = vmatpush3.bf16.msra.mxu0 %v235_v4  ;;  %5072 = vmatprep.mubr.msk.bf16.mxu0 %vm5634_vm1, %v5633_v1  ;;  %v4643_v13 = vld [vmem:[%s6624_s1 + $0x4] sm:$0x3]  ;;  %v4656_v17 = vld [vmem:[%s6624_s1 + $0xa] sm:$0x3]  ;;  %v4653_v25 = vld [vmem:[%s6624_s1 + $0x8] sm:$0x3] }
  0x12   : > { %5082 = vmatprep.subr.bf16.mxu0 %v5633_v1  ;;  %5088 = vmatprep.subr.bf16.mxu1 %v5633_v1  ;;  %s184_s29 = scalar_lea.vmem %s6623_s0, %s5502_s24  ;;  %v334_v18 = vsel %vm233_vm0, %v4643_v13, 0  ;;  %v516_v22 = vsel %vm233_vm0, %v4656_v17, 0  ;;  %v462_v31 = vsel %vm233_vm0, %v4653_v25, 0  ;;  %v4666_v36 = vld [vmem:[%s6624_s1 + $0xe] sm:$0x3]  ;;  %s4631_s24 = sshll.u32 %s5615_s12, 3 }
  0x13   : > { %s5713_s30 = scalar_lea.vmem %s184_s29, %s4925_s23  ;;  %v644_v42 = vsel %vm233_vm0, %v4666_v36, 0  ;;  %v4663_v45 = vld [vmem:[%s6624_s1 + $0xc] sm:$0x3]  ;;  %v4674_v52 = vld [vmem:[%s6624_s1 + $0x2] sm:$0x3]  ;;  %p6333_p6 = scmp.lt.s32.totalorder %s4631_s24, 15 }
  0x14   : > { %v5545_v6 = vld [vmem:[%s5713_s30] sm:$0xff]   ;;  %v5546_v8 = vld [vmem:[%s5713_s30 + $0x8] ss:$0 sps:$4 sm:$0x11]   ;;  %v5547_v16 = vld [vmem:[%s5713_s30 + $0xc] sm:$0xff]   ;;  %v579_v51 = vsel %vm233_vm0, %v4663_v45, 0 }
  0x15   : > { %5079 = vmatmul.mubr.msk.bf16.vlgmr.msra.gmra.mxu1 %vm229_vm2, %v5545_v6  ;;  %v218_v9 = vshrl.u32 %v5545_v6, 16  ;;  %v220_v10 = vshll.u32 %v5545_v6, 16  ;;  %v225_v11 = vshll.u32 %v5546_v8, 16  ;;  %v5548_v19 = vld [vmem:[%s5713_s30 + $0x14] ss:$0 sps:$4 sm:$0x11]  }
  0x16   : > { %5089 = vmatpush3.bf16.msra.mxu1 %v397_v7  ;;  %5090 = vmatprep.mubr.msk.bf16.mxu1 %vm5634_vm1, %v5633_v1  ;;  %v5732_v20 = vld [vmem:[%s5713_s30 + $0x18] sm:$0xff]   ;;  %v327_v23 = vrot.slane %v5545_v6, 1  ;;  %v328_v24 = vrot.slane %v5546_v8, 1  ;;  %v449_v26 = vshll.u32 %v5547_v16, 16  ;;  %v509_v27 = vrot.slane %v5547_v16, 1  ;;  %v5760_v41 = vld [vmem:[%s5713_s30 + $0xc] sm:$0xff]  }
  0x17   : > { %v222_v12 = vrot.slane %v220_v10, 1  ;;  %5100 = vmatprep.subr.bf16.mxu1 %v5633_v1  ;;  %v227_v14 = vrot.slane %v225_v11, 1  ;;  %v510_v28 = vrot.slane %v5548_v19, 1  ;;  %v5745_v29 = vld [vmem:[%s5713_s30 + $0x20] ss:$0 sps:$4 sm:$0x11]  }
  0x18   : > { %v631_v30 = vshll.u32 %v5732_v20, 16  ;;  %v329_v32 = vsel %vm326_vm4, %v327_v23, %v328_v24  ;;  %v447_v33 = vshrl.u32 %v5547_v16, 16  ;;  %v451_v34 = vrot.slane %v449_v26, 1  ;;  %v5552_v48 = vld [vmem:[%s5713_s30 + $0x14] ss:$0 sps:$4 sm:$0x11]  }
  0x19   : > { %v223_v15 = vor.u32 %v222_v12, %v218_v9  ;;  %v454_v35 = vshll.u32 %v5548_v19, 16  ;;  %v511_v37 = vsel %vm326_vm4, %v509_v27, %v510_v28  ;;  %v629_v38 = vshrl.u32 %v5732_v20, 16  ;;  %v4669_v60 = vld [vmem:[%s6624_s1 + $0x10] sm:$0x3]  ;;  %v4679_v61 = vld [vmem:[%s6624_s1 + $0x4] sm:$0x3] }
  0x1a   : > { %v633_v39 = vrot.slane %v631_v30, 1  ;;  %v636_v40 = vshll.u32 %v5745_v29, 16  ;;  %v452_v43 = vor.u32 %v451_v34, %v447_v33  ;;  %v775_v49 = vshll.u32 %v5760_v41, 16  ;;  %v5801_v0 = vld [vmem:[%s5713_s30 + $0x18] sm:$0xff]   ;;  %v762_v5 = vld [vmem:[%s6624_s1] sm:$0x3] }
  0x1b   : > { %v228_v21 = vsel %vm216_vm3, %v223_v15, %v227_v14  ;;  %v456_v44 = vrot.slane %v454_v35, 1  ;;  %v773_v54 = vshrl.u32 %v5760_v41, 16  ;;  %v780_v56 = vshll.u32 %v5552_v48, 16  ;;  %v5554_v8 = vld [vmem:[%s5713_s30 + $0x20] ss:$0 sps:$4 sm:$0x11]  }
  0x1c   : > { %5073 = vmatmul.mubr.msk.bf16.vlgmr.msra.gmra.mxu0 %vm229_vm2, %v228_v21  ;;  %v634_v46 = vor.u32 %v633_v39, %v629_v38  ;;  %v638_v47 = vrot.slane %v636_v40, 1  ;;  %v777_v55 = vrot.slane %v775_v49, 1  ;;  %v788_v57 = vsel %vm233_vm0, %v4674_v52, 0  ;;  %v4687_v12 = vld [vmem:[%s6624_s1 + $0x8] sm:$0x3]  ;;  %s6641_s24 = smov (!%p6333_p6, %s4631_s24), 15 }
  0x1d   : > { %5083 = vmatpush3.bf16.msra.mxu0 %v334_v18  ;;  %5091 = vmatmul.mubr.msk.bf16.vlgmr.msra.gmra.mxu1 %vm229_vm2, %v5547_v16  ;;  %v457_v50 = vsel %vm216_vm3, %v452_v43, %v456_v44  ;;  %v782_v59 = vrot.slane %v780_v56, 1  ;;  %v698_v62 = vsel %vm233_vm0, %v4669_v60, 0  ;;  %v885_v2 = vsel %vm233_vm0, %v4679_v61, 0  ;;  %v4697_v21 = vld [vmem:[%s6624_s1 + $0xc] sm:$0x3]  ;;  %v5555_v26 = vld [vmem:[%s5713_s30 + $0x24] sm:$0xff]  }
  0x1e   : > { %5084 = vmatprep.mubr.msk.bf16.mxu0 %vm5634_vm1, %v5633_v1  ;;  %5094 = vmatprep.subr.bf16.mxu0 %v5633_v1  ;;  %v639_v53 = vsel %vm216_vm3, %v634_v46, %v638_v47  ;;  %v778_v58 = vor.u32 %v777_v55, %v773_v54  ;;  %v691_v3 = vrot.slane %v5732_v20, 1  ;;  %v692_v4 = vrot.slane %v5745_v29, 1  ;;  %v4690_v25 = vld [vmem:[%s6624_s1 + $0xa] sm:$0x3]  ;;  %v4703_v27 = vld [vmem:[%s6624_s1 + $0x10] sm:$0x3] }
  0x1f   : > { %5101 = vmatpush3.bf16.msra.mxu1 %v516_v22  ;;  %5102 = vmatprep.mubr.msk.bf16.mxu1 %vm5634_vm1, %v5633_v1  ;;  %v878_v6 = vrot.slane %v5760_v41, 1  ;;  %v879_v7 = vrot.slane %v5552_v48, 1  ;;  %v994_v9 = vshll.u32 %v5801_v0, 16  ;;  %v834_v11 = vsel %vm233_vm0, %v762_v5, 0  ;;  %v4700_v36 = vld [vmem:[%s6624_s1 + $0xe] sm:$0x3] }
  0x20   : > { %5112 = vmatprep.subr.bf16.mxu1 %v5633_v1  ;;  %v783_v63 = vsel %vm216_vm3, %v778_v58, %v782_v59  ;;  %v693_v10 = vsel %vm326_vm4, %v691_v3, %v692_v4  ;;  %v992_v13 = vshrl.u32 %v5801_v0, 16  ;;  %v999_v16 = vshll.u32 %v5554_v8, 16  ;;  %v5556_v29 = vld [vmem:[%s5713_s30 + $0x2c] ss:$0 sps:$4 sm:$0x11]   ;;  %v5923_v3 = vld [vmem:[%s5713_s30 + $0x30] sm:$0xff]  }
  0x21   : > { %v880_v14 = vsel %vm326_vm4, %v878_v6, %v879_v7  ;;  %v996_v15 = vrot.slane %v994_v9, 1  ;;  %v1007_v17 = vsel %vm233_vm0, %v4687_v12, 0  ;;  %v1122_v24 = vsel %vm233_vm0, %v4697_v21, 0  ;;  %v4710_v45 = vld [vmem:[%s6624_s1 + $0x2] sm:$0x3]  ;;  %s4633_s5 = sshll.u32 %s6639_s13, 5 }
  0x22   : > { %v1001_v19 = vrot.slane %v999_v16, 1  ;;  %v1060_v28 = vsel %vm233_vm0, %v4690_v25, 0  ;;  %v1239_v30 = vsel %vm233_vm0, %v4703_v27, 0  ;;  %v1173_v33 = vshll.u32 %v5555_v26, 16  ;;  %v4715_v60 = vld [vmem:[%s6624_s1 + $0x4] sm:$0x3] }
  0x23   : > { %v997_v18 = vor.u32 %v996_v15, %v992_v13  ;;  %v1232_v34 = vrot.slane %v5555_v26, 1  ;;  %v1233_v35 = vrot.slane %v5556_v29, 1  ;;  %v1171_v38 = vshrl.u32 %v5555_v26, 16  ;;  %v5558_v47 = vld [vmem:[%s5713_s30 + $0x20] ss:$0 sps:$4 sm:$0x11]  }
  0x24   : > { %5085 = vmatmul.mubr.msk.bf16.vlgmr.msra.gmra.mxu0 %vm229_vm2, %v329_v32  ;;  %v1054_v32 = vrot.slane %v5554_v8, 1  ;;  %v1175_v39 = vrot.slane %v1173_v33, 1  ;;  %v1178_v40 = vshll.u32 %v5556_v29, 16  ;;  %v1186_v43 = vsel %vm233_vm0, %v4700_v36, 0  ;;  %v4723_v7 = vld [vmem:[%s6624_s1 + $0x8] sm:$0x3] }
  0x25   : > { %5095 = vmatpush3.bf16.msra.mxu0 %v462_v31  ;;  %5103 = vmatmul.mubr.msk.bf16.vlgmr.msra.gmra.mxu1 %vm229_vm2, %v511_v37  ;;  %v1002_v23 = vsel %vm216_vm3, %v997_v18, %v1001_v19  ;;  %v1053_v31 = vrot.slane %v5801_v0, 1  ;;  %v1234_v44 = vsel %vm326_vm4, %v1232_v34, %v1233_v35  ;;  %v1314_v56 = vshll.u32 %v5558_v47, 16  ;;  %v4736_v18 = vld [vmem:[%s6624_s1 + $0xe] sm:$0x3]  ;;  %v4733_v27 = vld [vmem:[%s6624_s1 + $0xc] sm:$0x3] }
  0x26   : > { %5096 = vmatprep.mubr.msk.bf16.mxu0 %vm5634_vm1, %v5633_v1  ;;  %5106 = vmatprep.subr.bf16.mxu0 %v5633_v1  ;;  %v1176_v48 = vor.u32 %v1175_v39, %v1171_v38  ;;  %v1180_v49 = vrot.slane %v1178_v40, 1  ;;  %v1413_v6 = vrot.slane %v5558_v47, 1  ;;  %v1707_v12 = vshll.u32 %v5923_v3, 16  ;;  %v4746_v34 = vld [vmem:[%s6624_s1 + $0x2] sm:$0x3]  ;;  %s4632_s8 = sshll.u32 %s6641_s24, 1 }
  0x27   : > { %5113 = vmatpush3.bf16.msra.mxu1 %v644_v42  ;;  %5114 = vmatprep.mubr.msk.bf16.mxu1 %vm5634_vm1, %v5633_v1  ;;  %v1055_v37 = vsel %vm326_vm4, %v1053_v31, %v1054_v32  ;;  %v5557_v42 = vld [vmem:[%s5713_s30 + $0x18] sm:$0xff]   ;;  %v1316_v59 = vrot.slane %v1314_v56, 1  ;;  %v1541_v13 = vsel %vm233_vm0, %v4723_v7, 0  ;;  %v1656_v33 = vsel %vm233_vm0, %v4733_v27, 0  ;;  %v4762_v7 = vld [vmem:[%s6624_s1 + $0xa] sm:$0x3]  ;;  %s6403_s10 = sadd.s32 %s4633_s5, %s4632_s8 }
  0x28   : > { %5124 = vmatprep.subr.bf16.mxu1 %v5633_v1  ;;  %v1307_v52 = vshrl.u32 %v5557_v42, 16  ;;  %v1181_v54 = vsel %vm216_vm3, %v1176_v48, %v1180_v49  ;;  %v1412_v5 = vrot.slane %v5557_v42, 1  ;;  %v1709_v21 = vrot.slane %v1707_v12, 1  ;;  %s4634_s20 = sshll.u32 %s6403_s10, 3 }
  0x29   : > { %v1856_v39 = vsel %vm233_vm0, %v4746_v34, 0  ;;  %v1766_v48 = vrot.slane %v5923_v3, 1  ;;  %s6439_s25 = scalar_lea.vmem %s6626_s3, %s4634_s20 }
  0x2c   : > { %5097 = vmatmul.mubr.msk.bf16.vlgmr.msra.gmra.mxu0 %vm229_vm2, %v457_v50  ;;  %v1309_v50 = vshll.u32 %v5557_v42, 16 }
  0x2d   : > { %5107 = vmatpush3.bf16.msra.mxu0 %v579_v51  ;;  %5115 = vmatmul.mubr.msk.bf16.vlgmr.msra.gmra.mxu1 %vm229_vm2, %v639_v53  ;;  %v1322_v51 = vsel %vm233_vm0, %v4710_v45, 0  ;;  %v4720_v53 = vld [vmem:[%s6624_s1 + $0x6] sm:$0x3] }
  0x2e   : > { %5108 = vmatprep.mubr.msk.bf16.mxu0 %vm5634_vm1, %v5633_v1  ;;  %5118 = vmatprep.subr.bf16.mxu0 %v5633_v1  ;;  %v1311_v55 = vrot.slane %v1309_v50, 1  ;;  %v1830_v50 = vld [vmem:[%s6624_s1] sm:$0x3] }
  0x2f   : > { %5125 = vmatpush3.bf16.msra.mxu1 %v788_v57  ;;  %5126 = vmatprep.mubr.msk.bf16.mxu1 %vm5634_vm1, %v5633_v1  ;;  %v1477_v57 = vsel %vm233_vm0, %v4720_v53, 0  ;;  %v5566_v53 = vld [vmem:[%s5713_s30 + $0x38] ss:$0 sps:$4 sm:$0x11]   ;;  %v1902_v56 = vsel %vm233_vm0, %v1830_v50, 0 }
  0x30   : > { %5136 = vmatprep.subr.bf16.mxu1 %v5633_v1  ;;  %v1312_v58 = vor.u32 %v1311_v55, %v1307_v52 }
  0x32   : > { %v1317_v61 = vsel %vm216_vm3, %v1312_v58, %v1316_v59 }
  0x34   : > { %5109 = vmatmul.mubr.msk.bf16.vlgmr.msra.gmra.mxu0 %vm229_vm2, %v5732_v20  ;;  %v4684_v20 = vld [vmem:[%s6624_s1 + $0x6] sm:$0x3] }
  0x35   : > { %5119 = vmatpush3.bf16.msra.mxu0 %v698_v62  ;;  %5127 = vmatmul.mubr.msk.bf16.vlgmr.msra.gmra.mxu1 %vm229_vm2, %v783_v63  ;;  %v943_v22 = vsel %vm233_vm0, %v4684_v20, 0  ;;  %v5559_v62 = vld [vmem:[%s5713_s30 + $0x24] sm:$0xff]   ;;  %v1705_v20 = vshrl.u32 %v5923_v3, 16 }
  0x36   : > { %5120 = vmatprep.mubr.msk.bf16.mxu0 %vm5634_vm1, %v5633_v1  ;;  %5130 = vmatprep.subr.bf16.mxu0 %v5633_v1  ;;  %v4726_v63 = vld [vmem:[%s6624_s1 + $0xa] sm:$0x3]  ;;  %v1528_v8 = vshll.u32 %v5559_v62, 16  ;;  %v1587_v9 = vrot.slane %v5559_v62, 1  ;;  %v1526_v15 = vshrl.u32 %v5559_v62, 16 }
  0x37   : > { %5137 = vmatpush3.bf16.msra.mxu1 %v885_v2  ;;  %5138 = vmatprep.mubr.msk.bf16.mxu1 %vm5634_vm1, %v5633_v1  ;;  %v5560_v2 = vld [vmem:[%s5713_s30 + $0x2c] ss:$0 sps:$4 sm:$0x11]   ;;  %v1594_v4 = vsel %vm233_vm0, %v4726_v63, 0 }
  0x38   : > { %5148 = vmatprep.subr.bf16.mxu1 %v5633_v1  ;;  %v1530_v16 = vrot.slane %v1528_v8, 1  ;;  %v5567_v8 = vld [vmem:[%s5713_s30 + $0x3c] sm:$0xff]  }
  0x3a   : > { %v1531_v25 = vor.u32 %v1530_v16, %v1526_v15  ;;  %v2241_v15 = vshll.u32 %v5567_v8, 16  ;;  %v2300_v16 = vrot.slane %v5567_v8, 1 }
  0x3c   : > { %5121 = vmatmul.mubr.msk.bf16.vlgmr.msra.gmra.mxu0 %vm229_vm2, %v693_v10  ;;  %v1588_v10 = vrot.slane %v5560_v2, 1 }
  0x3d   : > { %5131 = vmatpush3.bf16.msra.mxu0 %v834_v11  ;;  %5139 = vmatmul.mubr.msk.bf16.vlgmr.msra.gmra.mxu1 %vm229_vm2, %v880_v14  ;;  %v5935_v11 = vld [vmem:[%s5713_s30 + $0x38] ss:$0 sps:$4 sm:$0x11]   ;;  %v1414_v14 = vsel %vm326_vm4, %v1412_v5, %v1413_v6 }
  0x3e   : > { %5132 = vmatprep.mubr.msk.bf16.mxu0 %vm5634_vm1, %v5633_v1  ;;  %5142 = vmatprep.subr.bf16.mxu0 %v5633_v1  ;;  %v1589_v19 = vsel %vm326_vm4, %v1587_v9, %v1588_v10  ;;  %v1767_v49 = vrot.slane %v5935_v11, 1  ;;  %v4775_v9 = vld [vmem:[%s6624_s1 + $0x10] sm:$0x3]  ;;  %v2128_v10 = vsel %vm233_vm0, %v4762_v7, 0 }
  0x3f   : > { %5149 = vmatpush3.bf16.msra.mxu1 %v1007_v17  ;;  %5150 = vmatprep.mubr.msk.bf16.mxu1 %vm5634_vm1, %v5633_v1  ;;  %v1533_v17 = vshll.u32 %v5560_v2, 16  ;;  %v4756_v2 = vld [vmem:[%s6624_s1 + $0x6] sm:$0x3]  ;;  %v2307_v12 = vsel %vm233_vm0, %v4775_v9, 0  ;;  %v4805_v9 = vld [vmem:[%s6624_s1 + $0xc] sm:$0x3] }
  0x40   : > { %5160 = vmatprep.subr.bf16.mxu1 %v5633_v1  ;;  %v1768_v55 = vsel %vm326_vm4, %v1766_v48, %v1767_v49  ;;  %v6113_v48 = vld [vmem:[%s5713_s30 + $0x48] sm:$0xff]  }
  0x44   : > { %5133 = vmatmul.mubr.msk.bf16.vlgmr.msra.gmra.mxu0 %vm229_vm2, %v5760_v41  ;;  %v1296_v41 = vld [vmem:[%s6624_s1] sm:$0x3] }
  0x45   : > { %5143 = vmatpush3.bf16.msra.mxu0 %v943_v22  ;;  %5151 = vmatmul.mubr.msk.bf16.vlgmr.msra.gmra.mxu1 %vm229_vm2, %v1002_v23  ;;  %v1368_v46 = vsel %vm233_vm0, %v1296_v41, 0  ;;  %v1712_v22 = vshll.u32 %v5935_v11, 16  ;;  %v5950_v23 = vld [vmem:[%s5713_s30 + $0x24] sm:$0xff]  }
  0x46   : > { %5144 = vmatprep.mubr.msk.bf16.mxu0 %vm5634_vm1, %v5633_v1  ;;  %5154 = vmatprep.subr.bf16.mxu0 %v5633_v1  ;;  %v1843_v31 = vshll.u32 %v5950_v23, 16  ;;  %v1841_v36 = vshrl.u32 %v5950_v23, 16  ;;  %v5568_v11 = vld [vmem:[%s5713_s30 + $0x44] ss:$0 sps:$4 sm:$0x11]  }
  0x47   : > { %5161 = vmatpush3.bf16.msra.mxu1 %v1122_v24  ;;  %5162 = vmatprep.mubr.msk.bf16.mxu1 %vm5634_vm1, %v5633_v1  ;;  %v1720_v24 = vsel %vm233_vm0, %v4736_v18, 0  ;;  %v1714_v29 = vrot.slane %v1712_v22, 1  ;;  %v4772_v18 = vld [vmem:[%s6624_s1 + $0xe] sm:$0x3]  ;;  %v2246_v22 = vshll.u32 %v5568_v11, 16 }
  0x48   : > { %5172 = vmatprep.subr.bf16.mxu1 %v5633_v1 }
  0x4c   : > { %5145 = vmatmul.mubr.msk.bf16.vlgmr.msra.gmra.mxu0 %vm229_vm2, %v5801_v0  ;;  %v1419_v0 = vsel %vm233_vm0, %v4715_v60, 0 }
  0x4d   : > { %5155 = vmatpush3.bf16.msra.mxu0 %v1060_v28  ;;  %5163 = vmatmul.mubr.msk.bf16.vlgmr.msra.gmra.mxu1 %vm229_vm2, %v5555_v26  ;;  %v1535_v26 = vrot.slane %v1533_v17, 1  ;;  %v1710_v28 = vor.u32 %v1709_v21, %v1705_v20  ;;  %v2301_v17 = vrot.slane %v5568_v11, 1  ;;  %v2239_v20 = vshrl.u32 %v5567_v8, 16 }
  0x4e   : > { %5156 = vmatprep.mubr.msk.bf16.mxu0 %vm5634_vm1, %v5633_v1  ;;  %5166 = vmatprep.subr.bf16.mxu0 %v5633_v1  ;;  %v2243_v21 = vrot.slane %v2241_v15, 1  ;;  %v2724_v15 = vsel %vm233_vm0, %v4805_v9, 0 }
  0x4f   : > { %5173 = vmatpush3.bf16.msra.mxu1 %v1239_v30  ;;  %5174 = vmatprep.mubr.msk.bf16.mxu1 %vm5634_vm1, %v5633_v1  ;;  %v5564_v30 = vld [vmem:[%s5713_s30 + $0x2c] ss:$0 sps:$4 sm:$0x11]   ;;  %v1536_v32 = vsel %vm216_vm3, %v1531_v25, %v1535_v26  ;;  %v1715_v35 = vsel %vm216_vm3, %v1710_v28, %v1714_v29  ;;  %v2254_v25 = vsel %vm233_vm0, %v4772_v18, 0  ;;  %v2302_v26 = vsel %vm326_vm4, %v2300_v16, %v2301_v17  ;;  %v4818_v16 = vld [vmem:[%s6624_s1 + $0x2] sm:$0x3] }
  0x50   : > { %5184 = vmatprep.subr.bf16.mxu1 %v5633_v1  ;;  %v1848_v38 = vshll.u32 %v5564_v30, 16  ;;  %v1947_v52 = vrot.slane %v5564_v30, 1  ;;  %v2244_v28 = vor.u32 %v2243_v21, %v2239_v20  ;;  %v2248_v29 = vrot.slane %v2246_v22, 1  ;;  %v5570_v30 = vld [vmem:[%s5713_s30 + $0x38] ss:$0 sps:$4 sm:$0x11]  }
  0x51   : > { %v2924_v21 = vsel %vm233_vm0, %v4818_v16, 0  ;;  %v6275_v16 = vld [vmem:[%s5713_s30 + $0x48] sm:$0xff]  }
  0x52   : > { %v1850_v41 = vrot.slane %v1848_v38, 1 }
  0x54   : > { %5157 = vmatmul.mubr.msk.bf16.vlgmr.msra.gmra.mxu0 %vm229_vm2, %v1055_v37  ;;  %v1845_v37 = vrot.slane %v1843_v31, 1 }
  0x55   : > { %5167 = vmatpush3.bf16.msra.mxu0 %v1186_v43  ;;  %5175 = vmatmul.mubr.msk.bf16.vlgmr.msra.gmra.mxu1 %vm229_vm2, %v1234_v44  ;;  %v4751_v43 = vld [vmem:[%s6624_s1 + $0x4] sm:$0x3] }
  0x56   : > { %5168 = vmatprep.mubr.msk.bf16.mxu0 %vm5634_vm1, %v5633_v1  ;;  %5178 = vmatprep.subr.bf16.mxu0 %v5633_v1  ;;  %v1846_v40 = vor.u32 %v1845_v37, %v1841_v36  ;;  %v1953_v47 = vsel %vm233_vm0, %v4751_v43, 0  ;;  %v2382_v36 = vshll.u32 %v5570_v30, 16  ;;  %v4792_v37 = vld [vmem:[%s6624_s1 + $0x6] sm:$0x3] }
  0x57   : > { %5185 = vmatpush3.bf16.msra.mxu1 %v1368_v46  ;;  %5186 = vmatprep.mubr.msk.bf16.mxu1 %vm5634_vm1, %v5633_v1  ;;  %v5991_v46 = vld [vmem:[%s5713_s30 + $0x30] sm:$0xff]  }
  0x58   : > { %5196 = vmatprep.subr.bf16.mxu1 %v5633_v1  ;;  %v1851_v45 = vsel %vm216_vm3, %v1846_v40, %v1850_v41  ;;  %v2060_v59 = vshrl.u32 %v5991_v46, 16  ;;  %v2384_v41 = vrot.slane %v2382_v36, 1 }
  0x5c   : > { %5169 = vmatmul.mubr.msk.bf16.vlgmr.msra.gmra.mxu0 %vm229_vm2, %v1181_v54  ;;  %v2062_v54 = vshll.u32 %v5991_v46, 16 }
  0x5d   : > { %5179 = vmatpush3.bf16.msra.mxu0 %v1322_v51  ;;  %5187 = vmatmul.mubr.msk.bf16.vlgmr.msra.gmra.mxu1 %vm229_vm2, %v5557_v42  ;;  %v4739_v42 = vld [vmem:[%s6624_s1 + $0x10] sm:$0x3]  ;;  %v1946_v51 = vrot.slane %v5950_v23, 1 }
  0x5e   : > { %5180 = vmatprep.mubr.msk.bf16.mxu0 %vm5634_vm1, %v5633_v1  ;;  %5190 = vmatprep.subr.bf16.mxu0 %v5633_v1  ;;  %v1773_v44 = vsel %vm233_vm0, %v4739_v42, 0  ;;  %v2064_v60 = vrot.slane %v2062_v54, 1  ;;  %v4787_v42 = vld [vmem:[%s6624_s1 + $0x4] sm:$0x3] }
  0x5f   : > { %5197 = vmatpush3.bf16.msra.mxu1 %v1477_v57  ;;  %5198 = vmatprep.mubr.msk.bf16.mxu1 %vm5634_vm1, %v5633_v1  ;;  %v4759_v57 = vld [vmem:[%s6624_s1 + $0x8] sm:$0x3]  ;;  %v1948_v58 = vsel %vm326_vm4, %v1946_v51, %v1947_v52  ;;  %v2481_v51 = vrot.slane %v5570_v30, 1  ;;  %v2834_v30 = vrot.slane %v6113_v48, 1 }
  0x60   : > { %5208 = vmatprep.subr.bf16.mxu1 %v5633_v1  ;;  %v2065_v63 = vor.u32 %v2064_v60, %v2060_v59  ;;  %v4795_v52 = vld [vmem:[%s6624_s1 + $0x8] sm:$0x3] }
  0x64   : > { %5181 = vmatmul.mubr.msk.bf16.vlgmr.msra.gmra.mxu0 %vm229_vm2, %v1317_v61  ;;  %v2067_v61 = vshll.u32 %v5566_v53, 16 }
  0x65   : > { %5191 = vmatpush3.bf16.msra.mxu0 %v1419_v0  ;;  %5199 = vmatmul.mubr.msk.bf16.vlgmr.msra.gmra.mxu1 %vm229_vm2, %v5559_v62  ;;  %v2075_v62 = vsel %vm233_vm0, %v4759_v57, 0  ;;  %v2775_v57 = vshll.u32 %v6113_v48, 16 }
  0x66   : > { %5192 = vmatprep.mubr.msk.bf16.mxu0 %vm5634_vm1, %v5633_v1  ;;  %5202 = vmatprep.subr.bf16.mxu0 %v5633_v1  ;;  %v2069_v0 = vrot.slane %v2067_v61, 1 }
  0x67   : > { %5209 = vmatpush3.bf16.msra.mxu1 %v1594_v4  ;;  %5210 = vmatprep.mubr.msk.bf16.mxu1 %vm5634_vm1, %v5633_v1  ;;  %v2011_v4 = vsel %vm233_vm0, %v4756_v2, 0  ;;  %v2773_v2 = vshrl.u32 %v6113_v48, 16 }
  0x68   : > { %5220 = vmatprep.subr.bf16.mxu1 %v5633_v1  ;;  %v2070_v5 = vsel %vm216_vm3, %v2065_v63, %v2069_v0  ;;  %v4808_v63 = vld [vmem:[%s6624_s1 + $0xe] sm:$0x3] }
  0x6c   : > { %5193 = vmatmul.mubr.msk.bf16.vlgmr.msra.gmra.mxu0 %vm229_vm2, %v1414_v14  ;;  %v2122_v14 = vrot.slane %v5566_v53, 1 }
  0x6d   : > { %5203 = vmatpush3.bf16.msra.mxu0 %v1541_v13  ;;  %5211 = vmatmul.mubr.msk.bf16.vlgmr.msra.gmra.mxu1 %vm229_vm2, %v1589_v19  ;;  %v2121_v13 = vrot.slane %v5991_v46, 1 }
  0x6e   : > { %5204 = vmatprep.mubr.msk.bf16.mxu0 %vm5634_vm1, %v5633_v1  ;;  %5214 = vmatprep.subr.bf16.mxu0 %v5633_v1 }
  0x6f   : > { %5221 = vmatpush3.bf16.msra.mxu1 %v1720_v24  ;;  %5222 = vmatprep.mubr.msk.bf16.mxu1 %vm5634_vm1, %v5633_v1  ;;  %v2123_v19 = vsel %vm326_vm4, %v2121_v13, %v2122_v14  ;;  %v5569_v24 = vld [vmem:[%s5713_s30 + $0x30] sm:$0xff]  }
  0x70   : > { %5232 = vmatprep.subr.bf16.mxu1 %v5633_v1  ;;  %v2377_v31 = vshll.u32 %v5569_v24, 16  ;;  %v2375_v34 = vshrl.u32 %v5569_v24, 16  ;;  %v2480_v50 = vrot.slane %v5569_v24, 1 }
  0x72   : > { %v2482_v59 = vsel %vm326_vm4, %v2480_v50, %v2481_v51 }
  0x74   : > { %5205 = vmatmul.mubr.msk.bf16.vlgmr.msra.gmra.mxu0 %vm229_vm2, %v1536_v32  ;;  %v4782_v32 = vld [vmem:[%s6624_s1 + $0x2] sm:$0x3] }
  0x75   : > { %5215 = vmatpush3.bf16.msra.mxu0 %v1656_v33  ;;  %5223 = vmatmul.mubr.msk.bf16.vlgmr.msra.gmra.mxu1 %vm229_vm2, %v1715_v35  ;;  %v2249_v33 = vsel %vm216_vm3, %v2244_v28, %v2248_v29  ;;  %v2379_v35 = vrot.slane %v2377_v31, 1  ;;  %v2390_v38 = vsel %vm233_vm0, %v4782_v32, 0  ;;  %v6181_v28 = vld [vmem:[%s5713_s30 + $0x48] sm:$0xff]   ;;  %v2898_v32 = vld [vmem:[%s6624_s1] sm:$0x3] }
  0x76   : > { %5216 = vmatprep.mubr.msk.bf16.mxu0 %vm5634_vm1, %v5633_v1  ;;  %5226 = vmatprep.subr.bf16.mxu0 %v5633_v1  ;;  %v3130_v36 = vshll.u32 %v6181_v28, 16 }
  0x77   : > { %5233 = vmatpush3.bf16.msra.mxu1 %v1856_v39  ;;  %5234 = vmatprep.mubr.msk.bf16.mxu1 %vm5634_vm1, %v5633_v1  ;;  %v2545_v39 = vsel %vm233_vm0, %v4792_v37, 0  ;;  %v2380_v40 = vor.u32 %v2379_v35, %v2375_v34  ;;  %v6197_v35 = vld [vmem:[%s5713_s30 + $0x50] ss:$0 sps:$4 sm:$0x11]  }
  0x78   : > { %5244 = vmatprep.subr.bf16.mxu1 %v5633_v1 }
  0x79   : > { %v2385_v43 = vsel %vm216_vm3, %v2380_v40, %v2384_v41  ;;  %v3128_v41 = vshrl.u32 %v6181_v28, 16 }
  0x7c   : > { %5217 = vmatmul.mubr.msk.bf16.vlgmr.msra.gmra.mxu0 %vm229_vm2, %v5923_v3  ;;  %v4769_v3 = vld [vmem:[%s6624_s1 + $0xc] sm:$0x3] }
  0x7d   : > { %5227 = vmatpush3.bf16.msra.mxu0 %v1773_v44  ;;  %5235 = vmatmul.mubr.msk.bf16.vlgmr.msra.gmra.mxu1 %vm229_vm2, %v1851_v45  ;;  %v2190_v6 = vsel %vm233_vm0, %v4769_v3, 0  ;;  %v5571_v44 = vld [vmem:[%s5713_s30 + $0x3c] sm:$0xff]   ;;  %v4798_v45 = vld [vmem:[%s6624_s1 + $0xa] sm:$0x3]  ;;  %v2777_v3 = vrot.slane %v2775_v57, 1 }
  0x7e   : > { %5228 = vmatprep.mubr.msk.bf16.mxu0 %vm5634_vm1, %v5633_v1  ;;  %5238 = vmatprep.subr.bf16.mxu0 %v5633_v1  ;;  %v2662_v49 = vsel %vm233_vm0, %v4798_v45, 0  ;;  %v2596_v53 = vshll.u32 %v5571_v44, 16  ;;  %v2655_v54 = vrot.slane %v5571_v44, 1  ;;  %v2594_v60 = vshrl.u32 %v5571_v44, 16  ;;  %v4847_v57 = vld [vmem:[%s6624_s1 + $0x10] sm:$0x3] }
  0x7f   : > { %5245 = vmatpush3.bf16.msra.mxu1 %v1953_v47  ;;  %5246 = vmatprep.mubr.msk.bf16.mxu1 %vm5634_vm1, %v5633_v1  ;;  %v5572_v47 = vld [vmem:[%s5713_s30 + $0x44] ss:$0 sps:$4 sm:$0x11]  }
  0x80   : > { %5256 = vmatprep.subr.bf16.mxu1 %v5633_v1  ;;  %v2598_v61 = vrot.slane %v2596_v53, 1 }
  0x82   : > { %v2599_v7 = vor.u32 %v2598_v61, %v2594_v60 }
  0x84   : > { %5229 = vmatmul.mubr.msk.bf16.vlgmr.msra.gmra.mxu0 %vm229_vm2, %v1768_v55  ;;  %v2656_v55 = vrot.slane %v5572_v47, 1 }
  0x85   : > { %5239 = vmatpush3.bf16.msra.mxu0 %v1902_v56  ;;  %5247 = vmatmul.mubr.msk.bf16.vlgmr.msra.gmra.mxu1 %vm229_vm2, %v1948_v58  ;;  %v6125_v56 = vld [vmem:[%s5713_s30 + $0x50] ss:$0 sps:$4 sm:$0x11]   ;;  %v2609_v58 = vsel %vm233_vm0, %v4795_v52, 0 }
  0x86   : > { %5240 = vmatprep.mubr.msk.bf16.mxu0 %vm5634_vm1, %v5633_v1  ;;  %5250 = vmatprep.subr.bf16.mxu0 %v5633_v1  ;;  %v2657_v0 = vsel %vm326_vm4, %v2655_v54, %v2656_v55  ;;  %v2835_v31 = vrot.slane %v6125_v56, 1  ;;  %v4834_v54 = vld [vmem:[%s6624_s1 + $0xa] sm:$0x3] }
  0x87   : > { %5257 = vmatpush3.bf16.msra.mxu1 %v2075_v62  ;;  %5258 = vmatprep.mubr.msk.bf16.mxu1 %vm5634_vm1, %v5633_v1  ;;  %v2601_v62 = vshll.u32 %v5572_v47, 16  ;;  %v4828_v47 = vld [vmem:[%s6624_s1 + $0x6] sm:$0x3] }
  0x88   : > { %5268 = vmatprep.subr.bf16.mxu1 %v5633_v1  ;;  %v2836_v37 = vsel %vm326_vm4, %v2834_v30, %v2835_v31  ;;  %v4854_v30 = vld [vmem:[%s6624_s1 + $0x2] sm:$0x3] }
  0x8c   : > { %5241 = vmatmul.mubr.msk.bf16.vlgmr.msra.gmra.mxu0 %vm229_vm2, %v5950_v23  ;;  %v2364_v23 = vld [vmem:[%s6624_s1] sm:$0x3] }
  0x8d   : > { %5251 = vmatpush3.bf16.msra.mxu0 %v2011_v4  ;;  %5259 = vmatmul.mubr.msk.bf16.vlgmr.msra.gmra.mxu1 %vm229_vm2, %v2070_v5  ;;  %v2436_v27 = vsel %vm233_vm0, %v2364_v23, 0  ;;  %v2780_v4 = vshll.u32 %v6125_v56, 16  ;;  %v6140_v5 = vld [vmem:[%s5713_s30 + $0x3c] sm:$0xff]   ;;  %v5579_v56 = vld [vmem:[%s5713_s30 + $0x54] sm:$0xff]  }
  0x8e   : > { %5252 = vmatprep.mubr.msk.bf16.mxu0 %vm5634_vm1, %v5633_v1  ;;  %5262 = vmatprep.subr.bf16.mxu0 %v5633_v1  ;;  %v2911_v13 = vshll.u32 %v6140_v5, 16  ;;  %v2909_v18 = vshrl.u32 %v6140_v5, 16 }
  0x8f   : > { %5269 = vmatpush3.bf16.msra.mxu1 %v2190_v6  ;;  %5270 = vmatprep.mubr.msk.bf16.mxu1 %vm5634_vm1, %v5633_v1  ;;  %v2788_v6 = vsel %vm233_vm0, %v4808_v63, 0  ;;  %v2782_v11 = vrot.slane %v2780_v4, 1  ;;  %v3309_v63 = vshll.u32 %v5579_v56, 16 }
  0x90   : > { %5280 = vmatprep.subr.bf16.mxu1 %v5633_v1 }
  0x94   : > { %5253 = vmatmul.mubr.msk.bf16.vlgmr.msra.gmra.mxu0 %vm229_vm2, %v5991_v46  ;;  %v2487_v46 = vsel %vm233_vm0, %v4787_v42, 0  ;;  %v3132_v42 = vrot.slane %v3130_v36, 1 }
  0x95   : > { %5263 = vmatpush3.bf16.msra.mxu0 %v2128_v10  ;;  %5271 = vmatmul.mubr.msk.bf16.vlgmr.msra.gmra.mxu1 %vm229_vm2, %v5567_v8  ;;  %v2603_v8 = vrot.slane %v2601_v62, 1  ;;  %v2778_v10 = vor.u32 %v2777_v3, %v2773_v2  ;;  %v3375_v62 = vsel %vm233_vm0, %v4847_v57, 0  ;;  %v3189_v2 = vrot.slane %v6181_v28, 1 }
  0x96   : > { %5264 = vmatprep.mubr.msk.bf16.mxu0 %vm5634_vm1, %v5633_v1  ;;  %5274 = vmatprep.subr.bf16.mxu0 %v5633_v1  ;;  %v3133_v45 = vor.u32 %v3132_v42, %v3128_v41  ;;  %v3190_v3 = vrot.slane %v6197_v35, 1 }
  0x97   : > { %5281 = vmatpush3.bf16.msra.mxu1 %v2307_v12  ;;  %5282 = vmatprep.mubr.msk.bf16.mxu1 %vm5634_vm1, %v5633_v1  ;;  %v5576_v12 = vld [vmem:[%s5713_s30 + $0x44] ss:$0 sps:$4 sm:$0x11]   ;;  %v2604_v14 = vsel %vm216_vm3, %v2599_v7, %v2603_v8  ;;  %v2783_v17 = vsel %vm216_vm3, %v2778_v10, %v2782_v11  ;;  %v4844_v8 = vld [vmem:[%s6624_s1 + $0xe] sm:$0x3]  ;;  %v3307_v10 = vshrl.u32 %v5579_v56, 16 }
  0x98   : > { %5292 = vmatprep.subr.bf16.mxu1 %v5633_v1  ;;  %v2916_v20 = vshll.u32 %v5576_v12, 16  ;;  %v3015_v34 = vrot.slane %v5576_v12, 1  ;;  %v3311_v11 = vrot.slane %v3309_v63, 1  ;;  %v6342_v63 = vld [vmem:[%s5713_s30 + $0x5c] ss:$0 sps:$4 sm:$0x11]  }
  0x9a   : > { %v2918_v23 = vrot.slane %v2916_v20, 1 }
  0x9c   : > { %5265 = vmatmul.mubr.msk.bf16.vlgmr.msra.gmra.mxu0 %vm229_vm2, %v2123_v19  ;;  %v2913_v19 = vrot.slane %v2911_v13, 1 }
  0x9d   : > { %5275 = vmatpush3.bf16.msra.mxu0 %v2254_v25  ;;  %5283 = vmatmul.mubr.msk.bf16.vlgmr.msra.gmra.mxu1 %vm229_vm2, %v2302_v26  ;;  %v4823_v25 = vld [vmem:[%s6624_s1 + $0x4] sm:$0x3] }
  0x9e   : > { %5276 = vmatprep.mubr.msk.bf16.mxu0 %vm5634_vm1, %v5633_v1  ;;  %5286 = vmatprep.subr.bf16.mxu0 %v5633_v1  ;;  %v2914_v22 = vor.u32 %v2913_v19, %v2909_v18  ;;  %v3021_v29 = vsel %vm233_vm0, %v4823_v25, 0  ;;  %v3322_v18 = vsel %vm233_vm0, %v4844_v8, 0 }
  0x9f   : > { %5293 = vmatpush3.bf16.msra.mxu1 %v2436_v27  ;;  %5294 = vmatprep.mubr.msk.bf16.mxu1 %vm5634_vm1, %v5633_v1 }
  0xa0   : > { %5304 = vmatprep.subr.bf16.mxu1 %v5633_v1  ;;  %v2919_v27 = vsel %vm216_vm3, %v2914_v22, %v2918_v23  ;;  %v3312_v22 = vor.u32 %v3311_v11, %v3307_v10 }
  0xa4   : > { %5277 = vmatmul.mubr.msk.bf16.vlgmr.msra.gmra.mxu0 %vm229_vm2, %v2249_v33  ;;  %v3014_v33 = vrot.slane %v6140_v5, 1 }
  0xa5   : > { %5287 = vmatpush3.bf16.msra.mxu0 %v2390_v38  ;;  %5295 = vmatmul.mubr.msk.bf16.vlgmr.msra.gmra.mxu1 %vm229_vm2, %v5569_v24  ;;  %v4811_v24 = vld [vmem:[%s6624_s1 + $0x10] sm:$0x3]  ;;  %v2970_v38 = vsel %vm233_vm0, %v2898_v32, 0 }
  0xa6   : > { %5288 = vmatprep.mubr.msk.bf16.mxu0 %vm5634_vm1, %v5633_v1  ;;  %5298 = vmatprep.subr.bf16.mxu0 %v5633_v1  ;;  %v2841_v26 = vsel %vm233_vm0, %v4811_v24, 0  ;;  %v3016_v40 = vsel %vm326_vm4, %v3014_v33, %v3015_v34 }
  0xa7   : > { %5305 = vmatpush3.bf16.msra.mxu1 %v2545_v39  ;;  %5306 = vmatprep.mubr.msk.bf16.mxu1 %vm5634_vm1, %v5633_v1  ;;  %v4831_v39 = vld [vmem:[%s6624_s1 + $0x8] sm:$0x3] }
  0xa8   : > { %5316 = vmatprep.subr.bf16.mxu1 %v5633_v1 }
  0xac   : > { %5289 = vmatmul.mubr.msk.bf16.vlgmr.msra.gmra.mxu0 %vm229_vm2, %v2385_v43  ;;  %v3135_v43 = vshll.u32 %v6197_v35, 16  ;;  %v3443_v35 = vshrl.u32 %v6275_v16, 16 }
  0xad   : > { %5299 = vmatpush3.bf16.msra.mxu0 %v2487_v46  ;;  %5307 = vmatmul.mubr.msk.bf16.vlgmr.msra.gmra.mxu1 %vm229_vm2, %v5571_v44  ;;  %v3143_v44 = vsel %vm233_vm0, %v4831_v39, 0 }
  0xae   : > { %5300 = vmatprep.mubr.msk.bf16.mxu0 %vm5634_vm1, %v5633_v1  ;;  %5310 = vmatprep.subr.bf16.mxu0 %v5633_v1  ;;  %v3137_v46 = vrot.slane %v3135_v43, 1 }
  0xaf   : > { %5317 = vmatpush3.bf16.msra.mxu1 %v2662_v49  ;;  %5318 = vmatprep.mubr.msk.bf16.mxu1 %vm5634_vm1, %v5633_v1  ;;  %v3079_v49 = vsel %vm233_vm0, %v4828_v47, 0 }
  0xb0   : > { %5328 = vmatprep.subr.bf16.mxu1 %v5633_v1  ;;  %v3138_v50 = vsel %vm216_vm3, %v3133_v45, %v3137_v46 }
  0xb4   : > { %5301 = vmatmul.mubr.msk.bf16.vlgmr.msra.gmra.mxu0 %vm229_vm2, %v2482_v59  ;;  %v5580_v59 = vld [vmem:[%s5713_s30 + $0x5c] ss:$0 sps:$4 sm:$0x11]  }
  0xb5   : > { %5311 = vmatpush3.bf16.msra.mxu0 %v2609_v58  ;;  %5319 = vmatmul.mubr.msk.bf16.vlgmr.msra.gmra.mxu1 %vm229_vm2, %v2657_v0  ;;  %v3196_v58 = vsel %vm233_vm0, %v4834_v54, 0  ;;  %v3314_v12 = vshll.u32 %v5580_v59, 16  ;;  %v743_v54 = vlaneseq }
  0xb6   : > { %5312 = vmatprep.mubr.msk.bf16.mxu0 %vm5634_vm1, %v5633_v1  ;;  %5322 = vmatprep.subr.bf16.mxu0 %v5633_v1 }
  0xb7   : > { %5329 = vmatpush3.bf16.msra.mxu1 %v2788_v6  ;;  %5330 = vmatprep.mubr.msk.bf16.mxu1 %vm5634_vm1, %v5633_v1  ;;  %v3369_v6 = vrot.slane %v5580_v59, 1  ;;  %v3316_v23 = vrot.slane %v3314_v12, 1  ;;  %v6329_v59 = vld [vmem:[%s5713_s30 + $0x54] sm:$0xff]  }
  0xb8   : > { %5340 = vmatprep.subr.bf16.mxu1 %v5633_v1  ;;  %v3664_v12 = vshll.u32 %v6329_v59, 16 }
  0xb9   : > { %v3317_v32 = vsel %vm216_vm3, %v3312_v22, %v3316_v23  ;;  %v198_v23 = vld [vmem:[%s6625_s2] sm:$0x3] }
  0xbc   : > { %5313 = vmatmul.mubr.msk.bf16.vlgmr.msra.gmra.mxu0 %vm229_vm2, %v2604_v14  ;;  %v3191_v14 = vsel %vm326_vm4, %v3189_v2, %v3190_v3 }
  0xbd   : > { %5323 = vmatpush3.bf16.msra.mxu0 %v2724_v15  ;;  %5331 = vmatmul.mubr.msk.bf16.vlgmr.msra.gmra.mxu1 %vm229_vm2, %v2783_v17  ;;  %v3432_v15 = vld [vmem:[%s6624_s1] sm:$0x3] }
  0xbe   : > { %5324 = vmatprep.mubr.msk.bf16.mxu0 %vm5634_vm1, %v5633_v1  ;;  %5334 = vmatprep.subr.bf16.mxu0 %v5633_v1  ;;  %v3504_v24 = vsel %vm233_vm0, %v3432_v15, 0  ;;  %v3723_v15 = vrot.slane %v6329_v59, 1 }
  0xbf   : > { %5341 = vmatpush3.bf16.msra.mxu1 %v2924_v21  ;;  %5342 = vmatprep.mubr.msk.bf16.mxu1 %vm5634_vm1, %v5633_v1 }
  0xc0   : > { %5352 = vmatprep.subr.bf16.mxu1 %v5633_v1 }
  0xc4   : > { %5325 = vmatmul.mubr.msk.bf16.vlgmr.msra.gmra.mxu0 %vm229_vm2, %v6113_v48  ;;  %v4841_v48 = vld [vmem:[%s6624_s1 + $0xc] sm:$0x3] }
  0xc5   : > { %5335 = vmatpush3.bf16.msra.mxu0 %v2841_v26  ;;  %5343 = vmatmul.mubr.msk.bf16.vlgmr.msra.gmra.mxu1 %vm229_vm2, %v2919_v27  ;;  %v3258_v51 = vsel %vm233_vm0, %v4841_v48, 0  ;;  %v6285_v26 = vld [vmem:[%s5713_s30 + $0x50] ss:$0 sps:$4 sm:$0x11]   ;;  %v3445_v27 = vshll.u32 %v6275_v16, 16 }
  0xc6   : > { %5336 = vmatprep.mubr.msk.bf16.mxu0 %vm5634_vm1, %v5633_v1  ;;  %5346 = vmatprep.subr.bf16.mxu0 %v5633_v1 }
  0xc7   : > { %5353 = vmatpush3.bf16.msra.mxu1 %v3021_v29  ;;  %5354 = vmatprep.mubr.msk.bf16.mxu1 %vm5634_vm1, %v5633_v1  ;;  %v3447_v36 = vrot.slane %v3445_v27, 1 }
  0xc8   : > { %5364 = vmatprep.subr.bf16.mxu1 %v5633_v1 }
  0xc9   : > { %v3448_v47 = vor.u32 %v3447_v36, %v3443_v35 }
  0xcc   : > { %5337 = vmatmul.mubr.msk.bf16.vlgmr.msra.gmra.mxu0 %vm229_vm2, %v2836_v37  ;;  %v3450_v37 = vshll.u32 %v6285_v26, 16 }
  0xcd   : > { %5347 = vmatpush3.bf16.msra.mxu0 %v2970_v38  ;;  %5355 = vmatmul.mubr.msk.bf16.vlgmr.msra.gmra.mxu1 %vm229_vm2, %v3016_v40  ;;  %v4864_v38 = vld [vmem:[%s6624_s1 + $0x6] sm:$0x3]  ;;  %v3458_v40 = vsel %vm233_vm0, %v4854_v30, 0  ;;  %v3669_v30 = vshll.u32 %v6342_v63, 16 }
  0xce   : > { %5348 = vmatprep.mubr.msk.bf16.mxu0 %vm5634_vm1, %v5633_v1  ;;  %5358 = vmatprep.subr.bf16.mxu0 %v5633_v1  ;;  %v3452_v48 = vrot.slane %v3450_v37, 1 }
  0xcf   : > { %5365 = vmatpush3.bf16.msra.mxu1 %v3143_v44  ;;  %5366 = vmatprep.mubr.msk.bf16.mxu1 %vm5634_vm1, %v5633_v1  ;;  %v3613_v44 = vsel %vm233_vm0, %v4864_v38, 0  ;;  %v6398_v38 = vld [vmem:[%s5713_s30 + $0x54] sm:$0xff]  }
  0xd0   : > { %5376 = vmatprep.subr.bf16.mxu1 %v5633_v1 }
  0xd4   : > { %5349 = vmatmul.mubr.msk.bf16.vlgmr.msra.gmra.mxu0 %vm229_vm2, %v6140_v5  ;;  %v3368_v5 = vrot.slane %v5579_v56, 1 }
  0xd5   : > { %5359 = vmatpush3.bf16.msra.mxu0 %v3079_v49  ;;  %v6231_v52 = vpop.f32.mrf.mxu1  ;;  %5367 = vmatmul.mubr.msk.bf16.vlgmr.msra.gmra.mxu1 %vm229_vm2, %v3138_v50 }
  0xd6   : > { %5360 = vmatprep.mubr.msk.bf16.mxu0 %vm5634_vm1, %v5633_v1  ;;  %5370 = vmatprep.subr.bf16.mxu0 %v5633_v1  ;;  %v3370_v19 = vsel %vm326_vm4, %v3368_v5, %v3369_v6  ;;  %v3548_v6 = vrot.slane %v6275_v16, 1 }
  0xd7   : > { %v5080_v53 = vpop.f32.mrf.mxu1  ;;  %5377 = vmatpush3.bf16.msra.mxu1 %v3258_v51  ;;  %5378 = vmatprep.mubr.msk.bf16.mxu1 %vm5634_vm1, %v5633_v1 }
  0xd8   : > { %5388 = vmatprep.subr.bf16.mxu1 %v5633_v1  ;;  %v4859_v53 = vld [vmem:[%s6624_s1 + $0x4] sm:$0x3] }
  0xd9   : > { %v6243_v55 = vpop.f32.mrf.mxu1 }
  0xdb   : > { %v5081_v60 = vpop.f32.mrf.mxu1 }
  0xdc   : > { %v271_v61 = vpop.f32.mrf.mxu0  ;;  %5361 = vmatmul.mubr.msk.bf16.vlgmr.msra.gmra.mxu0 %vm229_vm2, %v6181_v28  ;;  %v4870_v60 = vld [vmem:[%s6624_s1 + $0xa] sm:$0x3] }
  0xdd   : > { %5371 = vmatpush3.bf16.msra.mxu0 %v3196_v58  ;;  %v6254_v0 = vpop.f32.mrf.mxu1  ;;  %5379 = vmatmul.mubr.msk.bf16.vlgmr.msra.gmra.mxu1 %vm229_vm2, %v5579_v56  ;;  %v318_v33 = vadd.f32 %v6231_v52, %v271_v61  ;;  %v3453_v58 = vsel %vm216_vm3, %v3448_v47, %v3452_v48  ;;  %v3730_v8 = vsel %vm233_vm0, %v4870_v60, 0 }
  0xde   : > { %v5074_v4 = vpop.f32.mrf.mxu0  ;;  %5372 = vmatprep.mubr.msk.bf16.mxu0 %vm5634_vm1, %v5633_v1  ;;  %5382 = vmatprep.subr.bf16.mxu0 %v5633_v1 }
  0xdf   : > { %v5092_v7 = vpop.f32.mrf.mxu1  ;;  %5389 = vmatpush3.bf16.msra.mxu1 %v3375_v62  ;;  %5390 = vmatprep.mubr.msk.bf16.mxu1 %vm5634_vm1, %v5633_v1  ;;  %v3555_v62 = vsel %vm233_vm0, %v4859_v53, 0  ;;  %v744_v4 = vshrl.u32 %v743_v54, 7  ;;  %v6419_v54 = vld [vmem:[%s5713_s30 + $0x5c] ss:$0 sps:$4 sm:$0x11]  }
  0xe0   : > { %v274_v9 = vpop.f32.mrf.mxu0  ;;  %5400 = vmatprep.subr.bf16.mxu1 %v5633_v1  ;;  %v3549_v7 = vrot.slane %v6285_v26, 1  ;;  %v3662_v26 = vshrl.u32 %v6329_v59, 16 }
  0xe1   : > { %v6268_v13 = vpop.f32.mrf.mxu1  ;;  %v321_v45 = vadd.f32 %v6243_v55, %v274_v9 }
  0xe2   : > { %v5075_v17 = vpop.f32.mrf.mxu0 }
  0xe3   : > { %v5093_v20 = vpop.f32.mrf.mxu1 }
  0xe4   : > { %v370_v21 = vpop.f32.mrf.mxu0  ;;  %5373 = vmatmul.mubr.msk.bf16.vlgmr.msra.gmra.mxu0 %vm229_vm2, %v3191_v14  ;;  %v745_v20 = vsub.s32 0, %v744_v4 }
  0xe5   : > { %5383 = vmatpush3.bf16.msra.mxu0 %v3322_v18  ;;  %v6281_v25 = vpop.f32.mrf.mxu1  ;;  %5391 = vmatmul.mubr.msk.bf16.vlgmr.msra.gmra.mxu1 %vm229_vm2, %v3370_v19  ;;  %v377_v41 = vadd.f32 %v370_v21, %v318_v33  ;;  %v4867_v21 = vld [vmem:[%s6624_s1 + $0x8] sm:$0x3] }
  0xe6   : > { %v5086_v28 = vpop.f32.mrf.mxu0  ;;  %5384 = vmatprep.mubr.msk.bf16.mxu0 %vm5634_vm1, %v5633_v1  ;;  %5394 = vmatprep.subr.bf16.mxu0 %v5633_v1  ;;  %v3677_v35 = vsel %vm233_vm0, %v4867_v21, 0 }
  0xe7   : > { %v5104_v29 = vpop.f32.mrf.mxu1  ;;  %5401 = vmatpush3.bf16.msra.mxu1 %v3504_v24  ;;  %5402 = vmatprep.mubr.msk.bf16.mxu1 %vm5634_vm1, %v5633_v1  ;;  %v440_v51 = vadd.f32 %v6254_v0, %v377_v41  ;;  %v6345_v0 = vld [vmem:[%s5713_s30 + $0x60] sm:$0xff]   ;;  %v751_v24 = vsub.s32 1, %v744_v4  ;;  %v6401_v41 = vrot.slane %v198_v23, %v745_v20 }
  0xe8   : > { %v373_v31 = vpop.f32.mrf.mxu0  ;;  %5412 = vmatprep.subr.bf16.mxu1 %v5633_v1  ;;  %v3843_v17 = vshll.u32 %v6345_v0, 16  ;;  %v3666_v29 = vrot.slane %v3664_v12, 1  ;;  %v3841_v37 = vshrl.u32 %v6345_v0, 16 }
  0xe9   : > { %v6299_v34 = vpop.f32.mrf.mxu1  ;;  %v378_v50 = vadd.f32 %v373_v31, %v321_v45  ;;  %v4880_v31 = vld [vmem:[%s6624_s1 + $0xe] sm:$0x3] }
  0xea   : > { %v5087_v39 = vpop.f32.mrf.mxu0  ;;  %v3856_v45 = vsel %vm233_vm0, %v4880_v31, 0  ;;  %v6468_v31 = vld [vmem:[%s5713_s30 + $0x60] sm:$0xff]  }
  0xeb   : > { %v5105_v42 = vpop.f32.mrf.mxu1  ;;  %v441_v2 = vadd.f32 %v6268_v13, %v378_v50  ;;  %v6365_v13 = vld [vmem:[%s5713_s30 + $0x68] ss:$0 sps:$4 sm:$0x11]  }
  0xec   : > { %v498_v43 = vpop.f32.mrf.mxu0  ;;  %5385 = vmatmul.mubr.msk.bf16.vlgmr.msra.gmra.mxu0 %vm229_vm2, %v3317_v32  ;;  %v3848_v32 = vshll.u32 %v6365_v13, 16 }
  0xed   : > { %5395 = vmatpush3.bf16.msra.mxu0 %v3458_v40  ;;  %v6310_v46 = vpop.f32.mrf.mxu1  ;;  %5403 = vmatmul.mubr.msk.bf16.vlgmr.msra.gmra.mxu1 %vm229_vm2, %v6275_v16  ;;  %v505_v56 = vadd.f32 %v498_v43, %v440_v51  ;;  %v3724_v16 = vrot.slane %v6342_v63, 1 }
  0xee   : > { %v5098_v49 = vpop.f32.mrf.mxu0  ;;  %5396 = vmatprep.mubr.msk.bf16.mxu0 %vm5634_vm1, %v5633_v1  ;;  %5406 = vmatprep.subr.bf16.mxu0 %v5633_v1  ;;  %v3850_v50 = vrot.slane %v3848_v32, 1 }
  0xef   : > { %v5116_v52 = vpop.f32.mrf.mxu1  ;;  %5413 = vmatpush3.bf16.msra.mxu1 %v3613_v44  ;;  %5414 = vmatprep.mubr.msk.bf16.mxu1 %vm5634_vm1, %v5633_v1  ;;  %v559_v10 = vadd.f32 %v6281_v25, %v505_v56  ;;  %v3550_v25 = vsel %vm326_vm4, %v3548_v6, %v3549_v7  ;;  %v3725_v36 = vsel %vm326_vm4, %v3723_v15, %v3724_v16  ;;  %v3671_v49 = vrot.slane %v3669_v30, 1 }
  0xf0   : > { %v501_v55 = vpop.f32.mrf.mxu0  ;;  %5424 = vmatprep.subr.bf16.mxu1 %v5633_v1  ;;  %v6405_v44 = vrot.slane %v198_v23, %v751_v24  ;;  %v4877_v52 = vld [vmem:[%s6624_s1 + $0xc] sm:$0x3]  ;;  %v3977_v6 = vshrl.u32 %v6398_v38, 16  ;;  %v4883_v23 = vld [vmem:[%s6624_s1 + $0x10] sm:$0x3] }
  0xf1   : > { %v6325_v57 = vpop.f32.mrf.mxu1  ;;  %v506_v9 = vadd.f32 %v501_v55, %v441_v2  ;;  %v3979_v55 = vshll.u32 %v6398_v38, 16 }
  0xf2   : > { %v5099_v61 = vpop.f32.mrf.mxu0 }
  0xf3   : > { %v5117_v3 = vpop.f32.mrf.mxu1  ;;  %v560_v27 = vadd.f32 %v6299_v34, %v506_v9  ;;  %v3845_v34 = vrot.slane %v3843_v17, 1  ;;  %v3981_v7 = vrot.slane %v3979_v55, 1  ;;  %v4196_v55 = vshrl.u32 %v6468_v31, 16 }
  0xf4   : > { %v615_v5 = vpop.f32.mrf.mxu0  ;;  %5397 = vmatmul.mubr.msk.bf16.vlgmr.msra.gmra.mxu0 %vm229_vm2, %v3453_v58  ;;  %v3792_v3 = vsel %vm233_vm0, %v4877_v52, 0 }
  0xf5   : > { %5407 = vmatpush3.bf16.msra.mxu0 %v3555_v62  ;;  %v6353_v11 = vpop.f32.mrf.mxu1  ;;  %5415 = vmatmul.mubr.msk.bf16.vlgmr.msra.gmra.mxu1 %vm229_vm2, %v6329_v59  ;;  %v622_v18 = vadd.f32 %v615_v5, %v559_v10  ;;  %v3846_v53 = vor.u32 %v3845_v34, %v3841_v37  ;;  %v3902_v34 = vrot.slane %v6345_v0, 1 }
  0xf6   : > { %v5110_v14 = vpop.f32.mrf.mxu0  ;;  %5408 = vmatprep.mubr.msk.bf16.mxu0 %vm5634_vm1, %v5633_v1  ;;  %5418 = vmatprep.subr.bf16.mxu0 %v5633_v1 }
  0xf7   : > { %v5128_v19 = vpop.f32.mrf.mxu1  ;;  %5425 = vmatpush3.bf16.msra.mxu1 %v3730_v8  ;;  %5426 = vmatprep.mubr.msk.bf16.mxu1 %vm5634_vm1, %v5633_v1  ;;  %v687_v40 = vadd.f32 %v6310_v46, %v622_v18  ;;  %v3667_v46 = vor.u32 %v3666_v29, %v3662_v26  ;;  %v3851_v5 = vsel %vm216_vm3, %v3846_v53, %v3850_v50  ;;  %v3984_v8 = vshll.u32 %v6419_v54, 16  ;;  %v4895_v26 = vld [vmem:[%s6624_s1 + $0x4] sm:$0x3] }
  0xf8   : > { %v618_v22 = vpop.f32.mrf.mxu0  ;;  %5436 = vmatprep.subr.bf16.mxu1 %v5633_v1  ;;  %v3982_v19 = vor.u32 %v3981_v7, %v3977_v6  ;;  %v3909_v29 = vsel %vm233_vm0, %v4883_v23, 0 }
  0xf9   : > { %v6387_v28 = vpop.f32.mrf.mxu1  ;;  %v623_v39 = vadd.f32 %v618_v22, %v560_v27  ;;  %v3672_v2 = vsel %vm216_vm3, %v3667_v46, %v3671_v49  ;;  %v3986_v20 = vrot.slane %v3984_v8, 1  ;;  %v4900_v8 = vld [vmem:[%s6624_s1 + $0x6] sm:$0x3] }
  0xfa   : > { %v5111_v33 = vpop.f32.mrf.mxu0 }
  0xfb   : > { %v5129_v42 = vpop.f32.mrf.mxu1  ;;  %v688_v58 = vadd.f32 %v6325_v57, %v623_v39  ;;  %v4890_v57 = vld [vmem:[%s6624_s1 + $0x2] sm:$0x3]  ;;  %v3987_v30 = vsel %vm216_vm3, %v3982_v19, %v3986_v20  ;;  %v3903_v39 = vrot.slane %v6365_v13, 1 }
  0xfc   : > { %v734_v43 = vpop.f32.mrf.mxu0  ;;  %5409 = vmatmul.mubr.msk.bf16.vlgmr.msra.gmra.mxu0 %vm229_vm2, %v3550_v25  ;;  %v3992_v15 = vsel %vm233_vm0, %v4890_v57, 0  ;;  %v4082_v42 = vrot.slane %v6398_v38, 1 }
  0xfd   : > { %v741_v47 = vadd.f32 %v734_v43, %v687_v40  ;;  %5419 = vmatpush3.bf16.msra.mxu0 %v3677_v35  ;;  %v6409_v48 = vpop.f32.mrf.mxu1  ;;  %5427 = vmatmul.mubr.msk.bf16.vlgmr.msra.gmra.mxu1 %vm229_vm2, %v3725_v36  ;;  %v4089_v36 = vsel %vm233_vm0, %v4895_v26, 0  ;;  %v4083_v43 = vrot.slane %v6419_v54, 1  ;;  %v3904_v52 = vsel %vm326_vm4, %v3902_v34, %v3903_v39 }
  0xfe   : > { %v5122_v51 = vpop.f32.mrf.mxu0  ;;  %5420 = vmatprep.mubr.msk.bf16.mxu0 %vm5634_vm1, %v5633_v1  ;;  %5430 = vmatprep.subr.bf16.mxu0 %v5633_v1 }
  0xff   : > { %v747_v56 = vmul.f32 %v6401_v41, %v741_v47  ;;  %v5140_v59 = vpop.f32.mrf.mxu1  ;;  %5437 = vmatpush3.bf16.msra.mxu1 %v3856_v45  ;;  %5438 = vmatprep.mubr.msk.bf16.mxu1 %vm5634_vm1, %v5633_v1  ;;  %v6486_v45 = vld [vmem:[%s5713_s30 + $0x68] ss:$0 sps:$4 sm:$0x11]  }
 0x100   : > { %v737_v60 = vpop.f32.mrf.mxu0  ;;  %5448 = vmatprep.subr.bf16.mxu1 %v5633_v1 }
 0x101   : > { %v753_v61 = vadd.f32 %v6405_v44, %v747_v56  ;;  %v742_v62 = vadd.f32 %v737_v60, %v688_v58  ;;  %v6429_v63 = vpop.f32.mrf.mxu1  ;;  %v4203_v58 = vshll.u32 %v6486_v45, 16 }
 0x102   : > { %v5123_v4 = vpop.f32.mrf.mxu0 }
 0x103   : > { %v755_v9 = vmax.f32 %v753_v61, 0.0  ;;  %v748_v10 = vmul.f32 %v6401_v41, %v742_v62  ;;  %v5141_v12 = vpop.f32.mrf.mxu1 }
 0x104   : > { %v870_v14 = vpop.f32.mrf.mxu0  ;;  %5421 = vmatmul.mubr.msk.bf16.vlgmr.msra.gmra.mxu0 %vm229_vm2, %v3672_v2 }
 0x105   : > { %757 = vst [vmem:[%s6439_s25] sm:$0xff] %v755_v9  ;;  %v754_v16 = vadd.f32 %v6405_v44, %v748_v10  ;;  %5431 = vmatpush3.bf16.msra.mxu0 %v3792_v3  ;;  %v1043_v17 = vpop.f32.mrf.mxu1  ;;  %5439 = vmatmul.mubr.msk.bf16.vlgmr.msra.gmra.mxu1 %vm229_vm2, %v3851_v5  ;;  %v871_v32 = vadd.f32 %v870_v14, %v6353_v11  ;;  %v3966_v11 = vld [vmem:[%s6624_s1] sm:$0x3]  ;;  %v4913_v14 = vld [vmem:[%s6624_s1 + $0xc] sm:$0x3] }
 0x106   : > { %v5134_v18 = vpop.f32.mrf.mxu0  ;;  %5432 = vmatprep.mubr.msk.bf16.mxu0 %vm5634_vm1, %v5633_v1  ;;  %5442 = vmatprep.subr.bf16.mxu0 %v5633_v1  ;;  %v4038_v53 = vsel %vm233_vm0, %v3966_v11, 0  ;;  %v5592_v11 = vld [vmem:[%s5713_s30 + $0x74] ss:$0 sps:$4 sm:$0x11]  }
 0x107   : > { %v756_v21 = vmax.f32 %v754_v16, 0.0  ;;  %v5152_v22 = vpop.f32.mrf.mxu1  ;;  %5449 = vmatpush3.bf16.msra.mxu1 %v3992_v15  ;;  %5450 = vmatprep.mubr.msk.bf16.mxu1 %vm5634_vm1, %v5633_v1  ;;  %v928_v47 = vadd.f32 %v6409_v48, %v871_v32  ;;  %v4084_v48 = vsel %vm326_vm4, %v4082_v42, %v4083_v43  ;;  %v4147_v16 = vsel %vm233_vm0, %v4900_v8, 0 }
 0x108   : > { %v873_v24 = vpop.f32.mrf.mxu0  ;;  %5460 = vmatprep.subr.bf16.mxu1 %v5633_v1  ;;  %v4326_v22 = vsel %vm233_vm0, %v4913_v14, 0 }
 0x109   : > { %758 = vst [vmem:[%s6439_s25 + $0x8] sm:$0xff] %v756_v21  ;;  %v6460_v25 = vpop.f32.mrf.mxu1  ;;  %v874_v13 = vadd.f32 %v873_v24, %v6387_v28  ;;  %v4903_v28 = vld [vmem:[%s6624_s1 + $0x8] sm:$0x3] }
 0x10a   : > { %v5135_v27 = vpop.f32.mrf.mxu0  ;;  %v4211_v62 = vsel %vm233_vm0, %v4903_v28, 0 }
 0x10b   : > { %v5153_v33 = vpop.f32.mrf.mxu1  ;;  %v929_v59 = vadd.f32 %v6429_v63, %v874_v13  ;;  %v4205_v63 = vrot.slane %v4203_v58, 1  ;;  %v4257_v13 = vrot.slane %v6468_v31, 1 }
 0x10c   : > { %v979_v35 = vpop.f32.mrf.mxu0  ;;  %5433 = vmatmul.mubr.msk.bf16.vlgmr.msra.gmra.mxu0 %vm229_vm2, %v6345_v0  ;;  %v4198_v0 = vshll.u32 %v6468_v31, 16 }
 0x10d   : > { %5443 = vmatpush3.bf16.msra.mxu0 %v3909_v29  ;;  %v1158_v37 = vpop.f32.mrf.mxu1  ;;  %5451 = vmatmul.mubr.msk.bf16.vlgmr.msra.gmra.mxu1 %vm229_vm2, %v3987_v30  ;;  %v986_v50 = vadd.f32 %v979_v35, %v928_v47  ;;  %v4258_v47 = vrot.slane %v6486_v45, 1 }
 0x10e   : > { %v5146_v40 = vpop.f32.mrf.mxu0  ;;  %5444 = vmatprep.mubr.msk.bf16.mxu0 %vm5634_vm1, %v5633_v1  ;;  %5454 = vmatprep.subr.bf16.mxu0 %v5633_v1  ;;  %v4200_v56 = vrot.slane %v4198_v0, 1 }
 0x10f   : > { %v5164_v46 = vpop.f32.mrf.mxu1  ;;  %5461 = vmatpush3.bf16.msra.mxu1 %v4089_v36  ;;  %5462 = vmatprep.mubr.msk.bf16.mxu1 %vm5634_vm1, %v5633_v1  ;;  %v1050_v3 = vadd.f32 %v1043_v17, %v986_v50  ;;  %v5591_v36 = vld [vmem:[%s5713_s30 + $0x6c] sm:$0xff]  }
 0x110   : > { %v982_v49 = vpop.f32.mrf.mxu0  ;;  %5472 = vmatprep.subr.bf16.mxu1 %v5633_v1  ;;  %v4201_v5 = vor.u32 %v4200_v56, %v4196_v55  ;;  %v4436_v28 = vrot.slane %v5591_v36, 1  ;;  %v4259_v56 = vsel %vm326_vm4, %v4257_v13, %v4258_v47 }
 0x111   : > { %v1161_v51 = vpop.f32.mrf.mxu1  ;;  %v987_v2 = vadd.f32 %v982_v49, %v929_v59 }
 0x112   : > { %v5147_v54 = vpop.f32.mrf.mxu0  ;;  %v4206_v17 = vsel %vm216_vm3, %v4201_v5, %v4205_v63 }
 0x113   : > { %v5165_v60 = vpop.f32.mrf.mxu1  ;;  %v1051_v10 = vadd.f32 %v6460_v25, %v987_v2 }
 0x114   : > { %v1096_v61 = vpop.f32.mrf.mxu0  ;;  %5445 = vmatmul.mubr.msk.bf16.vlgmr.msra.gmra.mxu0 %vm229_vm2, %v3904_v52  ;;  %v4377_v52 = vshll.u32 %v5591_v36, 16  ;;  %v4375_v60 = vshrl.u32 %v5591_v36, 16 }
 0x115   : > { %5455 = vmatpush3.bf16.msra.mxu0 %v4038_v53  ;;  %v1275_v57 = vpop.f32.mrf.mxu1  ;;  %5463 = vmatmul.mubr.msk.bf16.vlgmr.msra.gmra.mxu1 %vm229_vm2, %v4084_v48  ;;  %v1103_v6 = vadd.f32 %v1096_v61, %v1050_v3  ;;  %v4916_v48 = vld [vmem:[%s6624_s1 + $0xe] sm:$0x3] }
 0x116   : > { %v5158_v4 = vpop.f32.mrf.mxu0  ;;  %5456 = vmatprep.mubr.msk.bf16.mxu0 %vm5634_vm1, %v5633_v1  ;;  %5466 = vmatprep.subr.bf16.mxu0 %v5633_v1  ;;  %v4379_v61 = vrot.slane %v4377_v52, 1  ;;  %v4390_v3 = vsel %vm233_vm0, %v4916_v48, 0 }
 0x117   : > { %v5176_v7 = vpop.f32.mrf.mxu1  ;;  %5473 = vmatpush3.bf16.msra.mxu1 %v4211_v62  ;;  %5474 = vmatprep.mubr.msk.bf16.mxu1 %vm5634_vm1, %v5633_v1  ;;  %v1165_v19 = vadd.f32 %v1158_v37, %v1103_v6  ;;  %v4919_v37 = vld [vmem:[%s6624_s1 + $0x10] sm:$0x3]  ;;  %v4382_v62 = vshll.u32 %v5592_v11, 16 }
 0x118   : > { %v1099_v9 = vpop.f32.mrf.mxu0  ;;  %5484 = vmatprep.subr.bf16.mxu1 %v5633_v1  ;;  %v4443_v46 = vsel %vm233_vm0, %v4919_v37, 0  ;;  %v4380_v6 = vor.u32 %v4379_v61, %v4375_v60 }
 0x119   : > { %v1278_v12 = vpop.f32.mrf.mxu1  ;;  %v1104_v18 = vadd.f32 %v1099_v9, %v1051_v10  ;;  %v4384_v7 = vrot.slane %v4382_v62, 1 }
 0x11a   : > { %v5159_v15 = vpop.f32.mrf.mxu0 }
 0x11b   : > { %v5177_v20 = vpop.f32.mrf.mxu1  ;;  %v1166_v27 = vadd.f32 %v1161_v51, %v1104_v18  ;;  %v4385_v15 = vsel %vm216_vm3, %v4380_v6, %v4384_v7 }
 0x11c   : > { %v1222_v21 = vpop.f32.mrf.mxu0  ;;  %5457 = vmatmul.mubr.msk.bf16.vlgmr.msra.gmra.mxu0 %vm229_vm2, %v6398_v38  ;;  %v4906_v38 = vld [vmem:[%s6624_s1 + $0xa] sm:$0x3] }
 0x11d   : > { %v1229_v23 = vadd.f32 %v1222_v21, %v1165_v19  ;;  %5467 = vmatpush3.bf16.msra.mxu0 %v4147_v16  ;;  %v6524_v24 = vpop.f32.mrf.mxu1  ;;  %5475 = vmatmul.mubr.msk.bf16.vlgmr.msra.gmra.mxu1 %vm229_vm2, %v4206_v17  ;;  %v4264_v39 = vsel %vm233_vm0, %v4906_v38, 0 }
 0x11e   : > { %v5170_v25 = vpop.f32.mrf.mxu0  ;;  %5468 = vmatprep.mubr.msk.bf16.mxu0 %vm5634_vm1, %v5633_v1  ;;  %5478 = vmatprep.subr.bf16.mxu0 %v5633_v1 }
 0x11f   : > { %v1282_v26 = vadd.f32 %v1275_v57, %v1229_v23  ;;  %v5188_v29 = vpop.f32.mrf.mxu1  ;;  %5485 = vmatpush3.bf16.msra.mxu1 %v4326_v22  ;;  %5486 = vmatprep.mubr.msk.bf16.mxu1 %vm5634_vm1, %v5633_v1 }
 0x120   : > { %v1225_v30 = vpop.f32.mrf.mxu0  ;;  %5496 = vmatprep.subr.bf16.mxu1 %v5633_v1 }
 0x121   : > { %v1284_v32 = vmul.f32 %v1282_v26, %v6401_v41  ;;  %v1230_v33 = vadd.f32 %v1225_v30, %v1166_v27  ;;  %v1407_v35 = vpop.f32.mrf.mxu1 }
 0x122   : > { %v5171_v34 = vpop.f32.mrf.mxu0 }
 0x123   : > { %v1286_v40 = vadd.f32 %v1284_v32, %v6405_v44  ;;  %v1283_v42 = vadd.f32 %v1278_v12, %v1230_v33  ;;  %v5189_v43 = vpop.f32.mrf.mxu1 }
 0x124   : > { %v1358_v0 = vpop.f32.mrf.mxu0  ;;  %5469 = vmatmul.mubr.msk.bf16.vlgmr.msra.gmra.mxu0 %vm229_vm2, %v6468_v31  ;;  %v4437_v31 = vrot.slane %v5592_v11, 1 }
 0x125   : > { %v1288_v49 = vmax.f32 %v1286_v40, 0.0  ;;  %v1285_v50 = vmul.f32 %v1283_v42, %v6401_v41  ;;  %5479 = vmatpush3.bf16.msra.mxu0 %v4264_v39  ;;  %v1513_v51 = vpop.f32.mrf.mxu1  ;;  %5487 = vmatmul.mubr.msk.bf16.vlgmr.msra.gmra.mxu1 %vm229_vm2, %v5591_v36  ;;  %v1405_v12 = vadd.f32 %v6524_v24, %v1358_v0 }
 0x126   : > { %v5182_v53 = vpop.f32.mrf.mxu0  ;;  %5480 = vmatprep.mubr.msk.bf16.mxu0 %vm5634_vm1, %v5633_v1  ;;  %5490 = vmatprep.subr.bf16.mxu0 %v5633_v1  ;;  %v4438_v57 = vsel %vm326_vm4, %v4436_v28, %v4437_v31 }
 0x127   : > { %4705 = vst [vmem:[%s6439_s25 + $0x10] sm:$0xff] %v1288_v49  ;;  %v1287_v45 = vadd.f32 %v1285_v50, %v6405_v44  ;;  %v5200_v54 = vpop.f32.mrf.mxu1  ;;  %5497 = vmatpush3.bf16.msra.mxu1 %v4443_v46  ;;  %5498 = vmatprep.mubr.msk.bf16.mxu1 %vm5634_vm1, %v5633_v1 }
 0x128   : > { %v1361_v55 = vpop.f32.mrf.mxu0 }
 0x129   : > { %v1289_v58 = vmax.f32 %v1287_v45, 0.0  ;;  %v1516_v59 = vpop.f32.mrf.mxu1  ;;  %v1408_v20 = vadd.f32 %v1407_v35, %v1361_v55 }
 0x12a   : > { %v5183_v2 = vpop.f32.mrf.mxu0 }
 0x12b   : > { %4706 = vst [vmem:[%s6439_s25 + $0x18] sm:$0xff] %v1289_v58  ;;  %v5201_v4 = vpop.f32.mrf.mxu1 }
 0x12c   : > { %v1455_v5 = vpop.f32.mrf.mxu0  ;;  %5481 = vmatmul.mubr.msk.bf16.vlgmr.msra.gmra.mxu0 %vm229_vm2, %v4259_v56 }
 0x12d   : > { %5491 = vmatpush3.bf16.msra.mxu0 %v4390_v3  ;;  %v1630_v63 = vpop.f32.mrf.mxu1  ;;  %5499 = vmatmul.mubr.msk.bf16.vlgmr.msra.gmra.mxu1 %vm229_vm2, %v4438_v57  ;;  %v1462_v17 = vadd.f32 %v1455_v5, %v1405_v12 }
 0x12e   : > { %v5194_v8 = vpop.f32.mrf.mxu0  ;;  %5492 = vmatprep.mubr.msk.bf16.mxu0 %vm5634_vm1, %v5633_v1 }
 0x12f   : > { %v5212_v9 = vpop.f32.mrf.mxu1  ;;  %v1520_v25 = vadd.f32 %v1513_v51, %v1462_v17 }
 0x130   : > { %v1458_v10 = vpop.f32.mrf.mxu0 }
 0x131   : > { %v1633_v14 = vpop.f32.mrf.mxu1  ;;  %v1463_v23 = vadd.f32 %v1458_v10, %v1408_v20 }
 0x132   : > { %v5195_v16 = vpop.f32.mrf.mxu0 }
 0x133   : > { %v5213_v18 = vpop.f32.mrf.mxu1  ;;  %v1521_v24 = vadd.f32 %v1516_v59, %v1463_v23 }
 0x134   : > { %v1577_v19 = vpop.f32.mrf.mxu0  ;;  %5493 = vmatmul.mubr.msk.bf16.vlgmr.msra.gmra.mxu0 %vm229_vm2, %v4385_v15 }
 0x135   : > { %v1756_v21 = vpop.f32.mrf.mxu1  ;;  %v1584_v27 = vadd.f32 %v1577_v19, %v1520_v25 }
 0x136   : > { %v5206_v22 = vpop.f32.mrf.mxu0 }
 0x137   : > { %v5224_v26 = vpop.f32.mrf.mxu1  ;;  %v1637_v36 = vadd.f32 %v1630_v63, %v1584_v27 }
 0x138   : > { %v1580_v1 = vpop.f32.mrf.mxu0 }
 0x139   : > { %v1759_v29 = vpop.f32.mrf.mxu1  ;;  %v1585_v33 = vadd.f32 %v1580_v1, %v1521_v24 }
 0x13a   : > { %v5207_v38 = vpop.f32.mrf.mxu0 }
 0x13b   : > { %v5225_v30 = vpop.f32.mrf.mxu1  ;;  %v1638_v35 = vadd.f32 %v1633_v14, %v1585_v33 }
 0x13c   : > { %v1692_v32 = vpop.f32.mrf.mxu0 }
 0x13d   : > { %v1892_v37 = vpop.f32.mrf.mxu1  ;;  %v1699_v39 = vadd.f32 %v1692_v32, %v1637_v36 }
 0x13e   : > { %v5218_v34 = vpop.f32.mrf.mxu0 }
 0x13f   : > { %v5236_v11 = vpop.f32.mrf.mxu1  ;;  %v1763_v13 = vadd.f32 %v1756_v21, %v1699_v39 }
 0x140   : > { %v1695_v40 = vpop.f32.mrf.mxu0 }
 0x141   : > { %v1895_v42 = vpop.f32.mrf.mxu1  ;;  %v1700_v0 = vadd.f32 %v1695_v40, %v1638_v35 }
 0x142   : > { %v5219_v43 = vpop.f32.mrf.mxu0 }
 0x143   : > { %v5237_v47 = vpop.f32.mrf.mxu1  ;;  %v1764_v53 = vadd.f32 %v1759_v29, %v1700_v0 }
 0x144   : > { %v1809_v46 = vpop.f32.mrf.mxu0 }
 0x145   : > { %v1816_v49 = vadd.f32 %v1809_v46, %v1763_v13  ;;  %v1989_v50 = vpop.f32.mrf.mxu1 }
 0x146   : > { %v5230_v51 = vpop.f32.mrf.mxu0 }
 0x147   : > { %v1818_v52 = vmul.f32 %v1816_v49, %v6401_v41  ;;  %v5248_v28 = vpop.f32.mrf.mxu1 }
 0x148   : > { %v1812_v31 = vpop.f32.mrf.mxu0 }
 0x149   : > { %v1820_v45 = vadd.f32 %v1818_v52, %v6405_v44  ;;  %v1817_v54 = vadd.f32 %v1812_v31, %v1764_v53  ;;  %v1992_v48 = vpop.f32.mrf.mxu1 }
 0x14a   : > { %v5231_v55 = vpop.f32.mrf.mxu0 }
 0x14b   : > { %v1822_v56 = vmax.f32 %v1820_v45, 0.0  ;;  %v1819_v58 = vmul.f32 %v1817_v54, %v6401_v41  ;;  %v5249_v59 = vpop.f32.mrf.mxu1 }
 0x14c   : > { %v1938_v60 = vpop.f32.mrf.mxu0 }
 0x14d   : > { %4741 = vst [vmem:[%s6439_s25 + $0x20] sm:$0xff] %v1822_v56  ;;  %v1821_v61 = vadd.f32 %v1819_v58, %v6405_v44  ;;  %v2111_v62 = vpop.f32.mrf.mxu1  ;;  %v1939_v6 = vadd.f32 %v1938_v60, %v1892_v37 }
 0x14e   : > { %v5242_v2 = vpop.f32.mrf.mxu0 }
 0x14f   : > { %v1823_v3 = vmax.f32 %v1821_v61, 0.0  ;;  %v5260_v57 = vpop.f32.mrf.mxu1  ;;  %v1996_v14 = vadd.f32 %v1989_v50, %v1939_v6 }
 0x150   : > { %v1941_v4 = vpop.f32.mrf.mxu0 }
 0x151   : > { %4742 = vst [vmem:[%s6439_s25 + $0x28] sm:$0xff] %v1823_v3  ;;  %v2114_v5 = vpop.f32.mrf.mxu1  ;;  %v1942_v12 = vadd.f32 %v1941_v4, %v1895_v42 }
 0x152   : > { %v5243_v63 = vpop.f32.mrf.mxu0 }
 0x153   : > { %v5261_v7 = vpop.f32.mrf.mxu1  ;;  %v1997_v20 = vadd.f32 %v1992_v48, %v1942_v12 }
 0x154   : > { %v2047_v8 = vpop.f32.mrf.mxu0 }
 0x155   : > { %v2226_v9 = vpop.f32.mrf.mxu1  ;;  %v2054_v17 = vadd.f32 %v2047_v8, %v1996_v14 }
 0x156   : > { %v5254_v10 = vpop.f32.mrf.mxu0 }
 0x157   : > { %v5272_v15 = vpop.f32.mrf.mxu1  ;;  %v2118_v25 = vadd.f32 %v2111_v62, %v2054_v17 }
 0x158   : > { %v2050_v16 = vpop.f32.mrf.mxu0 }
 0x159   : > { %v2229_v18 = vpop.f32.mrf.mxu1  ;;  %v2055_v23 = vadd.f32 %v2050_v16, %v1997_v20 }
 0x15a   : > { %v5255_v19 = vpop.f32.mrf.mxu0 }
 0x15b   : > { %v5273_v21 = vpop.f32.mrf.mxu1  ;;  %v2119_v24 = vadd.f32 %v2114_v5, %v2055_v23 }
 0x15c   : > { %v2164_v22 = vpop.f32.mrf.mxu0 }
 0x15d   : > { %v2343_v26 = vpop.f32.mrf.mxu1  ;;  %v2171_v27 = vadd.f32 %v2164_v22, %v2118_v25 }
 0x15e   : > { %v5266_v1 = vpop.f32.mrf.mxu0 }
 0x15f   : > { %v5284_v29 = vpop.f32.mrf.mxu1  ;;  %v2233_v36 = vadd.f32 %v2226_v9, %v2171_v27 }
 0x160   : > { %v2167_v38 = vpop.f32.mrf.mxu0 }
 0x161   : > { %v2346_v30 = vpop.f32.mrf.mxu1  ;;  %v2172_v33 = vadd.f32 %v2167_v38, %v2119_v24 }
 0x162   : > { %v5267_v32 = vpop.f32.mrf.mxu0 }
 0x163   : > { %v5285_v37 = vpop.f32.mrf.mxu1  ;;  %v2234_v42 = vadd.f32 %v2229_v18, %v2172_v33 }
 0x164   : > { %v2290_v34 = vpop.f32.mrf.mxu0 }
 0x165   : > { %v2297_v39 = vadd.f32 %v2290_v34, %v2233_v36  ;;  %v2472_v11 = vpop.f32.mrf.mxu1 }
 0x166   : > { %v5278_v40 = vpop.f32.mrf.mxu0 }
 0x167   : > { %v2350_v35 = vadd.f32 %v2343_v26, %v2297_v39  ;;  %v5296_v43 = vpop.f32.mrf.mxu1 }
 0x168   : > { %v2293_v0 = vpop.f32.mrf.mxu0 }
 0x169   : > { %v2352_v13 = vmul.f32 %v2350_v35, %v6401_v41  ;;  %v2298_v47 = vadd.f32 %v2293_v0, %v2234_v42  ;;  %v2475_v46 = vpop.f32.mrf.mxu1 }
 0x16a   : > { %v5279_v49 = vpop.f32.mrf.mxu0 }
 0x16b   : > { %v2354_v50 = vadd.f32 %v2352_v13, %v6405_v44  ;;  %v2351_v51 = vadd.f32 %v2346_v30, %v2298_v47  ;;  %v5297_v52 = vpop.f32.mrf.mxu1 }
 0x16c   : > { %v2426_v53 = vpop.f32.mrf.mxu0 }
 0x16d   : > { %v2356_v28 = vmax.f32 %v2354_v50, 0.0  ;;  %v2353_v31 = vmul.f32 %v2351_v51, %v6401_v41  ;;  %v2581_v45 = vpop.f32.mrf.mxu1  ;;  %v2473_v5 = vadd.f32 %v2472_v11, %v2426_v53 }
 0x16e   : > { %v5290_v54 = vpop.f32.mrf.mxu0 }
 0x16f   : > { %4777 = vst [vmem:[%s6439_s25 + $0x30] sm:$0xff] %v2356_v28  ;;  %v2355_v48 = vadd.f32 %v2353_v31, %v6405_v44  ;;  %v5308_v55 = vpop.f32.mrf.mxu1 }
 0x170   : > { %v2429_v56 = vpop.f32.mrf.mxu0 }
 0x171   : > { %v2357_v58 = vmax.f32 %v2355_v48, 0.0  ;;  %v2584_v59 = vpop.f32.mrf.mxu1  ;;  %v2476_v10 = vadd.f32 %v2475_v46, %v2429_v56 }
 0x172   : > { %v5291_v60 = vpop.f32.mrf.mxu0 }
 0x173   : > { %4778 = vst [vmem:[%s6439_s25 + $0x38] sm:$0xff] %v2357_v58  ;;  %v5309_v61 = vpop.f32.mrf.mxu1 }
 0x174   : > { %v2523_v62 = vpop.f32.mrf.mxu0 }
 0x175   : > { %v2698_v2 = vpop.f32.mrf.mxu1  ;;  %v2530_v7 = vadd.f32 %v2523_v62, %v2473_v5 }
 0x176   : > { %v5302_v3 = vpop.f32.mrf.mxu0 }
 0x177   : > { %v5320_v57 = vpop.f32.mrf.mxu1  ;;  %v2588_v16 = vadd.f32 %v2581_v45, %v2530_v7 }
 0x178   : > { %v2526_v4 = vpop.f32.mrf.mxu0 }
 0x179   : > { %v2701_v63 = vpop.f32.mrf.mxu1  ;;  %v2531_v15 = vadd.f32 %v2526_v4, %v2476_v10 }
 0x17a   : > { %v5303_v6 = vpop.f32.mrf.mxu0 }
 0x17b   : > { %v5321_v8 = vpop.f32.mrf.mxu1  ;;  %v2589_v22 = vadd.f32 %v2584_v59, %v2531_v15 }
 0x17c   : > { %v2645_v9 = vpop.f32.mrf.mxu0 }
 0x17d   : > { %v2824_v12 = vpop.f32.mrf.mxu1  ;;  %v2652_v19 = vadd.f32 %v2645_v9, %v2588_v16 }
 0x17e   : > { %v5314_v14 = vpop.f32.mrf.mxu0 }
 0x17f   : > { %v5332_v17 = vpop.f32.mrf.mxu1  ;;  %v2705_v1 = vadd.f32 %v2698_v2, %v2652_v19 }
 0x180   : > { %v2648_v18 = vpop.f32.mrf.mxu0 }
 0x181   : > { %v2827_v20 = vpop.f32.mrf.mxu1  ;;  %v2653_v26 = vadd.f32 %v2648_v18, %v2589_v22 }
 0x182   : > { %v5315_v21 = vpop.f32.mrf.mxu0 }
 0x183   : > { %v5333_v23 = vpop.f32.mrf.mxu1  ;;  %v2706_v32 = vadd.f32 %v2701_v63, %v2653_v26 }
 0x184   : > { %v2760_v25 = vpop.f32.mrf.mxu0 }
 0x185   : > { %v2960_v27 = vpop.f32.mrf.mxu1  ;;  %v2767_v38 = vadd.f32 %v2760_v25, %v2705_v1 }
 0x186   : > { %v5326_v29 = vpop.f32.mrf.mxu0 }
 0x187   : > { %v5344_v24 = vpop.f32.mrf.mxu1  ;;  %v2831_v34 = vadd.f32 %v2824_v12, %v2767_v38 }
 0x188   : > { %v2763_v30 = vpop.f32.mrf.mxu0 }
 0x189   : > { %v2963_v33 = vpop.f32.mrf.mxu1  ;;  %v2768_v37 = vadd.f32 %v2763_v30, %v2706_v32 }
 0x18a   : > { %v5327_v36 = vpop.f32.mrf.mxu0 }
 0x18b   : > { %v5345_v39 = vpop.f32.mrf.mxu1  ;;  %v2832_v0 = vadd.f32 %v2827_v20, %v2768_v37 }
 0x18c   : > { %v2877_v11 = vpop.f32.mrf.mxu0 }
 0x18d   : > { %v2884_v40 = vadd.f32 %v2877_v11, %v2831_v34  ;;  %v3057_v35 = vpop.f32.mrf.mxu1 }
 0x18e   : > { %v5338_v42 = vpop.f32.mrf.mxu0 }
 0x18f   : > { %v2886_v43 = vmul.f32 %v2884_v40, %v6401_v41  ;;  %v5356_v13 = vpop.f32.mrf.mxu1 }
 0x190   : > { %v2880_v47 = vpop.f32.mrf.mxu0 }
 0x191   : > { %v2888_v46 = vadd.f32 %v2886_v43, %v6405_v44  ;;  %v2885_v49 = vadd.f32 %v2880_v47, %v2832_v0  ;;  %v3060_v50 = vpop.f32.mrf.mxu1 }
 0x192   : > { %v5339_v51 = vpop.f32.mrf.mxu0 }
 0x193   : > { %v2890_v52 = vmax.f32 %v2888_v46, 0.0  ;;  %v2887_v53 = vmul.f32 %v2885_v49, %v6401_v41  ;;  %v5357_v28 = vpop.f32.mrf.mxu1 }
 0x194   : > { %v3006_v31 = vpop.f32.mrf.mxu0 }
 0x195   : > { %4813 = vst [vmem:[%s6439_s25 + $0x40] sm:$0xff] %v2890_v52  ;;  %v2889_v45 = vadd.f32 %v2887_v53, %v6405_v44  ;;  %v3179_v54 = vpop.f32.mrf.mxu1  ;;  %v3007_v61 = vadd.f32 %v3006_v31, %v2960_v27 }
 0x196   : > { %v5350_v48 = vpop.f32.mrf.mxu0 }
 0x197   : > { %v2891_v55 = vmax.f32 %v2889_v45, 0.0  ;;  %v5368_v56 = vpop.f32.mrf.mxu1  ;;  %v3064_v5 = vadd.f32 %v3057_v35, %v3007_v61 }
 0x198   : > { %v3009_v58 = vpop.f32.mrf.mxu0 }
 0x199   : > { %4814 = vst [vmem:[%s6439_s25 + $0x48] sm:$0xff] %v2891_v55  ;;  %v3182_v59 = vpop.f32.mrf.mxu1  ;;  %v3010_v4 = vadd.f32 %v3009_v58, %v2963_v33 }
 0x19a   : > { %v5351_v60 = vpop.f32.mrf.mxu0 }
 0x19b   : > { %v5369_v62 = vpop.f32.mrf.mxu1  ;;  %v3065_v10 = vadd.f32 %v3060_v50, %v3010_v4 }
 0x19c   : > { %v3115_v2 = vpop.f32.mrf.mxu0 }
 0x19d   : > { %v3294_v3 = vpop.f32.mrf.mxu1  ;;  %v3122_v7 = vadd.f32 %v3115_v2, %v3064_v5 }
 0x19e   : > { %v5362_v57 = vpop.f32.mrf.mxu0 }
 0x19f   : > { %v5380_v63 = vpop.f32.mrf.mxu1  ;;  %v3186_v16 = vadd.f32 %v3179_v54, %v3122_v7 }
 0x1a0   : > { %v3118_v6 = vpop.f32.mrf.mxu0 }
 0x1a1   : > { %v3297_v8 = vpop.f32.mrf.mxu1  ;;  %v3123_v15 = vadd.f32 %v3118_v6, %v3065_v10 }
 0x1a2   : > { %v5363_v9 = vpop.f32.mrf.mxu0 }
 0x1a3   : > { %v5381_v12 = vpop.f32.mrf.mxu1  ;;  %v3187_v22 = vadd.f32 %v3182_v59, %v3123_v15 }
 0x1a4   : > { %v3232_v14 = vpop.f32.mrf.mxu0 }
 0x1a5   : > { %v3411_v17 = vpop.f32.mrf.mxu1  ;;  %v3239_v19 = vadd.f32 %v3232_v14, %v3186_v16 }
 0x1a6   : > { %v5374_v18 = vpop.f32.mrf.mxu0 }
 0x1a7   : > { %v5392_v20 = vpop.f32.mrf.mxu1  ;;  %v3301_v1 = vadd.f32 %v3294_v3, %v3239_v19 }
 0x1a8   : > { %v3235_v21 = vpop.f32.mrf.mxu0 }
 0x1a9   : > { %v3414_v23 = vpop.f32.mrf.mxu1  ;;  %v3240_v26 = vadd.f32 %v3235_v21, %v3187_v22 }
 0x1aa   : > { %v5375_v25 = vpop.f32.mrf.mxu0 }
 0x1ab   : > { %v5393_v27 = vpop.f32.mrf.mxu1  ;;  %v3302_v33 = vadd.f32 %v3297_v8, %v3240_v26 }
 0x1ac   : > { %v3358_v29 = vpop.f32.mrf.mxu0 }
 0x1ad   : > { %v3365_v38 = vadd.f32 %v3358_v29, %v3301_v1  ;;  %v3540_v24 = vpop.f32.mrf.mxu1 }
 0x1ae   : > { %v5386_v30 = vpop.f32.mrf.mxu0 }
 0x1af   : > { %v3418_v32 = vadd.f32 %v3411_v17, %v3365_v38  ;;  %v5404_v36 = vpop.f32.mrf.mxu1 }
 0x1b0   : > { %v3361_v37 = vpop.f32.mrf.mxu0 }
 0x1b1   : > { %v3420_v34 = vmul.f32 %v3418_v32, %v6401_v41  ;;  %v3366_v39 = vadd.f32 %v3361_v37, %v3302_v33  ;;  %v3543_v11 = vpop.f32.mrf.mxu1 }
 0x1b2   : > { %v5387_v40 = vpop.f32.mrf.mxu0 }
 0x1b3   : > { %v3422_v35 = vadd.f32 %v3420_v34, %v6405_v44  ;;  %v3419_v42 = vadd.f32 %v3414_v23, %v3366_v39  ;;  %v5405_v43 = vpop.f32.mrf.mxu1 }
 0x1b4   : > { %v3494_v0 = vpop.f32.mrf.mxu0 }
 0x1b5   : > { %v3424_v13 = vmax.f32 %v3422_v35, 0.0  ;;  %v3421_v47 = vmul.f32 %v3419_v42, %v6401_v41  ;;  %v3649_v46 = vpop.f32.mrf.mxu1  ;;  %v3541_v59 = vadd.f32 %v3540_v24, %v3494_v0 }
 0x1b6   : > { %v5398_v49 = vpop.f32.mrf.mxu0 }
 0x1b7   : > { %4849 = vst [vmem:[%s6439_s25 + $0x50] sm:$0xff] %v3424_v13  ;;  %v3423_v50 = vadd.f32 %v3421_v47, %v6405_v44  ;;  %v5416_v51 = vpop.f32.mrf.mxu1 }
 0x1b8   : > { %v3497_v52 = vpop.f32.mrf.mxu0 }
 0x1b9   : > { %v3425_v53 = vmax.f32 %v3423_v50, 0.0  ;;  %v3652_v28 = vpop.f32.mrf.mxu1  ;;  %v3544_v57 = vadd.f32 %v3543_v11, %v3497_v52 }
 0x1ba   : > { %v5399_v31 = vpop.f32.mrf.mxu0 }
 0x1bb   : > { %4850 = vst [vmem:[%s6439_s25 + $0x58] sm:$0xff] %v3425_v53  ;;  %v5417_v45 = vpop.f32.mrf.mxu1 }
 0x1bc   : > { %v3591_v54 = vpop.f32.mrf.mxu0 }
 0x1bd   : > { %v3766_v48 = vpop.f32.mrf.mxu1  ;;  %v3598_v62 = vadd.f32 %v3591_v54, %v3541_v59 }
 0x1be   : > { %v5410_v55 = vpop.f32.mrf.mxu0 }
 0x1bf   : > { %v5428_v56 = vpop.f32.mrf.mxu1  ;;  %v3656_v6 = vadd.f32 %v3649_v46, %v3598_v62 }
 0x1c0   : > { %v3594_v58 = vpop.f32.mrf.mxu0 }
 0x1c1   : > { %v3769_v60 = vpop.f32.mrf.mxu1  ;;  %v3599_v63 = vadd.f32 %v3594_v58, %v3544_v57 }
 0x1c2   : > { %v5411_v61 = vpop.f32.mrf.mxu0 }
 0x1c3   : > { %v5429_v2 = vpop.f32.mrf.mxu1  ;;  %v3657_v14 = vadd.f32 %v3652_v28, %v3599_v63 }
 0x1c4   : > { %v3713_v3 = vpop.f32.mrf.mxu0 }
 0x1c5   : > { %v3892_v4 = vpop.f32.mrf.mxu1  ;;  %v3720_v9 = vadd.f32 %v3713_v3, %v3656_v6 }
 0x1c6   : > { %v5422_v5 = vpop.f32.mrf.mxu0 }
 0x1c7   : > { %v5440_v7 = vpop.f32.mrf.mxu1  ;;  %v3773_v18 = vadd.f32 %v3766_v48, %v3720_v9 }
 0x1c8   : > { %v3716_v8 = vpop.f32.mrf.mxu0 }
 0x1c9   : > { %v3895_v10 = vpop.f32.mrf.mxu1  ;;  %v3721_v17 = vadd.f32 %v3716_v8, %v3657_v14 }
 0x1ca   : > { %v5423_v12 = vpop.f32.mrf.mxu0 }
 0x1cb   : > { %v5441_v15 = vpop.f32.mrf.mxu1  ;;  %v3774_v25 = vadd.f32 %v3769_v60, %v3721_v17 }
 0x1cc   : > { %v3828_v16 = vpop.f32.mrf.mxu0 }
 0x1cd   : > { %v4028_v19 = vpop.f32.mrf.mxu1  ;;  %v3835_v21 = vadd.f32 %v3828_v16, %v3773_v18 }
 0x1ce   : > { %v5434_v20 = vpop.f32.mrf.mxu0 }
 0x1cf   : > { %v5452_v22 = vpop.f32.mrf.mxu1  ;;  %v3899_v29 = vadd.f32 %v3892_v4, %v3835_v21 }
 0x1d0   : > { %v3831_v23 = vpop.f32.mrf.mxu0 }
 0x1d1   : > { %v4031_v26 = vpop.f32.mrf.mxu1  ;;  %v3836_v27 = vadd.f32 %v3831_v23, %v3774_v25 }
 0x1d2   : > { %v5435_v1 = vpop.f32.mrf.mxu0 }
 0x1d3   : > { %v5453_v38 = vpop.f32.mrf.mxu1  ;;  %v3900_v37 = vadd.f32 %v3895_v10, %v3836_v27 }
 0x1d4   : > { %v3945_v24 = vpop.f32.mrf.mxu0 }
 0x1d5   : > { %v3952_v30 = vadd.f32 %v3945_v24, %v3899_v29  ;;  %v4125_v32 = vpop.f32.mrf.mxu1 }
 0x1d6   : > { %v5446_v33 = vpop.f32.mrf.mxu0 }
 0x1d7   : > { %v3954_v36 = vmul.f32 %v3952_v30, %v6401_v41  ;;  %v5464_v34 = vpop.f32.mrf.mxu1 }
 0x1d8   : > { %v3948_v39 = vpop.f32.mrf.mxu0 }
 0x1d9   : > { %v3956_v11 = vadd.f32 %v3954_v36, %v6405_v44  ;;  %v3953_v40 = vadd.f32 %v3948_v39, %v3900_v37  ;;  %v4128_v35 = vpop.f32.mrf.mxu1 }
 0x1da   : > { %v5447_v42 = vpop.f32.mrf.mxu0 }
 0x1db   : > { %v3958_v43 = vmax.f32 %v3956_v11, 0.0  ;;  %v3955_v0 = vmul.f32 %v3953_v40, %v6401_v41  ;;  %v5465_v13 = vpop.f32.mrf.mxu1 }
 0x1dc   : > { %v4074_v47 = vpop.f32.mrf.mxu0 }
 0x1dd   : > { %4885 = vst [vmem:[%s6439_s25 + $0x60] sm:$0xff] %v3958_v43  ;;  %v3957_v46 = vadd.f32 %v3955_v0, %v6405_v44  ;;  %v4247_v49 = vpop.f32.mrf.mxu1  ;;  %v4075_v45 = vadd.f32 %v4074_v47, %v4028_v19 }
 0x1de   : > { %v5458_v50 = vpop.f32.mrf.mxu0 }
 0x1df   : > { %v3959_v51 = vmax.f32 %v3957_v46, 0.0  ;;  %v5476_v52 = vpop.f32.mrf.mxu1  ;;  %v4132_v59 = vadd.f32 %v4125_v32, %v4075_v45 }
 0x1e0   : > { %v4077_v53 = vpop.f32.mrf.mxu0 }
 0x1e1   : > { %4886 = vst [vmem:[%s6439_s25 + $0x68] sm:$0xff] %v3959_v51  ;;  %v4250_v28 = vpop.f32.mrf.mxu1  ;;  %v4078_v58 = vadd.f32 %v4077_v53, %v4031_v26 }
 0x1e2   : > { %v5459_v31 = vpop.f32.mrf.mxu0 }
 0x1e3   : > { %v5477_v54 = vpop.f32.mrf.mxu1  ;;  %v4133_v57 = vadd.f32 %v4128_v35, %v4078_v58 }
 0x1e4   : > { %v4183_v48 = vpop.f32.mrf.mxu0 }
 0x1e5   : > { %v4362_v55 = vpop.f32.mrf.mxu1  ;;  %v4190_v62 = vadd.f32 %v4183_v48, %v4132_v59 }
 0x1e6   : > { %v5470_v56 = vpop.f32.mrf.mxu0 }
 0x1e7   : > { %v5488_v60 = vpop.f32.mrf.mxu1  ;;  %v4254_v6 = vadd.f32 %v4247_v49, %v4190_v62 }
 0x1e8   : > { %v4186_v61 = vpop.f32.mrf.mxu0 }
 0x1e9   : > { %v4365_v2 = vpop.f32.mrf.mxu1  ;;  %v4191_v63 = vadd.f32 %v4186_v61, %v4133_v57 }
 0x1ea   : > { %v5471_v3 = vpop.f32.mrf.mxu0 }
 0x1eb   : > { %v5489_v4 = vpop.f32.mrf.mxu1  ;;  %v4255_v14 = vadd.f32 %v4250_v28, %v4191_v63 }
 0x1ec   : > { %v4300_v5 = vpop.f32.mrf.mxu0 }
 0x1ed   : > { %v4479_v7 = vpop.f32.mrf.mxu1  ;;  %v4307_v9 = vadd.f32 %v4300_v5, %v4254_v6 }
 0x1ee   : > { %v5482_v8 = vpop.f32.mrf.mxu0 }
 0x1ef   : > { %v5500_v10 = vpop.f32.mrf.mxu1  ;;  %v4369_v18 = vadd.f32 %v4362_v55, %v4307_v9 }
 0x1f0   : > { %v4303_v12 = vpop.f32.mrf.mxu0 }
 0x1f1   : > { %v4482_v15 = vpop.f32.mrf.mxu1  ;;  %v4308_v17 = vadd.f32 %v4303_v12, %v4255_v14 }
 0x1f2   : > { %v5483_v16 = vpop.f32.mrf.mxu0 }
 0x1f3   : > { %v5501_v19 = vpop.f32.mrf.mxu1  ;;  %v4370_v25 = vadd.f32 %v4365_v2, %v4308_v17 }
 0x1f4   : > { %v4426_v20 = vpop.f32.mrf.mxu0 }
 0x1f5   : > { %v4433_v21 = vadd.f32 %v4426_v20, %v4369_v18 }
 0x1f6   : > { %v5494_v22 = vpop.f32.mrf.mxu0 }
 0x1f7   : > { %v4486_v23 = vadd.f32 %v4479_v7, %v4433_v21 }
 0x1f8   : > { %v4429_v26 = vpop.f32.mrf.mxu0 }
 0x1f9   : > { %v4488_v1 = vmul.f32 %v4486_v23, %v6401_v41  ;;  %v4434_v27 = vadd.f32 %v4429_v26, %v4370_v25 }
 0x1fa   : > { %v5495_v29 = vpop.f32.mrf.mxu0 }
 0x1fb   : > { %v4490_v38 = vadd.f32 %v4488_v1, %v6405_v44  ;;  %v4487_v24 = vadd.f32 %v4482_v15, %v4434_v27 }
 0x1fd   : > { %v4492_v30 = vmax.f32 %v4490_v38, 0.0  ;;  %v4489_v32 = vmul.f32 %v4487_v24, %v6401_v41 }
 0x1ff   : > { %4921 = vst [vmem:[%s6439_s25 + $0x70] sm:$0xff] %v4492_v30  ;;  %v4491_v33 = vadd.f32 %v4489_v32, %v6405_v44 }
 0x201   : > { %v4493_v36 = vmax.f32 %v4491_v33, 0.0 }
 0x203   : > { %4922 = vst [vmem:[%s6439_s25 + $0x78] sm:$0xff] %v4493_v36 }
 0x204 PF: > { %s13_s16 = sadd.s32 1, %s5631_s16   ;;  %s6628_s12 = smov %s5623_s14 }
 0x205   : > { %p10_p7 = scmp.ge.s32.totalorder %s13_s16, 6   ;;  %s6629_s13 = smov %s5627_s15 }
 0x206   : > { %s6630_s14 = smov %s6633_s17  ;;  %s6631_s15 = smov %s6637_s18 }
 0x207   :  { %12 = sbr.rel (!%p10_p7) target bundleno = 3 (0x3), region = 87 }

</bundles_post_ra>
